<compile_context>
chip_gen: v6e
topology: v6e:2x2x1
jax: 0.10.0
libtpu: 0.0.40
codegen_flags: <defaults>
</compile_context>

<pallas_src>
import functools

import jax
import jax.numpy as jnp
from jax import lax
from jax.experimental import pallas as pl
from jax.experimental.pallas import tpu as pltpu

_LN_EPS = 1e-5                 # PyTorch nn.LayerNorm default eps
_MAX_TILE_B = 1024             # byte-targeted batch-tile cap (rows)
_FALLBACK_VMEM = 32 * 1024 * 1024


# --------------------------------------------------------------------------- helpers
def _sigmoid(x):
    return 1.0 / (1.0 + jnp.exp(-x))


def _silu(x):
    return x * _sigmoid(x)


@functools.lru_cache(maxsize=1)
def _vmem_limit_bytes():
    """Per-generation scoped-VMEM budget (3/4 of physical), safe fallback."""
    try:
        info = pltpu.get_tpu_info()
        cap = getattr(info, "vmem_capacity_bytes", None)
        if cap:
            return int(cap) * 3 // 4        # ~48 MiB on v7x, ~96 MiB on v5e/v6e
    except Exception:
        pass
    return _FALLBACK_VMEM


def _pick_tile_b(batch, tile_b=None):
    """Byte-targeted batch tile: whole batch when it fits (single grid step is
    fine), otherwise a large multiple-of-16 tile; no forced 2-step grid."""
    if tile_b is None:
        tile_b = batch if batch <= _MAX_TILE_B else _MAX_TILE_B
    tile_b = min(tile_b, batch)
    if tile_b != batch:
        tile_b = max(16, (tile_b // 16) * 16)   # sublane-aligned for bf16 tiles
    return tile_b


# --------------------------------------------------------------------------- fused kernel factory
def _make_fused_kernel(depth, n_sp, n_sh, d, o):
    """Build the single fused kernel for a given depth / expert-count config."""
    hdim = 4 * d
    dq = d // 4
    n_grp_prm = 2 if depth == 1 else 6
    grp_sizes = (n_sp, n_sp, n_sp, n_sh)

    def experts(x, prm, n_exp):
        """All experts of one group; stage-1 weights are lane-concatenated so the
        MXU N dim is n_exp*O / n_exp*D / n_exp*H instead of 32."""
        if depth == 1:
            wc, bc = prm
            hcat = jnp.dot(x, wc[...], preferred_element_type=jnp.float32) + bc[...]
            hcat = _silu(hcat)
            return [hcat[:, i * o:(i + 1) * o] for i in range(n_exp)]
        if depth == 2:
            w1c, b1c, gamc, betc, w2s, b2s = prm
            xf = x.astype(jnp.float32)
            hcat = jnp.dot(x, w1c[...], preferred_element_type=jnp.float32) + b1c[...]
            gam, bet = gamc[...], betc[...]
            outs = []
            for i in range(n_exp):
                sl = slice(i * d, (i + 1) * d)
                t = hcat[:, sl] * xf
                mu = jnp.mean(t, axis=-1, keepdims=True)
                var = jnp.mean(jnp.square(t - mu), axis=-1, keepdims=True)
                nrm = (t - mu) * lax.rsqrt(var + _LN_EPS) * gam[:, sl] + bet[:, sl]
                outs.append(jnp.dot(nrm.astype(jnp.bfloat16), w2s[i],
                                    preferred_element_type=jnp.float32) + b2s[i])
            return outs
        # depth == 3 (SwiGLU-style)
        w1c, b1c, w2c, b2c, w3s, b3s = prm
        h1 = jnp.dot(x, w1c[...], preferred_element_type=jnp.float32) + b1c[...]
        h2 = jnp.dot(x, w2c[...], preferred_element_type=jnp.float32) + b2c[...]
        g = _silu(h1) * h2
        outs = []
        for i in range(n_exp):
            gi = g[:, i * hdim:(i + 1) * hdim].astype(jnp.bfloat16)
            outs.append(jnp.dot(gi, w3s[i], preferred_element_type=jnp.float32) + b3s[i])
        return outs

    def gate(x, wg, bg):
        logits = jnp.dot(x, wg[...], preferred_element_type=jnp.float32) + bg[...]
        m = jnp.max(logits, axis=-1, keepdims=True)
        e = jnp.exp(logits - m)
        # exact reciprocal on a tiny (tile_b, E) tile: essentially free, and the
        # mixture weights sum to exactly 1 (reviewer correctness note).
        return e / jnp.sum(e, axis=-1, keepdims=True)

    def mix(outs, w, col0):
        acc = outs[0] * w[:, col0:col0 + 1]
        for i in range(1, len(outs)):
            acc = acc + outs[i] * w[:, col0 + i:col0 + i + 1]
        return acc

    def kernel(*refs):
        pos = 0
        xa, xb, xc, xs = (refs[i][...] for i in range(4))
        pos = 4
        grp_prm = []
        for _ in range(4):
            grp_prm.append(refs[pos:pos + n_grp_prm])
            pos += n_grp_prm
        gate_prm = []
        for _ in range(4):
            gate_prm.append(refs[pos:pos + 2])
            pos += 2
        if depth == 3:
            w1l, b1l, w2l, b2l = refs[pos:pos + 4]
            pos += 4
        out_ref = refs[pos]

        a_exp = experts(xa, grp_prm[0], grp_sizes[0])
        b_exp = experts(xb, grp_prm[1], grp_sizes[1])
        c_exp = experts(xc, grp_prm[2], grp_sizes[2])
        s_exp = experts(xs, grp_prm[3], grp_sizes[3])

        a_w = gate(xa, *gate_prm[0])
        b_w = gate(xb, *gate_prm[1])
        c_w = gate(xc, *gate_prm[2])
        s_w = gate(xs, *gate_prm[3])

        a_sp, a_sh = mix(a_exp, a_w, 0), mix(s_exp, a_w, n_sp)
        b_sp, b_sh = mix(b_exp, b_w, 0), mix(s_exp, b_w, n_sp)
        c_sp, c_sh = mix(c_exp, c_w, 0), mix(s_exp, c_w, n_sp)

        if depth == 3:
            # LHUC nets: fc1 weights of the three nets are lane-concatenated.
            hl = _silu(jnp.dot(xs, w1l[...], preferred_element_type=jnp.float32)
                       + b1l[...])

            def lhuc_gate(i):
                hi = hl[:, i * dq:(i + 1) * dq].astype(jnp.bfloat16)
                y = jnp.dot(hi, w2l[i], preferred_element_type=jnp.float32) + b2l[i]
                return _sigmoid(y)

            a_sp = a_sp * lhuc_gate(0)
            b_sp = b_sp * lhuc_gate(1)
            c_sp = c_sp * lhuc_gate(2)

        s_feat = mix(a_exp + b_exp + c_exp + s_exp, s_w, 0)
        # single lane-dense (tile_b, 4*O) store
        out = jnp.concatenate([a_sp + a_sh, b_sp + b_sh, c_sp + c_sh, s_feat], axis=1)
        out_ref[...] = out.astype(out_ref.dtype)

    return kernel


# --------------------------------------------------------------------------- parameter packing (per-expert -> fused layout)
def _pack_experts(experts, depth):
    if depth == 1:
        w = jnp.concatenate([e["w"] for e in experts], axis=1)
        b = jnp.concatenate([e["b"] for e in experts], axis=0).reshape(1, -1)
        return [w, b]
    if depth == 2:
        w1 = jnp.concatenate([e["w1"] for e in experts], axis=1)
        b1 = jnp.concatenate([e["b1"] for e in experts], axis=0).reshape(1, -1)
        gam = jnp.concatenate([e["gamma"] for e in experts], axis=0).reshape(1, -1)
        bet = jnp.concatenate([e["beta"] for e in experts], axis=0).reshape(1, -1)
        w2 = jnp.stack([e["w2"] for e in experts], axis=0)
        b2 = jnp.stack([e["b2"].reshape(1, -1) for e in experts], axis=0)
        return [w1, b1, gam, bet, w2, b2]
    w1 = jnp.concatenate([e["w1"] for e in experts], axis=1)
    b1 = jnp.concatenate([e["b1"] for e in experts], axis=0).reshape(1, -1)
    w2 = jnp.concatenate([e["w2"] for e in experts], axis=1)
    b2 = jnp.concatenate([e["b2"] for e in experts], axis=0).reshape(1, -1)
    w3 = jnp.stack([e["w3"] for e in experts], axis=0)
    b3 = jnp.stack([e["b3"].reshape(1, -1) for e in experts], axis=0)
    return [w1, b1, w2, b2, w3, b3]


def _pack_lhuc(lhucs):
    w1 = jnp.concatenate([l["w1"] for l in lhucs], axis=1)
    b1 = jnp.concatenate([l["b1"] for l in lhucs], axis=0).reshape(1, -1)
    w2 = jnp.stack([l["w2"] for l in lhucs], axis=0)
    b2 = jnp.stack([l["b2"].reshape(1, -1) for l in lhucs], axis=0)
    return [w1, b1, w2, b2]


def _cost(depth, batch, d, o, n_sp, n_sh, packed):
    h = 4 * d

    def grp(n):
        if depth == 1:
            return 2 * d * n * o
        if depth == 2:
            return 2 * d * n * d + n * 2 * d * o
        return 2 * (2 * d * n * h) + n * 2 * h * o

    per_row = 3 * grp(n_sp) + grp(n_sh)
    per_row += 3 * 2 * d * (n_sp + n_sh) + 2 * d * (3 * n_sp + n_sh)   # gates
    if depth == 3:
        per_row += 3 * (2 * d * (d // 4) + 2 * (d // 4) * d)           # LHUC
    width = o if depth == 1 else (h if depth == 3 else d)
    transc = batch * (3 * n_sp + n_sh) * width
    bytes_acc = (4 * batch * d * 2
                 + sum(int(p.size) * p.dtype.itemsize for p in packed)
                 + batch * 4 * o * 4)
    return batch * per_row, transc, bytes_acc


# --------------------------------------------------------------------------- fused forward (ONE pallas_call)
def extraction_layer_pallas(params, A, B, C, S, *, depth, tile_b=None):
    n_sp = len(params["task_a_experts"])
    n_sh = len(params["shared_experts"])
    batch, d = A.shape
    if depth == 1:
        o = params["task_a_experts"][0]["w"].shape[1]
    elif depth == 2:
        o = params["task_a_experts"][0]["w2"].shape[1]
    else:
        o = params["task_a_experts"][0]["w3"].shape[1]

    A, B, C, S = (t.astype(jnp.bfloat16) for t in (A, B, C, S))

    packed = []
    for grp in ("task_a_experts", "task_b_experts", "task_c_experts", "shared_experts"):
        packed += _pack_experts(params[grp], depth)
    for g in ("task_a_gate", "task_b_gate", "task_c_gate", "shared_gate"):
        packed += [params[g]["w"], params[g]["b"].reshape(1, -1)]
    if depth == 3:
        packed += _pack_lhuc([params["LHUC_a"], params["LHUC_b"], params["LHUC_c"]])

    tile_b = _pick_tile_b(batch, tile_b)
    grid = pl.cdiv(batch, tile_b)

    act_spec = pl.BlockSpec((tile_b, d), lambda i: (i, 0))
    in_specs = [act_spec] * 4 + [
        pl.BlockSpec(p.shape, lambda i, _n=p.ndim: (0,) * _n) for p in packed
    ]
    out_specs = pl.BlockSpec((tile_b, 4 * o), lambda i: (i, 0))

    flops, transc, bytes_acc = _cost(depth, batch, d, o, n_sp, n_sh, packed)
    kernel = _make_fused_kernel(depth, n_sp, n_sh, d, o)

    out = pl.pallas_call(
        kernel,
        out_shape=jax.ShapeDtypeStruct((batch, 4 * o), jnp.float32),
        grid_spec=pltpu.PrefetchScalarGridSpec(
            num_scalar_prefetch=0,
            grid=(grid,),
            in_specs=in_specs,
            out_specs=out_specs,
        ),
        compiler_params=pltpu.CompilerParams(
            # TODO(synk): on v7x (2 TensorCores) switch this axis to
            # pltpu.CORE_PARALLEL once the grid has >=4 steps; plain "parallel"
            # is a measured no-op on single-TC v5e/v6e and always safe.
            dimension_semantics=("parallel",),
            vmem_limit_bytes=_vmem_limit_bytes(),
        ),
        cost_estimate=pl.CostEstimate(
            flops=int(flops), transcendentals=int(transc),
            bytes_accessed=int(bytes_acc)),
    )(A, B, C, S, *packed)

    return (out[:, 0:o], out[:, o:2 * o], out[:, 2 * o:3 * o], out[:, 3 * o:4 * o])


# --------------------------------------------------------------------------- plain-JAX reference (same precision choices)
def _ref_gate(p, x):
    logits = jnp.dot(x, p["w"], preferred_element_type=jnp.float32) + p["b"]
    m = jnp.max(logits, axis=-1, keepdims=True)
    e = jnp.exp(logits - m)
    return e / jnp.sum(e, axis=-1, keepdims=True)


def _ref_expert1(p, x):
    return _silu(jnp.dot(x, p["w"], preferred_element_type=jnp.float32) + p["b"])


def _ref_expert2(p, x):
    h = jnp.dot(x, p["w1"], preferred_element_type=jnp.float32) + p["b1"]
    t = h * x.astype(jnp.float32)
    mu = jnp.mean(t, axis=-1, keepdims=True)
    var = jnp.mean(jnp.square(t - mu), axis=-1, keepdims=True)
    n = (t - mu) * lax.rsqrt(var + _LN_EPS) * p["gamma"] + p["beta"]
    return jnp.dot(n.astype(jnp.bfloat16), p["w2"],
                   preferred_element_type=jnp.float32) + p["b2"]


def _ref_expert3(p, x):
    h1 = jnp.dot(x, p["w1"], preferred_element_type=jnp.float32) + p["b1"]
    h2 = jnp.dot(x, p["w2"], preferred_element_type=jnp.float32) + p["b2"]
    g = _silu(h1) * h2
    return jnp.dot(g.astype(jnp.bfloat16), p["w3"],
                   preferred_element_type=jnp.float32) + p["b3"]


def _ref_lhuc(p, x):
    h = _silu(jnp.dot(x, p["w1"], preferred_element_type=jnp.float32) + p["b1"])
    return _sigmoid(jnp.dot(h.astype(jnp.bfloat16), p["w2"],
                            preferred_element_type=jnp.float32) + p["b2"])


def extraction_layer_reference(params, A, B, C, S, *, depth):
    A, B, C, S = (t.astype(jnp.bfloat16) for t in (A, B, C, S))
    ef = {1: _ref_expert1, 2: _ref_expert2, 3: _ref_expert3}[depth]
    a_outs = [ef(p, A) for p in params["task_a_experts"]]
    b_outs = [ef(p, B) for p in params["task_b_experts"]]
    c_outs = [ef(p, C) for p in params["task_c_experts"]]
    s_outs = [ef(p, S) for p in params["shared_experts"]]
    a_w = _ref_gate(params["task_a_gate"], A)
    b_w = _ref_gate(params["task_b_gate"], B)
    c_w = _ref_gate(params["task_c_gate"], C)
    s_w = _ref_gate(params["shared_gate"], S)
    ns = len(params["task_a_experts"])

    def wsum(outs, w):
        return jnp.einsum("nbo,bn->bo", jnp.stack(outs, axis=0), w)

    a_spec, a_shar = wsum(a_outs, a_w[:, :ns]), wsum(s_outs, a_w[:, ns:])
    b_spec, b_shar = wsum(b_outs, b_w[:, :ns]), wsum(s_outs, b_w[:, ns:])
    c_spec, c_shar = wsum(c_outs, c_w[:, :ns]), wsum(s_outs, c_w[:, ns:])
    if depth == 3:
        a_spec = a_spec * _ref_lhuc(params["LHUC_a"], S)
        b_spec = b_spec * _ref_lhuc(params["LHUC_b"], S)
        c_spec = c_spec * _ref_lhuc(params["LHUC_c"], S)
    s_feat = wsum(a_outs + b_outs + c_outs + s_outs, s_w)
    return a_spec + a_shar, b_spec + b_shar, c_spec + c_shar, s_feat


# --------------------------------------------------------------------------- parameter init (weights pre-transposed, bf16)
def init_extraction_layer_params(key, input_dim, output_dim,
                                 num_specific, num_shared, depth):
    keys = iter(jax.random.split(key, 64))

    def lin(d_in, d_out):
        kw, kb = jax.random.split(next(keys))
        s = 1.0 / (d_in ** 0.5)
        w = (jax.random.normal(kw, (d_in, d_out), jnp.float32) * s).astype(jnp.bfloat16)
        b = jax.random.uniform(kb, (d_out,), jnp.float32, -s, s)
        return w, b

    def expert():
        if depth == 1:
            w, b = lin(input_dim, output_dim)
            return {"w": w, "b": b}
        if depth == 2:
            w1, b1 = lin(input_dim, input_dim)
            w2, b2 = lin(input_dim, output_dim)
            return {"w1": w1, "b1": b1,
                    "gamma": jnp.ones((input_dim,), jnp.float32),
                    "beta": jnp.zeros((input_dim,), jnp.float32),
                    "w2": w2, "b2": b2}
        hidden = input_dim * 4
        w1, b1 = lin(input_dim, hidden)
        w2, b2 = lin(input_dim, hidden)
        w3, b3 = lin(hidden, output_dim)
        return {"w1": w1, "b1": b1, "w2": w2, "b2": b2, "w3": w3, "b3": b3}

    def gate(n_experts):
        w, b = lin(input_dim, n_experts)
        return {"w": w, "b": b}

    def lhuc():
        w1, b1 = lin(input_dim, input_dim // 4)
        w2, b2 = lin(input_dim // 4, input_dim)
        return {"w1": w1, "b1": b1, "w2": w2, "b2": b2}

    experts_per_task = num_specific + num_shared
    total_experts = num_specific * 3 + num_shared
    params = {
        "task_a_experts": [expert() for _ in range(num_specific)],
        "task_b_experts": [expert() for _ in range(num_specific)],
        "task_c_experts": [expert() for _ in range(num_specific)],
        "shared_experts": [expert() for _ in range(num_shared)],
        "task_a_gate": gate(experts_per_task),
        "task_b_gate": gate(experts_per_task),
        "task_c_gate": gate(experts_per_task),
        "shared_gate": gate(total_experts),
    }
    if depth == 3:
        params["LHUC_a"] = lhuc()
        params["LHUC_b"] = lhuc()
        params["LHUC_c"] = lhuc()
    return params


# --------------------------------------------------------------------------- demo / self-check
if __name__ == "__main__":
    # output_dim == input_dim so depth-3 LHUC gating broadcast is valid (as in
    # the PyTorch module's intended use).
    BATCH, INPUT_DIM, OUTPUT_DIM = 128, 32, 32
    NUM_SPECIFIC, NUM_SHARED = 2, 2

    root = jax.random.PRNGKey(0)
    k_inputs, k_params = jax.random.split(root)
    ka, kb, kc, ks = jax.random.split(k_inputs, 4)
    A = jax.random.normal(ka, (BATCH, INPUT_DIM), jnp.float32)
    B = jax.random.normal(kb, (BATCH, INPUT_DIM), jnp.float32)
    C = jax.random.normal(kc, (BATCH, INPUT_DIM), jnp.float32)
    S = jax.random.normal(ks, (BATCH, INPUT_DIM), jnp.float32)

    params_by_depth = {}
    for depth in (1, 2, 3):
        k_params, kd = jax.random.split(k_params)
        params = init_extraction_layer_params(
            kd, INPUT_DIM, OUTPUT_DIM, NUM_SPECIFIC, NUM_SHARED, depth)
        params_by_depth[depth] = params

        fwd = jax.jit(functools.partial(extraction_layer_pallas, depth=depth))
        outs = jax.block_until_ready(fwd(params, A, B, C, S))
        refs = extraction_layer_reference(params, A, B, C, S, depth=depth)

        for got, want in zip(outs, refs):
            assert got.shape == (BATCH, OUTPUT_DIM)
            err = float(jnp.max(jnp.abs(got - want)))
            assert err < 5e-3, f"depth={depth}: max abs err {err}"

    # Multi-step grid with a ragged last block (128 rows, 48-row tiles -> 3 steps,
    # last block partially out-of-bounds): exercises the no-pad path.
    fwd_ragged = jax.jit(functools.partial(extraction_layer_pallas, depth=1, tile_b=48))
    outs = jax.block_until_ready(fwd_ragged(params_by_depth[1], A, B, C, S))
    refs = extraction_layer_reference(params_by_depth[1], A, B, C, S, depth=1)
    for got, want in zip(outs, refs):
        err = float(jnp.max(jnp.abs(got - want)))
        assert err < 5e-3, f"ragged depth=1: max abs err {err}"

    print("KERNEL_OK")
</pallas_src>

<mosaic_0001>
module attributes {stable_mosaic.version = 11 : i64} {
  func.func @kernel(%arg0: i32, %arg1: memref<128x32xbf16, #tpu.memory_space<vmem>>, %arg2: memref<128x32xbf16, #tpu.memory_space<vmem>>, %arg3: memref<128x32xbf16, #tpu.memory_space<vmem>>, %arg4: memref<128x32xbf16, #tpu.memory_space<vmem>>, %arg5: memref<32x64xbf16, #tpu.memory_space<vmem>>, %arg6: memref<1x64xf32, #tpu.memory_space<vmem>>, %arg7: memref<32x64xbf16, #tpu.memory_space<vmem>>, %arg8: memref<1x64xf32, #tpu.memory_space<vmem>>, %arg9: memref<32x64xbf16, #tpu.memory_space<vmem>>, %arg10: memref<1x64xf32, #tpu.memory_space<vmem>>, %arg11: memref<32x64xbf16, #tpu.memory_space<vmem>>, %arg12: memref<1x64xf32, #tpu.memory_space<vmem>>, %arg13: memref<32x4xbf16, #tpu.memory_space<vmem>>, %arg14: memref<1x4xf32, #tpu.memory_space<vmem>>, %arg15: memref<32x4xbf16, #tpu.memory_space<vmem>>, %arg16: memref<1x4xf32, #tpu.memory_space<vmem>>, %arg17: memref<32x4xbf16, #tpu.memory_space<vmem>>, %arg18: memref<1x4xf32, #tpu.memory_space<vmem>>, %arg19: memref<32x8xbf16, #tpu.memory_space<vmem>>, %arg20: memref<1x8xf32, #tpu.memory_space<vmem>>, %arg21: memref<128x128xf32, #tpu.memory_space<vmem>>) attributes {dimension_semantics = [#tpu.dimension_semantics<parallel>], iteration_bounds = array<i64: 1>, scalar_prefetch = 0 : i64, scratch_operands = 0 : i64, tpu.core_type = #tpu.core_type<tc>, window_params = [{transform_indices = @transform_0, window_bounds = array<i64: 128, 32>}, {transform_indices = @transform_1, window_bounds = array<i64: 128, 32>}, {transform_indices = @transform_2, window_bounds = array<i64: 128, 32>}, {transform_indices = @transform_3, window_bounds = array<i64: 128, 32>}, {pipeline_mode = #tpu.pipeline_mode<synchronous>, transform_indices = @transform_4, window_bounds = array<i64: 32, 64>}, {pipeline_mode = #tpu.pipeline_mode<synchronous>, transform_indices = @transform_5, window_bounds = array<i64: 1, 64>}, {pipeline_mode = #tpu.pipeline_mode<synchronous>, transform_indices = @transform_6, window_bounds = array<i64: 32, 64>}, {pipeline_mode = #tpu.pipeline_mode<synchronous>, transform_indices = @transform_7, window_bounds = array<i64: 1, 64>}, {pipeline_mode = #tpu.pipeline_mode<synchronous>, transform_indices = @transform_8, window_bounds = array<i64: 32, 64>}, {pipeline_mode = #tpu.pipeline_mode<synchronous>, transform_indices = @transform_9, window_bounds = array<i64: 1, 64>}, {pipeline_mode = #tpu.pipeline_mode<synchronous>, transform_indices = @transform_10, window_bounds = array<i64: 32, 64>}, {pipeline_mode = #tpu.pipeline_mode<synchronous>, transform_indices = @transform_11, window_bounds = array<i64: 1, 64>}, {pipeline_mode = #tpu.pipeline_mode<synchronous>, transform_indices = @transform_12, window_bounds = array<i64: 32, 4>}, {pipeline_mode = #tpu.pipeline_mode<synchronous>, transform_indices = @transform_13, window_bounds = array<i64: 1, 4>}, {pipeline_mode = #tpu.pipeline_mode<synchronous>, transform_indices = @transform_14, window_bounds = array<i64: 32, 4>}, {pipeline_mode = #tpu.pipeline_mode<synchronous>, transform_indices = @transform_15, window_bounds = array<i64: 1, 4>}, {pipeline_mode = #tpu.pipeline_mode<synchronous>, transform_indices = @transform_16, window_bounds = array<i64: 32, 4>}, {pipeline_mode = #tpu.pipeline_mode<synchronous>, transform_indices = @transform_17, window_bounds = array<i64: 1, 4>}, {pipeline_mode = #tpu.pipeline_mode<synchronous>, transform_indices = @transform_18, window_bounds = array<i64: 32, 8>}, {pipeline_mode = #tpu.pipeline_mode<synchronous>, transform_indices = @transform_19, window_bounds = array<i64: 1, 8>}, {transform_indices = @transform_20, window_bounds = array<i64: 128, 128>}]} {
    %c0 = arith.constant 0 : index
    %c0_0 = arith.constant 0 : index
    %0 = vector.load %arg1[%c0, %c0_0] : memref<128x32xbf16, #tpu.memory_space<vmem>>, vector<128x32xbf16>
    %c0_1 = arith.constant 0 : index
    %c0_2 = arith.constant 0 : index
    %1 = vector.load %arg2[%c0_1, %c0_2] : memref<128x32xbf16, #tpu.memory_space<vmem>>, vector<128x32xbf16>
    %c0_3 = arith.constant 0 : index
    %c0_4 = arith.constant 0 : index
    %2 = vector.load %arg3[%c0_3, %c0_4] : memref<128x32xbf16, #tpu.memory_space<vmem>>, vector<128x32xbf16>
    %c0_5 = arith.constant 0 : index
    %c0_6 = arith.constant 0 : index
    %3 = vector.load %arg4[%c0_5, %c0_6] : memref<128x32xbf16, #tpu.memory_space<vmem>>, vector<128x32xbf16>
    %c0_7 = arith.constant 0 : index
    %c0_8 = arith.constant 0 : index
    %4 = vector.load %arg5[%c0_7, %c0_8] : memref<32x64xbf16, #tpu.memory_space<vmem>>, vector<32x64xbf16>
    %cst = arith.constant dense<0.000000e+00> : vector<128x64xf32>
    %5 = tpu.matmul %0, %4, %cst {dimension_numbers = #tpu.dot_dimension_numbers<[1], [0], [0], [1], [0, 0, 1, 1], [], []>} : vector<128x32xbf16>, vector<32x64xbf16>, vector<128x64xf32> -> vector<128x64xf32>
    %c0_9 = arith.constant 0 : index
    %c0_10 = arith.constant 0 : index
    %6 = vector.load %arg6[%c0_9, %c0_10] : memref<1x64xf32, #tpu.memory_space<vmem>>, vector<1x64xf32>
    %7 = vector.broadcast %6 : vector<1x64xf32> to vector<128x64xf32>
    %8 = arith.addf %5, %7 : vector<128x64xf32>
    %cst_11 = arith.constant 0.000000e+00 : f32
    %9 = vector.broadcast %cst_11 : f32 to vector<128x64xf32>
    %10 = arith.subf %9, %8 : vector<128x64xf32>
    %11 = math.exp %10 : vector<128x64xf32>
    %cst_12 = arith.constant 1.000000e+00 : f32
    %12 = vector.broadcast %cst_12 : f32 to vector<128x64xf32>
    %13 = arith.addf %12, %11 : vector<128x64xf32>
    %cst_13 = arith.constant 1.000000e+00 : f32
    %14 = vector.broadcast %cst_13 : f32 to vector<128x64xf32>
    %15 = arith.divf %14, %13 : vector<128x64xf32>
    %16 = arith.mulf %8, %15 : vector<128x64xf32>
    %17 = vector.extract_strided_slice %16 {offsets = [0, 0], sizes = [128, 32], strides = [1, 1]} : vector<128x64xf32> to vector<128x32xf32>
    %18 = vector.extract_strided_slice %16 {offsets = [0, 32], sizes = [128, 32], strides = [1, 1]} : vector<128x64xf32> to vector<128x32xf32>
    %c0_14 = arith.constant 0 : index
    %c0_15 = arith.constant 0 : index
    %19 = vector.load %arg7[%c0_14, %c0_15] : memref<32x64xbf16, #tpu.memory_space<vmem>>, vector<32x64xbf16>
    %cst_16 = arith.constant dense<0.000000e+00> : vector<128x64xf32>
    %20 = tpu.matmul %1, %19, %cst_16 {dimension_numbers = #tpu.dot_dimension_numbers<[1], [0], [0], [1], [0, 0, 1, 1], [], []>} : vector<128x32xbf16>, vector<32x64xbf16>, vector<128x64xf32> -> vector<128x64xf32>
    %c0_17 = arith.constant 0 : index
    %c0_18 = arith.constant 0 : index
    %21 = vector.load %arg8[%c0_17, %c0_18] : memref<1x64xf32, #tpu.memory_space<vmem>>, vector<1x64xf32>
    %22 = vector.broadcast %21 : vector<1x64xf32> to vector<128x64xf32>
    %23 = arith.addf %20, %22 : vector<128x64xf32>
    %cst_19 = arith.constant 0.000000e+00 : f32
    %24 = vector.broadcast %cst_19 : f32 to vector<128x64xf32>
    %25 = arith.subf %24, %23 : vector<128x64xf32>
    %26 = math.exp %25 : vector<128x64xf32>
    %cst_20 = arith.constant 1.000000e+00 : f32
    %27 = vector.broadcast %cst_20 : f32 to vector<128x64xf32>
    %28 = arith.addf %27, %26 : vector<128x64xf32>
    %cst_21 = arith.constant 1.000000e+00 : f32
    %29 = vector.broadcast %cst_21 : f32 to vector<128x64xf32>
    %30 = arith.divf %29, %28 : vector<128x64xf32>
    %31 = arith.mulf %23, %30 : vector<128x64xf32>
    %32 = vector.extract_strided_slice %31 {offsets = [0, 0], sizes = [128, 32], strides = [1, 1]} : vector<128x64xf32> to vector<128x32xf32>
    %33 = vector.extract_strided_slice %31 {offsets = [0, 32], sizes = [128, 32], strides = [1, 1]} : vector<128x64xf32> to vector<128x32xf32>
    %c0_22 = arith.constant 0 : index
    %c0_23 = arith.constant 0 : index
    %34 = vector.load %arg9[%c0_22, %c0_23] : memref<32x64xbf16, #tpu.memory_space<vmem>>, vector<32x64xbf16>
    %cst_24 = arith.constant dense<0.000000e+00> : vector<128x64xf32>
    %35 = tpu.matmul %2, %34, %cst_24 {dimension_numbers = #tpu.dot_dimension_numbers<[1], [0], [0], [1], [0, 0, 1, 1], [], []>} : vector<128x32xbf16>, vector<32x64xbf16>, vector<128x64xf32> -> vector<128x64xf32>
    %c0_25 = arith.constant 0 : index
    %c0_26 = arith.constant 0 : index
    %36 = vector.load %arg10[%c0_25, %c0_26] : memref<1x64xf32, #tpu.memory_space<vmem>>, vector<1x64xf32>
    %37 = vector.broadcast %36 : vector<1x64xf32> to vector<128x64xf32>
    %38 = arith.addf %35, %37 : vector<128x64xf32>
    %cst_27 = arith.constant 0.000000e+00 : f32
    %39 = vector.broadcast %cst_27 : f32 to vector<128x64xf32>
    %40 = arith.subf %39, %38 : vector<128x64xf32>
    %41 = math.exp %40 : vector<128x64xf32>
    %cst_28 = arith.constant 1.000000e+00 : f32
    %42 = vector.broadcast %cst_28 : f32 to vector<128x64xf32>
    %43 = arith.addf %42, %41 : vector<128x64xf32>
    %cst_29 = arith.constant 1.000000e+00 : f32
    %44 = vector.broadcast %cst_29 : f32 to vector<128x64xf32>
    %45 = arith.divf %44, %43 : vector<128x64xf32>
    %46 = arith.mulf %38, %45 : vector<128x64xf32>
    %47 = vector.extract_strided_slice %46 {offsets = [0, 0], sizes = [128, 32], strides = [1, 1]} : vector<128x64xf32> to vector<128x32xf32>
    %48 = vector.extract_strided_slice %46 {offsets = [0, 32], sizes = [128, 32], strides = [1, 1]} : vector<128x64xf32> to vector<128x32xf32>
    %c0_30 = arith.constant 0 : index
    %c0_31 = arith.constant 0 : index
    %49 = vector.load %arg11[%c0_30, %c0_31] : memref<32x64xbf16, #tpu.memory_space<vmem>>, vector<32x64xbf16>
    %cst_32 = arith.constant dense<0.000000e+00> : vector<128x64xf32>
    %50 = tpu.matmul %3, %49, %cst_32 {dimension_numbers = #tpu.dot_dimension_numbers<[1], [0], [0], [1], [0, 0, 1, 1], [], []>} : vector<128x32xbf16>, vector<32x64xbf16>, vector<128x64xf32> -> vector<128x64xf32>
    %c0_33 = arith.constant 0 : index
    %c0_34 = arith.constant 0 : index
    %51 = vector.load %arg12[%c0_33, %c0_34] : memref<1x64xf32, #tpu.memory_space<vmem>>, vector<1x64xf32>
    %52 = vector.broadcast %51 : vector<1x64xf32> to vector<128x64xf32>
    %53 = arith.addf %50, %52 : vector<128x64xf32>
    %cst_35 = arith.constant 0.000000e+00 : f32
    %54 = vector.broadcast %cst_35 : f32 to vector<128x64xf32>
    %55 = arith.subf %54, %53 : vector<128x64xf32>
    %56 = math.exp %55 : vector<128x64xf32>
    %cst_36 = arith.constant 1.000000e+00 : f32
    %57 = vector.broadcast %cst_36 : f32 to vector<128x64xf32>
    %58 = arith.addf %57, %56 : vector<128x64xf32>
    %cst_37 = arith.constant 1.000000e+00 : f32
    %59 = vector.broadcast %cst_37 : f32 to vector<128x64xf32>
    %60 = arith.divf %59, %58 : vector<128x64xf32>
    %61 = arith.mulf %53, %60 : vector<128x64xf32>
    %62 = vector.extract_strided_slice %61 {offsets = [0, 0], sizes = [128, 32], strides = [1, 1]} : vector<128x64xf32> to vector<128x32xf32>
    %63 = vector.extract_strided_slice %61 {offsets = [0, 32], sizes = [128, 32], strides = [1, 1]} : vector<128x64xf32> to vector<128x32xf32>
    %c0_38 = arith.constant 0 : index
    %c0_39 = arith.constant 0 : index
    %64 = vector.load %arg13[%c0_38, %c0_39] : memref<32x4xbf16, #tpu.memory_space<vmem>>, vector<32x4xbf16>
    %cst_40 = arith.constant dense<0.000000e+00> : vector<128x4xf32>
    %65 = tpu.matmul %0, %64, %cst_40 {dimension_numbers = #tpu.dot_dimension_numbers<[1], [0], [0], [1], [0, 0, 1, 1], [], []>} : vector<128x32xbf16>, vector<32x4xbf16>, vector<128x4xf32> -> vector<128x4xf32>
    %c0_41 = arith.constant 0 : index
    %c0_42 = arith.constant 0 : index
    %66 = vector.load %arg14[%c0_41, %c0_42] : memref<1x4xf32, #tpu.memory_space<vmem>>, vector<1x4xf32>
    %67 = vector.broadcast %66 : vector<1x4xf32> to vector<128x4xf32>
    %68 = arith.addf %65, %67 : vector<128x4xf32>
    %cst_43 = arith.constant dense<0xFF800000> : vector<128xf32>
    %69 = vector.multi_reduction <maximumf>, %68, %cst_43 [1] : vector<128x4xf32> to vector<128xf32>
    %70 = vector.shape_cast %69 : vector<128xf32> to vector<128x1xf32>
    %71 = vector.broadcast %70 : vector<128x1xf32> to vector<128x4xf32>
    %72 = arith.subf %68, %71 : vector<128x4xf32>
    %73 = math.exp %72 : vector<128x4xf32>
    %cst_44 = arith.constant dense<0.000000e+00> : vector<128xf32>
    %74 = vector.multi_reduction <add>, %73, %cst_44 [1] : vector<128x4xf32> to vector<128xf32>
    %75 = vector.shape_cast %74 : vector<128xf32> to vector<128x1xf32>
    %76 = vector.broadcast %75 : vector<128x1xf32> to vector<128x4xf32>
    %77 = arith.divf %73, %76 : vector<128x4xf32>
    %c0_45 = arith.constant 0 : index
    %c0_46 = arith.constant 0 : index
    %78 = vector.load %arg15[%c0_45, %c0_46] : memref<32x4xbf16, #tpu.memory_space<vmem>>, vector<32x4xbf16>
    %cst_47 = arith.constant dense<0.000000e+00> : vector<128x4xf32>
    %79 = tpu.matmul %1, %78, %cst_47 {dimension_numbers = #tpu.dot_dimension_numbers<[1], [0], [0], [1], [0, 0, 1, 1], [], []>} : vector<128x32xbf16>, vector<32x4xbf16>, vector<128x4xf32> -> vector<128x4xf32>
    %c0_48 = arith.constant 0 : index
    %c0_49 = arith.constant 0 : index
    %80 = vector.load %arg16[%c0_48, %c0_49] : memref<1x4xf32, #tpu.memory_space<vmem>>, vector<1x4xf32>
    %81 = vector.broadcast %80 : vector<1x4xf32> to vector<128x4xf32>
    %82 = arith.addf %79, %81 : vector<128x4xf32>
    %cst_50 = arith.constant dense<0xFF800000> : vector<128xf32>
    %83 = vector.multi_reduction <maximumf>, %82, %cst_50 [1] : vector<128x4xf32> to vector<128xf32>
    %84 = vector.shape_cast %83 : vector<128xf32> to vector<128x1xf32>
    %85 = vector.broadcast %84 : vector<128x1xf32> to vector<128x4xf32>
    %86 = arith.subf %82, %85 : vector<128x4xf32>
    %87 = math.exp %86 : vector<128x4xf32>
    %cst_51 = arith.constant dense<0.000000e+00> : vector<128xf32>
    %88 = vector.multi_reduction <add>, %87, %cst_51 [1] : vector<128x4xf32> to vector<128xf32>
    %89 = vector.shape_cast %88 : vector<128xf32> to vector<128x1xf32>
    %90 = vector.broadcast %89 : vector<128x1xf32> to vector<128x4xf32>
    %91 = arith.divf %87, %90 : vector<128x4xf32>
    %c0_52 = arith.constant 0 : index
    %c0_53 = arith.constant 0 : index
    %92 = vector.load %arg17[%c0_52, %c0_53] : memref<32x4xbf16, #tpu.memory_space<vmem>>, vector<32x4xbf16>
    %cst_54 = arith.constant dense<0.000000e+00> : vector<128x4xf32>
    %93 = tpu.matmul %2, %92, %cst_54 {dimension_numbers = #tpu.dot_dimension_numbers<[1], [0], [0], [1], [0, 0, 1, 1], [], []>} : vector<128x32xbf16>, vector<32x4xbf16>, vector<128x4xf32> -> vector<128x4xf32>
    %c0_55 = arith.constant 0 : index
    %c0_56 = arith.constant 0 : index
    %94 = vector.load %arg18[%c0_55, %c0_56] : memref<1x4xf32, #tpu.memory_space<vmem>>, vector<1x4xf32>
    %95 = vector.broadcast %94 : vector<1x4xf32> to vector<128x4xf32>
    %96 = arith.addf %93, %95 : vector<128x4xf32>
    %cst_57 = arith.constant dense<0xFF800000> : vector<128xf32>
    %97 = vector.multi_reduction <maximumf>, %96, %cst_57 [1] : vector<128x4xf32> to vector<128xf32>
    %98 = vector.shape_cast %97 : vector<128xf32> to vector<128x1xf32>
    %99 = vector.broadcast %98 : vector<128x1xf32> to vector<128x4xf32>
    %100 = arith.subf %96, %99 : vector<128x4xf32>
    %101 = math.exp %100 : vector<128x4xf32>
    %cst_58 = arith.constant dense<0.000000e+00> : vector<128xf32>
    %102 = vector.multi_reduction <add>, %101, %cst_58 [1] : vector<128x4xf32> to vector<128xf32>
    %103 = vector.shape_cast %102 : vector<128xf32> to vector<128x1xf32>
    %104 = vector.broadcast %103 : vector<128x1xf32> to vector<128x4xf32>
    %105 = arith.divf %101, %104 : vector<128x4xf32>
    %c0_59 = arith.constant 0 : index
    %c0_60 = arith.constant 0 : index
    %106 = vector.load %arg19[%c0_59, %c0_60] : memref<32x8xbf16, #tpu.memory_space<vmem>>, vector<32x8xbf16>
    %cst_61 = arith.constant dense<0.000000e+00> : vector<128x8xf32>
    %107 = tpu.matmul %3, %106, %cst_61 {dimension_numbers = #tpu.dot_dimension_numbers<[1], [0], [0], [1], [0, 0, 1, 1], [], []>} : vector<128x32xbf16>, vector<32x8xbf16>, vector<128x8xf32> -> vector<128x8xf32>
    %c0_62 = arith.constant 0 : index
    %c0_63 = arith.constant 0 : index
    %108 = vector.load %arg20[%c0_62, %c0_63] : memref<1x8xf32, #tpu.memory_space<vmem>>, vector<1x8xf32>
    %109 = vector.broadcast %108 : vector<1x8xf32> to vector<128x8xf32>
    %110 = arith.addf %107, %109 : vector<128x8xf32>
    %cst_64 = arith.constant dense<0xFF800000> : vector<128xf32>
    %111 = vector.multi_reduction <maximumf>, %110, %cst_64 [1] : vector<128x8xf32> to vector<128xf32>
    %112 = vector.shape_cast %111 : vector<128xf32> to vector<128x1xf32>
    %113 = vector.broadcast %112 : vector<128x1xf32> to vector<128x8xf32>
    %114 = arith.subf %110, %113 : vector<128x8xf32>
    %115 = math.exp %114 : vector<128x8xf32>
    %cst_65 = arith.constant dense<0.000000e+00> : vector<128xf32>
    %116 = vector.multi_reduction <add>, %115, %cst_65 [1] : vector<128x8xf32> to vector<128xf32>
    %117 = vector.shape_cast %116 : vector<128xf32> to vector<128x1xf32>
    %118 = vector.broadcast %117 : vector<128x1xf32> to vector<128x8xf32>
    %119 = arith.divf %115, %118 : vector<128x8xf32>
    %120 = vector.extract_strided_slice %77 {offsets = [0, 0], sizes = [128, 1], strides = [1, 1]} : vector<128x4xf32> to vector<128x1xf32>
    %121 = vector.broadcast %120 : vector<128x1xf32> to vector<128x32xf32>
    %122 = arith.mulf %17, %121 : vector<128x32xf32>
    %123 = vector.extract_strided_slice %77 {offsets = [0, 1], sizes = [128, 1], strides = [1, 1]} : vector<128x4xf32> to vector<128x1xf32>
    %124 = vector.broadcast %123 : vector<128x1xf32> to vector<128x32xf32>
    %125 = arith.mulf %18, %124 : vector<128x32xf32>
    %126 = arith.addf %122, %125 : vector<128x32xf32>
    %127 = vector.extract_strided_slice %77 {offsets = [0, 2], sizes = [128, 1], strides = [1, 1]} : vector<128x4xf32> to vector<128x1xf32>
    %128 = vector.broadcast %127 : vector<128x1xf32> to vector<128x32xf32>
    %129 = arith.mulf %62, %128 : vector<128x32xf32>
    %130 = vector.extract_strided_slice %77 {offsets = [0, 3], sizes = [128, 1], strides = [1, 1]} : vector<128x4xf32> to vector<128x1xf32>
    %131 = vector.broadcast %130 : vector<128x1xf32> to vector<128x32xf32>
    %132 = arith.mulf %63, %131 : vector<128x32xf32>
    %133 = arith.addf %129, %132 : vector<128x32xf32>
    %134 = vector.extract_strided_slice %91 {offsets = [0, 0], sizes = [128, 1], strides = [1, 1]} : vector<128x4xf32> to vector<128x1xf32>
    %135 = vector.broadcast %134 : vector<128x1xf32> to vector<128x32xf32>
    %136 = arith.mulf %32, %135 : vector<128x32xf32>
    %137 = vector.extract_strided_slice %91 {offsets = [0, 1], sizes = [128, 1], strides = [1, 1]} : vector<128x4xf32> to vector<128x1xf32>
    %138 = vector.broadcast %137 : vector<128x1xf32> to vector<128x32xf32>
    %139 = arith.mulf %33, %138 : vector<128x32xf32>
    %140 = arith.addf %136, %139 : vector<128x32xf32>
    %141 = vector.extract_strided_slice %91 {offsets = [0, 2], sizes = [128, 1], strides = [1, 1]} : vector<128x4xf32> to vector<128x1xf32>
    %142 = vector.broadcast %141 : vector<128x1xf32> to vector<128x32xf32>
    %143 = arith.mulf %62, %142 : vector<128x32xf32>
    %144 = vector.extract_strided_slice %91 {offsets = [0, 3], sizes = [128, 1], strides = [1, 1]} : vector<128x4xf32> to vector<128x1xf32>
    %145 = vector.broadcast %144 : vector<128x1xf32> to vector<128x32xf32>
    %146 = arith.mulf %63, %145 : vector<128x32xf32>
    %147 = arith.addf %143, %146 : vector<128x32xf32>
    %148 = vector.extract_strided_slice %105 {offsets = [0, 0], sizes = [128, 1], strides = [1, 1]} : vector<128x4xf32> to vector<128x1xf32>
    %149 = vector.broadcast %148 : vector<128x1xf32> to vector<128x32xf32>
    %150 = arith.mulf %47, %149 : vector<128x32xf32>
    %151 = vector.extract_strided_slice %105 {offsets = [0, 1], sizes = [128, 1], strides = [1, 1]} : vector<128x4xf32> to vector<128x1xf32>
    %152 = vector.broadcast %151 : vector<128x1xf32> to vector<128x32xf32>
    %153 = arith.mulf %48, %152 : vector<128x32xf32>
    %154 = arith.addf %150, %153 : vector<128x32xf32>
    %155 = vector.extract_strided_slice %105 {offsets = [0, 2], sizes = [128, 1], strides = [1, 1]} : vector<128x4xf32> to vector<128x1xf32>
    %156 = vector.broadcast %155 : vector<128x1xf32> to vector<128x32xf32>
    %157 = arith.mulf %62, %156 : vector<128x32xf32>
    %158 = vector.extract_strided_slice %105 {offsets = [0, 3], sizes = [128, 1], strides = [1, 1]} : vector<128x4xf32> to vector<128x1xf32>
    %159 = vector.broadcast %158 : vector<128x1xf32> to vector<128x32xf32>
    %160 = arith.mulf %63, %159 : vector<128x32xf32>
    %161 = arith.addf %157, %160 : vector<128x32xf32>
    %162 = vector.extract_strided_slice %119 {offsets = [0, 0], sizes = [128, 1], strides = [1, 1]} : vector<128x8xf32> to vector<128x1xf32>
    %163 = vector.broadcast %162 : vector<128x1xf32> to vector<128x32xf32>
    %164 = arith.mulf %17, %163 : vector<128x32xf32>
    %165 = vector.extract_strided_slice %119 {offsets = [0, 1], sizes = [128, 1], strides = [1, 1]} : vector<128x8xf32> to vector<128x1xf32>
    %166 = vector.broadcast %165 : vector<128x1xf32> to vector<128x32xf32>
    %167 = arith.mulf %18, %166 : vector<128x32xf32>
    %168 = arith.addf %164, %167 : vector<128x32xf32>
    %169 = vector.extract_strided_slice %119 {offsets = [0, 2], sizes = [128, 1], strides = [1, 1]} : vector<128x8xf32> to vector<128x1xf32>
    %170 = vector.broadcast %169 : vector<128x1xf32> to vector<128x32xf32>
    %171 = arith.mulf %32, %170 : vector<128x32xf32>
    %172 = arith.addf %168, %171 : vector<128x32xf32>
    %173 = vector.extract_strided_slice %119 {offsets = [0, 3], sizes = [128, 1], strides = [1, 1]} : vector<128x8xf32> to vector<128x1xf32>
    %174 = vector.broadcast %173 : vector<128x1xf32> to vector<128x32xf32>
    %175 = arith.mulf %33, %174 : vector<128x32xf32>
    %176 = arith.addf %172, %175 : vector<128x32xf32>
    %177 = vector.extract_strided_slice %119 {offsets = [0, 4], sizes = [128, 1], strides = [1, 1]} : vector<128x8xf32> to vector<128x1xf32>
    %178 = vector.broadcast %177 : vector<128x1xf32> to vector<128x32xf32>
    %179 = arith.mulf %47, %178 : vector<128x32xf32>
    %180 = arith.addf %176, %179 : vector<128x32xf32>
    %181 = vector.extract_strided_slice %119 {offsets = [0, 5], sizes = [128, 1], strides = [1, 1]} : vector<128x8xf32> to vector<128x1xf32>
    %182 = vector.broadcast %181 : vector<128x1xf32> to vector<128x32xf32>
    %183 = arith.mulf %48, %182 : vector<128x32xf32>
    %184 = arith.addf %180, %183 : vector<128x32xf32>
    %185 = vector.extract_strided_slice %119 {offsets = [0, 6], sizes = [128, 1], strides = [1, 1]} : vector<128x8xf32> to vector<128x1xf32>
    %186 = vector.broadcast %185 : vector<128x1xf32> to vector<128x32xf32>
    %187 = arith.mulf %62, %186 : vector<128x32xf32>
    %188 = arith.addf %184, %187 : vector<128x32xf32>
    %189 = vector.extract_strided_slice %119 {offsets = [0, 7], sizes = [128, 1], strides = [1, 1]} : vector<128x8xf32> to vector<128x1xf32>
    %190 = vector.broadcast %189 : vector<128x1xf32> to vector<128x32xf32>
    %191 = arith.mulf %63, %190 : vector<128x32xf32>
    %192 = arith.addf %188, %191 : vector<128x32xf32>
    %193 = arith.addf %126, %133 : vector<128x32xf32>
    %194 = arith.addf %140, %147 : vector<128x32xf32>
    %195 = arith.addf %154, %161 : vector<128x32xf32>
    %196 = tpu.concatenate %193, %194, %195, %192 in 1 : vector<128x32xf32>, vector<128x32xf32>, vector<128x32xf32>, vector<128x32xf32> -> vector<128x128xf32>
    %c0_66 = arith.constant 0 : index
    %c0_67 = arith.constant 0 : index
    %197 = vector.load %arg21[%c0_66, %c0_67] : memref<128x128xf32, #tpu.memory_space<vmem>>, vector<128x128xf32>
    tpu.vector_store %arg21[%c0_66, %c0_67], %196 {strides = array<i32>} : memref<128x128xf32, #tpu.memory_space<vmem>>, vector<128x128xf32>,
    return
  }
  func.func @transform_0(%arg0: i32) -> (i32, i32) {
    %c0_i32 = arith.constant 0 : i32
    %c0_i32_0 = arith.constant 0 : i32
    return %arg0, %c0_i32 : i32, i32
  }
  func.func @transform_1(%arg0: i32) -> (i32, i32) {
    %c0_i32 = arith.constant 0 : i32
    %c0_i32_0 = arith.constant 0 : i32
    return %arg0, %c0_i32 : i32, i32
  }
  func.func @transform_2(%arg0: i32) -> (i32, i32) {
    %c0_i32 = arith.constant 0 : i32
    %c0_i32_0 = arith.constant 0 : i32
    return %arg0, %c0_i32 : i32, i32
  }
  func.func @transform_3(%arg0: i32) -> (i32, i32) {
    %c0_i32 = arith.constant 0 : i32
    %c0_i32_0 = arith.constant 0 : i32
    return %arg0, %c0_i32 : i32, i32
  }
  func.func @transform_4(%arg0: i32) -> (i32, i32) {
    %c0_i32 = arith.constant 0 : i32
    %c0_i32_0 = arith.constant 0 : i32
    %c0_i32_1 = arith.constant 0 : i32
    return %c0_i32, %c0_i32_0 : i32, i32
  }
  func.func @transform_5(%arg0: i32) -> (i32, i32) {
    %c0_i32 = arith.constant 0 : i32
    %c0_i32_0 = arith.constant 0 : i32
    %c0_i32_1 = arith.constant 0 : i32
    return %c0_i32, %c0_i32_0 : i32, i32
  }
  func.func @transform_6(%arg0: i32) -> (i32, i32) {
    %c0_i32 = arith.constant 0 : i32
    %c0_i32_0 = arith.constant 0 : i32
    %c0_i32_1 = arith.constant 0 : i32
    return %c0_i32, %c0_i32_0 : i32, i32
  }
  func.func @transform_7(%arg0: i32) -> (i32, i32) {
    %c0_i32 = arith.constant 0 : i32
    %c0_i32_0 = arith.constant 0 : i32
    %c0_i32_1 = arith.constant 0 : i32
    return %c0_i32, %c0_i32_0 : i32, i32
  }
  func.func @transform_8(%arg0: i32) -> (i32, i32) {
    %c0_i32 = arith.constant 0 : i32
    %c0_i32_0 = arith.constant 0 : i32
    %c0_i32_1 = arith.constant 0 : i32
    return %c0_i32, %c0_i32_0 : i32, i32
  }
  func.func @transform_9(%arg0: i32) -> (i32, i32) {
    %c0_i32 = arith.constant 0 : i32
    %c0_i32_0 = arith.constant 0 : i32
    %c0_i32_1 = arith.constant 0 : i32
    return %c0_i32, %c0_i32_0 : i32, i32
  }
  func.func @transform_10(%arg0: i32) -> (i32, i32) {
    %c0_i32 = arith.constant 0 : i32
    %c0_i32_0 = arith.constant 0 : i32
    %c0_i32_1 = arith.constant 0 : i32
    return %c0_i32, %c0_i32_0 : i32, i32
  }
  func.func @transform_11(%arg0: i32) -> (i32, i32) {
    %c0_i32 = arith.constant 0 : i32
    %c0_i32_0 = arith.constant 0 : i32
    %c0_i32_1 = arith.constant 0 : i32
    return %c0_i32, %c0_i32_0 : i32, i32
  }
  func.func @transform_12(%arg0: i32) -> (i32, i32) {
    %c0_i32 = arith.constant 0 : i32
    %c0_i32_0 = arith.constant 0 : i32
    %c0_i32_1 = arith.constant 0 : i32
    return %c0_i32, %c0_i32_0 : i32, i32
  }
  func.func @transform_13(%arg0: i32) -> (i32, i32) {
    %c0_i32 = arith.constant 0 : i32
    %c0_i32_0 = arith.constant 0 : i32
    %c0_i32_1 = arith.constant 0 : i32
    return %c0_i32, %c0_i32_0 : i32, i32
  }
  func.func @transform_14(%arg0: i32) -> (i32, i32) {
    %c0_i32 = arith.constant 0 : i32
    %c0_i32_0 = arith.constant 0 : i32
    %c0_i32_1 = arith.constant 0 : i32
    return %c0_i32, %c0_i32_0 : i32, i32
  }
  func.func @transform_15(%arg0: i32) -> (i32, i32) {
    %c0_i32 = arith.constant 0 : i32
    %c0_i32_0 = arith.constant 0 : i32
    %c0_i32_1 = arith.constant 0 : i32
    return %c0_i32, %c0_i32_0 : i32, i32
  }
  func.func @transform_16(%arg0: i32) -> (i32, i32) {
    %c0_i32 = arith.constant 0 : i32
    %c0_i32_0 = arith.constant 0 : i32
    %c0_i32_1 = arith.constant 0 : i32
    return %c0_i32, %c0_i32_0 : i32, i32
  }
  func.func @transform_17(%arg0: i32) -> (i32, i32) {
    %c0_i32 = arith.constant 0 : i32
    %c0_i32_0 = arith.constant 0 : i32
    %c0_i32_1 = arith.constant 0 : i32
    return %c0_i32, %c0_i32_0 : i32, i32
  }
  func.func @transform_18(%arg0: i32) -> (i32, i32) {
    %c0_i32 = arith.constant 0 : i32
    %c0_i32_0 = arith.constant 0 : i32
    %c0_i32_1 = arith.constant 0 : i32
    return %c0_i32, %c0_i32_0 : i32, i32
  }
  func.func @transform_19(%arg0: i32) -> (i32, i32) {
    %c0_i32 = arith.constant 0 : i32
    %c0_i32_0 = arith.constant 0 : i32
    %c0_i32_1 = arith.constant 0 : i32
    return %c0_i32, %c0_i32_0 : i32, i32
  }
  func.func @transform_20(%arg0: i32) -> (i32, i32) {
    %c0_i32 = arith.constant 0 : i32
    %c0_i32_0 = arith.constant 0 : i32
    return %arg0, %c0_i32 : i32, i32
  }
}

</mosaic_0001>

<bundles_post_ra>
// kernel: extraction_layer_pallas.1
= control target key start
LH: loop header
LB: loop body
LE: loop exit
PB: predicated region body
PF: predicated region fallthrough
CT: control target
= control target key end

     0   :  { %vm193_vm0 = vcmask 261120   ;;  %vm1435_vm1 = vcmask 31744   ;;  %vm2324_vm2 = vcmask 64512   ;;  %vm5286_vm3 = vcmask 785408   ;;  %s10561_s4 = inlined_call_operand.vmem [shape: bf16[32,64], index: 4, kind: input, shape index: {}]   ;;  %s10562_s6 = inlined_call_operand.vmem [shape: bf16[32,64], index: 6, kind: input, shape index: {}]   ;;  %s10563_s0 = inlined_call_operand.vmem [shape: bf16[128,32], index: 0, kind: input, shape index: {}]   ;;  %s10564_s1 = inlined_call_operand.vmem [shape: bf16[128,32], index: 1, kind: input, shape index: {}]   ;;  %s10565_s8 = inlined_call_operand.vmem [shape: bf16[32,64], index: 8, kind: input, shape index: {}]   ;;  %s10566_s10 = inlined_call_operand.vmem [shape: bf16[32,64], index: 10, kind: input, shape index: {}]   ;;  %s10567_s2 = inlined_call_operand.vmem [shape: bf16[128,32], index: 2, kind: input, shape index: {}]   ;;  %s10568_s3 = inlined_call_operand.vmem [shape: bf16[128,32], index: 3, kind: input, shape index: {}]   ;;  %s10569_s12 = inlined_call_operand.vmem [shape: bf16[32,4], index: 12, kind: input, shape index: {}]   ;;  %s10570_s14 = inlined_call_operand.vmem [shape: bf16[32,4], index: 14, kind: input, shape index: {}]   ;;  %s10571_s16 = inlined_call_operand.vmem [shape: bf16[32,4], index: 16, kind: input, shape index: {}]   ;;  %s10572_s18 = inlined_call_operand.vmem [shape: bf16[32,8], index: 18, kind: input, shape index: {}]   ;;  %s10573_s5 = inlined_call_operand.vmem [shape: f32[1,64], index: 5, kind: input, shape index: {}]   ;;  %s10574_s7 = inlined_call_operand.vmem [shape: f32[1,64], index: 7, kind: input, shape index: {}]   ;;  %s10575_s9 = inlined_call_operand.vmem [shape: f32[1,64], index: 9, kind: input, shape index: {}]   ;;  %s10576_s11 = inlined_call_operand.vmem [shape: f32[1,64], index: 11, kind: input, shape index: {}]   ;;  %s10577_s13 = inlined_call_operand.vmem [shape: f32[1,4], index: 13, kind: input, shape index: {}]   ;;  %s10578_s15 = inlined_call_operand.vmem [shape: f32[1,4], index: 15, kind: input, shape index: {}]   ;;  %s10579_s17 = inlined_call_operand.vmem [shape: f32[1,4], index: 17, kind: input, shape index: {}]   ;;  %s10580_s19 = inlined_call_operand.vmem [shape: f32[1,8], index: 19, kind: input, shape index: {}]   ;;  %s10581_s20 = inlined_call_operand.vmem [shape: f32[128,128], index: 20, kind: output, shape index: {}]  }
   0x1   :  { %10880 = sst [smem:[#allocation332_spill]] %s10561_s4  ;;  %v5834_v12 = vld [vmem:[%s10566_s10 + $0x8] sm:$0xff]   ;;  %v5844_v20 = vld [vmem:[%s10566_s10] sm:$0xff]   ;;  %v6670_v30 = vld [vmem:[%s10567_s2 + $0x10] sm:$0xff]   ;;  %vm5269_vm4 = vcmask 523264  }
   0x2   :  { %10881 = sst [smem:[#allocation333_spill]] %s10562_s6  ;;  %v5849_v22 = vld [vmem:[%s10569_s12 + $0x8] sm:$0xff]   ;;  %v6639_v25 = vld [vmem:[%s10567_s2] sm:$0xff]   ;;  %v6675_v31 = vld [vmem:[%s10568_s3 + $0x10] sm:$0xff]  }
   0x3   :  { %10882 = sst [smem:[#allocation334_spill]] %s10563_s0  ;;  %v6644_v26 = vld [vmem:[%s10568_s3] sm:$0xff]   ;;  %v5854_v27 = vld [vmem:[%s10570_s14 + $0x8] sm:$0xff]   ;;  %v5852_v34 = vld [vmem:[%s10567_s2 + $0x18] sm:$0xff]  }
   0x4   :  { %10883 = sst [smem:[#allocation335_spill]] %s10564_s1  ;;  %v6660_v28 = vld [vmem:[%s10567_s2 + $0x8] sm:$0xff]   ;;  %v5859_v32 = vld [vmem:[%s10569_s12] sm:$0xff]   ;;  %v5853_v36 = vld [vmem:[%s10568_s3 + $0x18] sm:$0xff]  }
   0x5   :  { %10884 = sst [smem:[#allocation336_spill]] %s10565_s8  ;;  %v6665_v29 = vld [vmem:[%s10568_s3 + $0x8] sm:$0xff]   ;;  %v5864_v33 = vld [vmem:[%s10570_s14] sm:$0xff]   ;;  %v5860_v42 = vld [vmem:[%s10567_s2 + $0x30] sm:$0xff]   ;;  %s6395_s14 = smov 64  }
   0x6   :  { %10885 = sst [smem:[#allocation337_spill]] %s10576_s11  ;;  %v5865_v35 = vld [vmem:[%s10571_s16 + $0x8] sm:$0xff]   ;;  %v5855_v38 = vld [vmem:[%s10567_s2 + $0x20] sm:$0xff]   ;;  %v5861_v43 = vld [vmem:[%s10568_s3 + $0x30] sm:$0xff]  }
   0x7   :  { %s10886_s23 = sld [smem:[#allocation332_spill]]  ;;  %v5866_v37 = vld [vmem:[%s10572_s18 + $0x8] sm:$0xff]   ;;  %v5856_v39 = vld [vmem:[%s10568_s3 + $0x20] sm:$0xff]   ;;  %v5862_v44 = vld [vmem:[%s10567_s2 + $0x38] sm:$0xff]  }
   0x8   :  { %s10887_s11 = sld [smem:[#allocation333_spill]]  ;;  %v5857_v40 = vld [vmem:[%s10567_s2 + $0x28] sm:$0xff]   ;;  %v5863_v45 = vld [vmem:[%s10568_s3 + $0x38] sm:$0xff]   ;;  %v5867_v46 = vld [vmem:[%s10571_s16] sm:$0xff]  }
   0x9   :  { %s10888_s29 = sld [smem:[#allocation334_spill]]  ;;  %v5858_v41 = vld [vmem:[%s10568_s3 + $0x28] sm:$0xff]   ;;  %v5868_v47 = vld [vmem:[%s10572_s18] sm:$0xff]  }
   0xa   :  { %s10889_s21 = sld [smem:[#allocation335_spill]]  ;;  %v5323_v52 = vld [vmem:[%s10573_s5] ss:$0 sm:$0xff] }
   0xb   :  { %s10890_s25 = sld [smem:[#allocation336_spill]]  ;;  %v5342_v54 = vld [vmem:[%s10574_s7] ss:$0 sm:$0xff] }
   0xc   :  { %s10931_s0 = sld [smem:[#allocation337_spill]] }
   0xd   :  { %v5821_v0 = vld [vmem:[%s10886_s23 + $0x8] sm:$0xff]   ;;  %v5823_v2 = vld [vmem:[%s10886_s23] sm:$0xff]  }
   0xe   :  { %v5822_v1 = vld [vmem:[%s10887_s11 + $0x8] sm:$0xff]   ;;  %5523 = vmatprep.subr.bf16.mxu0 %v5821_v0  ;;  %v5824_v3 = vld [vmem:[%s10887_s11] sm:$0xff]  }
   0xf   :  { %5543 = vmatprep.subr.bf16.mxu1 %v5822_v1  ;;  %5524 = vmatpush3.bf16.msra.mxu0 %v5821_v0  ;;  %v6516_v4 = vld [vmem:[%s10888_s29] sm:$0xff]   ;;  %v6528_v6 = vld [vmem:[%s10888_s29 + $0x8] sm:$0xff]   ;;  %v6543_v9 = vld [vmem:[%s10888_s29 + $0x10] sm:$0xff]  }
  0x10   :  { %5544 = vmatpush3.bf16.msra.mxu1 %v5822_v1  ;;  %5525 = vmatprep.subr.bf16.mxu0 %v5823_v2  ;;  %v6521_v5 = vld [vmem:[%s10889_s21] sm:$0xff]   ;;  %v6535_v7 = vld [vmem:[%s10889_s21 + $0x8] sm:$0xff]   ;;  %v6550_v10 = vld [vmem:[%s10889_s21 + $0x10] sm:$0xff]  }
  0x11   :  { %5545 = vmatprep.subr.bf16.mxu1 %v5824_v3  ;;  %5527 = vmatprep.mubr.msk.bf16.mxu0 %vm193_vm0, %v6516_v4  ;;  %v5829_v8 = vld [vmem:[%s10890_s25 + $0x8] sm:$0xff]   ;;  %v6561_v11 = vld [vmem:[%s10888_s29 + $0x18] sm:$0xff]   ;;  %v6574_v14 = vld [vmem:[%s10888_s29 + $0x20] sm:$0xff]  }
  0x12   :  { %5547 = vmatprep.mubr.msk.bf16.mxu1 %vm193_vm0, %v6521_v5  ;;  %v6569_v13 = vld [vmem:[%s10889_s21 + $0x18] sm:$0xff]   ;;  %v6579_v15 = vld [vmem:[%s10889_s21 + $0x20] sm:$0xff]   ;;  %v6595_v17 = vld [vmem:[%s10888_s29 + $0x28] sm:$0xff]  }
  0x13   :  { %5526 = vmatpush3.bf16.msra.mxu0 %v5823_v2  ;;  %v5839_v16 = vld [vmem:[%s10890_s25] sm:$0xff]   ;;  %v6600_v18 = vld [vmem:[%s10889_s21 + $0x28] sm:$0xff]   ;;  %v6605_v19 = vld [vmem:[%s10888_s29 + $0x30] sm:$0xff]  }
  0x14   :  { %5546 = vmatpush3.bf16.msra.mxu1 %v5824_v3  ;;  %5563 = vmatprep.subr.bf16.mxu0 %v5829_v8  ;;  %v6613_v21 = vld [vmem:[%s10889_s21 + $0x30] sm:$0xff]   ;;  %v6629_v23 = vld [vmem:[%s10888_s29 + $0x38] sm:$0xff]  }
  0x15   :  { %5583 = vmatprep.subr.bf16.mxu1 %v5834_v12  ;;  %v6634_v24 = vld [vmem:[%s10889_s21 + $0x38] sm:$0xff]  }
  0x16   :  { %5528 = vmatmul.mubr.msk.bf16.vlgmr.msra.gmra.mxu0 %vm193_vm0, %v6528_v6 }
  0x17   :  { %5548 = vmatmul.mubr.msk.bf16.vlgmr.msra.gmra.mxu1 %vm193_vm0, %v6535_v7  ;;  %5564 = vmatpush3.bf16.msra.mxu0 %v5829_v8 }
  0x18   :  { %5531 = vmatprep.mubr.msk.bf16.mxu0 %vm193_vm0, %v6543_v9  ;;  %5551 = vmatprep.mubr.msk.bf16.mxu1 %vm193_vm0, %v6550_v10 }
  0x19   :  { %5584 = vmatpush3.bf16.msra.mxu1 %v5834_v12  ;;  %5565 = vmatprep.subr.bf16.mxu0 %v5839_v16 }
  0x1a   :  { %5585 = vmatprep.subr.bf16.mxu1 %v5844_v20 }
  0x1b   :  { %5566 = vmatpush3.bf16.msra.mxu0 %v5839_v16 }
  0x1c   :  { %5603 = vmatprep.subr.bf16.mxu0 %v5849_v22 }
  0x1d   :  { %5586 = vmatpush3.bf16.msra.mxu1 %v5844_v20 }
  0x1e   :  { %5532 = vmatmul.mubr.msk.bf16.gmra.mxu0 %vm193_vm0, %v6561_v11  ;;  %5623 = vmatprep.subr.bf16.mxu1 %v5854_v27 }
  0x1f   :  { %5552 = vmatmul.mubr.msk.bf16.gmra.mxu1 %vm193_vm0, %v6569_v13  ;;  %5535 = vmatprep.mubr.msk.bf16.mxu0 %vm193_vm0, %v6574_v14 }
  0x20   :  { %5555 = vmatprep.mubr.msk.bf16.mxu1 %vm193_vm0, %v6579_v15 }
  0x26   :  { %5536 = vmatmul.mubr.msk.bf16.gmra.mxu0 %vm193_vm0, %v6595_v17 }
  0x27   :  { %5556 = vmatmul.mubr.msk.bf16.gmra.mxu1 %vm193_vm0, %v6600_v18  ;;  %5539 = vmatprep.mubr.msk.bf16.mxu0 %vm193_vm0, %v6605_v19 }
  0x28   :  { %5559 = vmatprep.mubr.msk.bf16.mxu1 %vm193_vm0, %v6613_v21 }
  0x2e   :  { %5540 = vmatmul.mubr.msk.bf16.gmra.mxu0 %vm193_vm0, %v6629_v23 }
  0x2f   :  { %5560 = vmatmul.mubr.msk.bf16.gmra.mxu1 %vm193_vm0, %v6634_v24  ;;  %5567 = vmatprep.mubr.msk.bf16.mxu0 %vm193_vm0, %v6639_v25 }
  0x30   :  { %5587 = vmatprep.mubr.msk.bf16.mxu1 %vm193_vm0, %v6644_v26 }
  0x36   :  { %5568 = vmatmul.mubr.msk.bf16.vlgmr.msra.gmra.mxu0 %vm193_vm0, %v6660_v28 }
  0x37   :  { %5588 = vmatmul.mubr.msk.bf16.vlgmr.msra.gmra.mxu1 %vm193_vm0, %v6665_v29  ;;  %5604 = vmatpush3.bf16.msra.mxu0 %v5849_v22 }
  0x38   :  { %5571 = vmatprep.mubr.msk.bf16.mxu0 %vm193_vm0, %v6670_v30  ;;  %5591 = vmatprep.mubr.msk.bf16.mxu1 %vm193_vm0, %v6675_v31 }
  0x39   :  { %5624 = vmatpush3.bf16.msra.mxu1 %v5854_v27  ;;  %5605 = vmatprep.subr.bf16.mxu0 %v5859_v32 }
  0x3a   :  { %5625 = vmatprep.subr.bf16.mxu1 %v5864_v33 }
  0x3b   :  { %5606 = vmatpush3.bf16.msra.mxu0 %v5859_v32 }
  0x3c   :  { %5643 = vmatprep.subr.bf16.mxu0 %v5865_v35 }
  0x3d   :  { %5626 = vmatpush3.bf16.msra.mxu1 %v5864_v33 }
  0x3e   :  { %5572 = vmatmul.mubr.msk.bf16.gmra.mxu0 %vm193_vm0, %v5852_v34  ;;  %5663 = vmatprep.subr.bf16.mxu1 %v5866_v37 }
  0x3f   :  { %5592 = vmatmul.mubr.msk.bf16.gmra.mxu1 %vm193_vm0, %v5853_v36  ;;  %5575 = vmatprep.mubr.msk.bf16.mxu0 %vm193_vm0, %v5855_v38 }
  0x40   :  { %5595 = vmatprep.mubr.msk.bf16.mxu1 %vm193_vm0, %v5856_v39 }
  0x46   :  { %5576 = vmatmul.mubr.msk.bf16.gmra.mxu0 %vm193_vm0, %v5857_v40 }
  0x47   :  { %5596 = vmatmul.mubr.msk.bf16.gmra.mxu1 %vm193_vm0, %v5858_v41  ;;  %5579 = vmatprep.mubr.msk.bf16.mxu0 %vm193_vm0, %v5860_v42 }
  0x48   :  { %5599 = vmatprep.mubr.msk.bf16.mxu1 %vm193_vm0, %v5861_v43 }
  0x4e   :  { %5580 = vmatmul.mubr.msk.bf16.gmra.mxu0 %vm193_vm0, %v5862_v44 }
  0x4f   :  { %5600 = vmatmul.mubr.msk.bf16.gmra.mxu1 %vm193_vm0, %v5863_v45  ;;  %5607 = vmatprep.mubr.msk.bf16.mxu0 %vm193_vm0, %v6516_v4 }
  0x50   :  { %5627 = vmatprep.mubr.msk.bf16.mxu1 %vm193_vm0, %v6521_v5 }
  0x56   :  { %5608 = vmatmul.mubr.msk.bf16.vlgmr.msra.gmra.mxu0 %vm193_vm0, %v6528_v6 }
  0x57   :  { %5628 = vmatmul.mubr.msk.bf16.vlgmr.msra.gmra.mxu1 %vm193_vm0, %v6535_v7  ;;  %5611 = vmatprep.mubr.msk.bf16.mxu0 %vm193_vm0, %v6543_v9 }
  0x58   :  { %5631 = vmatprep.mubr.msk.bf16.mxu1 %vm193_vm0, %v6550_v10  ;;  %5644 = vmatpush3.bf16.msra.mxu0 %v5865_v35 }
  0x59   :  { %5664 = vmatpush3.bf16.msra.mxu1 %v5866_v37  ;;  %5645 = vmatprep.subr.bf16.mxu0 %v5867_v46 }
  0x5a   :  { %5665 = vmatprep.subr.bf16.mxu1 %v5868_v47 }
  0x5c   :  { %5646 = vmatpush3.bf16.msra.mxu0 %v5867_v46 }
  0x5d   :  { %5666 = vmatpush3.bf16.msra.mxu1 %v5868_v47 }
  0x5e   :  { %5612 = vmatmul.mubr.msk.bf16.gmra.mxu0 %vm193_vm0, %v6561_v11 }
  0x5f   :  { %5632 = vmatmul.mubr.msk.bf16.gmra.mxu1 %vm193_vm0, %v6569_v13  ;;  %5615 = vmatprep.mubr.msk.bf16.mxu0 %vm193_vm0, %v6574_v14 }
  0x60   :  { %5635 = vmatprep.mubr.msk.bf16.mxu1 %vm193_vm0, %v6579_v15 }
  0x66   :  { %5616 = vmatmul.mubr.msk.bf16.gmra.mxu0 %vm193_vm0, %v6595_v17 }
  0x67   :  { %5636 = vmatmul.mubr.msk.bf16.gmra.mxu1 %vm193_vm0, %v6600_v18  ;;  %5619 = vmatprep.mubr.msk.bf16.mxu0 %vm193_vm0, %v6605_v19 }
  0x68   :  { %5639 = vmatprep.mubr.msk.bf16.mxu1 %vm193_vm0, %v6613_v21 }
  0x6e   :  { %5620 = vmatmul.mubr.msk.bf16.gmra.mxu0 %vm193_vm0, %v6629_v23 }
  0x6f   :  { %5640 = vmatmul.mubr.msk.bf16.gmra.mxu1 %vm193_vm0, %v6634_v24  ;;  %5647 = vmatprep.mubr.msk.bf16.mxu0 %vm193_vm0, %v6639_v25 }
  0x70   :  { %5667 = vmatprep.mubr.msk.bf16.mxu1 %vm193_vm0, %v6644_v26 }
  0x76   :  { %5648 = vmatmul.mubr.msk.bf16.vlgmr.msra.gmra.mxu0 %vm193_vm0, %v6660_v28 }
  0x77   :  { %5668 = vmatmul.mubr.msk.bf16.vlgmr.msra.gmra.mxu1 %vm193_vm0, %v6665_v29  ;;  %5651 = vmatprep.mubr.msk.bf16.mxu0 %vm193_vm0, %v6670_v30 }
  0x78   :  { %5671 = vmatprep.mubr.msk.bf16.mxu1 %vm193_vm0, %v6675_v31 }
  0x7e   :  { %5652 = vmatmul.mubr.msk.bf16.gmra.mxu0 %vm193_vm0, %v5852_v34 }
  0x7f   :  { %5672 = vmatmul.mubr.msk.bf16.gmra.mxu1 %vm193_vm0, %v5853_v36  ;;  %5655 = vmatprep.mubr.msk.bf16.mxu0 %vm193_vm0, %v5855_v38 }
  0x80   :  { %5675 = vmatprep.mubr.msk.bf16.mxu1 %vm193_vm0, %v5856_v39 }
  0x86   :  { %5656 = vmatmul.mubr.msk.bf16.gmra.mxu0 %vm193_vm0, %v5857_v40 }
  0x87   :  { %5676 = vmatmul.mubr.msk.bf16.gmra.mxu1 %vm193_vm0, %v5858_v41  ;;  %5659 = vmatprep.mubr.msk.bf16.mxu0 %vm193_vm0, %v5860_v42 }
  0x88   :  { %5679 = vmatprep.mubr.msk.bf16.mxu1 %vm193_vm0, %v5861_v43 }
  0x8e   :  { %5660 = vmatmul.mubr.msk.bf16.gmra.mxu0 %vm193_vm0, %v5862_v44 }
  0x8f   :  { %5680 = vmatmul.mubr.msk.bf16.gmra.mxu1 %vm193_vm0, %v5863_v45 }
  0xd6   :  { %v6797_v48 = vpop.f32.mrf.mxu0 }
  0xd7   :  { %10891 = vst [vmem:[#allocation2_spill] sm:$0xff] %v6797_v48  ;;  %v6799_v49 = vpop.f32.mrf.mxu1 }
  0xd8   :  { %10892 = vst [vmem:[#allocation3_spill] sm:$0xff] %v6799_v49  ;;  %v6801_v50 = vpop.f32.mrf.mxu0 }
  0xd9   :  { %10893 = vst [vmem:[#allocation4_spill] sm:$0xff] %v6801_v50  ;;  %v6803_v51 = vpop.f32.mrf.mxu1 }
  0xda   :  { %10894 = vst [vmem:[#allocation5_spill] sm:$0xff] %v6803_v51  ;;  %v5530_v53 = vpop.f32.mrf.mxu0 }
  0xdb   :  { %v6811_v55 = vadd.f32 %v5530_v53, %v5323_v52  ;;  %v5550_v56 = vpop.f32.mrf.mxu1 }
  0xdc   :  { %v6813_v57 = vadd.f32 %v5550_v56, %v5342_v54  ;;  %v255_v58 = vpop.f32.mrf.mxu0 }
  0xdd   :  { %10895 = vst [vmem:[#allocation6_spill] sm:$0xff] %v6811_v55  ;;  %v6815_v59 = vadd.f32 %v5323_v52, %v255_v58  ;;  %v551_v60 = vpop.f32.mrf.mxu1 }
  0xde   :  { %10896 = vst [vmem:[#allocation7_spill] sm:$0xff] %v6813_v57  ;;  %v6817_v61 = vadd.f32 %v5342_v54, %v551_v60  ;;  %v6819_v62 = vpop.f32.mrf.mxu0 }
  0xdf   :  { %10897 = vst [vmem:[#allocation8_spill] sm:$0xff] %v6815_v59  ;;  %10899 = vst [vmem:[#allocation10_spill] sm:$0xff] %v6819_v62  ;;  %v6821_v63 = vpop.f32.mrf.mxu1 }
  0xe0   :  { %10898 = vst [vmem:[#allocation9_spill] sm:$0xff] %v6817_v61  ;;  %10900 = vst [vmem:[#allocation11_spill] sm:$0xff] %v6821_v63  ;;  %v6823_v0 = vpop.f32.mrf.mxu0 }
  0xe1   :  { %10901 = vst [vmem:[#allocation12_spill] sm:$0xff] %v6823_v0  ;;  %v6825_v1 = vpop.f32.mrf.mxu1 }
  0xe2   :  { %10902 = vst [vmem:[#allocation13_spill] sm:$0xff] %v6825_v1  ;;  %v5534_v2 = vpop.f32.mrf.mxu0 }
  0xe3   :  { %v6827_v3 = vadd.f32 %v5534_v2, %v5323_v52  ;;  %v5554_v4 = vpop.f32.mrf.mxu1 }
  0xe4   :  { %v6829_v5 = vadd.f32 %v5554_v4, %v5342_v54  ;;  %v271_v6 = vpop.f32.mrf.mxu0 }
  0xe5   :  { %10903 = vst [vmem:[#allocation14_spill] sm:$0xff] %v6827_v3  ;;  %v6831_v7 = vadd.f32 %v5323_v52, %v271_v6  ;;  %v567_v8 = vpop.f32.mrf.mxu1 }
  0xe6   :  { %10904 = vst [vmem:[#allocation15_spill] sm:$0xff] %v6829_v5  ;;  %v6833_v9 = vadd.f32 %v5342_v54, %v567_v8  ;;  %v5537_v10 = vpop.f32.mrf.mxu0 }
  0xe7   :  { %10905 = vst [vmem:[#allocation16_spill] sm:$0xff] %v6831_v7  ;;  %v6835_v11 = vadd.f32 %v5537_v10, %v5323_v52  ;;  %v5557_v12 = vpop.f32.mrf.mxu1 }
  0xe8   :  { %10906 = vst [vmem:[#allocation17_spill] sm:$0xff] %v6833_v9  ;;  %v6837_v13 = vadd.f32 %v5557_v12, %v5342_v54  ;;  %v284_v14 = vpop.f32.mrf.mxu0 }
  0xe9   :  { %10907 = vst [vmem:[#allocation18_spill] sm:$0xff] %v6835_v11  ;;  %v6839_v15 = vadd.f32 %v5323_v52, %v284_v14  ;;  %v580_v16 = vpop.f32.mrf.mxu1 }
  0xea   :  { %10908 = vst [vmem:[#allocation19_spill] sm:$0xff] %v6837_v13  ;;  %v6841_v17 = vadd.f32 %v5342_v54, %v580_v16  ;;  %v5538_v18 = vpop.f32.mrf.mxu0 }
  0xeb   :  { %10909 = vst [vmem:[#allocation20_spill] sm:$0xff] %v6839_v15  ;;  %v5558_v19 = vpop.f32.mrf.mxu1  ;;  %v6843_v21 = vadd.f32 %v5538_v18, %v5323_v52 }
  0xec   :  { %10910 = vst [vmem:[#allocation21_spill] sm:$0xff] %v6841_v17  ;;  %v287_v20 = vpop.f32.mrf.mxu0  ;;  %v6845_v23 = vadd.f32 %v5558_v19, %v5342_v54 }
  0xed   :  { %10911 = vst [vmem:[#allocation22_spill] sm:$0xff] %v6843_v21  ;;  %v583_v22 = vpop.f32.mrf.mxu1  ;;  %v6847_v25 = vadd.f32 %v5323_v52, %v287_v20 }
  0xee   :  { %10912 = vst [vmem:[#allocation23_spill] sm:$0xff] %v6845_v23  ;;  %v5541_v24 = vpop.f32.mrf.mxu0  ;;  %v6849_v27 = vadd.f32 %v5342_v54, %v583_v22 }
  0xef   :  { %10913 = vst [vmem:[#allocation24_spill] sm:$0xff] %v6847_v25  ;;  %v5561_v26 = vpop.f32.mrf.mxu1  ;;  %v6851_v31 = vadd.f32 %v5541_v24, %v5323_v52 }
  0xf0   :  { %10914 = vst [vmem:[#allocation25_spill] sm:$0xff] %v6849_v27  ;;  %v300_v28 = vpop.f32.mrf.mxu0  ;;  %v6853_v33 = vadd.f32 %v5561_v26, %v5342_v54 }
  0xf1   :  { %v596_v29 = vpop.f32.mrf.mxu1  ;;  %10915 = vst [vmem:[#allocation26_spill] sm:$0xff] %v6851_v31  ;;  %v6855_v35 = vadd.f32 %v5323_v52, %v300_v28 }
  0xf2   :  { %v5542_v30 = vpop.f32.mrf.mxu0  ;;  %10916 = vst [vmem:[#allocation27_spill] sm:$0xff] %v6853_v33  ;;  %v6857_v37 = vadd.f32 %v5342_v54, %v596_v29 }
  0xf3   :  { %v5562_v32 = vpop.f32.mrf.mxu1  ;;  %10917 = vst [vmem:[#allocation28_spill] sm:$0xff] %v6855_v35  ;;  %v6865_v41 = vadd.f32 %v5542_v30, %v5323_v52 }
  0xf4   :  { %v303_v34 = vpop.f32.mrf.mxu0  ;;  %10918 = vst [vmem:[#allocation29_spill] sm:$0xff] %v6857_v37  ;;  %v6869_v43 = vadd.f32 %v5562_v32, %v5342_v54 }
  0xf5   :  { %v599_v36 = vpop.f32.mrf.mxu1  ;;  %10922 = vst [vmem:[#allocation33_spill] sm:$0xff] %v6865_v41  ;;  %v6871_v45 = vadd.f32 %v5323_v52, %v303_v34  ;;  %v5361_v52 = vld [vmem:[%s10575_s9] ss:$0 sm:$0xff] }
  0xf6   :  { %v6859_v38 = vpop.f32.mrf.mxu0  ;;  %10924 = vst [vmem:[#allocation35_spill] sm:$0xff] %v6869_v43  ;;  %v6873_v47 = vadd.f32 %v5342_v54, %v599_v36  ;;  %v5380_v54 = vld [vmem:[%s10931_s0] ss:$0 sm:$0xff] }
  0xf7   :  { %10919 = vst [vmem:[#allocation30_spill] sm:$0xff] %v6859_v38  ;;  %v6861_v39 = vpop.f32.mrf.mxu1  ;;  %10925 = vst [vmem:[#allocation36_spill] sm:$0xff] %v6871_v45 }
  0xf8   :  { %10920 = vst [vmem:[#allocation31_spill] sm:$0xff] %v6861_v39  ;;  %v6863_v40 = vpop.f32.mrf.mxu0  ;;  %10926 = vst [vmem:[#allocation37_spill] sm:$0xff] %v6873_v47 }
  0xf9   :  { %10921 = vst [vmem:[#allocation32_spill] sm:$0xff] %v6863_v40  ;;  %v6867_v42 = vpop.f32.mrf.mxu1 }
  0xfa   :  { %10923 = vst [vmem:[#allocation34_spill] sm:$0xff] %v6867_v42  ;;  %v5570_v44 = vpop.f32.mrf.mxu0 }
  0xfb   :  { %v5590_v46 = vpop.f32.mrf.mxu1  ;;  %v6889_v12 = vadd.f32 %v5570_v44, %v5361_v52 }
  0xfc   :  { %v847_v53 = vpop.f32.mrf.mxu0  ;;  %v6891_v16 = vadd.f32 %v5590_v46, %v5380_v54 }
  0xfd   :  { %v1143_v56 = vpop.f32.mrf.mxu1  ;;  %10932 = vst [vmem:[#allocation42_spill] sm:$0xff] %v6889_v12  ;;  %v6895_v19 = vadd.f32 %v5361_v52, %v847_v53 }
  0xfe   :  { %v6875_v58 = vpop.f32.mrf.mxu0  ;;  %10933 = vst [vmem:[#allocation43_spill] sm:$0xff] %v6891_v16  ;;  %v6897_v20 = vadd.f32 %v5380_v54, %v1143_v56 }
  0xff   :  { %10927 = vst [vmem:[#allocation38_spill] sm:$0xff] %v6875_v58  ;;  %v6877_v60 = vpop.f32.mrf.mxu1  ;;  %10935 = vst [vmem:[#allocation45_spill] sm:$0xff] %v6895_v19 }
 0x100   :  { %10928 = vst [vmem:[#allocation39_spill] sm:$0xff] %v6877_v60  ;;  %v6879_v2 = vpop.f32.mrf.mxu0  ;;  %10936 = vst [vmem:[#allocation46_spill] sm:$0xff] %v6897_v20 }
 0x101   :  { %10929 = vst [vmem:[#allocation40_spill] sm:$0xff] %v6879_v2  ;;  %v6881_v4 = vpop.f32.mrf.mxu1 }
 0x102   :  { %10930 = vst [vmem:[#allocation41_spill] sm:$0xff] %v6881_v4  ;;  %v5574_v6 = vpop.f32.mrf.mxu0 }
 0x103   :  { %v5594_v8 = vpop.f32.mrf.mxu1  ;;  %v6901_v32 = vadd.f32 %v5574_v6, %v5361_v52 }
 0x104   :  { %v863_v10 = vpop.f32.mrf.mxu0  ;;  %v6903_v34 = vadd.f32 %v5594_v8, %v5380_v54 }
 0x105   :  { %v1159_v14 = vpop.f32.mrf.mxu1  ;;  %10938 = vst [vmem:[#allocation48_spill] sm:$0xff] %v6901_v32  ;;  %v6907_v44 = vadd.f32 %v5361_v52, %v863_v10 }
 0x106   :  { %v6893_v18 = vpop.f32.mrf.mxu0  ;;  %10939 = vst [vmem:[#allocation49_spill] sm:$0xff] %v6903_v34  ;;  %v6909_v46 = vadd.f32 %v5380_v54, %v1159_v14 }
 0x107   :  { %10934 = vst [vmem:[#allocation44_spill] sm:$0xff] %v6893_v18  ;;  %v5597_v22 = vpop.f32.mrf.mxu1  ;;  %10941 = vst [vmem:[#allocation51_spill] sm:$0xff] %v6907_v44 }
 0x108   :  { %v6899_v24 = vpop.f32.mrf.mxu0  ;;  %10942 = vst [vmem:[#allocation52_spill] sm:$0xff] %v6909_v46  ;;  %v6913_v12 = vadd.f32 %v5597_v22, %v5380_v54 }
 0x109   :  { %10937 = vst [vmem:[#allocation47_spill] sm:$0xff] %v6899_v24  ;;  %v1172_v28 = vpop.f32.mrf.mxu1 }
 0x10a   :  { %v5578_v26 = vpop.f32.mrf.mxu0  ;;  %10944 = vst [vmem:[#allocation54_spill] sm:$0xff] %v6913_v12  ;;  %v6915_v47 = vadd.f32 %v5380_v54, %v1172_v28 }
 0x10b   :  { %v5598_v30 = vpop.f32.mrf.mxu1  ;;  %v6917_v6 = vadd.f32 %v5578_v26, %v5361_v52 }
 0x10c   :  { %v879_v29 = vpop.f32.mrf.mxu0  ;;  %10945 = vst [vmem:[#allocation55_spill] sm:$0xff] %v6915_v47  ;;  %v6919_v8 = vadd.f32 %v5598_v30, %v5380_v54 }
 0x10d   :  { %v1175_v53 = vpop.f32.mrf.mxu1  ;;  %10946 = vst [vmem:[#allocation56_spill] sm:$0xff] %v6917_v6  ;;  %v6921_v41 = vadd.f32 %v5361_v52, %v879_v29 }
 0x10e   :  { %v6905_v36 = vpop.f32.mrf.mxu0  ;;  %10947 = vst [vmem:[#allocation57_spill] sm:$0xff] %v6919_v8  ;;  %v6923_v10 = vadd.f32 %v5380_v54, %v1175_v53 }
 0x10f   :  { %10940 = vst [vmem:[#allocation50_spill] sm:$0xff] %v6905_v36  ;;  %v5601_v19 = vpop.f32.mrf.mxu1  ;;  %10948 = vst [vmem:[#allocation58_spill] sm:$0xff] %v6921_v41 }
 0x110   :  { %v6911_v56 = vpop.f32.mrf.mxu0  ;;  %10949 = vst [vmem:[#allocation59_spill] sm:$0xff] %v6923_v10  ;;  %v6925_v36 = vadd.f32 %v5601_v19, %v5380_v54  ;;  %v6940_v19 = vld [vmem:[%s10577_s13] ss:$0 sm:$0xff] }
 0x111   :  { %10943 = vst [vmem:[#allocation53_spill] sm:$0xff] %v6911_v56  ;;  %v1188_v43 = vpop.f32.mrf.mxu1 }
 0x112   :  { %v5582_v45 = vpop.f32.mrf.mxu0  ;;  %10950 = vst [vmem:[#allocation60_spill] sm:$0xff] %v6925_v36  ;;  %v6927_v56 = vadd.f32 %v5380_v54, %v1188_v43  ;;  %v6945_v43 = vld [vmem:[%s10578_s15] ss:$0 sm:$0xff] }
 0x113   :  { %v5602_v14 = vpop.f32.mrf.mxu1  ;;  %v6929_v18 = vadd.f32 %v5582_v45, %v5361_v52 }
 0x114   :  { %v895_v32 = vpop.f32.mrf.mxu0  ;;  %10951 = vst [vmem:[#allocation61_spill] sm:$0xff] %v6927_v56  ;;  %v6931_v26 = vadd.f32 %v5602_v14, %v5380_v54 }
 0x115   :  { %v1191_v22 = vpop.f32.mrf.mxu1  ;;  %10952 = vst [vmem:[#allocation62_spill] sm:$0xff] %v6929_v18  ;;  %v6933_v24 = vadd.f32 %v5361_v52, %v895_v32 }
 0x116   :  { %v5609_v44 = vpop.f32.mrf.mxu0  ;;  %10953 = vst [vmem:[#allocation63_spill] sm:$0xff] %v6931_v26  ;;  %v6935_v29 = vadd.f32 %v5380_v54, %v1191_v22 }
 0x117   :  { %v5629_v27 = vpop.f32.mrf.mxu1  ;;  %10954 = vst [vmem:[#allocation64_spill] sm:$0xff] %v6933_v24  ;;  %v6948_v14 = vadd.f32 %v5609_v44, %v6940_v19 }
 0x118   :  { %v1372_v28 = vpop.f32.mrf.mxu0  ;;  %10955 = vst [vmem:[#allocation65_spill] sm:$0xff] %v6935_v29  ;;  %v6951_v52 = vadd.f32 %v5629_v27, %v6945_v43 }
 0x119   :  { %v1669_v6 = vpop.f32.mrf.mxu1  ;;  %v1442_v32 = vsel %vm1435_vm1, %v6948_v14, -inf  ;;  %v6956_v22 = vadd.f32 %v6940_v19, %v1372_v28 }
 0x11a   :  { %v5610_v30 = vpop.f32.mrf.mxu0  ;;  %v1738_v18 = vsel %vm1435_vm1, %v6951_v52, -inf  ;;  %1443 = vmax.xlane.f32.xlu1 %v1442_v32  ;;  %v6964_v44 = vadd.f32 %v6945_v43, %v1669_v6 }
 0x11b   :  { %v5630_v53 = vpop.f32.mrf.mxu1  ;;  %v6961_v24 = vadd.f32 %v5610_v30, %v6940_v19  ;;  %1739 = vmax.xlane.f32.xlu0 %v1738_v18  ;;  %v1436_v32 = vsel %vm1435_vm1, %v6956_v22, -inf }
 0x11c   :  { %v1375_v45 = vpop.f32.mrf.mxu0  ;;  %v6967_v27 = vadd.f32 %v5630_v53, %v6945_v43  ;;  %v1732_v18 = vsel %vm1435_vm1, %v6964_v44, -inf }
 0x11d   :  { %v1672_v41 = vpop.f32.mrf.mxu1  ;;  %v1445_v29 = vsel %vm1435_vm1, %v6961_v24, -inf  ;;  %v6981_v25 = vadd.f32 %v6940_v19, %v1375_v45 }
 0x11e   :  { %v5613_v54 = vpop.f32.mrf.mxu0  ;;  %1446 = vmax.xlane.f32.xlu1 %v1445_v29  ;;  %v1741_v30 = vsel %vm1435_vm1, %v6967_v27, -inf  ;;  %v6978_v53 = vadd.f32 %v6945_v43, %v1672_v41 }
 0x11f   :  { %v5633_v26 = vpop.f32.mrf.mxu1  ;;  %1437 = vmax.xlane.f32.xlu0 %v1436_v32  ;;  %v6987_v32 = vadd.f32 %v5613_v54, %v6940_v19  ;;  %v1439_v41 = vsel %vm1435_vm1, %v6981_v25, -inf }
 0x120   :  { %v1388_v28 = vpop.f32.mrf.mxu0  ;;  %v1735_v2 = vsel %vm1435_vm1, %v6978_v53, -inf }
 0x121   :  { %v1685_v10 = vpop.f32.mrf.mxu1  ;;  %v1454_v54 = vsel %vm1435_vm1, %v6987_v32, -inf }
 0x122   :  { %v5614_v6 = vpop.f32.mrf.mxu0  ;;  %1742 = vmax.xlane.f32.xlu1 %v1741_v30  ;;  %v7019_v21 = vadd.f32 %v6945_v43, %v1685_v10 }
 0x123   :  { %1733 = vmax.xlane.f32.xlu0 %v1732_v18  ;;  %v6984_v29 = vadd.f32 %v5614_v6, %v6940_v19  ;;  %v5634_v58 = vpop.f32.mrf.mxu1  ;;  %v6999_v18 = vadd.f32 %v5633_v26, %v6945_v43 }
 0x124   :  { %v1391_v23 = vpop.f32.mrf.mxu0  ;;  %v6994_v45 = vadd.f32 %v5634_v58, %v6945_v43  ;;  %v7009_v58 = vadd.f32 %v6940_v19, %v1388_v28  ;;  %v1744_v10 = vsel %vm1435_vm1, %v7019_v21, -inf }
 0x125   :  { %v1457_v30 = vsel %vm1435_vm1, %v6984_v29, -inf  ;;  %v1750_v26 = vsel %vm1435_vm1, %v6999_v18, -inf }
 0x126   :  { %1736 = vmax.xlane.f32.xlu1 %v1735_v2  ;;  %v5617_v6 = vpop.f32.mrf.mxu0  ;;  %v1688_v2 = vpop.f32.mrf.mxu1  ;;  %v1753_v8 = vsel %vm1435_vm1, %v6994_v45, -inf }
 0x127   :  { %1440 = vmax.xlane.f32.xlu0 %v1439_v41  ;;  %v7006_v41 = vadd.f32 %v6940_v19, %v1391_v23  ;;  %v1448_v23 = vsel %vm1435_vm1, %v7009_v58, -inf }
 0x128   :  { %v1404_v38 = vpop.f32.mrf.mxu0  ;;  %v5637_v40 = vpop.f32.mrf.mxu1 }
 0x12a   :  { %1458 = vmax.xlane.f32.xlu1 %v1457_v30  ;;  %v7014_v30 = vadd.f32 %v6945_v43, %v1688_v2  ;;  %v5618_v28 = vpop.f32.mrf.mxu0  ;;  %v1701_v9 = vpop.f32.mrf.mxu1  ;;  %v7029_v2 = vadd.f32 %v5617_v6, %v6940_v19 }
 0x12b   :  { %1455 = vmax.xlane.f32.xlu0 %v1454_v54  ;;  %v1451_v54 = vsel %vm1435_vm1, %v7006_v41, -inf  ;;  %v7024_v46 = vadd.f32 %v5618_v28, %v6940_v19 }
 0x12c   :  { %v1407_v7 = vpop.f32.mrf.mxu0  ;;  %v1466_v6 = vsel %vm1435_vm1, %v7029_v2, -inf }
 0x12e   :  { %1754 = vmax.xlane.f32.xlu1 %v1753_v8  ;;  %v1747_v8 = vsel %vm1435_vm1, %v7014_v30, -inf  ;;  %v5621_v28 = vpop.f32.mrf.mxu0 }
 0x12f   :  { %1751 = vmax.xlane.f32.xlu0 %v1750_v26  ;;  %v5638_v26 = vpop.f32.mrf.mxu1 }
 0x130   :  { %v7034_v5 = vadd.f32 %v5638_v26, %v6945_v43  ;;  %v7049_v26 = vadd.f32 %v6940_v19, %v1404_v38  ;;  %v1420_v3 = vpop.f32.mrf.mxu0 }
 0x131   :  { %v1704_v34 = vpop.f32.mrf.mxu1 }
 0x132   :  { %1452 = vmax.xlane.f32.xlu1 %v1451_v54  ;;  %v1469_v54 = vsel %vm1435_vm1, %v7024_v46, -inf  ;;  %v1460_v38 = vsel %vm1435_vm1, %v7049_v26, -inf  ;;  %v5622_v20 = vpop.f32.mrf.mxu0 }
 0x133   :  { %1449 = vmax.xlane.f32.xlu0 %v1448_v23  ;;  %v7039_v23 = vadd.f32 %v5637_v40, %v6945_v43  ;;  %v5641_v61 = vpop.f32.mrf.mxu1  ;;  %v7064_v57 = vadd.f32 %v5622_v20, %v6940_v19 }
 0x134   :  { %v1423_v16 = vpop.f32.mrf.mxu0 }
 0x135   :  { %v1762_v40 = vsel %vm1435_vm1, %v7039_v23, -inf  ;;  %v1717_v59 = vpop.f32.mrf.mxu1  ;;  %v1481_v20 = vsel %vm1435_vm1, %v7064_v57, -inf }
 0x136   :  { %1748 = vmax.xlane.f32.xlu1 %v1747_v8  ;;  %v7044_v8 = vadd.f32 %v6940_v19, %v1407_v7 }
 0x137   :  { %1745 = vmax.xlane.f32.xlu0 %v1744_v10  ;;  %v1765_v10 = vsel %vm1435_vm1, %v7034_v5, -inf }
 0x138   :  { %v1463_v7 = vsel %vm1435_vm1, %v7044_v8, -inf }
 0x13a   :  { %1470 = vmax.xlane.f32.xlu1 %v1469_v54  ;;  %v7054_v54 = vadd.f32 %v6945_v43, %v1704_v34 }
 0x13b   :  { %1467 = vmax.xlane.f32.xlu0 %v1466_v6  ;;  %v7059_v6 = vadd.f32 %v6945_v43, %v1701_v9 }
 0x13c   :  { %v1759_v34 = vsel %vm1435_vm1, %v7054_v54, -inf }
 0x13d   :  { %v1756_v9 = vsel %vm1435_vm1, %v7059_v6, -inf }
 0x13e   :  { %1766 = vmax.xlane.f32.xlu1 %v1765_v10  ;;  %v7069_v10 = vadd.f32 %v5621_v28, %v6940_v19 }
 0x13f   :  { %1763 = vmax.xlane.f32.xlu0 %v1762_v40  ;;  %v5642_v40 = vpop.f32.mrf.mxu1 }
 0x140   :  { %v7074_v55 = vadd.f32 %v5642_v40, %v6945_v43  ;;  %v1478_v28 = vsel %vm1435_vm1, %v7069_v10, -inf  ;;  %v7089_v40 = vadd.f32 %v6940_v19, %v1420_v3  ;;  %v7104_v3 = vld [vmem:[%s10579_s17] ss:$0 sm:$0xff] }
 0x141   :  { %v1720_v37 = vpop.f32.mrf.mxu1 }
 0x142   :  { %1464 = vmax.xlane.f32.xlu1 %v1463_v7  ;;  %v7079_v7 = vadd.f32 %v5641_v61, %v6945_v43 }
 0x143   :  { %1461 = vmax.xlane.f32.xlu0 %v1460_v38  ;;  %v5649_v38 = vpop.f32.mrf.mxu0  ;;  %v5669_v35 = vpop.f32.mrf.mxu1 }
 0x144   :  { %v1774_v61 = vsel %vm1435_vm1, %v7079_v7, -inf }
 0x145   :  { %v1965_v56 = vpop.f32.mrf.mxu0 }
 0x146   :  { %1760 = vmax.xlane.f32.xlu1 %v1759_v34  ;;  %v7084_v34 = vadd.f32 %v6940_v19, %v1423_v16  ;;  %v1472_v19 = vsel %vm1435_vm1, %v7089_v40, -inf }
 0x147   :  { %1757 = vmax.xlane.f32.xlu0 %v1756_v9  ;;  %v1777_v9 = vsel %vm1435_vm1, %v7074_v55, -inf  ;;  %v5650_v33 = vpop.f32.mrf.mxu0 }
 0x148   :  { %v1475_v16 = vsel %vm1435_vm1, %v7084_v34, -inf }
 0x14a   :  { %1482 = vmax.xlane.f32.xlu1 %v1481_v20  ;;  %v7094_v20 = vadd.f32 %v6945_v43, %v1720_v37  ;;  %v7109_v37 = vadd.f32 %v5650_v33, %v7104_v3 }
 0x14b   :  { %1479 = vmax.xlane.f32.xlu0 %v1478_v28  ;;  %v7099_v28 = vadd.f32 %v6945_v43, %v1717_v59  ;;  %v7114_v59 = vadd.f32 %v5649_v38, %v7104_v3  ;;  %v7119_v43 = vld [vmem:[%s10580_s19] ss:$0 sm:$0xff] }
 0x14c   :  { %v7129_v38 = vadd.f32 %v5669_v35, %v7119_v43 }
 0x14d   :  { %v1768_v36 = vsel %vm1435_vm1, %v7099_v28, -inf  ;;  %v2034_v17 = vsel %vm1435_vm1, %v7114_v59, -inf }
 0x14e   :  { %1778 = vmax.xlane.f32.xlu1 %v1777_v9  ;;  %v2261_v9 = vpop.f32.mrf.mxu1  ;;  %v2331_v35 = vsel %vm2324_vm2, %v7129_v38, -inf }
 0x14f   :  { %1775 = vmax.xlane.f32.xlu0 %v1774_v61  ;;  %v1771_v61 = vsel %vm1435_vm1, %v7094_v20, -inf }
 0x150   :  { %v5670_v31 = vpop.f32.mrf.mxu1 }
 0x151   :  { %v7124_v33 = vadd.f32 %v5670_v31, %v7119_v43 }
 0x152   :  { %1476 = vmax.xlane.f32.xlu1 %v1475_v16  ;;  %v1968_v16 = vpop.f32.mrf.mxu0  ;;  %v2264_v15 = vpop.f32.mrf.mxu1 }
 0x153   :  { %1473 = vmax.xlane.f32.xlu0 %v1472_v19  ;;  %v2037_v19 = vsel %vm1435_vm1, %v7109_v37, -inf  ;;  %v2334_v31 = vsel %vm2324_vm2, %v7124_v33, -inf }
 0x154   :  { %v5653_v47 = vpop.f32.mrf.mxu0  ;;  %v5673_v12 = vpop.f32.mrf.mxu1 }
 0x156   :  { %1772 = vmax.xlane.f32.xlu1 %v1771_v61  ;;  %v7134_v61 = vadd.f32 %v7104_v3, %v1968_v16  ;;  %v1981_v13 = vpop.f32.mrf.mxu0  ;;  %v7149_v16 = vadd.f32 %v7119_v43, %v2261_v9  ;;  %v2277_v1 = vpop.f32.mrf.mxu1 }
 0x157   :  { %1769 = vmax.xlane.f32.xlu0 %v1768_v36  ;;  %v7139_v36 = vadd.f32 %v7104_v3, %v1965_v56 }
 0x158   :  { %v5654_v11 = vpop.f32.mrf.mxu0  ;;  %v2325_v9 = vsel %vm2324_vm2, %v7149_v16, -inf }
 0x159   :  { %v2028_v56 = vsel %vm1435_vm1, %v7139_v36, -inf  ;;  %v7154_v4 = vadd.f32 %v5654_v11, %v7104_v3 }
 0x15a   :  { %2038 = vmax.xlane.f32.xlu1 %v2037_v19  ;;  %v7144_v19 = vadd.f32 %v7119_v43, %v2264_v15  ;;  %v1984_v0 = vpop.f32.mrf.mxu0 }
 0x15b   :  { %2035 = vmax.xlane.f32.xlu0 %v2034_v17  ;;  %v2031_v17 = vsel %vm1435_vm1, %v7134_v61, -inf  ;;  %v2049_v11 = vsel %vm1435_vm1, %v7154_v4, -inf }
 0x15c   :  { %v2328_v15 = vsel %vm2324_vm2, %v7144_v19, -inf }
 0x15e   :  { %2335 = vmax.xlane.f32.xlu1 %v2334_v31  ;;  %v7159_v31 = vadd.f32 %v5653_v47, %v7104_v3 }
 0x15f   :  { %2332 = vmax.xlane.f32.xlu0 %v2331_v35  ;;  %v5674_v35 = vpop.f32.mrf.mxu1 }
 0x160   :  { %v7164_v63 = vadd.f32 %v5674_v35, %v7119_v43  ;;  %v2046_v47 = vsel %vm1435_vm1, %v7159_v31, -inf  ;;  %v7179_v35 = vadd.f32 %v7104_v3, %v1981_v13 }
 0x161   :  { %v2280_v60 = vpop.f32.mrf.mxu1 }
 0x162   :  { %2032 = vmax.xlane.f32.xlu1 %v2031_v17  ;;  %v7169_v17 = vadd.f32 %v5673_v12, %v7119_v43  ;;  %v2040_v13 = vsel %vm1435_vm1, %v7179_v35, -inf }
 0x163   :  { %2029 = vmax.xlane.f32.xlu0 %v2028_v56  ;;  %v5657_v56 = vpop.f32.mrf.mxu0  ;;  %v5677_v51 = vpop.f32.mrf.mxu1 }
 0x164   :  { %v2343_v12 = vsel %vm2324_vm2, %v7169_v17, -inf }
 0x165   :  { %v1997_v62 = vpop.f32.mrf.mxu0  ;;  %v2293_v50 = vpop.f32.mrf.mxu1 }
 0x166   :  { %2329 = vmax.xlane.f32.xlu1 %v2328_v15  ;;  %v7174_v15 = vadd.f32 %v7104_v3, %v1984_v0 }
 0x167   :  { %2326 = vmax.xlane.f32.xlu0 %v2325_v9  ;;  %v2346_v9 = vsel %vm2324_vm2, %v7164_v63, -inf  ;;  %v5658_v42 = vpop.f32.mrf.mxu0 }
 0x168   :  { %v2043_v0 = vsel %vm1435_vm1, %v7174_v15, -inf  ;;  %v7194_v49 = vadd.f32 %v5658_v42, %v7104_v3 }
 0x169   :  { %v2000_v39 = vpop.f32.mrf.mxu0 }
 0x16a   :  { %2050 = vmax.xlane.f32.xlu1 %v2049_v11  ;;  %v7184_v11 = vadd.f32 %v7119_v43, %v2280_v60  ;;  %10958 = vst [vmem:[#allocation68_spill] sm:$0xff] %v7194_v49  ;;  %v2061_v42 = vsel %vm1435_vm1, %v7194_v49, -inf }
 0x16b   :  { %2047 = vmax.xlane.f32.xlu0 %v2046_v47  ;;  %v7189_v47 = vadd.f32 %v7119_v43, %v2277_v1 }
 0x16c   :  { %10956 = vst [vmem:[#allocation66_spill] sm:$0xff] %v7184_v11  ;;  %v2340_v60 = vsel %vm2324_vm2, %v7184_v11, -inf }
 0x16d   :  { %10957 = vst [vmem:[#allocation67_spill] sm:$0xff] %v7189_v47  ;;  %v2337_v1 = vsel %vm2324_vm2, %v7189_v47, -inf }
 0x16e   :  { %2347 = vmax.xlane.f32.xlu1 %v2346_v9  ;;  %v7199_v9 = vadd.f32 %v5657_v56, %v7104_v3 }
 0x16f   :  { %2344 = vmax.xlane.f32.xlu0 %v2343_v12  ;;  %v5678_v12 = vpop.f32.mrf.mxu1 }
 0x170   :  { %10959 = vst [vmem:[#allocation69_spill] sm:$0xff] %v7199_v9  ;;  %v7204_v48 = vadd.f32 %v5678_v12, %v7119_v43  ;;  %v2058_v56 = vsel %vm1435_vm1, %v7199_v9, -inf  ;;  %v7219_v12 = vadd.f32 %v7104_v3, %v1997_v62 }
 0x171   :  { %v2296_v11 = vpop.f32.mrf.mxu1 }
 0x172   :  { %2044 = vmax.xlane.f32.xlu1 %v2043_v0  ;;  %10960 = vst [vmem:[#allocation70_spill] sm:$0xff] %v7204_v48  ;;  %v7209_v0 = vadd.f32 %v5677_v51, %v7119_v43  ;;  %10962 = vst [vmem:[#allocation72_spill] sm:$0xff] %v7219_v12  ;;  %v2052_v62 = vsel %vm1435_vm1, %v7219_v12, -inf }
 0x173   :  { %2041 = vmax.xlane.f32.xlu0 %v2040_v13  ;;  %v5661_v13 = vpop.f32.mrf.mxu0  ;;  %v5681_v47 = vpop.f32.mrf.mxu1 }
 0x174   :  { %10961 = vst [vmem:[#allocation71_spill] sm:$0xff] %v7209_v0  ;;  %v2355_v51 = vsel %vm2324_vm2, %v7209_v0, -inf }
 0x175   :  { %v2013_v49 = vpop.f32.mrf.mxu0  ;;  %v2309_v9 = vpop.f32.mrf.mxu1 }
 0x176   :  { %2341 = vmax.xlane.f32.xlu1 %v2340_v60  ;;  %v7214_v60 = vadd.f32 %v7104_v3, %v2000_v39 }
 0x177   :  { %2338 = vmax.xlane.f32.xlu0 %v2337_v1  ;;  %v2358_v1 = vsel %vm2324_vm2, %v7204_v48, -inf  ;;  %v5662_v48 = vpop.f32.mrf.mxu0 }
 0x178   :  { %v2055_v39 = vsel %vm1435_vm1, %v7214_v60, -inf  ;;  %v7234_v0 = vadd.f32 %v5662_v48, %v7104_v3  ;;  %v7249_v48 = vadd.f32 %v5681_v47, %v7119_v43 }
 0x17a   :  { %2062 = vmax.xlane.f32.xlu1 %v2061_v42  ;;  %v7224_v42 = vadd.f32 %v7119_v43, %v2296_v11  ;;  %10966 = vst [vmem:[#allocation76_spill] sm:$0xff] %v7249_v48 }
 0x17b   :  { %2059 = vmax.xlane.f32.xlu0 %v2058_v56  ;;  %v7229_v56 = vadd.f32 %v7119_v43, %v2293_v50 }
 0x17c   :  { %v2352_v11 = vsel %vm2324_vm2, %v7224_v42, -inf }
 0x17d   :  { %10963 = vst [vmem:[#allocation73_spill] sm:$0xff] %v7229_v56  ;;  %v2349_v50 = vsel %vm2324_vm2, %v7229_v56, -inf }
 0x17e   :  { %2359 = vmax.xlane.f32.xlu1 %v2358_v1  ;;  %v7239_v1 = vadd.f32 %v5661_v13, %v7104_v3  ;;  %v2016_v13 = vpop.f32.mrf.mxu0 }
 0x17f   :  { %2356 = vmax.xlane.f32.xlu0 %v2355_v51  ;;  %v5682_v51 = vpop.f32.mrf.mxu1  ;;  %v7254_v56 = vadd.f32 %v7104_v3, %v2016_v13 }
 0x180   :  { %10964 = vst [vmem:[#allocation74_spill] sm:$0xff] %v7239_v1  ;;  %v7244_v12 = vadd.f32 %v5682_v51, %v7119_v43  ;;  %v2367_v51 = vsel %vm2324_vm2, %v7249_v48, -inf }
 0x181   :  { %10967 = vst [vmem:[#allocation77_spill] sm:$0xff] %v7254_v56  ;;  %v2312_v47 = vpop.f32.mrf.mxu1 }
 0x182   :  { %2056 = vmax.xlane.f32.xlu1 %v2055_v39  ;;  %10965 = vst [vmem:[#allocation75_spill] sm:$0xff] %v7244_v12  ;;  %v2073_v39 = vsel %vm1435_vm1, %v7234_v0, -inf }
 0x183   :  { %2053 = vmax.xlane.f32.xlu0 %v2052_v62  ;;  %v2070_v62 = vsel %vm1435_vm1, %v7239_v1, -inf  ;;  %v7264_v1 = vadd.f32 %v7119_v43, %v2312_v47 }
 0x185   :  { %10969 = vst [vmem:[#allocation79_spill] sm:$0xff] %v7264_v1 }
 0x186   :  { %2353 = vmax.xlane.f32.xlu1 %v2352_v11  ;;  %v2370_v11 = vsel %vm2324_vm2, %v7244_v12, -inf }
 0x187   :  { %2350 = vmax.xlane.f32.xlu0 %v2349_v50  ;;  %v7259_v50 = vadd.f32 %v7104_v3, %v2013_v49  ;;  %v2364_v49 = vsel %vm2324_vm2, %v7264_v1, -inf }
 0x189   :  { %10968 = vst [vmem:[#allocation78_spill] sm:$0xff] %v7259_v50  ;;  %v2064_v13 = vsel %vm1435_vm1, %v7259_v50, -inf }
 0x18a   :  { %2074 = vmax.xlane.f32.xlu1 %v2073_v39  ;;  %v2067_v39 = vsel %vm1435_vm1, %v7254_v56, -inf }
 0x18b   :  { %2071 = vmax.xlane.f32.xlu0 %v2070_v62  ;;  %v7269_v62 = vadd.f32 %v7119_v43, %v2309_v9 }
 0x18d   :  { %10970 = vst [vmem:[#allocation80_spill] sm:$0xff] %v7269_v62  ;;  %v2361_v3 = vsel %vm2324_vm2, %v7269_v62, -inf }
 0x18e   :  { %2371 = vmax.xlane.f32.xlu1 %v2370_v11 }
 0x18f   :  { %2368 = vmax.xlane.f32.xlu0 %v2367_v51 }
 0x192   :  { %2068 = vmax.xlane.f32.xlu1 %v2067_v39 }
 0x193   :  { %2065 = vmax.xlane.f32.xlu0 %v2064_v13 }
 0x196   :  { %2365 = vmax.xlane.f32.xlu1 %v2364_v49 }
 0x197   :  { %2362 = vmax.xlane.f32.xlu0 %v2361_v3 }
 0x1a3   :  { %v1444_v11 = vpop.xlane.xlu1 %1443 }
 0x1a4   :  { %v1740_v51 = vpop.xlane.xlu0 %1739  ;;  %v1486_v47 = vsub.f32 %v6948_v14, %v1444_v11 }
 0x1a5   :  { %v1782_v43 = vsub.f32 %v6951_v52, %v1740_v51 }
 0x1a6   :  { %v1504_v9 = vmul.f32 1.442695, %v1486_v47 }
 0x1a7   :  { %v1800_v56 = vmul.f32 1.442695, %v1782_v43  ;;  %v1447_v48 = vpop.xlane.xlu1 %1446 }
 0x1a8   :  { %5869 = vpow2.f32 %v1504_v9  ;;  %v1487_v39 = vsub.f32 %v6961_v24, %v1447_v48  ;;  %v1438_v13 = vpop.xlane.xlu0 %1437 }
 0x1a9   :  { %v1484_v1 = vsub.f32 %v6956_v22, %v1438_v13  ;;  %5871 = vpow2.f32 %v1800_v56 }
 0x1aa   :  { %v1506_v50 = vmul.f32 1.442695, %v1487_v39 }
 0x1ab   :  { %v1500_v62 = vmul.f32 1.442695, %v1484_v1  ;;  %v1743_v49 = vpop.xlane.xlu1 %1742 }
 0x1ac   :  { %5873 = vpow2.f32 %v1506_v50  ;;  %v1783_v3 = vsub.f32 %v6967_v27, %v1743_v49  ;;  %v1734_v12 = vpop.xlane.xlu0 %1733 }
 0x1ad   :  { %v1780_v14 = vsub.f32 %v6964_v44, %v1734_v12  ;;  %5875 = vpow2.f32 %v1500_v62 }
 0x1ae   :  { %v1802_v52 = vmul.f32 1.442695, %v1783_v3 }
 0x1af   :  { %v1796_v11 = vmul.f32 1.442695, %v1780_v14  ;;  %v1737_v51 = vpop.xlane.xlu1 %1736 }
 0x1b0   :  { %5877 = vpow2.f32 %v1802_v52  ;;  %v1781_v24 = vsub.f32 %v6978_v53, %v1737_v51  ;;  %v1441_v48 = vpop.xlane.xlu0 %1440 }
 0x1b1   :  { %v1485_v22 = vsub.f32 %v6981_v25, %v1441_v48  ;;  %5879 = vpow2.f32 %v1796_v11 }
 0x1b2   :  { %v1798_v56 = vmul.f32 1.442695, %v1781_v24 }
 0x1b3   :  { %v1502_v1 = vmul.f32 1.442695, %v1485_v22  ;;  %v1459_v47 = vpop.xlane.xlu1 %1458 }
 0x1b4   :  { %v1491_v50 = vsub.f32 %v6984_v29, %v1459_v47  ;;  %v1456_v27 = vpop.xlane.xlu0 %1455 }
 0x1b5   :  { %v7286_v43 = vpop.eup %5869  ;;  %5881 = vpow2.f32 %v1502_v1  ;;  %v1490_v44 = vsub.f32 %v6987_v32, %v1456_v27 }
 0x1b6   :  { %v1538_v12 = vsel %vm1435_vm1, %v7286_v43, 0.0  ;;  %v7291_v62 = vpop.eup %5871  ;;  %5883 = vpow2.f32 %v1798_v56  ;;  %v1514_v53 = vmul.f32 1.442695, %v1491_v50 }
 0x1b7   :  { %v1512_v25 = vmul.f32 1.442695, %v1490_v44  ;;  %v1755_v9 = vpop.xlane.xlu1 %1754  ;;  %1539 = vadd.xlane.f32.xlu0 %v1538_v12  ;;  %v1834_v14 = vsel %vm1435_vm1, %v7291_v62, 0.0 }
 0x1b8   :  { %v1787_v39 = vsub.f32 %v6994_v45, %v1755_v9  ;;  %v1752_v13 = vpop.xlane.xlu0 %1751 }
 0x1b9   :  { %v7294_v29 = vpop.eup %5873  ;;  %5885 = vpow2.f32 %v1512_v25  ;;  %v1786_v49 = vsub.f32 %v6999_v18, %v1752_v13 }
 0x1ba   :  { %v1810_v3 = vmul.f32 1.442695, %v1787_v39  ;;  %v1541_v32 = vsel %vm1435_vm1, %v7294_v29, 0.0  ;;  %v7301_v52 = vpop.eup %5875  ;;  %5887 = vpow2.f32 %v1514_v53 }
 0x1bb   :  { %v1808_v11 = vmul.f32 1.442695, %v1786_v49  ;;  %1542 = vadd.xlane.f32.xlu1 %v1541_v32  ;;  %v1453_v51 = vpop.xlane.xlu1 %1452  ;;  %1835 = vadd.xlane.f32.xlu0 %v1834_v14  ;;  %v1532_v1 = vsel %vm1435_vm1, %v7301_v52, 0.0 }
 0x1bc   :  { %v1489_v45 = vsub.f32 %v7006_v41, %v1453_v51  ;;  %v1450_v24 = vpop.xlane.xlu0 %1449 }
 0x1bd   :  { %v7304_v48 = vpop.eup %5877  ;;  %5889 = vpow2.f32 %v1808_v11  ;;  %v1488_v18 = vsub.f32 %v7009_v58, %v1450_v24 }
 0x1be   :  { %5891 = vpow2.f32 %v1810_v3  ;;  %v1510_v22 = vmul.f32 1.442695, %v1489_v45  ;;  %v1837_v56 = vsel %vm1435_vm1, %v7304_v48, 0.0  ;;  %v7311_v47 = vpop.eup %5879 }
 0x1bf   :  { %v1508_v50 = vmul.f32 1.442695, %v1488_v18  ;;  %1838 = vadd.xlane.f32.xlu1 %v1837_v56  ;;  %v1749_v27 = vpop.xlane.xlu1 %1748  ;;  %1533 = vadd.xlane.f32.xlu0 %v1532_v1  ;;  %v1828_v25 = vsel %vm1435_vm1, %v7311_v47, 0.0 }
 0x1c0   :  { %v1785_v41 = vsub.f32 %v7014_v30, %v1749_v27  ;;  %v1746_v44 = vpop.xlane.xlu0 %1745 }
 0x1c1   :  { %5893 = vpow2.f32 %v1508_v50  ;;  %v1784_v58 = vsub.f32 %v7019_v21, %v1746_v44 }
 0x1c2   :  { %v7315_v12 = vpop.eup %5881  ;;  %5895 = vpow2.f32 %v1510_v22  ;;  %v1806_v53 = vmul.f32 1.442695, %v1785_v41 }
 0x1c3   :  { %v1804_v9 = vmul.f32 1.442695, %v1784_v58  ;;  %v1471_v39 = vpop.xlane.xlu1 %1470  ;;  %1829 = vadd.xlane.f32.xlu0 %v1828_v25  ;;  %v1535_v13 = vsel %vm1435_vm1, %v7315_v12, 0.0  ;;  %v7321_v49 = vpop.eup %5883 }
 0x1c4   :  { %v1495_v30 = vsub.f32 %v7024_v46, %v1471_v39  ;;  %1536 = vadd.xlane.f32.xlu1 %v1535_v13  ;;  %v1468_v3 = vpop.xlane.xlu0 %1467  ;;  %v1831_v45 = vsel %vm1435_vm1, %v7321_v49, 0.0 }
 0x1c5   :  { %5897 = vpow2.f32 %v1804_v9  ;;  %v1494_v21 = vsub.f32 %v7029_v2, %v1468_v3 }
 0x1c6   :  { %v7325_v32 = vpop.eup %5885  ;;  %5899 = vpow2.f32 %v1806_v53  ;;  %v1522_v14 = vmul.f32 1.442695, %v1495_v30 }
 0x1c7   :  { %v1520_v11 = vmul.f32 1.442695, %v1494_v21  ;;  %v1767_v51 = vpop.xlane.xlu1 %1766  ;;  %v1550_v24 = vsel %vm1435_vm1, %v7325_v32, 0.0  ;;  %v7331_v18 = vpop.eup %5887  ;;  %v10647_v21 = vmov 0  }
 0x1c8   :  { %v1791_v46 = vsub.f32 %v7034_v5, %v1767_v51  ;;  %1832 = vadd.xlane.f32.xlu1 %v1831_v45  ;;  %1551 = vadd.xlane.f32.xlu0 %v1550_v24  ;;  %v1764_v22 = vpop.xlane.xlu0 %1763  ;;  %v1553_v44 = vsel %vm1435_vm1, %v7331_v18, 0.0 }
 0x1c9   :  { %5901 = vpow2.f32 %v1520_v11  ;;  %v1790_v2 = vsub.f32 %v7039_v23, %v1764_v22  ;;  %5694 = vset.pattern.permute.xlu1 %v10647_v21 }
 0x1ca   :  { %v7335_v56 = vpop.eup %5889  ;;  %5903 = vpow2.f32 %v1522_v14  ;;  %v1818_v50 = vmul.f32 1.442695, %v1791_v46 }
 0x1cb   :  { %v7337_v1 = vpop.eup %5891  ;;  %v1816_v27 = vmul.f32 1.442695, %v1790_v2  ;;  %v1465_v41 = vpop.xlane.xlu1 %1464  ;;  %v1846_v5 = vsel %vm1435_vm1, %v7335_v56, 0.0 }
 0x1cc   :  { %v1493_v58 = vsub.f32 %v7044_v8, %v1465_v41  ;;  %1554 = vadd.xlane.f32.xlu1 %v1553_v44  ;;  %1847 = vadd.xlane.f32.xlu0 %v1846_v5  ;;  %v1462_v53 = vpop.xlane.xlu0 %1461  ;;  %v1849_v9 = vsel %vm1435_vm1, %v7337_v1, 0.0 }
 0x1cd   :  { %5905 = vpow2.f32 %v1816_v27  ;;  %v1492_v23 = vsub.f32 %v7049_v26, %v1462_v53 }
 0x1ce   :  { %v7345_v25 = vpop.eup %5893  ;;  %5907 = vpow2.f32 %v1818_v50  ;;  %v1518_v13 = vmul.f32 1.442695, %v1493_v58 }
 0x1cf   :  { %v7349_v39 = vpop.eup %5895  ;;  %v1516_v30 = vmul.f32 1.442695, %v1492_v23  ;;  %v1761_v3 = vpop.xlane.xlu1 %1760  ;;  %v1544_v8 = vsel %vm1435_vm1, %v7345_v25, 0.0 }
 0x1d0   :  { %v1789_v14 = vsub.f32 %v7054_v54, %v1761_v3  ;;  %1850 = vadd.xlane.f32.xlu1 %v1849_v9  ;;  %1545 = vadd.xlane.f32.xlu0 %v1544_v8  ;;  %v1758_v26 = vpop.xlane.xlu0 %1757  ;;  %v1547_v45 = vsel %vm1435_vm1, %v7349_v39, 0.0 }
 0x1d1   :  { %5909 = vpow2.f32 %v1516_v30  ;;  %v1788_v11 = vsub.f32 %v7059_v6, %v1758_v26  ;;  %v10649_v30 = vmov 1  }
 0x1d2   :  { %v7356_v51 = vpop.eup %5897  ;;  %5911 = vpow2.f32 %v1518_v13  ;;  %v1814_v46 = vmul.f32 1.442695, %v1789_v14  ;;  %5712 = vset.pattern.permute.xlu0 %v10649_v30 }
 0x1d3   :  { %v7360_v24 = vpop.eup %5899  ;;  %v1812_v22 = vmul.f32 1.442695, %v1788_v11  ;;  %v1483_v2 = vpop.xlane.xlu1 %1482  ;;  %v1840_v54 = vsel %vm1435_vm1, %v7356_v51, 0.0 }
 0x1d4   :  { %v1499_v50 = vsub.f32 %v7064_v57, %v1483_v2  ;;  %1548 = vadd.xlane.f32.xlu1 %v1547_v45  ;;  %1841 = vadd.xlane.f32.xlu0 %v1840_v54  ;;  %v1480_v27 = vpop.xlane.xlu0 %1479  ;;  %v1843_v44 = vsel %vm1435_vm1, %v7360_v24, 0.0 }
 0x1d5   :  { %5913 = vpow2.f32 %v1812_v22  ;;  %v1498_v6 = vsub.f32 %v7069_v10, %v1480_v27 }
 0x1d6   :  { %v7366_v41 = vpop.eup %5901  ;;  %5915 = vpow2.f32 %v1814_v46  ;;  %v1530_v58 = vmul.f32 1.442695, %v1499_v50 }
 0x1d7   :  { %v7370_v5 = vpop.eup %5903  ;;  %v1528_v53 = vmul.f32 1.442695, %v1498_v6  ;;  %v1779_v23 = vpop.xlane.xlu1 %1778  ;;  %v1562_v57 = vsel %vm1435_vm1, %v7366_v41, 0.0 }
 0x1d8   :  { %v1795_v9 = vsub.f32 %v7074_v55, %v1779_v23  ;;  %1844 = vadd.xlane.f32.xlu1 %v1843_v44  ;;  %1563 = vadd.xlane.f32.xlu0 %v1562_v57  ;;  %v1776_v13 = vpop.xlane.xlu0 %1775  ;;  %v1565_v8 = vsel %vm1435_vm1, %v7370_v5, 0.0 }
 0x1d9   :  { %5917 = vpow2.f32 %v1528_v53  ;;  %v1794_v10 = vsub.f32 %v7079_v7, %v1776_v13 }
 0x1da   :  { %v7377_v3 = vpop.eup %5905  ;;  %5919 = vpow2.f32 %v1530_v58  ;;  %v1826_v14 = vmul.f32 1.442695, %v1795_v9 }
 0x1db   :  { %v1824_v26 = vmul.f32 1.442695, %v1794_v10  ;;  %v1477_v11 = vpop.xlane.xlu1 %1476  ;;  %v1858_v55 = vsel %vm1435_vm1, %v7377_v3, 0.0  ;;  %v7383_v45 = vpop.eup %5907 }
 0x1dc   :  { %v1497_v46 = vsub.f32 %v7084_v34, %v1477_v11  ;;  %1566 = vadd.xlane.f32.xlu1 %v1565_v8  ;;  %1859 = vadd.xlane.f32.xlu0 %v1858_v55  ;;  %v1474_v7 = vpop.xlane.xlu0 %1473  ;;  %v1861_v6 = vsel %vm1435_vm1, %v7383_v45, 0.0 }
 0x1dd   :  { %5921 = vpow2.f32 %v1824_v26  ;;  %v1496_v22 = vsub.f32 %v7089_v40, %v1474_v7 }
 0x1de   :  { %v7387_v2 = vpop.eup %5909  ;;  %v1526_v54 = vmul.f32 1.442695, %v1497_v46  ;;  %5923 = vpow2.f32 %v1826_v14 }
 0x1df   :  { %v1524_v50 = vmul.f32 1.442695, %v1496_v22  ;;  %v1773_v27 = vpop.xlane.xlu1 %1772  ;;  %v1556_v44 = vsel %vm1435_vm1, %v7387_v2, 0.0  ;;  %v7393_v58 = vpop.eup %5911 }
 0x1e0   :  { %v1793_v34 = vsub.f32 %v7094_v20, %v1773_v27  ;;  %1862 = vadd.xlane.f32.xlu1 %v1861_v6  ;;  %1557 = vadd.xlane.f32.xlu0 %v1556_v44  ;;  %v1770_v53 = vpop.xlane.xlu0 %1769  ;;  %v1559_v10 = vsel %vm1435_vm1, %v7393_v58, 0.0 }
 0x1e1   :  { %5925 = vpow2.f32 %v1524_v50  ;;  %v1792_v40 = vsub.f32 %v7099_v28, %v1770_v53 }
 0x1e2   :  { %v7397_v23 = vpop.eup %5913  ;;  %5927 = vpow2.f32 %v1526_v54  ;;  %v1822_v57 = vmul.f32 1.442695, %v1793_v34 }
 0x1e3   :  { %v1820_v9 = vmul.f32 1.442695, %v1792_v40  ;;  %v2039_v13 = vpop.xlane.xlu1 %2038  ;;  %v1852_v8 = vsel %vm1435_vm1, %v7397_v23, 0.0  ;;  %v7403_v14 = vpop.eup %5915 }
 0x1e4   :  { %v2079_v20 = vsub.f32 %v7109_v37, %v2039_v13  ;;  %1560 = vadd.xlane.f32.xlu1 %v1559_v10  ;;  %1853 = vadd.xlane.f32.xlu0 %v1852_v8  ;;  %v2036_v26 = vpop.xlane.xlu0 %2035  ;;  %v1855_v22 = vsel %vm1435_vm1, %v7403_v14, 0.0 }
 0x1e5   :  { %5929 = vpow2.f32 %v1820_v9  ;;  %v2078_v28 = vsub.f32 %v7114_v59, %v2036_v26 }
 0x1e6   :  { %v7407_v11 = vpop.eup %5917  ;;  %5931 = vpow2.f32 %v1822_v57  ;;  %v2098_v55 = vmul.f32 1.442695, %v2079_v20 }
 0x1e7   :  { %v2096_v46 = vmul.f32 1.442695, %v2078_v28  ;;  %v2336_v7 = vpop.xlane.xlu1 %2335  ;;  %v1574_v54 = vsel %vm1435_vm1, %v7407_v11, 0.0  ;;  %v7413_v50 = vpop.eup %5919 }
 0x1e8   :  { %10971 = vst [vmem:[#allocation81_spill] sm:$0xff] %v7413_v50  ;;  %v2376_v37 = vsub.f32 %v7124_v33, %v2336_v7  ;;  %1856 = vadd.xlane.f32.xlu1 %v1855_v22  ;;  %1575 = vadd.xlane.f32.xlu0 %v1574_v54  ;;  %v2333_v27 = vpop.xlane.xlu0 %2332  ;;  %v1577_v40 = vsel %vm1435_vm1, %v7413_v50, 0.0 }
 0x1e9   :  { %5933 = vpow2.f32 %v2096_v46  ;;  %v2375_v59 = vsub.f32 %v7129_v38, %v2333_v27 }
 0x1ea   :  { %v7417_v6 = vpop.eup %5921  ;;  %5935 = vpow2.f32 %v2098_v55  ;;  %v2395_v44 = vmul.f32 1.442695, %v2376_v37 }
 0x1eb   :  { %v2393_v34 = vmul.f32 1.442695, %v2375_v59  ;;  %v2033_v53 = vpop.xlane.xlu1 %2032  ;;  %v1870_v57 = vsel %vm1435_vm1, %v7417_v6, 0.0  ;;  %v7423_v9 = vpop.eup %5923 }
 0x1ec   :  { %10972 = vst [vmem:[#allocation82_spill] sm:$0xff] %v7423_v9  ;;  %v2077_v33 = vsub.f32 %v7134_v61, %v2033_v53  ;;  %1578 = vadd.xlane.f32.xlu1 %v1577_v40  ;;  %1871 = vadd.xlane.f32.xlu0 %v1870_v57  ;;  %v2030_v13 = vpop.xlane.xlu0 %2029  ;;  %v1873_v55 = vsel %vm1435_vm1, %v7423_v9, 0.0 }
 0x1ed   :  { %5937 = vpow2.f32 %v2393_v34  ;;  %v2076_v38 = vsub.f32 %v7139_v36, %v2030_v13 }
 0x1ee   :  { %v7427_v10 = vpop.eup %5925  ;;  %5939 = vpow2.f32 %v2395_v44  ;;  %v2094_v20 = vmul.f32 1.442695, %v2077_v33 }
 0x1ef   :  { %v7429_v8 = vpop.eup %5927  ;;  %v2092_v26 = vmul.f32 1.442695, %v2076_v38  ;;  %v2330_v28 = vpop.xlane.xlu1 %2329  ;;  %v1568_v61 = vsel %vm1435_vm1, %v7427_v10, 0.0 }
 0x1f0   :  { %10973 = vst [vmem:[#allocation83_spill] sm:$0xff] %v7429_v8  ;;  %v2374_v46 = vsub.f32 %v7144_v19, %v2330_v28  ;;  %1874 = vadd.xlane.f32.xlu1 %v1873_v55  ;;  %1569 = vadd.xlane.f32.xlu0 %v1568_v61  ;;  %v2327_v7 = vpop.xlane.xlu0 %2326  ;;  %v1571_v54 = vsel %vm1435_vm1, %v7429_v8, 0.0 }
 0x1f1   :  { %5941 = vpow2.f32 %v2092_v26  ;;  %v2373_v36 = vsub.f32 %v7149_v16, %v2327_v7 }
 0x1f2   :  { %v7437_v22 = vpop.eup %5929  ;;  %5943 = vpow2.f32 %v2094_v20  ;;  %v2391_v27 = vmul.f32 1.442695, %v2374_v46 }
 0x1f3   :  { %v7441_v37 = vpop.eup %5931  ;;  %v2389_v59 = vmul.f32 1.442695, %v2373_v36  ;;  %v2051_v44 = vpop.xlane.xlu1 %2050  ;;  %v1864_v19 = vsel %vm1435_vm1, %v7437_v22, 0.0 }
 0x1f4   :  { %10974 = vst [vmem:[#allocation84_spill] sm:$0xff] %v7441_v37  ;;  %v2083_v34 = vsub.f32 %v7154_v4, %v2051_v44  ;;  %1572 = vadd.xlane.f32.xlu1 %v1571_v54  ;;  %1865 = vadd.xlane.f32.xlu0 %v1864_v19  ;;  %v2048_v53 = vpop.xlane.xlu0 %2047  ;;  %v1867_v57 = vsel %vm1435_vm1, %v7441_v37, 0.0 }
 0x1f5   :  { %5945 = vpow2.f32 %v2389_v59  ;;  %v2082_v16 = vsub.f32 %v7159_v31, %v2048_v53 }
 0x1f6   :  { %v7447_v40 = vpop.eup %5933  ;;  %5947 = vpow2.f32 %v2391_v27  ;;  %v2106_v13 = vmul.f32 1.442695, %v2083_v34 }
 0x1f7   :  { %10975 = vst [vmem:[#allocation85_spill] sm:$0xff] %v7447_v40  ;;  %v7451_v33 = vpop.eup %5935  ;;  %v2104_v38 = vmul.f32 1.442695, %v2082_v16  ;;  %v2348_v20 = vpop.xlane.xlu1 %2347  ;;  %v2130_v4 = vsel %vm1435_vm1, %v7447_v40, 0.0 }
 0x1f8   :  { %10976 = vst [vmem:[#allocation86_spill] sm:$0xff] %v7451_v33  ;;  %v2380_v26 = vsub.f32 %v7164_v63, %v2348_v20  ;;  %1868 = vadd.xlane.f32.xlu1 %v1867_v57  ;;  %2131 = vadd.xlane.f32.xlu0 %v2130_v4  ;;  %v2345_v28 = vpop.xlane.xlu0 %2344  ;;  %v2133_v61 = vsel %vm1435_vm1, %v7451_v33, 0.0 }
 0x1f9   :  { %5949 = vpow2.f32 %v2104_v38  ;;  %v2379_v31 = vsub.f32 %v7169_v17, %v2345_v28 }
 0x1fa   :  { %v7457_v55 = vpop.eup %5937  ;;  %5951 = vpow2.f32 %v2106_v13  ;;  %v2403_v7 = vmul.f32 1.442695, %v2380_v26 }
 0x1fb   :  { %10977 = vst [vmem:[#allocation87_spill] sm:$0xff] %v7457_v55  ;;  %v7461_v46 = vpop.eup %5939  ;;  %v2401_v36 = vmul.f32 1.442695, %v2379_v31  ;;  %v2045_v54 = vpop.xlane.xlu1 %2044  ;;  %v2427_v63 = vsel %vm2324_vm2, %v7457_v55, 0.0 }
 0x1fc   :  { %10978 = vst [vmem:[#allocation88_spill] sm:$0xff] %v7461_v46  ;;  %v2081_v27 = vsub.f32 %v7174_v15, %v2045_v54  ;;  %2134 = vadd.xlane.f32.xlu1 %v2133_v61  ;;  %2428 = vadd.xlane.f32.xlu0 %v2427_v63  ;;  %v2042_v59 = vpop.xlane.xlu0 %2041  ;;  %v2430_v19 = vsel %vm2324_vm2, %v7461_v46, 0.0  ;;  %v10980_v15 = vld [vmem:[#allocation66_spill] sm:$0xff]  ;;  %v10984_v63 = vld [vmem:[#allocation68_spill] sm:$0xff] }
 0x1fd   :  { %5953 = vpow2.f32 %v2401_v36  ;;  %v2080_v17 = vsub.f32 %v7179_v35, %v2042_v59  ;;  %v10981_v35 = vld [vmem:[#allocation67_spill] sm:$0xff] }
 0x1fe   :  { %v7467_v44 = vpop.eup %5941  ;;  %5955 = vpow2.f32 %v2403_v7  ;;  %v2102_v34 = vmul.f32 1.442695, %v2081_v27 }
 0x1ff   :  { %10979 = vst [vmem:[#allocation89_spill] sm:$0xff] %v7467_v44  ;;  %v2100_v53 = vmul.f32 1.442695, %v2080_v17  ;;  %v2342_v16 = vpop.xlane.xlu1 %2341  ;;  %v2124_v57 = vsel %vm1435_vm1, %v7467_v44, 0.0  ;;  %v7473_v13 = vpop.eup %5943  ;;  %v10985_v17 = vld [vmem:[#allocation69_spill] sm:$0xff] }
 0x200   :  { %v2378_v38 = vsub.f32 %v10980_v15, %v2342_v16  ;;  %2431 = vadd.xlane.f32.xlu1 %v2430_v19  ;;  %2125 = vadd.xlane.f32.xlu0 %v2124_v57  ;;  %v2339_v20 = vpop.xlane.xlu0 %2338  ;;  %v2127_v7 = vsel %vm1435_vm1, %v7473_v13, 0.0 }
 0x201   :  { %5957 = vpow2.f32 %v2100_v53  ;;  %v2377_v4 = vsub.f32 %v10981_v35, %v2339_v20  ;;  %v10987_v35 = vld [vmem:[#allocation70_spill] sm:$0xff] }
 0x202   :  { %v7477_v26 = vpop.eup %5945  ;;  %v2399_v28 = vmul.f32 1.442695, %v2378_v38  ;;  %5959 = vpow2.f32 %v2102_v34 }
 0x203   :  { %10982 = vst [vmem:[#allocation66_spill] sm:$0xff] %v7477_v26  ;;  %v2397_v31 = vmul.f32 1.442695, %v2377_v4  ;;  %v2063_v61 = vpop.xlane.xlu1 %2062  ;;  %v2421_v36 = vsel %vm2324_vm2, %v7477_v26, 0.0  ;;  %v7483_v54 = vpop.eup %5947  ;;  %v10670_v26 = vmov 2  }
 0x204   :  { %10983 = vst [vmem:[#allocation67_spill] sm:$0xff] %v7483_v54  ;;  %v2087_v27 = vsub.f32 %v10984_v63, %v2063_v61  ;;  %2128 = vadd.xlane.f32.xlu1 %v2127_v7  ;;  %2422 = vadd.xlane.f32.xlu0 %v2421_v36  ;;  %v2060_v59 = vpop.xlane.xlu0 %2059  ;;  %v2424_v15 = vsel %vm2324_vm2, %v7483_v54, 0.0  ;;  %v10988_v61 = vld [vmem:[#allocation71_spill] sm:$0xff] }
 0x205   :  { %5961 = vpow2.f32 %v2397_v31  ;;  %v2086_v19 = vsub.f32 %v10985_v17, %v2060_v59 }
 0x206   :  { %v7487_v53 = vpop.eup %5949  ;;  %5963 = vpow2.f32 %v2399_v28  ;;  %v2114_v34 = vmul.f32 1.442695, %v2087_v27 }
 0x207   :  { %v2112_v16 = vmul.f32 1.442695, %v2086_v19  ;;  %v2360_v57 = vpop.xlane.xlu1 %2359  ;;  %v2142_v38 = vsel %vm1435_vm1, %v7487_v53, 0.0  ;;  %v7493_v20 = vpop.eup %5951 }
 0x208   :  { %10986 = vst [vmem:[#allocation68_spill] sm:$0xff] %v7493_v20  ;;  %v2384_v4 = vsub.f32 %v10987_v35, %v2360_v57  ;;  %2425 = vadd.xlane.f32.xlu1 %v2424_v15  ;;  %2143 = vadd.xlane.f32.xlu0 %v2142_v38  ;;  %v2357_v31 = vpop.xlane.xlu0 %2356  ;;  %v2145_v59 = vsel %vm1435_vm1, %v7493_v20, 0.0  ;;  %v10991_v15 = vld [vmem:[#allocation72_spill] sm:$0xff] }
 0x209   :  { %5965 = vpow2.f32 %v2112_v16  ;;  %v2383_v7 = vsub.f32 %v10988_v61, %v2357_v31 }
 0x20a   :  { %v7497_v28 = vpop.eup %5953  ;;  %5967 = vpow2.f32 %v2114_v34  ;;  %v2411_v36 = vmul.f32 1.442695, %v2384_v4 }
 0x20b   :  { %10989 = vst [vmem:[#allocation69_spill] sm:$0xff] %v7497_v28  ;;  %v2409_v63 = vmul.f32 1.442695, %v2383_v7  ;;  %v2057_v27 = vpop.xlane.xlu1 %2056  ;;  %v2439_v17 = vsel %vm2324_vm2, %v7497_v28, 0.0  ;;  %v7503_v19 = vpop.eup %5955 }
 0x20c   :  { %10990 = vst [vmem:[#allocation70_spill] sm:$0xff] %v7503_v19  ;;  %v2085_v57 = vsub.f32 %v7214_v60, %v2057_v27  ;;  %2146 = vadd.xlane.f32.xlu1 %v2145_v59  ;;  %2440 = vadd.xlane.f32.xlu0 %v2439_v17  ;;  %v2054_v16 = vpop.xlane.xlu0 %2053  ;;  %v2442_v61 = vsel %vm2324_vm2, %v7503_v19, 0.0  ;;  %v10993_v27 = vld [vmem:[#allocation73_spill] sm:$0xff] }
 0x20d   :  { %5969 = vpow2.f32 %v2409_v63  ;;  %v2084_v38 = vsub.f32 %v10991_v15, %v2054_v16 }
 0x20e   :  { %v7507_v34 = vpop.eup %5957  ;;  %5971 = vpow2.f32 %v2411_v36  ;;  %v2110_v35 = vmul.f32 1.442695, %v2085_v57 }
 0x20f   :  { %v2108_v4 = vmul.f32 1.442695, %v2084_v38  ;;  %v2354_v31 = vpop.xlane.xlu1 %2353  ;;  %v2136_v7 = vsel %vm1435_vm1, %v7507_v34, 0.0  ;;  %v7513_v21 = vpop.eup %5959 }
 0x210   :  { %10992 = vst [vmem:[#allocation71_spill] sm:$0xff] %v7513_v21  ;;  %v2382_v60 = vsub.f32 %v7224_v42, %v2354_v31  ;;  %2443 = vadd.xlane.f32.xlu1 %v2442_v61  ;;  %2137 = vadd.xlane.f32.xlu0 %v2136_v7  ;;  %v2351_v63 = vpop.xlane.xlu0 %2350  ;;  %v2139_v38 = vsel %vm1435_vm1, %v7513_v21, 0.0  ;;  %v10996_v61 = vld [vmem:[#allocation74_spill] sm:$0xff] }
 0x211   :  { %5973 = vpow2.f32 %v2108_v4  ;;  %v2381_v59 = vsub.f32 %v10993_v27, %v2351_v63 }
 0x212   :  { %v7517_v36 = vpop.eup %5961  ;;  %5975 = vpow2.f32 %v2110_v35  ;;  %v2407_v57 = vmul.f32 1.442695, %v2382_v60 }
 0x213   :  { %10994 = vst [vmem:[#allocation72_spill] sm:$0xff] %v7517_v36  ;;  %v7519_v17 = vpop.eup %5963  ;;  %v2405_v16 = vmul.f32 1.442695, %v2381_v59  ;;  %v2075_v15 = vpop.xlane.xlu1 %2074  ;;  %v2433_v42 = vsel %vm2324_vm2, %v7517_v36, 0.0 }
 0x214   :  { %10995 = vst [vmem:[#allocation73_spill] sm:$0xff] %v7519_v17  ;;  %v2091_v31 = vsub.f32 %v7234_v0, %v2075_v15  ;;  %2140 = vadd.xlane.f32.xlu1 %v2139_v38  ;;  %2434 = vadd.xlane.f32.xlu0 %v2433_v42  ;;  %v2072_v4 = vpop.xlane.xlu0 %2071  ;;  %v2436_v60 = vsel %vm2324_vm2, %v7519_v17, 0.0  ;;  %v10998_v15 = vld [vmem:[#allocation75_spill] sm:$0xff]  ;;  %v10999_v42 = vld [vmem:[#allocation76_spill] sm:$0xff] }
 0x215   :  { %5977 = vpow2.f32 %v2405_v16  ;;  %v2090_v7 = vsub.f32 %v10996_v61, %v2072_v4 }
 0x216   :  { %v7527_v35 = vpop.eup %5965  ;;  %5979 = vpow2.f32 %v2407_v57  ;;  %v2122_v27 = vmul.f32 1.442695, %v2091_v31 }
 0x217   :  { %v7531_v63 = vpop.eup %5967  ;;  %v2120_v59 = vmul.f32 1.442695, %v2090_v7  ;;  %v2372_v30 = vpop.xlane.xlu1 %2371  ;;  %v2154_v0 = vsel %vm1435_vm1, %v7527_v35, 0.0 }
 0x218   :  { %10997 = vst [vmem:[#allocation74_spill] sm:$0xff] %v7531_v63  ;;  %v2388_v38 = vsub.f32 %v10998_v15, %v2372_v30  ;;  %2437 = vadd.xlane.f32.xlu1 %v2436_v60  ;;  %2155 = vadd.xlane.f32.xlu0 %v2154_v0  ;;  %v2369_v16 = vpop.xlane.xlu0 %2368  ;;  %v2157_v28 = vsel %vm1435_vm1, %v7531_v63, 0.0  ;;  %v11002_v60 = vld [vmem:[#allocation77_spill] sm:$0xff]  ;;  %v11003_v15 = vld [vmem:[#allocation78_spill] sm:$0xff] }
 0x219   :  { %5981 = vpow2.f32 %v2120_v59  ;;  %v2387_v4 = vsub.f32 %v10999_v42, %v2369_v16 }
 0x21a   :  { %v7537_v61 = vpop.eup %5969  ;;  %5983 = vpow2.f32 %v2122_v27  ;;  %v2419_v31 = vmul.f32 1.442695, %v2388_v38 }
 0x21b   :  { %11000 = vst [vmem:[#allocation75_spill] sm:$0xff] %v7537_v61  ;;  %v7541_v57 = vpop.eup %5971  ;;  %v2417_v7 = vmul.f32 1.442695, %v2387_v4  ;;  %v2069_v36 = vpop.xlane.xlu1 %2068  ;;  %v2451_v30 = vsel %vm2324_vm2, %v7537_v61, 0.0 }
 0x21c   :  { %11001 = vst [vmem:[#allocation76_spill] sm:$0xff] %v7541_v57  ;;  %v2089_v0 = vsub.f32 %v11002_v60, %v2069_v36  ;;  %2158 = vadd.xlane.f32.xlu1 %v2157_v28  ;;  %2452 = vadd.xlane.f32.xlu0 %v2451_v30  ;;  %v2066_v59 = vpop.xlane.xlu0 %2065  ;;  %v2454_v19 = vsel %vm2324_vm2, %v7541_v57, 0.0  ;;  %v11005_v28 = vld [vmem:[#allocation79_spill] sm:$0xff]  ;;  %v11006_v60 = vld [vmem:[#allocation80_spill] sm:$0xff] }
 0x21d   :  { %5985 = vpow2.f32 %v2417_v7  ;;  %v2088_v16 = vsub.f32 %v11003_v15, %v2066_v59 }
 0x21e   :  { %v7547_v42 = vpop.eup %5973  ;;  %5987 = vpow2.f32 %v2419_v31  ;;  %v2118_v38 = vmul.f32 1.442695, %v2089_v0 }
 0x21f   :  { %v7551_v27 = vpop.eup %5975  ;;  %v2116_v4 = vmul.f32 1.442695, %v2088_v16  ;;  %v2366_v17 = vpop.xlane.xlu1 %2365  ;;  %v2148_v36 = vsel %vm1435_vm1, %v7547_v42, 0.0 }
 0x220   :  { %11004 = vst [vmem:[#allocation77_spill] sm:$0xff] %v7551_v27  ;;  %v2386_v30 = vsub.f32 %v11005_v28, %v2366_v17  ;;  %2455 = vadd.xlane.f32.xlu1 %v2454_v19  ;;  %2149 = vadd.xlane.f32.xlu0 %v2148_v36  ;;  %v2363_v7 = vpop.xlane.xlu0 %2362  ;;  %v2151_v61 = vsel %vm1435_vm1, %v7551_v27, 0.0 }
 0x221   :  { %5989 = vpow2.f32 %v2116_v4  ;;  %v2385_v59 = vsub.f32 %v11006_v60, %v2363_v7 }
 0x222   :  { %v7557_v15 = vpop.eup %5977  ;;  %5991 = vpow2.f32 %v2118_v38  ;;  %v2415_v31 = vmul.f32 1.442695, %v2386_v30 }
 0x223   :  { %11007 = vst [vmem:[#allocation78_spill] sm:$0xff] %v7557_v15  ;;  %v2413_v0 = vmul.f32 1.442695, %v2385_v59  ;;  %v2445_v16 = vsel %vm2324_vm2, %v7557_v15, 0.0  ;;  %v7563_v57 = vpop.eup %5979 }
 0x224   :  { %11008 = vst [vmem:[#allocation79_spill] sm:$0xff] %v7563_v57  ;;  %2152 = vadd.xlane.f32.xlu1 %v2151_v61  ;;  %2446 = vadd.xlane.f32.xlu0 %v2445_v16  ;;  %v2448_v17 = vsel %vm2324_vm2, %v7563_v57, 0.0 }
 0x225   :  { %5993 = vpow2.f32 %v2413_v0 }
 0x226   :  { %v7565_v19 = vpop.eup %5981  ;;  %5995 = vpow2.f32 %v2415_v31 }
 0x227   :  { %v2166_v4 = vsel %vm1435_vm1, %v7565_v19, 0.0  ;;  %v7571_v38 = vpop.eup %5983 }
 0x228   :  { %11009 = vst [vmem:[#allocation80_spill] sm:$0xff] %v7571_v38  ;;  %2449 = vadd.xlane.f32.xlu1 %v2448_v17  ;;  %2167 = vadd.xlane.f32.xlu0 %v2166_v4  ;;  %v2169_v61 = vsel %vm1435_vm1, %v7571_v38, 0.0  ;;  %v10674_v38 = vmov 3  }
 0x22a   :  { %v7573_v36 = vpop.eup %5985 }
 0x22b   :  { %11010 = vst [vmem:[#allocation90_spill] sm:$0xff] %v7573_v36  ;;  %v2463_v28 = vsel %vm2324_vm2, %v7573_v36, 0.0  ;;  %v7579_v30 = vpop.eup %5987 }
 0x22c   :  { %11011 = vst [vmem:[#allocation91_spill] sm:$0xff] %v7579_v30  ;;  %2170 = vadd.xlane.f32.xlu1 %v2169_v61  ;;  %2464 = vadd.xlane.f32.xlu0 %v2463_v28  ;;  %v2466_v60 = vsel %vm2324_vm2, %v7579_v30, 0.0 }
 0x22e   :  { %v7581_v7 = vpop.eup %5989 }
 0x22f   :  { %v2160_v59 = vsel %vm1435_vm1, %v7581_v7, 0.0  ;;  %v7587_v31 = vpop.eup %5991 }
 0x230   :  { %11012 = vst [vmem:[#allocation92_spill] sm:$0xff] %v7587_v31  ;;  %2467 = vadd.xlane.f32.xlu1 %v2466_v60  ;;  %2161 = vadd.xlane.f32.xlu0 %v2160_v59  ;;  %v2163_v16 = vsel %vm1435_vm1, %v7587_v31, 0.0 }
 0x232   :  { %v7589_v0 = vpop.eup %5993 }
 0x233   :  { %11013 = vst [vmem:[#allocation93_spill] sm:$0xff] %v7589_v0  ;;  %v2457_v17 = vsel %vm2324_vm2, %v7589_v0, 0.0  ;;  %v7595_v4 = vpop.eup %5995 }
 0x234   :  { %11014 = vst [vmem:[#allocation94_spill] sm:$0xff] %v7595_v4  ;;  %2164 = vadd.xlane.f32.xlu1 %v2163_v16  ;;  %2458 = vadd.xlane.f32.xlu0 %v2457_v17  ;;  %v2460_v61 = vsel %vm2324_vm2, %v7595_v4, 0.0 }
 0x238   :  { %2461 = vadd.xlane.f32.xlu1 %v2460_v61 }
 0x240   :  { %v1540_v28 = vpop.xlane.xlu0 %1539 }
 0x241   :  { %5997 = vrcp.f32 %v1540_v28  ;;  %v11015_v28 = vmov 1  }
 0x244   :  { %v7599_v60 = vpop.xlane.xlu1 %1542  ;;  %v1836_v59 = vpop.xlane.xlu0 %1835 }
 0x248   :  { %v7601_v36 = vpop.xlane.xlu1 %1838  ;;  %v1534_v30 = vpop.xlane.xlu0 %1533 }
 0x24c   :  { %v1830_v15 = vpop.xlane.xlu0 %1829 }
 0x24d   :  { %v1537_v57 = vpop.xlane.xlu1 %1536 }
 0x24e   :  { %v5998_v55 = vpop.eup %5997  ;;  %5999 = vrcp.f32 %v1537_v57 }
 0x24f   :  { %v1585_v0 = vmul.f32 %v5998_v55, %v7286_v43  ;;  %6001 = vrcp.f32 %v1836_v59 }
 0x251   :  { %v1833_v16 = vpop.xlane.xlu1 %1832  ;;  %v1552_v17 = vpop.xlane.xlu0 %1551  ;;  %2513 = vperm.xlu1 %5694, %v1585_v0  }
 0x252   :  { %6003 = vrcp.f32 %v1833_v16 }
 0x253   :  { %6005 = vrcp.f32 %v1552_v17 }
 0x254   :  { %6007 = vrcp.f32 %v1534_v30 }
 0x255   :  { %v7604_v4 = vpop.xlane.xlu1 %1554  ;;  %v1848_v61 = vpop.xlane.xlu0 %1847  ;;  %5695 = vset.pattern.permute.xlu1 %v11015_v28 }
 0x256   :  { %2606 = vperm.xlu1 %5695, %v1585_v0   ;;  %6009 = vrcp.f32 %v1848_v61 }
 0x257   :  { %6011 = vrcp.f32 %v1830_v15 }
 0x259   :  { %v7607_v54 = vpop.xlane.xlu1 %1850  ;;  %v1546_v46 = vpop.xlane.xlu0 %1545 }
 0x25a   :  { %5696 = vset.pattern.permute.xlu1 %v10670_v26  ;;  %6013 = vrcp.f32 %v1546_v46 }
 0x25b   :  { %v6000_v57 = vpop.eup %5999  ;;  %2766 = vperm.xlu1 %5696, %v1585_v0   ;;  %6015 = vrcp.f32 %v7599_v60 }
 0x25c   :  { %v7611_v43 = vmul.f32 %v6000_v57, %v7315_v12  ;;  %v6002_v16 = vpop.eup %6001  ;;  %v11016_v57 = vmov 0  }
 0x25d   :  { %v7613_v55 = vpop.xlane.xlu1 %1548  ;;  %v1842_v59 = vpop.xlane.xlu0 %1841  ;;  %v1881_v12 = vmul.f32 %v6002_v16, %v7291_v62  ;;  %v11017_v62 = vmov 3  }
 0x25e   :  { %2602 = vperm.xlu0 %5712, %v7611_v43   ;;  %6017 = vrcp.f32 %v1842_v59 }
 0x25f   :  { %5697 = vset.pattern.permute.xlu1 %v10674_v38  ;;  %v6004_v26 = vpop.eup %6003 }
 0x260   :  { %2846 = vperm.xlu1 %5697, %v1585_v0   ;;  %v7630_v0 = vmul.f32 %v6004_v26, %v7321_v49  ;;  %v6006_v16 = vpop.eup %6005  ;;  %v11018_v26 = vmov 2  }
 0x261   :  { %v7617_v31 = vpop.xlane.xlu1 %1844  ;;  %v7619_v27 = vpop.xlane.xlu0 %1563  ;;  %v7647_v30 = vmul.f32 %v6006_v16, %v7325_v32 }
 0x262   :  { %5714 = vset.pattern.permute.xlu0 %v10674_v38  ;;  %v6008_v44 = vpop.eup %6007  ;;  %6019 = vrcp.f32 %v7619_v27 }
 0x263   :  { %2842 = vperm.xlu0 %5714, %v7611_v43   ;;  %v6010_v32 = vpop.eup %6009  ;;  %v7663_v15 = vmul.f32 %v6008_v44, %v7301_v52  ;;  %6021 = vrcp.f32 %v7601_v36 }
 0x264   :  { %5698 = vset.pattern.permute.xlu1 %v11016_v57  ;;  %v7672_v46 = vmul.f32 %v6010_v32, %v7335_v56  ;;  %v6012_v44 = vpop.eup %6011 }
 0x265   :  { %v7625_v63 = vpop.xlane.xlu1 %1566  ;;  %v7627_v21 = vpop.xlane.xlu0 %1859  ;;  %3009 = vperm.xlu1 %5698, %v1881_v12   ;;  %11019 = vst [vmem:[#allocation95_spill] sm:$0xff] %v7663_v15  ;;  %v7690_v9 = vmul.f32 %v6012_v44, %v7311_v47 }
 0x266   :  { %6023 = vrcp.f32 %v7627_v21 }
 0x267   :  { %5716 = vset.pattern.permute.xlu0 %v11015_v28  ;;  %v6014_v56 = vpop.eup %6013  ;;  %11023 = vst [vmem:[#allocation99_spill] sm:$0xff] %v7690_v9 }
 0x268   :  { %3098 = vperm.xlu0 %5716, %v7630_v0   ;;  %v7695_v59 = vmul.f32 %v6014_v56, %v7345_v25 }
 0x269   :  { %v7634_v17 = vpop.xlane.xlu1 %1862  ;;  %v7636_v38 = vpop.xlane.xlu0 %1557  ;;  %5699 = vset.pattern.permute.xlu1 %v11015_v28 }
 0x26a   :  { %3102 = vperm.xlu1 %5699, %v1881_v12   ;;  %6025 = vrcp.f32 %v7636_v38 }
 0x26c   :  { %5718 = vset.pattern.permute.xlu0 %v11017_v62 }
 0x26d   :  { %v7640_v20 = vpop.xlane.xlu1 %1560  ;;  %3338 = vperm.xlu0 %5718, %v7630_v0   ;;  %v7643_v49 = vpop.xlane.xlu0 %1853 }
 0x26e   :  { %5700 = vset.pattern.permute.xlu1 %v11018_v26  ;;  %6027 = vrcp.f32 %v7643_v49 }
 0x26f   :  { %3262 = vperm.xlu1 %5700, %v1881_v12  }
 0x271   :  { %v7649_v33 = vpop.xlane.xlu1 %1856  ;;  %5720 = vset.pattern.permute.xlu0 %v11015_v28  ;;  %v7652_v61 = vpop.xlane.xlu0 %1575 }
 0x272   :  { %2622 = vperm.xlu0 %5720, %v7647_v30   ;;  %6029 = vrcp.f32 %v7652_v61 }
 0x273   :  { %5701 = vset.pattern.permute.xlu1 %v11017_v62 }
 0x274   :  { %3342 = vperm.xlu1 %5701, %v1881_v12  }
 0x275   :  { %v7656_v40 = vpop.xlane.xlu1 %1578  ;;  %v7658_v37 = vpop.xlane.xlu0 %1871 }
 0x276   :  { %5722 = vset.pattern.permute.xlu0 %v11017_v62  ;;  %6031 = vrcp.f32 %v7658_v37 }
 0x277   :  { %2862 = vperm.xlu0 %5722, %v7647_v30  }
 0x278   :  { %5702 = vset.pattern.permute.xlu1 %v11015_v28 }
 0x279   :  { %v7666_v16 = vpop.xlane.xlu1 %1874  ;;  %v7668_v8 = vpop.xlane.xlu0 %1569  ;;  %2598 = vperm.xlu1 %5702, %v7663_v15  }
 0x27a   :  { %6033 = vrcp.f32 %v7668_v8 }
 0x27b   :  { %5724 = vset.pattern.permute.xlu0 %v11015_v28 }
 0x27c   :  { %3118 = vperm.xlu0 %5724, %v7672_v46  }
 0x27d   :  { %v7677_v12 = vpop.xlane.xlu1 %1572  ;;  %v7679_v52 = vpop.xlane.xlu0 %1865  ;;  %5703 = vset.pattern.permute.xlu1 %v11017_v62 }
 0x27e   :  { %11020 = vst [vmem:[#allocation96_spill] sm:$0xff] %v7677_v12  ;;  %2838 = vperm.xlu1 %5703, %v7663_v15   ;;  %6035 = vrcp.f32 %v7679_v52  ;;  %v11051_v52 = vld [vmem:[#allocation31_spill] sm:$0xff] }
 0x27f   :  { %6037 = vrcp.f32 %v7604_v4 }
 0x280   :  { %5726 = vset.pattern.permute.xlu0 %v11017_v62 }
 0x281   :  { %v7684_v32 = vpop.xlane.xlu1 %1868  ;;  %3358 = vperm.xlu0 %5726, %v7672_v46   ;;  %v7687_v60 = vpop.xlane.xlu0 %2131 }
 0x282   :  { %11021 = vst [vmem:[#allocation97_spill] sm:$0xff] %v7684_v32  ;;  %11022 = vst [vmem:[#allocation98_spill] sm:$0xff] %v7687_v60  ;;  %5704 = vset.pattern.permute.xlu1 %v11015_v28  ;;  %v6016_v60 = vpop.eup %6015 }
 0x283   :  { %3094 = vperm.xlu1 %5704, %v7690_v9   ;;  %v6018_v25 = vpop.eup %6017  ;;  %v7714_v56 = vmul.f32 %v6016_v60, %v7294_v29 }
 0x284   :  { %v6020_v60 = vpop.eup %6019 }
 0x285   :  { %v7697_v15 = vpop.xlane.xlu1 %2134  ;;  %5728 = vset.pattern.permute.xlu0 %v11015_v28  ;;  %v7700_v12 = vpop.xlane.xlu0 %2428  ;;  %11028 = vst [vmem:[#allocation104_spill] sm:$0xff] %v7714_v56 }
 0x286   :  { %11024 = vst [vmem:[#allocation100_spill] sm:$0xff] %v7697_v15  ;;  %11025 = vst [vmem:[#allocation101_spill] sm:$0xff] %v7700_v12  ;;  %2614 = vperm.xlu0 %5728, %v7695_v59  }
 0x287   :  { %5705 = vset.pattern.permute.xlu1 %v11017_v62 }
 0x288   :  { %3334 = vperm.xlu1 %5705, %v7690_v9  }
 0x289   :  { %v7706_v47 = vpop.xlane.xlu1 %2431  ;;  %v7708_v44 = vpop.xlane.xlu0 %2125 }
 0x28a   :  { %11026 = vst [vmem:[#allocation102_spill] sm:$0xff] %v7706_v47  ;;  %11027 = vst [vmem:[#allocation103_spill] sm:$0xff] %v7708_v44  ;;  %5730 = vset.pattern.permute.xlu0 %v11017_v62  ;;  %v7723_v47 = vmul.f32 %v6018_v25, %v7356_v51  ;;  %v6022_v51 = vpop.eup %6021  ;;  %v7741_v25 = vmul.f32 %v6020_v60, %v7366_v41 }
 0x28b   :  { %2854 = vperm.xlu0 %5730, %v7695_v59   ;;  %v7750_v9 = vmul.f32 %v6022_v51, %v7304_v48  ;;  %v6024_v41 = vpop.eup %6023 }
 0x28c   :  { %5706 = vset.pattern.permute.xlu1 %v11016_v57  ;;  %v7766_v48 = vmul.f32 %v6024_v41, %v7377_v3 }
 0x28d   :  { %v7717_v12 = vpop.xlane.xlu1 %2128  ;;  %v7719_v27 = vpop.xlane.xlu0 %2422  ;;  %2518 = vperm.xlu1 %5706, %v7714_v56   ;;  %11034 = vst [vmem:[#allocation110_spill] sm:$0xff] %v7750_v9 }
 0x28e   :  { %11029 = vst [vmem:[#allocation105_spill] sm:$0xff] %v7719_v27  ;;  %6039 = vrcp.f32 %v7717_v12 }
 0x28f   :  { %5732 = vset.pattern.permute.xlu0 %v11015_v28 }
 0x290   :  { %3110 = vperm.xlu0 %5732, %v7723_v47  }
 0x291   :  { %v7727_v36 = vpop.xlane.xlu1 %2425  ;;  %5707 = vset.pattern.permute.xlu1 %v11015_v28  ;;  %v7732_v29 = vpop.xlane.xlu0 %2143 }
 0x292   :  { %11030 = vst [vmem:[#allocation106_spill] sm:$0xff] %v7727_v36  ;;  %2610 = vperm.xlu1 %5707, %v7714_v56  }
 0x294   :  { %5734 = vset.pattern.permute.xlu0 %v11017_v62 }
 0x295   :  { %v7735_v27 = vpop.xlane.xlu1 %2146  ;;  %3350 = vperm.xlu0 %5734, %v7723_v47   ;;  %v7743_v21 = vpop.xlane.xlu0 %2440 }
 0x296   :  { %11031 = vst [vmem:[#allocation107_spill] sm:$0xff] %v7735_v27  ;;  %5708 = vset.pattern.permute.xlu1 %v11017_v62  ;;  %11032 = vst [vmem:[#allocation108_spill] sm:$0xff] %v7743_v21 }
 0x297   :  { %2850 = vperm.xlu1 %5708, %v7714_v56  }
 0x299   :  { %v7745_v36 = vpop.xlane.xlu1 %2443  ;;  %5746 = vset.pattern.permute.xlu0 %v11015_v28  ;;  %v7758_v60 = vpop.xlane.xlu0 %2137 }
 0x29a   :  { %11033 = vst [vmem:[#allocation109_spill] sm:$0xff] %v7745_v36  ;;  %2638 = vperm.xlu0 %5746, %v7741_v25   ;;  %v6026_v36 = vpop.eup %6025 }
 0x29b   :  { %5709 = vset.pattern.permute.xlu1 %v11015_v28  ;;  %v7786_v41 = vmul.f32 %v6026_v36, %v7387_v2  ;;  %v6028_v2 = vpop.eup %6027 }
 0x29c   :  { %3106 = vperm.xlu1 %5709, %v7750_v9   ;;  %v7806_v36 = vmul.f32 %v6028_v2, %v7397_v23 }
 0x29d   :  { %v7755_v56 = vpop.xlane.xlu1 %2140  ;;  %v7770_v38 = vpop.xlane.xlu0 %2434 }
 0x29e   :  { %11035 = vst [vmem:[#allocation111_spill] sm:$0xff] %v7755_v56  ;;  %5748 = vset.pattern.permute.xlu0 %v11017_v62  ;;  %11037 = vst [vmem:[#allocation113_spill] sm:$0xff] %v7770_v38 }
 0x29f   :  { %2878 = vperm.xlu0 %5748, %v7741_v25  }
 0x2a0   :  { %5710 = vset.pattern.permute.xlu1 %v11017_v62 }
 0x2a1   :  { %v7762_v21 = vpop.xlane.xlu1 %2437  ;;  %3346 = vperm.xlu1 %5710, %v7750_v9   ;;  %v7782_v3 = vpop.xlane.xlu0 %2155 }
 0x2a2   :  { %11036 = vst [vmem:[#allocation112_spill] sm:$0xff] %v7762_v21 }
 0x2a3   :  { %5750 = vset.pattern.permute.xlu0 %v11015_v28 }
 0x2a4   :  { %3134 = vperm.xlu0 %5750, %v7766_v48  }
 0x2a5   :  { %v7772_v51 = vpop.xlane.xlu1 %2158  ;;  %5711 = vset.pattern.permute.xlu1 %v11016_v57  ;;  %v7795_v49 = vpop.xlane.xlu0 %2452 }
 0x2a6   :  { %11038 = vst [vmem:[#allocation114_spill] sm:$0xff] %v7772_v51  ;;  %2508 = vperm.xlu1 %5711, %v7611_v43   ;;  %11041 = vst [vmem:[#allocation117_spill] sm:$0xff] %v7795_v49  ;;  %v11053_v51 = vld [vmem:[#allocation3_spill] sm:$0xff] }
 0x2a8   :  { %5752 = vset.pattern.permute.xlu0 %v11017_v62 }
 0x2a9   :  { %v7778_v21 = vpop.xlane.xlu1 %2455  ;;  %3374 = vperm.xlu0 %5752, %v7766_v48   ;;  %v7808_v61 = vpop.xlane.xlu0 %2149 }
 0x2aa   :  { %11039 = vst [vmem:[#allocation115_spill] sm:$0xff] %v7778_v21  ;;  %5713 = vset.pattern.permute.xlu1 %v11018_v26 }
 0x2ab   :  { %2762 = vperm.xlu1 %5713, %v7611_v43  }
 0x2ad   :  { %v7788_v38 = vpop.xlane.xlu1 %2152  ;;  %5754 = vset.pattern.permute.xlu0 %v11015_v28 }
 0x2ae   :  { %11040 = vst [vmem:[#allocation116_spill] sm:$0xff] %v7788_v38  ;;  %2630 = vperm.xlu0 %5754, %v7786_v41   ;;  %v7890_v38 = vld [vmem:[%s10574_s7] ss:$0 sm:$0xff]  ;;  %s6389_s7 = smov 96  }
 0x2af   :  { %5715 = vset.pattern.permute.xlu1 %v11016_v57 }
 0x2b0   :  { %3004 = vperm.xlu1 %5715, %v7630_v0  }
 0x2b1   :  { %v7797_v21 = vpop.xlane.xlu1 %2449 }
 0x2b2   :  { %11042 = vst [vmem:[#allocation118_spill] sm:$0xff] %v7797_v21  ;;  %5756 = vset.pattern.permute.xlu0 %v11017_v62  ;;  %v7818_v21 = vpop.xlane.xlu0 %2446 }
 0x2b3   :  { %2870 = vperm.xlu0 %5756, %v7786_v41   ;;  %11045 = vst [vmem:[#allocation121_spill] sm:$0xff] %v7818_v21  ;;  %v7853_v21 = vld [vmem:[%s10573_s5] ss:$0 sm:$0xff] }
 0x2b4   :  { %5717 = vset.pattern.permute.xlu1 %v11018_v26 }
 0x2b5   :  { %3258 = vperm.xlu1 %5717, %v7630_v0   ;;  %v7803_v43 = vpop.xlane.xlu1 %2170  ;;  %v6030_v0 = vpop.eup %6029 }
 0x2b6   :  { %11043 = vst [vmem:[#allocation119_spill] sm:$0xff] %v7803_v43  ;;  %v7824_v23 = vmul.f32 %v6030_v0, %v7407_v11  ;;  %v7830_v2 = vpop.xlane.xlu0 %2167 }
 0x2b7   :  { %5758 = vset.pattern.permute.xlu0 %v11015_v28 }
 0x2b8   :  { %3126 = vperm.xlu0 %5758, %v7806_v36  }
 0x2b9   :  { %5719 = vset.pattern.permute.xlu1 %v11016_v57  ;;  %v7815_v49 = vpop.xlane.xlu1 %2467 }
 0x2ba   :  { %2533 = vperm.xlu1 %5719, %v7647_v30   ;;  %11044 = vst [vmem:[#allocation120_spill] sm:$0xff] %v7815_v49  ;;  %v7840_v0 = vpop.xlane.xlu0 %2464 }
 0x2bb   :  { %11048 = vst [vmem:[#allocation124_spill] sm:$0xff] %v7840_v0 }
 0x2bc   :  { %5760 = vset.pattern.permute.xlu0 %v11017_v62 }
 0x2bd   :  { %3366 = vperm.xlu0 %5760, %v7806_v36   ;;  %v7827_v37 = vpop.xlane.xlu1 %2164 }
 0x2be   :  { %5721 = vset.pattern.permute.xlu1 %v11018_v26  ;;  %11046 = vst [vmem:[#allocation122_spill] sm:$0xff] %v7827_v37 }
 0x2bf   :  { %2782 = vperm.xlu1 %5721, %v7647_v30   ;;  %v6032_v30 = vpop.eup %6031 }
 0x2c0   :  { %v7844_v49 = vmul.f32 %v6032_v30, %v7417_v6  ;;  %v7862_v6 = vpop.xlane.xlu0 %2161 }
 0x2c1   :  { %5770 = vset.pattern.permute.xlu0 %v11015_v28  ;;  %v7837_v11 = vpop.xlane.xlu1 %2461 }
 0x2c2   :  { %2654 = vperm.xlu0 %5770, %v7824_v23   ;;  %11047 = vst [vmem:[#allocation123_spill] sm:$0xff] %v7837_v11  ;;  %v11050_v11 = vld [vmem:[#allocation2_spill] sm:$0xff] }
 0x2c3   :  { %5723 = vset.pattern.permute.xlu1 %v11016_v57  ;;  %v7857_v9 = vadd.f32 %v7853_v21, %v11050_v11  ;;  %v7873_v11 = vld [vmem:[%s10931_s0] ss:$0 sm:$0xff] }
 0x2c4   :  { %3029 = vperm.xlu1 %5723, %v7672_v46   ;;  %v7877_v0 = vadd.f32 %v7873_v11, %v11051_v52  ;;  %v7884_v37 = vpop.xlane.xlu0 %2458  ;;  %v7894_v52 = vadd.f32 %v7890_v38, %v11053_v51 }
 0x2c5   :  { %v317_v30 = vsub.f32 0.0, %v7857_v9  ;;  %11052 = vst [vmem:[#allocation2_spill] sm:$0xff] %v7884_v37  ;;  %v11056_v37 = vld [vmem:[#allocation4_spill] sm:$0xff] }
 0x2c6   :  { %5772 = vset.pattern.permute.xlu0 %v11017_v62  ;;  %v1205_v56 = vsub.f32 0.0, %v7877_v0  ;;  %v7909_v27 = vadd.f32 %v7853_v21, %v11056_v37 }
 0x2c7   :  { %2894 = vperm.xlu0 %5772, %v7824_v23   ;;  %v335_v43 = vmul.f32 1.442695, %v317_v30 }
 0x2c8   :  { %5725 = vset.pattern.permute.xlu1 %v11018_v26  ;;  %v1223_v30 = vmul.f32 1.442695, %v1205_v56  ;;  %v315_v37 = vsub.f32 0.0, %v7909_v27 }
 0x2c9   :  { %3278 = vperm.xlu1 %5725, %v7672_v46   ;;  %v6034_v46 = vpop.eup %6033  ;;  %6041 = vpow2.f32 %v335_v43 }
 0x2ca   :  { %v7882_v4 = vmul.f32 %v6034_v46, %v7427_v10  ;;  %v613_v46 = vsub.f32 0.0, %v7894_v52  ;;  %v6036_v51 = vpop.eup %6035  ;;  %6043 = vrcp.f32 %v7732_v29 }
 0x2cb   :  { %5774 = vset.pattern.permute.xlu0 %v11015_v28  ;;  %v6038_v12 = vpop.eup %6037  ;;  %6045 = vpow2.f32 %v1223_v30 }
 0x2cc   :  { %3150 = vperm.xlu0 %5774, %v7844_v49   ;;  %v7848_v8 = vpop.permute.xlu1 %2513  ;;  %v631_v43 = vmul.f32 1.442695, %v613_v46  ;;  %6047 = vrcp.f32 %v7607_v54  ;;  %v331_v54 = vmul.f32 1.442695, %v315_v37 }
 0x2cd   :  { %11049 = vst [vmem:[#allocation125_spill] sm:$0xff] %v7848_v8  ;;  %5727 = vset.pattern.permute.xlu1 %v11016_v57  ;;  %6049 = vrcp.f32 %v7758_v60  ;;  %v6040_v60 = vpop.eup %6039 }
 0x2ce   :  { %2523 = vperm.xlu1 %5727, %v7695_v59   ;;  %6051 = vpow2.f32 %v631_v43  ;;  %v7956_v37 = vmul.f32 %v6040_v60, %v7473_v13 }
 0x2cf   :  { %6053 = vrcp.f32 %v7782_v3 }
 0x2d0   :  { %5776 = vset.pattern.permute.xlu0 %v11017_v62  ;;  %6055 = vpow2.f32 %v331_v54  ;;  %11064 = vst [vmem:[#allocation128_spill] sm:$0xff] %v7956_v37 }
 0x2d1   :  { %3390 = vperm.xlu0 %5776, %v7844_v49   ;;  %v7868_v8 = vpop.permute.xlu1 %2606  ;;  %6057 = vrcp.f32 %v7808_v61 }
 0x2d2   :  { %5729 = vset.pattern.permute.xlu1 %v11018_v26  ;;  %6059 = vrcp.f32 %v7613_v55 }
 0x2d3   :  { %2774 = vperm.xlu1 %5729, %v7695_v59   ;;  %6061 = vrcp.f32 %v7862_v6 }
 0x2d5   :  { %5778 = vset.pattern.permute.xlu0 %v11015_v28 }
 0x2d6   :  { %2646 = vperm.xlu0 %5778, %v7882_v4   ;;  %v7898_v10 = vpop.permute.xlu1 %2766  ;;  %v6042_v43 = vpop.eup %6041 }
 0x2d7   :  { %11054 = vst [vmem:[#allocation31_spill] sm:$0xff] %v7898_v10  ;;  %5731 = vset.pattern.permute.xlu1 %v11016_v57 }
 0x2d8   :  { %3019 = vperm.xlu1 %5731, %v7723_v47  }
 0x2d9   :  { %v7903_v59 = vpop.permute.xlu0 %2602 }
 0x2da   :  { %11055 = vst [vmem:[#allocation3_spill] sm:$0xff] %v7903_v59  ;;  %5780 = vset.pattern.permute.xlu0 %v11017_v62  ;;  %v7920_v59 = vmul.f32 %v6036_v51, %v7437_v22  ;;  %v11060_v22 = vld [vmem:[#allocation34_spill] sm:$0xff]  ;;  %v11062_v51 = vld [vmem:[#allocation5_spill] sm:$0xff] }
 0x2db   :  { %2886 = vperm.xlu0 %5780, %v7882_v4   ;;  %v7912_v10 = vpop.permute.xlu1 %2846  ;;  %v7935_v46 = vadd.f32 %v7873_v11, %v11060_v22 }
 0x2dc   :  { %5733 = vset.pattern.permute.xlu1 %v11018_v26 }
 0x2dd   :  { %3270 = vperm.xlu1 %5733, %v7723_v47   ;;  %v7930_v47 = vmul.f32 %v6038_v12, %v7331_v18  ;;  %v7944_v18 = vadd.f32 %v7890_v38, %v11062_v51  ;;  %v1203_v22 = vsub.f32 0.0, %v7935_v46  ;;  %v6044_v51 = vpop.eup %6043 }
 0x2de   :  { %v7917_v56 = vpop.permute.xlu0 %2842  ;;  %v6046_v15 = vpop.eup %6045  ;;  %v7968_v13 = vmul.f32 %v6044_v51, %v7487_v53 }
 0x2df   :  { %11057 = vst [vmem:[#allocation4_spill] sm:$0xff] %v7917_v56  ;;  %5782 = vset.pattern.permute.xlu0 %v11015_v28  ;;  %11059 = vst [vmem:[#allocation127_spill] sm:$0xff] %v7930_v47  ;;  %v1219_v56 = vmul.f32 1.442695, %v1203_v22  ;;  %v6048_v61 = vpop.eup %6047 }
 0x2e0   :  { %3142 = vperm.xlu0 %5782, %v7920_v59   ;;  %v7927_v29 = vpop.permute.xlu1 %3009  ;;  %11066 = vst [vmem:[#allocation130_spill] sm:$0xff] %v7968_v13  ;;  %v6050_v60 = vpop.eup %6049 }
 0x2e1   :  { %11058 = vst [vmem:[#allocation126_spill] sm:$0xff] %v7927_v29  ;;  %5735 = vset.pattern.permute.xlu1 %v11016_v57  ;;  %v365_v29 = vadd.f32 1.0, %v6042_v43  ;;  %v11067_v43 = vld [vmem:[#allocation10_spill] sm:$0xff]  ;;  %v7984_v53 = vmul.f32 %v6050_v60, %v7507_v34 }
 0x2e2   :  { %2538 = vperm.xlu1 %5735, %v7930_v47   ;;  %v7972_v22 = vadd.f32 %v7853_v21, %v11067_v43 }
 0x2e3   :  { %v7938_v30 = vpop.permute.xlu0 %3098  ;;  %6063 = vrcp.f32 %v365_v29  ;;  %11069 = vst [vmem:[#allocation131_spill] sm:$0xff] %v7984_v53 }
 0x2e4   :  { %11061 = vst [vmem:[#allocation34_spill] sm:$0xff] %v7938_v30  ;;  %5784 = vset.pattern.permute.xlu0 %v11017_v62  ;;  %v611_v30 = vsub.f32 0.0, %v7944_v18  ;;  %6065 = vpow2.f32 %v1219_v56  ;;  %v11070_v56 = vld [vmem:[#allocation39_spill] sm:$0xff] }
 0x2e5   :  { %3382 = vperm.xlu0 %5784, %v7920_v59   ;;  %v7947_v12 = vpop.permute.xlu1 %3102  ;;  %v7990_v51 = vadd.f32 %v7873_v11, %v11070_v56 }
 0x2e6   :  { %5736 = vset.pattern.permute.xlu1 %v11015_v28  ;;  %v627_v55 = vmul.f32 1.442695, %v611_v30  ;;  %v321_v30 = vsub.f32 0.0, %v7972_v22 }
 0x2e7   :  { %2626 = vperm.xlu1 %5736, %v7930_v47   ;;  %v1209_v56 = vsub.f32 0.0, %v7990_v51 }
 0x2e8   :  { %v7953_v3 = vpop.permute.xlu0 %3338  ;;  %6067 = vpow2.f32 %v627_v55  ;;  %v343_v55 = vmul.f32 1.442695, %v321_v30 }
 0x2e9   :  { %11063 = vst [vmem:[#allocation5_spill] sm:$0xff] %v7953_v3  ;;  %5796 = vset.pattern.permute.xlu0 %v11015_v28  ;;  %v1231_v32 = vmul.f32 1.442695, %v1209_v56 }
 0x2ea   :  { %3594 = vperm.xlu0 %5796, %v7956_v37   ;;  %v7962_v54 = vpop.permute.xlu1 %3262  ;;  %v6052_v37 = vpop.eup %6051 }
 0x2eb   :  { %11065 = vst [vmem:[#allocation129_spill] sm:$0xff] %v7962_v54  ;;  %5737 = vset.pattern.permute.xlu1 %v11017_v62  ;;  %v1253_v54 = vadd.f32 1.0, %v6046_v15  ;;  %v6054_v29 = vpop.eup %6053  ;;  %v661_v15 = vadd.f32 1.0, %v6052_v37 }
 0x2ec   :  { %2866 = vperm.xlu1 %5737, %v7930_v47   ;;  %v7980_v47 = vmul.f32 %v6048_v61, %v7337_v1  ;;  %v6056_v61 = vpop.eup %6055  ;;  %v7998_v34 = vmul.f32 %v6054_v29, %v7527_v35 }
 0x2ed   :  { %v7974_v3 = vpop.permute.xlu0 %2622  ;;  %6069 = vrcp.f32 %v1253_v54  ;;  %v6058_v60 = vpop.eup %6057 }
 0x2ee   :  { %3614 = vperm.xlu0 %5796, %v7968_v13   ;;  %11068 = vst [vmem:[#allocation10_spill] sm:$0xff] %v7980_v47  ;;  %11071 = vst [vmem:[#allocation39_spill] sm:$0xff] %v7998_v34  ;;  %v11072_v13 = vld [vmem:[#allocation11_spill] sm:$0xff]  ;;  %v6060_v54 = vpop.eup %6059  ;;  %6071 = vrcp.f32 %v661_v15  ;;  %v8012_v35 = vmul.f32 %v6058_v60, %v7547_v42 }
 0x2ef   :  { %v7977_v6 = vpop.permute.xlu1 %3342  ;;  %v8002_v37 = vadd.f32 %v7890_v38, %v11072_v13  ;;  %6073 = vrcp.f32 %v7617_v31  ;;  %v6062_v29 = vpop.eup %6061  ;;  %v363_v13 = vadd.f32 1.0, %v6056_v61  ;;  %v8018_v15 = vmul.f32 %v6060_v54, %v7349_v39 }
 0x2f0   :  { %5738 = vset.pattern.permute.xlu1 %v11015_v28  ;;  %11073 = vst [vmem:[#allocation11_spill] sm:$0xff] %v8012_v35  ;;  %6075 = vpow2.f32 %v343_v55  ;;  %v8026_v61 = vmul.f32 %v6062_v29, %v7581_v7  ;;  %v11076_v55 = vld [vmem:[#allocation12_spill] sm:$0xff] }
 0x2f1   :  { %3122 = vperm.xlu1 %5738, %v7980_v47   ;;  %v617_v30 = vsub.f32 0.0, %v8002_v37  ;;  %11074 = vst [vmem:[#allocation132_spill] sm:$0xff] %v8018_v15  ;;  %6077 = vrcp.f32 %v363_v13  ;;  %v8030_v39 = vadd.f32 %v7853_v21, %v11076_v55 }
 0x2f2   :  { %3606 = vperm.xlu0 %5796, %v7984_v53   ;;  %v7993_v1 = vpop.permute.xlu0 %2862  ;;  %11075 = vst [vmem:[#allocation133_spill] sm:$0xff] %v8026_v61  ;;  %6079 = vpow2.f32 %v1231_v32 }
 0x2f3   :  { %v639_v60 = vmul.f32 1.442695, %v617_v30  ;;  %v319_v21 = vsub.f32 0.0, %v8030_v39 }
 0x2f4   :  { %v7995_v43 = vpop.permute.xlu1 %2598 }
 0x2f5   :  { %5739 = vset.pattern.permute.xlu1 %v11017_v62  ;;  %6081 = vpow2.f32 %v639_v60  ;;  %v339_v55 = vmul.f32 1.442695, %v319_v21 }
 0x2f6   :  { %3630 = vperm.xlu0 %5796, %v7998_v34   ;;  %3362 = vperm.xlu1 %5739, %v7980_v47   ;;  %v6064_v34 = vpop.eup %6063 }
 0x2f7   :  { %v8008_v53 = vpop.permute.xlu0 %3118  ;;  %v6066_v31 = vpop.eup %6065  ;;  %v8033_v56 = vmul.f32 %v6064_v34, %v7857_v9  ;;  %v11079_v34 = vld [vmem:[#allocation41_spill] sm:$0xff] }
 0x2f8   :  { %v6068_v54 = vpop.eup %6067  ;;  %v1251_v47 = vadd.f32 1.0, %v6066_v31  ;;  %v8050_v13 = vadd.f32 %v7873_v11, %v11079_v34 }
 0x2f9   :  { %v8015_v44 = vpop.permute.xlu1 %2838  ;;  %11077 = vst [vmem:[#allocation12_spill] sm:$0xff] %v8033_v56  ;;  %v2663_v7 = vmul.f32 %v7868_v8, %v8033_v56  ;;  %v659_v9 = vadd.f32 1.0, %v6068_v54 }
 0x2fa   :  { %3622 = vperm.xlu0 %5796, %v8012_v35   ;;  %5740 = vset.pattern.permute.xlu1 %v11016_v57  ;;  %v6070_v50 = vpop.eup %6069  ;;  %6083 = vrcp.f32 %v1251_v47  ;;  %v1207_v54 = vsub.f32 0.0, %v8050_v13 }
 0x2fb   :  { %2528 = vperm.xlu1 %5740, %v8018_v15   ;;  %v8046_v32 = vmul.f32 %v6070_v50, %v7877_v0  ;;  %v6072_v8 = vpop.eup %6071  ;;  %v11080_v50 = vld [vmem:[#allocation13_spill] sm:$0xff]  ;;  %6085 = vrcp.f32 %v659_v9 }
 0x2fc   :  { %v8023_v42 = vpop.permute.xlu0 %3358  ;;  %v6074_v60 = vpop.eup %6073  ;;  %v8060_v0 = vadd.f32 %v7890_v38, %v11080_v50  ;;  %v8064_v47 = vmul.f32 %v6072_v8, %v7894_v52  ;;  %6087 = vpow2.f32 %v339_v55  ;;  %v1227_v8 = vmul.f32 1.442695, %v1207_v54 }
 0x2fd   :  { %11078 = vst [vmem:[#allocation134_spill] sm:$0xff] %v8046_v32  ;;  %v2903_v31 = vmul.f32 %v7912_v10, %v8046_v32  ;;  %v6076_v11 = vpop.eup %6075  ;;  %v8075_v38 = vmul.f32 %v6074_v60, %v7360_v24 }
 0x2fe   :  { %3638 = vperm.xlu0 %5796, %v8026_v61   ;;  %v8036_v35 = vpop.permute.xlu1 %3094  ;;  %11081 = vst [vmem:[#allocation41_spill] sm:$0xff] %v8064_v47  ;;  %v369_v34 = vadd.f32 1.0, %v6076_v11  ;;  %v615_v52 = vsub.f32 0.0, %v8060_v0  ;;  %v6078_v9 = vpop.eup %6077 }
 0x2ff   :  { %5741 = vset.pattern.permute.xlu1 %v11015_v28  ;;  %11083 = vst [vmem:[#allocation135_spill] sm:$0xff] %v8075_v38  ;;  %v8088_v11 = vmul.f32 %v6078_v9, %v7909_v27 }
 0x300   :  { %2618 = vperm.xlu1 %5741, %v8018_v15   ;;  %6089 = vrcp.f32 %v369_v34  ;;  %v635_v24 = vmul.f32 1.442695, %v615_v52  ;;  %v11085_v34 = vld [vmem:[#allocation18_spill] sm:$0xff] }
 0x301   :  { %v8043_v29 = vpop.permute.xlu0 %2614  ;;  %11084 = vst [vmem:[#allocation136_spill] sm:$0xff] %v8088_v11  ;;  %6091 = vpow2.f32 %v1227_v8  ;;  %v325_v52 = vsub.f32 0.0, %v11085_v34 }
 0x302   :  { %2697 = vrot.lane.b32.xlu0 %v2663_v7, %s6389_s7  ;;  %v3159_v7 = vmul.f32 %v7947_v12, %v8064_v47  ;;  %v3399_v12 = vmul.f32 %v7977_v6, %v8046_v32  ;;  %v2661_v6 = vmul.f32 %v7995_v43, %v8088_v11  ;;  %6093 = vpow2.f32 %v635_v24 }
 0x303   :  { %v8053_v30 = vpop.permute.xlu1 %3334 }
 0x304   :  { %5742 = vset.pattern.permute.xlu1 %v11017_v62 }
 0x305   :  { %2858 = vperm.xlu1 %5742, %v8018_v15  }
 0x306   :  { %2937 = vrot.lane.b32.xlu0 %v2903_v31, %s6389_s7  ;;  %v8068_v10 = vpop.permute.xlu0 %2854  ;;  %v6080_v31 = vpop.eup %6079 }
 0x307   :  { %v6082_v55 = vpop.eup %6081 }
 0x308   :  { %v8072_v21 = vpop.permute.xlu1 %2518  ;;  %v6084_v54 = vpop.eup %6083  ;;  %v665_v47 = vadd.f32 1.0, %v6082_v55 }
 0x309   :  { %11082 = vst [vmem:[#allocation13_spill] sm:$0xff] %v8072_v21  ;;  %5743 = vset.pattern.permute.xlu1 %v11015_v28  ;;  %v1257_v21 = vadd.f32 1.0, %v6080_v31  ;;  %v8099_v27 = vmul.f32 %v6084_v54, %v7935_v46  ;;  %v6086_v8 = vpop.eup %6085  ;;  %v351_v31 = vmul.f32 1.442695, %v325_v52  ;;  %v11089_v52 = vld [vmem:[#allocation19_spill] sm:$0xff] }
 0x30a   :  { %3193 = vrot.lane.b32.xlu0 %v3159_v7, %s6389_s7  ;;  %3114 = vperm.xlu1 %5743, %v8075_v38   ;;  %v6088_v24 = vpop.eup %6087  ;;  %v8111_v46 = vmul.f32 %v6086_v8, %v7944_v18  ;;  %v621_v56 = vsub.f32 0.0, %v11089_v52 }
 0x30b   :  { %v8081_v50 = vpop.permute.xlu0 %3110  ;;  %11086 = vst [vmem:[#allocation18_spill] sm:$0xff] %v8099_v27  ;;  %6095 = vrcp.f32 %v1257_v21  ;;  %v2901_v43 = vmul.f32 %v8015_v44, %v8099_v27  ;;  %v11088_v21 = vld [vmem:[#allocation54_spill] sm:$0xff]  ;;  %v367_v44 = vadd.f32 1.0, %v6088_v24  ;;  %v3397_v11 = vmul.f32 %v8053_v30, %v8099_v27  ;;  %v11091_v30 = vld [vmem:[#allocation20_spill] sm:$0xff] }
 0x30c   :  { %11087 = vst [vmem:[#allocation137_spill] sm:$0xff] %v8111_v46  ;;  %6097 = vrcp.f32 %v665_v47  ;;  %v1213_v55 = vsub.f32 0.0, %v11088_v21 }
 0x30d   :  { %v8085_v60 = vpop.permute.xlu1 %2610  ;;  %6099 = vpow2.f32 %v351_v31  ;;  %v6090_v18 = vpop.eup %6089 }
 0x30e   :  { %3433 = vrot.lane.b32.xlu0 %v3399_v12, %s6389_s7  ;;  %5744 = vset.pattern.permute.xlu1 %v11017_v62  ;;  %v1239_v8 = vmul.f32 1.442695, %v1213_v55  ;;  %6101 = vrcp.f32 %v367_v44  ;;  %v8131_v24 = vmul.f32 %v6090_v18, %v7972_v22 }
 0x30f   :  { %3354 = vperm.xlu1 %5744, %v8075_v38  }
 0x310   :  { %v8095_v7 = vpop.permute.xlu0 %3350  ;;  %11090 = vst [vmem:[#allocation54_spill] sm:$0xff] %v8131_v24  ;;  %6103 = vpow2.f32 %v1239_v8 }
 0x312   :  { %2693 = vrot.lane.b32.xlu0 %v2661_v6, %s6389_s7  ;;  %v8102_v9 = vpop.permute.xlu1 %2850  ;;  %v3157_v6 = vmul.f32 %v8036_v35, %v8111_v46  ;;  %v647_v35 = vmul.f32 1.442695, %v621_v56  ;;  %v323_v46 = vsub.f32 0.0, %v11091_v30  ;;  %v2667_v56 = vmul.f32 %v7974_v3, %v8131_v24 }
 0x313   :  { %5745 = vset.pattern.permute.xlu1 %v11016_v57 }
 0x314   :  { %2553 = vperm.xlu1 %5745, %v7741_v25   ;;  %6105 = vpow2.f32 %v647_v35  ;;  %v347_v18 = vmul.f32 1.442695, %v323_v46  ;;  %v11097_v46 = vld [vmem:[#allocation21_spill] sm:$0xff] }
 0x315   :  { %v8108_v12 = vpop.permute.xlu0 %2638 }
 0x316   :  { %2933 = vrot.lane.b32.xlu0 %v2901_v43, %s6389_s7  ;;  %v6092_v43 = vpop.eup %6091 }
 0x317   :  { %v8115_v54 = vpop.permute.xlu1 %3106  ;;  %v6094_v31 = vpop.eup %6093 }
 0x318   :  { %5747 = vset.pattern.permute.xlu1 %v11018_v26  ;;  %v6096_v55 = vpop.eup %6095  ;;  %v663_v32 = vadd.f32 1.0, %v6094_v31 }
 0x319   :  { %2798 = vperm.xlu1 %5747, %v7741_v25   ;;  %v1255_v25 = vadd.f32 1.0, %v6092_v43  ;;  %v8143_v22 = vmul.f32 %v6096_v55, %v7990_v51  ;;  %v11095_v51 = vld [vmem:[#allocation55_spill] sm:$0xff]  ;;  %v619_v55 = vsub.f32 0.0, %v11097_v46 }
 0x31a   :  { %v8122_v47 = vpop.permute.xlu0 %2878  ;;  %3189 = vrot.lane.b32.xlu0 %v3157_v6, %s6389_s7  ;;  %v1211_v31 = vsub.f32 0.0, %v11095_v51 }
 0x31b   :  { %11093 = vst [vmem:[#allocation20_spill] sm:$0xff] %v8143_v22  ;;  %6107 = vrcp.f32 %v1255_v25  ;;  %v2907_v8 = vmul.f32 %v7993_v1, %v8143_v22 }
 0x31c   :  { %v8127_v15 = vpop.permute.xlu1 %3346  ;;  %6109 = vrcp.f32 %v663_v32 }
 0x31d   :  { %5749 = vset.pattern.permute.xlu1 %v11016_v57  ;;  %6111 = vpow2.f32 %v347_v18  ;;  %v3403_v18 = vmul.f32 %v8023_v42, %v8143_v22 }
 0x31e   :  { %3429 = vrot.lane.b32.xlu0 %v3397_v11, %s6389_s7  ;;  %3049 = vperm.xlu1 %5749, %v7766_v48   ;;  %v6098_v11 = vpop.eup %6097  ;;  %6113 = vrcp.f32 %v7625_v63 }
 0x31f   :  { %v8135_v6 = vpop.permute.xlu0 %3134  ;;  %v6100_v43 = vpop.eup %6099  ;;  %v8153_v35 = vmul.f32 %v6098_v11, %v8002_v37 }
 0x320   :  { %v373_v1 = vadd.f32 1.0, %v6100_v43  ;;  %v6102_v32 = vpop.eup %6101 }
 0x321   :  { %v8140_v44 = vpop.permute.xlu1 %2508  ;;  %11094 = vst [vmem:[#allocation138_spill] sm:$0xff] %v8153_v35  ;;  %v6104_v11 = vpop.eup %6103 }
 0x322   :  { %11092 = vst [vmem:[#allocation19_spill] sm:$0xff] %v8140_v44  ;;  %2705 = vrot.lane.b32.xlu0 %v2667_v56, %s6389_s7  ;;  %5751 = vset.pattern.permute.xlu1 %v11018_v26  ;;  %v1235_v56 = vmul.f32 1.442695, %v1211_v31  ;;  %6115 = vrcp.f32 %v373_v1  ;;  %v6106_v43 = vpop.eup %6105  ;;  %v8175_v44 = vmul.f32 %v6102_v32, %v8030_v39  ;;  %v1261_v31 = vadd.f32 1.0, %v6104_v11  ;;  %v11101_v1 = vld [vmem:[#allocation26_spill] sm:$0xff] }
 0x323   :  { %3294 = vperm.xlu1 %5751, %v7766_v48   ;;  %v3163_v48 = vmul.f32 %v8008_v53, %v8153_v35  ;;  %v643_v53 = vmul.f32 1.442695, %v619_v55  ;;  %v329_v55 = vsub.f32 0.0, %v11101_v1  ;;  %v11179_v35 = vld [vmem:[#allocation130_spill] sm:$0xff] }
 0x324   :  { %v8150_v3 = vpop.permute.xlu0 %3374  ;;  %11099 = vst [vmem:[#allocation139_spill] sm:$0xff] %v8175_v44  ;;  %6117 = vpow2.f32 %v1235_v56  ;;  %v2665_v42 = vmul.f32 %v8043_v29, %v8175_v44  ;;  %v11183_v44 = vld [vmem:[#allocation68_spill] sm:$0xff] }
 0x325   :  { %6119 = vpow2.f32 %v643_v53  ;;  %v11103_v53 = vld [vmem:[#allocation60_spill] sm:$0xff] }
 0x326   :  { %2945 = vrot.lane.b32.xlu0 %v2907_v8, %s6389_s7  ;;  %v8157_v25 = vpop.permute.xlu1 %2762  ;;  %6121 = vrcp.f32 %v1261_v31 }
 0x327   :  { %11096 = vst [vmem:[#allocation55_spill] sm:$0xff] %v8157_v25  ;;  %5753 = vset.pattern.permute.xlu1 %v11016_v57  ;;  %6123 = vrcp.f32 %v7634_v17 }
 0x328   :  { %2543 = vperm.xlu1 %5753, %v7786_v41  }
 0x329   :  { %v8164_v37 = vpop.permute.xlu0 %2630 }
 0x32a   :  { %3201 = vrot.lane.b32.xlu0 %v3163_v48, %s6389_s7  ;;  %v6108_v48 = vpop.eup %6107 }
 0x32b   :  { %v8168_v8 = vpop.permute.xlu1 %3004  ;;  %v8187_v39 = vmul.f32 %v6108_v48, %v8050_v13  ;;  %v6110_v32 = vpop.eup %6109 }
 0x32c   :  { %11098 = vst [vmem:[#allocation21_spill] sm:$0xff] %v8168_v8  ;;  %5755 = vset.pattern.permute.xlu1 %v11018_v26  ;;  %v6112_v11 = vpop.eup %6111  ;;  %v8200_v13 = vmul.f32 %v6110_v32, %v8060_v0 }
 0x32d   :  { %2790 = vperm.xlu1 %5755, %v7786_v41   ;;  %v669_v41 = vadd.f32 1.0, %v6106_v43  ;;  %11102 = vst [vmem:[#allocation26_spill] sm:$0xff] %v8187_v39  ;;  %v2905_v29 = vmul.f32 %v8068_v10, %v8187_v39  ;;  %v1217_v43 = vsub.f32 0.0, %v11103_v53  ;;  %v6114_v31 = vpop.eup %6113  ;;  %v371_v17 = vadd.f32 1.0, %v6112_v11 }
 0x32e   :  { %v8177_v63 = vpop.permute.xlu0 %2870  ;;  %3441 = vrot.lane.b32.xlu0 %v3403_v18, %s6389_s7  ;;  %v359_v18 = vmul.f32 1.442695, %v329_v55  ;;  %11105 = vst [vmem:[#allocation141_spill] sm:$0xff] %v8200_v13  ;;  %v3161_v10 = vmul.f32 %v8081_v50, %v8200_v13  ;;  %v8214_v32 = vmul.f32 %v6114_v31, %v7370_v5 }
 0x32f   :  { %6125 = vrcp.f32 %v669_v41  ;;  %v6116_v0 = vpop.eup %6115 }
 0x330   :  { %v8182_v25 = vpop.permute.xlu1 %3258  ;;  %6127 = vpow2.f32 %v359_v18  ;;  %11108 = vst [vmem:[#allocation142_spill] sm:$0xff] %v8214_v32  ;;  %v8221_v18 = vmul.f32 %v6116_v0, %v11085_v34 }
 0x331   :  { %11100 = vst [vmem:[#allocation140_spill] sm:$0xff] %v8182_v25  ;;  %5757 = vset.pattern.permute.xlu1 %v11016_v57  ;;  %6129 = vrcp.f32 %v371_v17 }
 0x332   :  { %2701 = vrot.lane.b32.xlu0 %v2665_v42, %s6389_s7  ;;  %3039 = vperm.xlu1 %5757, %v7806_v36   ;;  %v11106_v42 = vld [vmem:[#allocation27_spill] sm:$0xff]  ;;  %11109 = vst [vmem:[#allocation143_spill] sm:$0xff] %v8221_v18 }
 0x333   :  { %v8191_v56 = vpop.permute.xlu0 %3126  ;;  %v625_v55 = vsub.f32 0.0, %v11106_v42 }
 0x335   :  { %v8197_v8 = vpop.permute.xlu1 %2533  ;;  %v655_v50 = vmul.f32 1.442695, %v625_v55 }
 0x336   :  { %11104 = vst [vmem:[#allocation60_spill] sm:$0xff] %v8197_v8  ;;  %2941 = vrot.lane.b32.xlu0 %v2905_v29, %s6389_s7  ;;  %5759 = vset.pattern.permute.xlu1 %v11018_v26  ;;  %v1247_v8 = vmul.f32 1.442695, %v1217_v43  ;;  %v6118_v29 = vpop.eup %6117 }
 0x337   :  { %3286 = vperm.xlu1 %5759, %v7806_v36   ;;  %v3401_v36 = vmul.f32 %v8095_v7, %v8187_v39  ;;  %v6120_v11 = vpop.eup %6119  ;;  %v1259_v43 = vadd.f32 1.0, %v6118_v29  ;;  %v2671_v7 = vmul.f32 %v8108_v12, %v8221_v18 }
 0x338   :  { %v8207_v48 = vpop.permute.xlu0 %3366  ;;  %6131 = vpow2.f32 %v1247_v8  ;;  %v6122_v31 = vpop.eup %6121  ;;  %v667_v34 = vadd.f32 1.0, %v6120_v11 }
 0x339   :  { %6133 = vrcp.f32 %v7640_v20  ;;  %v6124_v8 = vpop.eup %6123  ;;  %v8235_v20 = vmul.f32 %v6122_v31, %v11088_v21  ;;  %v11116_v31 = vld [vmem:[#allocation61_spill] sm:$0xff] }
 0x33a   :  { %3197 = vrot.lane.b32.xlu0 %v3161_v10, %s6389_s7  ;;  %v8211_v41 = vpop.permute.xlu1 %2782  ;;  %6135 = vpow2.f32 %v655_v50  ;;  %v11111_v10 = vld [vmem:[#allocation28_spill] sm:$0xff]  ;;  %v8245_v50 = vmul.f32 %v6124_v8, %v7383_v45 }
 0x33b   :  { %11107 = vst [vmem:[#allocation27_spill] sm:$0xff] %v8211_v41  ;;  %5761 = vset.pattern.permute.xlu1 %v11015_v28  ;;  %v327_v55 = vsub.f32 0.0, %v11111_v10  ;;  %11112 = vst [vmem:[#allocation28_spill] sm:$0xff] %v8235_v20  ;;  %6137 = vrcp.f32 %v1259_v43  ;;  %v2911_v29 = vmul.f32 %v8122_v47, %v8235_v20  ;;  %v11117_v41 = vld [vmem:[#allocation29_spill] sm:$0xff] }
 0x33c   :  { %2642 = vperm.xlu1 %5761, %v8214_v32   ;;  %v6126_v0 = vpop.eup %6125  ;;  %11114 = vst [vmem:[#allocation146_spill] sm:$0xff] %v8245_v50  ;;  %6139 = vrcp.f32 %v667_v34 }
 0x33d   :  { %v8224_v5 = vpop.permute.xlu0 %2654  ;;  %v6128_v11 = vpop.eup %6127  ;;  %v8249_v21 = vmul.f32 %v6126_v0, %v11089_v52  ;;  %v355_v43 = vmul.f32 1.442695, %v327_v55  ;;  %6141 = vrcp.f32 %v7649_v33  ;;  %v3407_v33 = vmul.f32 %v8150_v3, %v8235_v20 }
 0x33e   :  { %3437 = vrot.lane.b32.xlu0 %v3401_v36, %s6389_s7  ;;  %v6130_v47 = vpop.eup %6129  ;;  %v377_v8 = vadd.f32 1.0, %v6128_v11 }
 0x33f   :  { %v8227_v17 = vpop.permute.xlu1 %3029  ;;  %11115 = vst [vmem:[#allocation147_spill] sm:$0xff] %v8249_v21  ;;  %v3167_v45 = vmul.f32 %v8135_v6, %v8249_v21  ;;  %6143 = vpow2.f32 %v355_v43  ;;  %v8268_v11 = vmul.f32 %v6130_v47, %v11091_v30  ;;  %v11176_v21 = vld [vmem:[#allocation128_spill] sm:$0xff] }
 0x340   :  { %11110 = vst [vmem:[#allocation144_spill] sm:$0xff] %v8227_v17  ;;  %5762 = vset.pattern.permute.xlu1 %v11017_v62  ;;  %v623_v17 = vsub.f32 0.0, %v11117_v41  ;;  %6145 = vrcp.f32 %v377_v8 }
 0x341   :  { %2882 = vperm.xlu1 %5762, %v8214_v32   ;;  %11119 = vst [vmem:[#allocation29_spill] sm:$0xff] %v8268_v11  ;;  %v2669_v3 = vmul.f32 %v8164_v37, %v8268_v11  ;;  %v11182_v11 = vld [vmem:[#allocation131_spill] sm:$0xff]  ;;  %v11237_v32 = vld [vmem:[#allocation5_spill] sm:$0xff] }
 0x342   :  { %2713 = vrot.lane.b32.xlu0 %v2671_v7, %s6389_s7  ;;  %v8240_v12 = vpop.permute.xlu0 %2894  ;;  %v1215_v7 = vsub.f32 0.0, %v11116_v31  ;;  %v651_v6 = vmul.f32 1.442695, %v623_v17 }
 0x344   :  { %v8242_v36 = vpop.permute.xlu1 %3278  ;;  %v1243_v34 = vmul.f32 1.442695, %v1215_v7 }
 0x345   :  { %11113 = vst [vmem:[#allocation145_spill] sm:$0xff] %v8242_v36  ;;  %5763 = vset.pattern.permute.xlu1 %v11015_v28  ;;  %v6132_v52 = vpop.eup %6131 }
 0x346   :  { %2953 = vrot.lane.b32.xlu0 %v2911_v29, %s6389_s7  ;;  %3138 = vperm.xlu1 %5763, %v8245_v50   ;;  %v6134_v0 = vpop.eup %6133  ;;  %v1265_v43 = vadd.f32 1.0, %v6132_v52  ;;  %6147 = vpow2.f32 %v1243_v34 }
 0x347   :  { %v8260_v55 = vpop.permute.xlu0 %3150  ;;  %v6136_v29 = vpop.eup %6135  ;;  %6149 = vpow2.f32 %v651_v6 }
 0x348   :  { %v673_v30 = vadd.f32 1.0, %v6136_v29  ;;  %6151 = vrcp.f32 %v1265_v43 }
 0x349   :  { %v8258_v36 = vpop.permute.xlu1 %2523 }
 0x34a   :  { %11118 = vst [vmem:[#allocation61_spill] sm:$0xff] %v8258_v36  ;;  %3209 = vrot.lane.b32.xlu0 %v3167_v45, %s6389_s7  ;;  %5764 = vset.pattern.permute.xlu1 %v11017_v62  ;;  %v8274_v45 = vmul.f32 %v6134_v0, %v7393_v58  ;;  %v6138_v36 = vpop.eup %6137  ;;  %6153 = vrcp.f32 %v673_v30 }
 0x34b   :  { %3378 = vperm.xlu1 %5764, %v8245_v50   ;;  %v8281_v47 = vmul.f32 %v6138_v36, %v11095_v51  ;;  %v6140_v8 = vpop.eup %6139 }
 0x34c   :  { %11121 = vst [vmem:[#allocation149_spill] sm:$0xff] %v8274_v45  ;;  %v3391_v17 = vpop.permute.xlu0 %3390  ;;  %v6142_v37 = vpop.eup %6141  ;;  %v8291_v34 = vmul.f32 %v6140_v8, %v11097_v46 }
 0x34d   :  { %11122 = vst [vmem:[#allocation150_spill] sm:$0xff] %v8281_v47  ;;  %v2909_v52 = vmul.f32 %v8177_v63, %v8281_v47  ;;  %v6144_v36 = vpop.eup %6143  ;;  %v8299_v63 = vmul.f32 %v6142_v37, %v7403_v14  ;;  %v3405_v43 = vmul.f32 %v8207_v48, %v8281_v47  ;;  %v11188_v47 = vld [vmem:[#allocation71_spill] sm:$0xff] }
 0x34e   :  { %3449 = vrot.lane.b32.xlu0 %v3407_v33, %s6389_s7  ;;  %v8271_v7 = vpop.permute.xlu1 %2774  ;;  %11124 = vst [vmem:[#allocation152_spill] sm:$0xff] %v8291_v34  ;;  %v3165_v0 = vmul.f32 %v8191_v56, %v8291_v34  ;;  %v6146_v6 = vpop.eup %6145  ;;  %v375_v29 = vadd.f32 1.0, %v6144_v36 }
 0x34f   :  { %11120 = vst [vmem:[#allocation148_spill] sm:$0xff] %v8271_v7  ;;  %5765 = vset.pattern.permute.xlu1 %v11015_v28  ;;  %11126 = vst [vmem:[#allocation154_spill] sm:$0xff] %v8299_v63  ;;  %v8309_v8 = vmul.f32 %v6146_v6, %v11101_v1 }
 0x350   :  { %2634 = vperm.xlu1 %5765, %v8274_v45   ;;  %6155 = vrcp.f32 %v375_v29 }
 0x351   :  { %v2647_v51 = vpop.permute.xlu0 %2646  ;;  %11128 = vst [vmem:[#allocation156_spill] sm:$0xff] %v8309_v8  ;;  %v2675_v37 = vmul.f32 %v8224_v5, %v8309_v8  ;;  %v11180_v8 = vld [vmem:[#allocation7_spill] sm:$0xff] }
 0x352   :  { %2709 = vrot.lane.b32.xlu0 %v2669_v3, %s6389_s7 }
 0x353   :  { %v8284_v58 = vpop.permute.xlu1 %3019  ;;  %v6148_v46 = vpop.eup %6147 }
 0x354   :  { %11123 = vst [vmem:[#allocation151_spill] sm:$0xff] %v8284_v58  ;;  %5766 = vset.pattern.permute.xlu1 %v11017_v62  ;;  %v6150_v56 = vpop.eup %6149  ;;  %v1263_v14 = vadd.f32 1.0, %v6148_v46  ;;  %v11161_v58 = vld [vmem:[#allocation100_spill] sm:$0xff] }
 0x355   :  { %2874 = vperm.xlu1 %5766, %v8274_v45   ;;  %v671_v48 = vadd.f32 1.0, %v6150_v56 }
 0x356   :  { %2949 = vrot.lane.b32.xlu0 %v2909_v52, %s6389_s7  ;;  %v2887_v3 = vpop.permute.xlu0 %2886  ;;  %v6152_v52 = vpop.eup %6151  ;;  %6157 = vrcp.f32 %v1263_v14 }
 0x357   :  { %v8317_v36 = vmul.f32 %v6152_v52, %v11103_v53  ;;  %v6154_v6 = vpop.eup %6153  ;;  %6159 = vrcp.f32 %v671_v48 }
 0x358   :  { %v8296_v33 = vpop.permute.xlu1 %3270  ;;  %v8327_v5 = vmul.f32 %v6154_v6, %v11106_v42  ;;  %6161 = vrcp.f32 %v7830_v2 }
 0x359   :  { %11125 = vst [vmem:[#allocation153_spill] sm:$0xff] %v8296_v33  ;;  %5767 = vset.pattern.permute.xlu1 %v11015_v28  ;;  %11129 = vst [vmem:[#allocation157_spill] sm:$0xff] %v8317_v36  ;;  %v2915_v29 = vmul.f32 %v8240_v12, %v8317_v36  ;;  %v3411_v56 = vmul.f32 %v3391_v17, %v8317_v36  ;;  %6163 = vrcp.f32 %v7656_v40 }
 0x35a   :  { %3205 = vrot.lane.b32.xlu0 %v3165_v0, %s6389_s7  ;;  %3130 = vperm.xlu1 %5767, %v8299_v63   ;;  %11130 = vst [vmem:[#allocation158_spill] sm:$0xff] %v8327_v5  ;;  %v3171_v46 = vmul.f32 %v8260_v55, %v8327_v5  ;;  %6165 = vrcp.f32 %v7666_v16  ;;  %v11139_v16 = vld [vmem:[#allocation96_spill] sm:$0xff] }
 0x35b   :  { %v3143_v0 = vpop.permute.xlu0 %3142  ;;  %6167 = vrcp.f32 %v11139_v16 }
 0x35d   :  { %v8306_v30 = vpop.permute.xlu1 %2538  ;;  %v6156_v12 = vpop.eup %6155 }
 0x35e   :  { %11127 = vst [vmem:[#allocation155_spill] sm:$0xff] %v8306_v30  ;;  %3445 = vrot.lane.b32.xlu0 %v3405_v43, %s6389_s7  ;;  %5768 = vset.pattern.permute.xlu1 %v11017_v62  ;;  %v8342_v14 = vmul.f32 %v6156_v12, %v11111_v10 }
 0x35f   :  { %3370 = vperm.xlu1 %5768, %v8299_v63  }
 0x360   :  { %v3383_v43 = vpop.permute.xlu0 %3382  ;;  %11131 = vst [vmem:[#allocation159_spill] sm:$0xff] %v8342_v14 }
 0x362   :  { %2721 = vrot.lane.b32.xlu0 %v2675_v37, %s6389_s7  ;;  %v8320_v1 = vpop.permute.xlu1 %2626 }
 0x363   :  { %5769 = vset.pattern.permute.xlu1 %v11016_v57  ;;  %v6158_v55 = vpop.eup %6157 }
 0x364   :  { %2573 = vperm.xlu1 %5769, %v7824_v23   ;;  %v8353_v17 = vmul.f32 %v6158_v55, %v11116_v31  ;;  %v6160_v10 = vpop.eup %6159 }
 0x365   :  { %v8344_v52 = vpop.permute.xlu0 %3594  ;;  %v8362_v2 = vmul.f32 %v6160_v10, %v11117_v41 }
 0x366   :  { %2961 = vrot.lane.b32.xlu0 %v2915_v29, %s6389_s7  ;;  %11132 = vst [vmem:[#allocation160_spill] sm:$0xff] %v8344_v52  ;;  %11133 = vst [vmem:[#allocation161_spill] sm:$0xff] %v8353_v17  ;;  %v2913_v48 = vmul.f32 %v2887_v3, %v8353_v17  ;;  %v3409_v41 = vmul.f32 %v3383_v43, %v8353_v17  ;;  %v6162_v29 = vpop.eup %6161  ;;  %v11185_v17 = vld [vmem:[#allocation114_spill] sm:$0xff] }
 0x367   :  { %v8330_v53 = vpop.permute.xlu1 %2866  ;;  %11134 = vst [vmem:[#allocation162_spill] sm:$0xff] %v8362_v2  ;;  %v3169_v31 = vmul.f32 %v3143_v0, %v8362_v2  ;;  %v8385_v40 = vmul.f32 %v6162_v29, %v7565_v19  ;;  %v6164_v12 = vpop.eup %6163  ;;  %v11175_v2 = vld [vmem:[#allocation111_spill] sm:$0xff] }
 0x368   :  { %5771 = vset.pattern.permute.xlu1 %v11018_v26 }
 0x369   :  { %2814 = vperm.xlu1 %5771, %v7824_v23   ;;  %v2673_v23 = vmul.f32 %v2647_v51, %v8342_v14  ;;  %v8359_v6 = vpop.permute.xlu0 %3614  ;;  %11136 = vst [vmem:[#allocation164_spill] sm:$0xff] %v8385_v40  ;;  %v614_v14 = vsub.f32 0.0, %v11180_v8 }
 0x36a   :  { %3217 = vrot.lane.b32.xlu0 %v3171_v46, %s6389_s7 }
 0x36b   :  { %v633_v36 = vmul.f32 1.442695, %v614_v14 }
 0x36c   :  { %v8338_v42 = vpop.permute.xlu1 %3122 }
 0x36d   :  { %5773 = vset.pattern.permute.xlu1 %v11016_v57 }
 0x36e   :  { %3457 = vrot.lane.b32.xlu0 %v3411_v56, %s6389_s7  ;;  %3069 = vperm.xlu1 %5773, %v7844_v49   ;;  %v11137_v56 = vld [vmem:[#allocation81_spill] sm:$0xff] }
 0x36f   :  { %v8401_v55 = vmul.f32 %v6164_v12, %v11137_v56  ;;  %v11145_v12 = vld [vmem:[#allocation97_spill] sm:$0xff] }
 0x370   :  { %6169 = vrcp.f32 %v11145_v12  ;;  %v11152_v12 = vld [vmem:[#allocation98_spill] sm:$0xff] }
 0x371   :  { %v8350_v37 = vpop.permute.xlu1 %3362  ;;  %11138 = vst [vmem:[#allocation81_spill] sm:$0xff] %v8401_v55  ;;  %6171 = vrcp.f32 %v11152_v12  ;;  %v11159_v12 = vld [vmem:[#allocation103_spill] sm:$0xff] }
 0x372   :  { %2717 = vrot.lane.b32.xlu0 %v2673_v23, %s6389_s7  ;;  %5775 = vset.pattern.permute.xlu1 %v11018_v26  ;;  %6173 = vrcp.f32 %v11159_v12 }
 0x373   :  { %3310 = vperm.xlu1 %5775, %v7844_v49   ;;  %v8371_v49 = vpop.permute.xlu0 %3606  ;;  %6175 = vrcp.f32 %v11161_v58  ;;  %v11167_v58 = vld [vmem:[#allocation89_spill] sm:$0xff] }
 0x376   :  { %2957 = vrot.lane.b32.xlu0 %v2913_v48, %s6389_s7  ;;  %v8365_v51 = vpop.permute.xlu1 %2528  ;;  %v6166_v48 = vpop.eup %6165 }
 0x377   :  { %11135 = vst [vmem:[#allocation163_spill] sm:$0xff] %v8365_v51  ;;  %5777 = vset.pattern.permute.xlu1 %v11016_v57  ;;  %v8380_v0 = vpop.permute.xlu0 %3630 }
 0x378   :  { %2563 = vperm.xlu1 %5777, %v7882_v4  }
 0x37a   :  { %3213 = vrot.lane.b32.xlu0 %v3169_v31, %s6389_s7 }
 0x37b   :  { %v8374_v3 = vpop.permute.xlu1 %2618 }
 0x37c   :  { %5779 = vset.pattern.permute.xlu1 %v11018_v26 }
 0x37d   :  { %2806 = vperm.xlu1 %5779, %v7882_v4   ;;  %v8393_v4 = vpop.permute.xlu0 %3622 }
 0x37e   :  { %3453 = vrot.lane.b32.xlu0 %v3409_v41, %s6389_s7  ;;  %v11143_v41 = vld [vmem:[#allocation82_spill] sm:$0xff] }
 0x37f   :  { %v8417_v29 = vmul.f32 %v6166_v48, %v11143_v41  ;;  %v11150_v48 = vld [vmem:[#allocation83_spill] sm:$0xff] }
 0x380   :  { %v8382_v46 = vpop.permute.xlu1 %2858 }
 0x381   :  { %5781 = vset.pattern.permute.xlu1 %v11016_v57  ;;  %v8404_v23 = vpop.permute.xlu0 %3638  ;;  %11144 = vst [vmem:[#allocation82_spill] sm:$0xff] %v8417_v29 }
 0x382   :  { %3646 = vperm.xlu0 %5796, %v8385_v40   ;;  %3059 = vperm.xlu1 %5781, %v7920_v59  }
 0x385   :  { %v8391_v43 = vpop.permute.xlu1 %3114 }
 0x386   :  { %5783 = vset.pattern.permute.xlu1 %v11018_v26  ;;  %5804 = vset.pattern.permute.xlu0 %v11017_v62 }
 0x387   :  { %3302 = vperm.xlu1 %5783, %v7920_v59   ;;  %v8412_v59 = vpop.permute.xlu0 %2697 }
 0x388   :  { %11141 = vst [vmem:[#allocation165_spill] sm:$0xff] %v8412_v59 }
 0x38a   :  { %v8398_v19 = vpop.permute.xlu1 %3354 }
 0x38b   :  { %5785 = vset.pattern.permute.xlu1 %v11015_v28  ;;  %v8422_v56 = vpop.permute.xlu0 %2937 }
 0x38c   :  { %2658 = vperm.xlu1 %5785, %v8401_v55   ;;  %11146 = vst [vmem:[#allocation97_spill] sm:$0xff] %v8422_v56 }
 0x38f   :  { %v8408_v10 = vpop.permute.xlu1 %2553  ;;  %v8428_v51 = vpop.permute.xlu0 %3193 }
 0x390   :  { %11140 = vst [vmem:[#allocation96_spill] sm:$0xff] %v8408_v10  ;;  %5786 = vset.pattern.permute.xlu1 %v11017_v62  ;;  %v6168_v10 = vpop.eup %6167  ;;  %11148 = vst [vmem:[#allocation168_spill] sm:$0xff] %v8428_v51 }
 0x391   :  { %2898 = vperm.xlu1 %5786, %v8401_v55   ;;  %v8433_v41 = vmul.f32 %v6168_v10, %v11150_v48  ;;  %v6170_v7 = vpop.eup %6169 }
 0x393   :  { %11151 = vst [vmem:[#allocation83_spill] sm:$0xff] %v8433_v41  ;;  %v8440_v59 = vpop.permute.xlu0 %3433 }
 0x394   :  { %v8414_v31 = vpop.permute.xlu1 %2798  ;;  %11154 = vst [vmem:[#allocation170_spill] sm:$0xff] %v8440_v59 }
 0x395   :  { %11142 = vst [vmem:[#allocation166_spill] sm:$0xff] %v8414_v31  ;;  %5787 = vset.pattern.permute.xlu1 %v11015_v28 }
 0x396   :  { %3154 = vperm.xlu1 %5787, %v8417_v29  }
 0x397   :  { %v8450_v48 = vpop.permute.xlu0 %2693 }
 0x398   :  { %11158 = vst [vmem:[#allocation172_spill] sm:$0xff] %v8450_v48 }
 0x399   :  { %v8424_v16 = vpop.permute.xlu1 %3049 }
 0x39a   :  { %11147 = vst [vmem:[#allocation167_spill] sm:$0xff] %v8424_v16  ;;  %5788 = vset.pattern.permute.xlu1 %v11017_v62  ;;  %v11156_v16 = vld [vmem:[#allocation84_spill] sm:$0xff] }
 0x39b   :  { %3394 = vperm.xlu1 %5788, %v8417_v29   ;;  %v8447_v10 = vmul.f32 %v6170_v7, %v11156_v16  ;;  %v11164_v16 = vld [vmem:[#allocation85_spill] sm:$0xff]  ;;  %v11198_v29 = vld [vmem:[#allocation74_spill] sm:$0xff] }
 0x39d   :  { %11157 = vst [vmem:[#allocation84_spill] sm:$0xff] %v8447_v10 }
 0x39e   :  { %v8430_v31 = vpop.permute.xlu1 %3294 }
 0x39f   :  { %11149 = vst [vmem:[#allocation169_spill] sm:$0xff] %v8430_v31  ;;  %5789 = vset.pattern.permute.xlu1 %v11015_v28  ;;  %v6172_v31 = vpop.eup %6171 }
 0x3a0   :  { %2650 = vperm.xlu1 %5789, %v8433_v41   ;;  %v8464_v33 = vmul.f32 %v6172_v31, %v11164_v16  ;;  %v11170_v16 = vld [vmem:[#allocation86_spill] sm:$0xff] }
 0x3a2   :  { %11165 = vst [vmem:[#allocation85_spill] sm:$0xff] %v8464_v33 }
 0x3a3   :  { %v8438_v30 = vpop.permute.xlu1 %2543 }
 0x3a4   :  { %11153 = vst [vmem:[#allocation98_spill] sm:$0xff] %v8438_v30  ;;  %5790 = vset.pattern.permute.xlu1 %v11017_v62 }
 0x3a5   :  { %2890 = vperm.xlu1 %5790, %v8433_v41  }
 0x3a8   :  { %v8444_v56 = vpop.permute.xlu1 %2790 }
 0x3a9   :  { %11155 = vst [vmem:[#allocation171_spill] sm:$0xff] %v8444_v56  ;;  %5791 = vset.pattern.permute.xlu1 %v11015_v28  ;;  %v8459_v56 = vpop.permute.xlu0 %2933 }
 0x3aa   :  { %3146 = vperm.xlu1 %5791, %v8447_v10   ;;  %11162 = vst [vmem:[#allocation100_spill] sm:$0xff] %v8459_v56 }
 0x3ad   :  { %v8454_v30 = vpop.permute.xlu1 %3039  ;;  %v8468_v12 = vpop.permute.xlu0 %3189 }
 0x3ae   :  { %11160 = vst [vmem:[#allocation103_spill] sm:$0xff] %v8454_v30  ;;  %5792 = vset.pattern.permute.xlu1 %v11017_v62  ;;  %11166 = vst [vmem:[#allocation174_spill] sm:$0xff] %v8468_v12  ;;  %v6174_v30 = vpop.eup %6173  ;;  %v11172_v12 = vld [vmem:[#allocation107_spill] sm:$0xff] }
 0x3af   :  { %3386 = vperm.xlu1 %5792, %v8447_v10   ;;  %v8475_v56 = vmul.f32 %v6174_v30, %v11167_v58  ;;  %6177 = vrcp.f32 %v11172_v12  ;;  %v11174_v30 = vld [vmem:[#allocation6_spill] sm:$0xff]  ;;  %v11178_v12 = vld [vmem:[#allocation43_spill] sm:$0xff] }
 0x3b0   :  { %v318_v58 = vsub.f32 0.0, %v11174_v30  ;;  %6179 = vrcp.f32 %v11175_v2  ;;  %v1206_v34 = vsub.f32 0.0, %v11178_v12 }
 0x3b1   :  { %11168 = vst [vmem:[#allocation89_spill] sm:$0xff] %v8475_v56  ;;  %v8477_v51 = vpop.permute.xlu0 %3429 }
 0x3b2   :  { %v8461_v7 = vpop.permute.xlu1 %3286  ;;  %11169 = vst [vmem:[#allocation175_spill] sm:$0xff] %v8477_v51  ;;  %v1225_v2 = vmul.f32 1.442695, %v1206_v34  ;;  %v11187_v34 = vld [vmem:[#allocation8_spill] sm:$0xff] }
 0x3b3   :  { %11163 = vst [vmem:[#allocation173_spill] sm:$0xff] %v8461_v7  ;;  %5793 = vset.pattern.permute.xlu1 %v11016_v57  ;;  %v6176_v7 = vpop.eup %6175 }
 0x3b4   :  { %3505 = vperm.xlu1 %5793, %v8464_v33   ;;  %v8483_v59 = vmul.f32 %v6176_v7, %v11170_v16  ;;  %v337_v16 = vmul.f32 1.442695, %v318_v58 }
 0x3b5   :  { %v8489_v5 = vpop.permute.xlu0 %2705 }
 0x3b6   :  { %11171 = vst [vmem:[#allocation86_spill] sm:$0xff] %v8483_v59  ;;  %11173 = vst [vmem:[#allocation107_spill] sm:$0xff] %v8489_v5  ;;  %6181 = vpow2.f32 %v337_v16 }
 0x3b7   :  { %v8470_v48 = vpop.permute.xlu1 %2642  ;;  %6183 = vpow2.f32 %v1225_v2  ;;  %v11191_v2 = vld [vmem:[#allocation46_spill] sm:$0xff] }
 0x3b8   :  { %5794 = vset.pattern.permute.xlu1 %v11015_v28  ;;  %6185 = vrcp.f32 %v11185_v17  ;;  %v1204_v17 = vsub.f32 0.0, %v11191_v2 }
 0x3b9   :  { %3598 = vperm.xlu1 %5794, %v8464_v33   ;;  %v8497_v7 = vpop.permute.xlu0 %2945  ;;  %6187 = vpow2.f32 %v633_v36 }
 0x3ba   :  { %11177 = vst [vmem:[#allocation6_spill] sm:$0xff] %v8497_v7 }
 0x3bc   :  { %v8479_v31 = vpop.permute.xlu1 %2882  ;;  %v6178_v5 = vpop.eup %6177 }
 0x3bd   :  { %3590 = vperm.xlu1 %5794, %v8475_v56   ;;  %v8504_v18 = vpop.permute.xlu0 %3201  ;;  %v8510_v7 = vmul.f32 %v6178_v5, %v11183_v44  ;;  %v6180_v58 = vpop.eup %6179  ;;  %v11190_v44 = vld [vmem:[#allocation116_spill] sm:$0xff] }
 0x3be   :  { %11181 = vst [vmem:[#allocation111_spill] sm:$0xff] %v8504_v18  ;;  %v316_v18 = vsub.f32 0.0, %v11187_v34  ;;  %v8521_v22 = vmul.f32 %v6180_v58, %v11188_v47  ;;  %6189 = vrcp.f32 %v11190_v44  ;;  %v11194_v47 = vld [vmem:[#allocation9_spill] sm:$0xff]  ;;  %v1221_v58 = vmul.f32 1.442695, %v1204_v17  ;;  %v11201_v17 = vld [vmem:[#allocation14_spill] sm:$0xff] }
 0x3bf   :  { %11184 = vst [vmem:[#allocation128_spill] sm:$0xff] %v8510_v7  ;;  %v612_v36 = vsub.f32 0.0, %v11194_v47 }
 0x3c0   :  { %11189 = vst [vmem:[#allocation130_spill] sm:$0xff] %v8521_v22  ;;  %v333_v5 = vmul.f32 1.442695, %v316_v18 }
 0x3c1   :  { %v8486_v25 = vpop.permute.xlu1 %3138  ;;  %3602 = vperm.xlu1 %5794, %v8483_v59   ;;  %v8515_v16 = vpop.permute.xlu0 %3441 }
 0x3c2   :  { %11186 = vst [vmem:[#allocation43_spill] sm:$0xff] %v8515_v16  ;;  %v11193_v16 = vld [vmem:[#allocation39_spill] sm:$0xff]  ;;  %6191 = vpow2.f32 %v333_v5 }
 0x3c3   :  { %v6182_v14 = vpop.eup %6181 }
 0x3c4   :  { %v366_v62 = vadd.f32 1.0, %v6182_v14  ;;  %v6184_v44 = vpop.eup %6183 }
 0x3c5   :  { %5795 = vset.pattern.permute.xlu1 %v11016_v57  ;;  %v8526_v39 = vpop.permute.xlu0 %2701  ;;  %v6186_v18 = vpop.eup %6185  ;;  %v1254_v59 = vadd.f32 1.0, %v6184_v44 }
 0x3c6   :  { %v8494_v51 = vpop.permute.xlu1 %3378  ;;  %3500 = vperm.xlu1 %5795, %v11176_v21   ;;  %11192 = vst [vmem:[#allocation7_spill] sm:$0xff] %v8526_v39  ;;  %6193 = vrcp.f32 %v366_v62  ;;  %v629_v39 = vmul.f32 1.442695, %v612_v36  ;;  %v6188_v56 = vpop.eup %6187  ;;  %v8539_v10 = vmul.f32 %v6186_v18, %v11198_v29  ;;  %v11203_v36 = vld [vmem:[#allocation77_spill] sm:$0xff] }
 0x3c7   :  { %6195 = vpow2.f32 %v1221_v58 }
 0x3c8   :  { %11199 = vst [vmem:[#allocation114_spill] sm:$0xff] %v8539_v10  ;;  %6197 = vpow2.f32 %v629_v39 }
 0x3c9   :  { %6199 = vrcp.f32 %v1254_v59 }
 0x3ca   :  { %3525 = vperm.xlu1 %5795, %v11179_v35  }
 0x3cb   :  { %v8501_v13 = vpop.permute.xlu1 %2634  ;;  %v6190_v5 = vpop.eup %6189 }
 0x3cc   :  { %v8549_v58 = vmul.f32 %v6190_v5, %v11203_v36 }
 0x3ce   :  { %3515 = vperm.xlu1 %5795, %v11182_v11   ;;  %11204 = vst [vmem:[#allocation116_spill] sm:$0xff] %v8549_v58 }
 0x3cf   :  { %v6192_v18 = vpop.eup %6191 }
 0x3d0   :  { %v8507_v24 = vpop.permute.xlu1 %2874  ;;  %v364_v63 = vadd.f32 1.0, %v6192_v18 }
 0x3d2   :  { %5797 = vset.pattern.permute.xlu1 %v11015_v28 }
 0x3d3   :  { %3618 = vperm.xlu1 %5797, %v8510_v7   ;;  %v8535_v7 = vpop.permute.xlu0 %2941 }
 0x3d4   :  { %11196 = vst [vmem:[#allocation68_spill] sm:$0xff] %v8535_v7  ;;  %v662_v7 = vadd.f32 1.0, %v6188_v56  ;;  %v11208_v56 = vld [vmem:[#allocation15_spill] sm:$0xff] }
 0x3d5   :  { %v8518_v20 = vpop.permute.xlu1 %3130  ;;  %v618_v59 = vsub.f32 0.0, %v11208_v56 }
 0x3d6   :  { %6201 = vrcp.f32 %v662_v7 }
 0x3d7   :  { %3610 = vperm.xlu1 %5797, %v8521_v22   ;;  %v11197_v22 = vld [vmem:[#allocation11_spill] sm:$0xff]  ;;  %v8546_v62 = vpop.permute.xlu0 %3197 }
 0x3d8   :  { %11202 = vst [vmem:[#allocation71_spill] sm:$0xff] %v8546_v62  ;;  %v6194_v62 = vpop.eup %6193 }
 0x3da   :  { %v8528_v27 = vpop.permute.xlu1 %3370 }
 0x3db   :  { %5798 = vset.pattern.permute.xlu1 %v11016_v57  ;;  %v8555_v50 = vpop.permute.xlu0 %3437 }
 0x3dc   :  { %3545 = vperm.xlu1 %5798, %v11193_v16   ;;  %11207 = vst [vmem:[#allocation9_spill] sm:$0xff] %v8555_v50 }
 0x3df   :  { %v8533_v33 = vpop.permute.xlu1 %2573 }
 0x3e0   :  { %11195 = vst [vmem:[#allocation131_spill] sm:$0xff] %v8533_v33  ;;  %3535 = vperm.xlu1 %5798, %v11197_v22   ;;  %v322_v33 = vsub.f32 0.0, %v11201_v17 }
 0x3e2   :  { %v345_v44 = vmul.f32 1.442695, %v322_v33  ;;  %v6196_v33 = vpop.eup %6195 }
 0x3e3   :  { %v6198_v7 = vpop.eup %6197  ;;  %v1252_v50 = vadd.f32 1.0, %v6196_v33 }
 0x3e4   :  { %v8541_v14 = vpop.permute.xlu1 %2814  ;;  %5799 = vset.pattern.permute.xlu1 %v11015_v28  ;;  %6203 = vpow2.f32 %v345_v44  ;;  %v8565_v44 = vpop.permute.xlu0 %2713 }
 0x3e5   :  { %11200 = vst [vmem:[#allocation8_spill] sm:$0xff] %v8541_v14  ;;  %3634 = vperm.xlu1 %5799, %v8539_v10   ;;  %v11206_v14 = vld [vmem:[#allocation49_spill] sm:$0xff]  ;;  %6205 = vrcp.f32 %v364_v63  ;;  %v8563_v10 = vmul.f32 %v6194_v62, %v11174_v30  ;;  %11211 = vst [vmem:[#allocation14_spill] sm:$0xff] %v8565_v44  ;;  %v6200_v18 = vpop.eup %6199  ;;  %v660_v63 = vadd.f32 1.0, %v6198_v7 }
 0x3e6   :  { %v1210_v39 = vsub.f32 0.0, %v11206_v14  ;;  %v6202_v30 = vpop.eup %6201  ;;  %v11219_v7 = vld [vmem:[#allocation17_spill] sm:$0xff] }
 0x3e7   :  { %11210 = vst [vmem:[#allocation74_spill] sm:$0xff] %v8563_v10  ;;  %v2664_v38 = vmul.f32 %v8085_v60, %v8563_v10  ;;  %v11230_v10 = vld [vmem:[#allocation30_spill] sm:$0xff] }
 0x3e8   :  { %v1233_v5 = vmul.f32 1.442695, %v1210_v39  ;;  %v11213_v39 = vld [vmem:[#allocation16_spill] sm:$0xff]  ;;  %v8580_v33 = vpop.permute.xlu0 %2953 }
 0x3e9   :  { %v8551_v29 = vpop.permute.xlu1 %3069  ;;  %3626 = vperm.xlu1 %5799, %v8549_v58   ;;  %11215 = vst [vmem:[#allocation15_spill] sm:$0xff] %v8580_v33 }
 0x3ea   :  { %11205 = vst [vmem:[#allocation46_spill] sm:$0xff] %v8551_v29  ;;  %v641_v29 = vmul.f32 1.442695, %v618_v59  ;;  %6207 = vpow2.f32 %v1233_v5  ;;  %v8574_v59 = vmul.f32 %v6200_v18, %v11178_v12  ;;  %v11218_v12 = vld [vmem:[#allocation52_spill] sm:$0xff] }
 0x3ec   :  { %6209 = vpow2.f32 %v641_v29  ;;  %11214 = vst [vmem:[#allocation49_spill] sm:$0xff] %v8574_v59  ;;  %v2904_v5 = vmul.f32 %v8102_v9, %v8574_v59  ;;  %v8585_v29 = vmul.f32 %v6202_v30, %v11180_v8  ;;  %v616_v9 = vsub.f32 0.0, %v11219_v7  ;;  %v8594_v44 = vpop.permute.xlu0 %3209 }
 0x3ed   :  { %5800 = vset.pattern.permute.xlu1 %v11016_v57  ;;  %6211 = vrcp.f32 %v1252_v50  ;;  %v1208_v50 = vsub.f32 0.0, %v11218_v12  ;;  %11221 = vst [vmem:[#allocation17_spill] sm:$0xff] %v8594_v44  ;;  %v11224_v44 = vld [vmem:[#allocation3_spill] sm:$0xff] }
 0x3ee   :  { %v8559_v36 = vpop.permute.xlu1 %3310  ;;  %3565 = vperm.xlu1 %5800, %v8385_v40   ;;  %11217 = vst [vmem:[#allocation176_spill] sm:$0xff] %v8585_v29  ;;  %6213 = vrcp.f32 %v660_v63  ;;  %v3400_v63 = vmul.f32 %v8127_v15, %v8574_v59  ;;  %v637_v30 = vmul.f32 1.442695, %v616_v9  ;;  %v11226_v15 = vld [vmem:[#allocation22_spill] sm:$0xff]  ;;  %v11250_v40 = vld [vmem:[#allocation53_spill] sm:$0xff] }
 0x3ef   :  { %11209 = vst [vmem:[#allocation11_spill] sm:$0xff] %v8559_v36  ;;  %v320_v36 = vsub.f32 0.0, %v11213_v39 }
 0x3f1   :  { %v341_v62 = vmul.f32 1.442695, %v320_v36  ;;  %v6204_v60 = vpop.eup %6203 }
 0x3f2   :  { %3555 = vperm.xlu1 %5800, %v8026_v61   ;;  %v370_v36 = vadd.f32 1.0, %v6204_v60  ;;  %v6206_v33 = vpop.eup %6205 }
 0x3f3   :  { %v8568_v58 = vpop.permute.xlu1 %2563  ;;  %6215 = vpow2.f32 %v341_v62 }
 0x3f4   :  { %11212 = vst [vmem:[#allocation77_spill] sm:$0xff] %v8568_v58  ;;  %6217 = vrcp.f32 %v370_v36  ;;  %v326_v36 = vsub.f32 0.0, %v11226_v15 }
 0x3f6   :  { %2699 = vrot.lane.b32.xlu1 %v2664_v38, %s6389_s7  ;;  %v3160_v38 = vmul.f32 %v8115_v54, %v8585_v29  ;;  %v8600_v54 = vmul.f32 %v6206_v33, %v11187_v34  ;;  %v8613_v34 = vld [vmem:[%s10575_s9] ss:$0 sm:$0xff]  ;;  %v11227_v33 = vld [vmem:[#allocation32_spill] sm:$0xff]  ;;  %v353_v29 = vmul.f32 1.442695, %v326_v36  ;;  %s6394_s9 = smov 32  }
 0x3f7   :  { %5801 = vset.pattern.permute.xlu1 %v11015_v28  ;;  %v6208_v8 = vpop.eup %6207  ;;  %v11235_v36 = vld [vmem:[#allocation34_spill] sm:$0xff]  ;;  %v8704_v61 = vadd.f32 %v8613_v34, %v11250_v40 }
 0x3f8   :  { %v8582_v58 = vpop.permute.xlu1 %2806  ;;  %11222 = vst [vmem:[#allocation177_spill] sm:$0xff] %v8600_v54 }
 0x3f9   :  { %11216 = vst [vmem:[#allocation16_spill] sm:$0xff] %v8582_v58  ;;  %v1229_v58 = vmul.f32 1.442695, %v1208_v50  ;;  %v6210_v62 = vpop.eup %6209 }
 0x3fa   :  { %2939 = vrot.lane.b32.xlu1 %v2904_v5, %s6389_s7  ;;  %v1258_v5 = vadd.f32 1.0, %v6208_v8  ;;  %v6212_v50 = vpop.eup %6211  ;;  %v666_v9 = vadd.f32 1.0, %v6210_v62 }
 0x3fb   :  { %6219 = vpow2.f32 %v1229_v58  ;;  %v8617_v58 = vadd.f32 %v8613_v34, %v11227_v33  ;;  %v8620_v8 = vmul.f32 %v6212_v50, %v11191_v2 }
 0x3fc   :  { %6221 = vpow2.f32 %v637_v30  ;;  %v11229_v30 = vld [vmem:[#allocation4_spill] sm:$0xff] }
 0x3fd   :  { %v8592_v18 = vpop.permute.xlu1 %3059  ;;  %11228 = vst [vmem:[#allocation22_spill] sm:$0xff] %v8620_v8  ;;  %6223 = vrcp.f32 %v1258_v5  ;;  %v907_v62 = vsub.f32 0.0, %v8617_v58  ;;  %v11232_v5 = vld [vmem:[#allocation57_spill] sm:$0xff] }
 0x3fe   :  { %11220 = vst [vmem:[#allocation52_spill] sm:$0xff] %v8592_v18  ;;  %3195 = vrot.lane.b32.xlu1 %v3160_v38, %s6389_s7  ;;  %v2662_v38 = vmul.f32 %v11224_v44, %v8600_v54  ;;  %v8607_v18 = vpop.permute.xlu0 %3449  ;;  %v6214_v44 = vpop.eup %6213  ;;  %v8629_v54 = vadd.f32 %v8613_v34, %v11230_v10  ;;  %6225 = vrcp.f32 %v666_v9  ;;  %v1214_v50 = vsub.f32 0.0, %v11232_v5  ;;  %v11236_v9 = vld [vmem:[#allocation40_spill] sm:$0xff] }
 0x3ff   :  { %11225 = vst [vmem:[#allocation3_spill] sm:$0xff] %v8607_v18  ;;  %v8633_v2 = vmul.f32 %v6214_v44, %v11194_v47  ;;  %6227 = vpow2.f32 %v353_v29  ;;  %v923_v47 = vmul.f32 1.442695, %v907_v62  ;;  %v8647_v41 = vadd.f32 %v8613_v34, %v11236_v9 }
 0x400   :  { %v6216_v18 = vpop.eup %6215  ;;  %v909_v55 = vsub.f32 0.0, %v8629_v54 }
 0x401   :  { %11231 = vst [vmem:[#allocation32_spill] sm:$0xff] %v8633_v2  ;;  %v368_v33 = vadd.f32 1.0, %v6216_v18  ;;  %v3158_v59 = vmul.f32 %v11235_v36, %v8633_v2  ;;  %v6218_v44 = vpop.eup %6217  ;;  %v3398_v36 = vmul.f32 %v11237_v32, %v8620_v8 }
 0x402   :  { %v8602_v60 = vpop.permute.xlu1 %3302  ;;  %3435 = vrot.lane.b32.xlu1 %v3400_v63, %s6389_s7  ;;  %v927_v29 = vmul.f32 1.442695, %v909_v55  ;;  %v8657_v45 = vmul.f32 %v6218_v44, %v11201_v17 }
 0x403   :  { %11223 = vst [vmem:[#allocation178_spill] sm:$0xff] %v8602_v60  ;;  %v2902_v60 = vmul.f32 %v11229_v30, %v8620_v8  ;;  %v11234_v30 = vld [vmem:[#allocation23_spill] sm:$0xff]  ;;  %6229 = vrcp.f32 %v368_v33 }
 0x404   :  { %v622_v28 = vsub.f32 0.0, %v11234_v30  ;;  %6231 = vpow2.f32 %v923_v47  ;;  %11239 = vst [vmem:[#allocation57_spill] sm:$0xff] %v8657_v45  ;;  %v2668_v55 = vmul.f32 %v8320_v1, %v8657_v45  ;;  %v11241_v47 = vld [vmem:[#allocation24_spill] sm:$0xff] }
 0x406   :  { %2695 = vrot.lane.b32.xlu1 %v2662_v38, %s6389_s7  ;;  %v8636_v38 = vpop.permute.xlu0 %2709 }
 0x407   :  { %v8623_v63 = vpop.permute.xlu1 %2658  ;;  %11233 = vst [vmem:[#allocation4_spill] sm:$0xff] %v8636_v38  ;;  %v1241_v38 = vmul.f32 1.442695, %v1214_v50  ;;  %v911_v50 = vsub.f32 0.0, %v8647_v41 }
 0x408   :  { %v6220_v18 = vpop.eup %6219 }
 0x409   :  { %v6222_v62 = vpop.eup %6221  ;;  %v1256_v9 = vadd.f32 1.0, %v6220_v18  ;;  %6233 = vpow2.f32 %v1241_v38  ;;  %v931_v17 = vmul.f32 1.442695, %v911_v50 }
 0x40a   :  { %2935 = vrot.lane.b32.xlu1 %v2902_v60, %s6389_s7  ;;  %v649_v60 = vmul.f32 1.442695, %v622_v28  ;;  %v8652_v2 = vpop.permute.xlu0 %2949  ;;  %v6224_v28 = vpop.eup %6223  ;;  %v664_v33 = vadd.f32 1.0, %v6222_v62 }
 0x40b   :  { %11238 = vst [vmem:[#allocation30_spill] sm:$0xff] %v8652_v2  ;;  %v324_v2 = vsub.f32 0.0, %v11241_v47  ;;  %v8669_v44 = vmul.f32 %v6224_v28, %v11206_v14 }
 0x40c   :  { %v8642_v10 = vpop.permute.xlu1 %2898  ;;  %6235 = vpow2.f32 %v649_v60 }
 0x40d   :  { %6237 = vpow2.f32 %v927_v29  ;;  %11242 = vst [vmem:[#allocation23_spill] sm:$0xff] %v8669_v44  ;;  %v2908_v29 = vmul.f32 %v8330_v53, %v8669_v44  ;;  %v349_v14 = vmul.f32 1.442695, %v324_v2  ;;  %v11248_v53 = vld [vmem:[#allocation25_spill] sm:$0xff] }
 0x40e   :  { %3191 = vrot.lane.b32.xlu1 %v3158_v59, %s6389_s7  ;;  %v11240_v59 = vld [vmem:[#allocation38_spill] sm:$0xff]  ;;  %6239 = vrcp.f32 %v1256_v9  ;;  %v8671_v38 = vpop.permute.xlu0 %3205  ;;  %v11246_v9 = vld [vmem:[#allocation59_spill] sm:$0xff]  ;;  %v620_v2 = vsub.f32 0.0, %v11248_v53 }
 0x40f   :  { %v8663_v32 = vadd.f32 %v8613_v34, %v11240_v59  ;;  %11243 = vst [vmem:[#allocation34_spill] sm:$0xff] %v8671_v38  ;;  %v11244_v59 = vld [vmem:[#allocation47_spill] sm:$0xff]  ;;  %6241 = vrcp.f32 %v664_v33  ;;  %v1212_v28 = vsub.f32 0.0, %v11246_v9  ;;  %v11247_v38 = vld [vmem:[#allocation44_spill] sm:$0xff] }
 0x410   :  { %v8679_v1 = vadd.f32 %v8613_v34, %v11244_v59  ;;  %6243 = vpow2.f32 %v931_v17  ;;  %v8690_v45 = vadd.f32 %v8613_v34, %v11247_v38  ;;  %v645_v16 = vmul.f32 1.442695, %v620_v2 }
 0x411   :  { %v8654_v26 = vpop.permute.xlu1 %3154  ;;  %v913_v60 = vsub.f32 0.0, %v8663_v32  ;;  %6245 = vpow2.f32 %v349_v14 }
 0x412   :  { %3431 = vrot.lane.b32.xlu1 %v3398_v36, %s6389_s7  ;;  %v6226_v36 = vpop.eup %6225  ;;  %v915_v59 = vsub.f32 0.0, %v8679_v1  ;;  %v8698_v33 = vpop.permute.xlu0 %3445  ;;  %v917_v52 = vsub.f32 0.0, %v8690_v45 }
 0x413   :  { %v6228_v62 = vpop.eup %6227  ;;  %v8684_v50 = vmul.f32 %v6226_v36, %v11208_v56  ;;  %11249 = vst [vmem:[#allocation5_spill] sm:$0xff] %v8698_v33 }
 0x414   :  { %v6230_v17 = vpop.eup %6229  ;;  %v374_v36 = vadd.f32 1.0, %v6228_v62  ;;  %v939_v57 = vmul.f32 1.442695, %v915_v59  ;;  %v943_v2 = vmul.f32 1.442695, %v917_v52 }
 0x415   :  { %11245 = vst [vmem:[#allocation40_spill] sm:$0xff] %v8684_v50  ;;  %v3164_v56 = vmul.f32 %v8338_v42, %v8684_v50  ;;  %v3404_v42 = vmul.f32 %v8350_v37, %v8669_v44  ;;  %v11253_v50 = vld [vmem:[#allocation50_spill] sm:$0xff] }
 0x416   :  { %v8673_v18 = vpop.permute.xlu1 %3394  ;;  %2707 = vrot.lane.b32.xlu1 %v2668_v55, %s6389_s7  ;;  %v935_v55 = vmul.f32 1.442695, %v913_v60  ;;  %v1237_v60 = vmul.f32 1.442695, %v1212_v28  ;;  %v8713_v59 = vpop.permute.xlu0 %2721  ;;  %v8718_v37 = vadd.f32 %v8613_v34, %v11253_v50 }
 0x417   :  { %11252 = vst [vmem:[#allocation24_spill] sm:$0xff] %v8713_v59 }
 0x418   :  { %6247 = vpow2.f32 %v935_v55 }
 0x419   :  { %6249 = vrcp.f32 %v374_v36  ;;  %v919_v36 = vsub.f32 0.0, %v8704_v61 }
 0x41a   :  { %2947 = vrot.lane.b32.xlu1 %v2908_v29, %s6389_s7  ;;  %v6232_v29 = vpop.eup %6231  ;;  %6251 = vpow2.f32 %v1237_v60  ;;  %v8733_v50 = vpop.permute.xlu0 %2961 }
 0x41b   :  { %v8693_v8 = vpop.permute.xlu1 %2650  ;;  %v6234_v38 = vpop.eup %6233  ;;  %v955_v62 = vadd.f32 1.0, %v6232_v29  ;;  %6253 = vpow2.f32 %v939_v57  ;;  %v11254_v29 = vld [vmem:[#allocation33_spill] sm:$0xff]  ;;  %v947_v34 = vmul.f32 1.442695, %v919_v36  ;;  %11256 = vst [vmem:[#allocation59_spill] sm:$0xff] %v8733_v50 }
 0x41c   :  { %v6236_v14 = vpop.eup %6235  ;;  %v1262_v55 = vadd.f32 1.0, %v6234_v38  ;;  %6255 = vpow2.f32 %v645_v16  ;;  %v330_v60 = vsub.f32 0.0, %v11254_v29  ;;  %v921_v16 = vsub.f32 0.0, %v8718_v37 }
 0x41d   :  { %v6238_v28 = vpop.eup %6237  ;;  %6257 = vrcp.f32 %v955_v62 }
 0x41e   :  { %3203 = vrot.lane.b32.xlu1 %v3164_v56, %s6389_s7  ;;  %v8711_v56 = vmul.f32 %v6230_v17, %v11213_v39  ;;  %v6240_v40 = vpop.eup %6239  ;;  %v670_v17 = vadd.f32 1.0, %v6236_v14  ;;  %v957_v59 = vadd.f32 1.0, %v6238_v28  ;;  %6259 = vrcp.f32 %v1262_v55  ;;  %v11258_v55 = vld [vmem:[#allocation63_spill] sm:$0xff] }
 0x41f   :  { %v8727_v57 = vmul.f32 %v6240_v40, %v11218_v12  ;;  %6261 = vpow2.f32 %v943_v2  ;;  %v361_v14 = vmul.f32 1.442695, %v330_v60  ;;  %v1218_v40 = vsub.f32 0.0, %v11258_v55  ;;  %v11259_v60 = vld [vmem:[#allocation35_spill] sm:$0xff] }
 0x420   :  { %v8708_v33 = vpop.permute.xlu1 %2890  ;;  %11251 = vst [vmem:[#allocation38_spill] sm:$0xff] %v8711_v56  ;;  %v2666_v39 = vmul.f32 %v8374_v3, %v8711_v56  ;;  %6263 = vrcp.f32 %v670_v17  ;;  %v951_v2 = vmul.f32 1.442695, %v921_v16  ;;  %v626_v50 = vsub.f32 0.0, %v11259_v60 }
 0x421   :  { %11255 = vst [vmem:[#allocation47_spill] sm:$0xff] %v8727_v57  ;;  %v2906_v3 = vmul.f32 %v8382_v46, %v8727_v57  ;;  %6265 = vrcp.f32 %v957_v59  ;;  %v1249_v59 = vmul.f32 1.442695, %v1218_v40 }
 0x422   :  { %3443 = vrot.lane.b32.xlu1 %v3404_v42, %s6389_s7  ;;  %v6242_v42 = vpop.eup %6241  ;;  %6267 = vpow2.f32 %v947_v34 }
 0x423   :  { %v6244_v52 = vpop.eup %6243  ;;  %v8736_v28 = vmul.f32 %v6242_v42, %v11219_v7  ;;  %6269 = vpow2.f32 %v361_v14  ;;  %v8745_v42 = vpop.permute.xlu0 %3217  ;;  %v657_v14 = vmul.f32 1.442695, %v626_v50 }
 0x424   :  { %v6246_v62 = vpop.eup %6245  ;;  %v959_v12 = vadd.f32 1.0, %v6244_v52  ;;  %11260 = vst [vmem:[#allocation25_spill] sm:$0xff] %v8745_v42 }
 0x425   :  { %v8724_v38 = vpop.permute.xlu1 %3146  ;;  %11257 = vst [vmem:[#allocation44_spill] sm:$0xff] %v8736_v28  ;;  %v6248_v36 = vpop.eup %6247  ;;  %v3162_v46 = vmul.f32 %v8391_v43, %v8736_v28  ;;  %v372_v17 = vadd.f32 1.0, %v6246_v62  ;;  %v3402_v43 = vmul.f32 %v8398_v19, %v8727_v57  ;;  %v11264_v28 = vld [vmem:[#allocation36_spill] sm:$0xff] }
 0x426   :  { %2703 = vrot.lane.b32.xlu1 %v2666_v39, %s6389_s7  ;;  %v6250_v7 = vpop.eup %6249  ;;  %6271 = vrcp.f32 %v959_v12  ;;  %v961_v56 = vadd.f32 1.0, %v6248_v36 }
 0x427   :  { %v6252_v52 = vpop.eup %6251  ;;  %6273 = vpow2.f32 %v951_v2  ;;  %v8753_v12 = vmul.f32 %v6250_v7, %v11226_v15  ;;  %v8758_v42 = vpop.permute.xlu0 %3457  ;;  %v328_v15 = vsub.f32 0.0, %v11264_v28 }
 0x428   :  { %v6254_v34 = vpop.eup %6253  ;;  %6275 = vrcp.f32 %v372_v17  ;;  %v1260_v40 = vadd.f32 1.0, %v6252_v52  ;;  %11263 = vst [vmem:[#allocation33_spill] sm:$0xff] %v8758_v42 }
 0x429   :  { %11262 = vst [vmem:[#allocation50_spill] sm:$0xff] %v8753_v12  ;;  %6277 = vpow2.f32 %v1249_v59  ;;  %v963_v2 = vadd.f32 1.0, %v6254_v34 }
 0x42a   :  { %v8739_v39 = vpop.permute.xlu1 %3386  ;;  %2943 = vrot.lane.b32.xlu1 %v2906_v3, %s6389_s7  ;;  %v6256_v3 = vpop.eup %6255  ;;  %6279 = vrcp.f32 %v961_v56 }
 0x42b   :  { %v6258_v62 = vpop.eup %6257  ;;  %6281 = vpow2.f32 %v657_v14  ;;  %v668_v17 = vadd.f32 1.0, %v6256_v3  ;;  %v8775_v42 = vpop.permute.xlu0 %2717 }
 0x42c   :  { %6283 = vrcp.f32 %v1260_v40  ;;  %v8766_v59 = vmul.f32 %v6258_v62, %v8617_v58  ;;  %v357_v40 = vmul.f32 1.442695, %v328_v15 }
 0x42d   :  { %6285 = vrcp.f32 %v963_v2 }
 0x42e   :  { %3199 = vrot.lane.b32.xlu1 %v3162_v46, %s6389_s7  ;;  %v6260_v46 = vpop.eup %6259  ;;  %11266 = vst [vmem:[#allocation35_spill] sm:$0xff] %v8766_v59  ;;  %6287 = vrcp.f32 %v668_v17  ;;  %v11271_v17 = vld [vmem:[#allocation37_spill] sm:$0xff] }
 0x42f   :  { %v8748_v16 = vpop.permute.xlu1 %3505  ;;  %v6262_v36 = vpop.eup %6261  ;;  %v8762_v7 = vmul.f32 %v6260_v46, %v11232_v5  ;;  %v624_v15 = vsub.f32 0.0, %v11271_v17 }
 0x430   :  { %11261 = vst [vmem:[#allocation53_spill] sm:$0xff] %v8748_v16  ;;  %v2672_v16 = vmul.f32 %v8470_v48, %v8753_v12  ;;  %v6264_v50 = vpop.eup %6263  ;;  %v965_v52 = vadd.f32 1.0, %v6262_v36 }
 0x431   :  { %11265 = vst [vmem:[#allocation63_spill] sm:$0xff] %v8762_v7  ;;  %v6266_v56 = vpop.eup %6265  ;;  %v2912_v34 = vmul.f32 %v8479_v31, %v8762_v7  ;;  %v8772_v5 = vmul.f32 %v6264_v50, %v11234_v30 }
 0x432   :  { %3439 = vrot.lane.b32.xlu1 %v3402_v43, %s6389_s7  ;;  %v6268_v48 = vpop.eup %6267  ;;  %v8779_v62 = vmul.f32 %v6266_v56, %v8629_v54  ;;  %6289 = vrcp.f32 %v965_v52 }
 0x433   :  { %v6270_v14 = vpop.eup %6269  ;;  %11267 = vst [vmem:[#allocation36_spill] sm:$0xff] %v8772_v5  ;;  %v967_v31 = vadd.f32 1.0, %v6268_v48  ;;  %v3168_v30 = vmul.f32 %v8486_v25, %v8772_v5  ;;  %6291 = vpow2.f32 %v357_v40  ;;  %v3408_v48 = vmul.f32 %v8494_v51, %v8762_v7 }
 0x434   :  { %v3599_v19 = vpop.permute.xlu1 %3598  ;;  %v6272_v58 = vpop.eup %6271  ;;  %11270 = vst [vmem:[#allocation179_spill] sm:$0xff] %v8779_v62  ;;  %v378_v50 = vadd.f32 1.0, %v6270_v14 }
 0x435   :  { %v6274_v2 = vpop.eup %6273  ;;  %v8790_v56 = vmul.f32 %v6272_v58, %v8647_v41  ;;  %6293 = vrcp.f32 %v967_v31 }
 0x436   :  { %2715 = vrot.lane.b32.xlu1 %v2672_v16, %s6389_s7  ;;  %v11268_v16 = vld [vmem:[#allocation65_spill] sm:$0xff]  ;;  %v969_v52 = vadd.f32 1.0, %v6274_v2  ;;  %6295 = vrcp.f32 %v378_v50 }
 0x437   :  { %v1216_v46 = vsub.f32 0.0, %v11268_v16  ;;  %11269 = vst [vmem:[#allocation65_spill] sm:$0xff] %v8775_v42  ;;  %11272 = vst [vmem:[#allocation37_spill] sm:$0xff] %v8790_v56  ;;  %v3657_v14 = vmul.f32 %v8371_v49, %v8790_v56 }
 0x438   :  { %v3591_v43 = vpop.permute.xlu1 %3590 }
 0x439   :  { %v3653_v3 = vmul.f32 %v3591_v43, %v8766_v59  ;;  %v3655_v43 = vmul.f32 %v3599_v19, %v8779_v62  ;;  %v1245_v42 = vmul.f32 1.442695, %v1216_v46  ;;  %v653_v19 = vmul.f32 1.442695, %v624_v15 }
 0x43a   :  { %2955 = vrot.lane.b32.xlu1 %v2912_v34, %s6389_s7  ;;  %v6276_v34 = vpop.eup %6275 }
 0x43b   :  { %3685 = vrot.lane.b32.xlu0 %v3653_v3, %s6389_s7  ;;  %v6278_v54 = vpop.eup %6277  ;;  %v8795_v3 = vpop.permute.xlu0 %2957  ;;  %v8802_v41 = vmul.f32 %v6276_v34, %v11241_v47  ;;  %6297 = vpow2.f32 %v1245_v42 }
 0x43c   :  { %v8784_v36 = vpop.permute.xlu1 %3602  ;;  %v6280_v25 = vpop.eup %6279  ;;  %11273 = vst [vmem:[#allocation180_spill] sm:$0xff] %v8795_v3  ;;  %v1266_v58 = vadd.f32 1.0, %v6278_v54  ;;  %6299 = vrcp.f32 %v969_v52  ;;  %v11311_v3 = vmov 0  }
 0x43d   :  { %v6282_v46 = vpop.eup %6281  ;;  %11275 = vst [vmem:[#allocation182_spill] sm:$0xff] %v8802_v41  ;;  %v8806_v51 = vmul.f32 %v6280_v25, %v8663_v32  ;;  %v2670_v49 = vmul.f32 %v8501_v13, %v8802_v41  ;;  %6301 = vpow2.f32 %v653_v19 }
 0x43e   :  { %3211 = vrot.lane.b32.xlu1 %v3168_v30, %s6389_s7  ;;  %v6284_v31 = vpop.eup %6283  ;;  %v674_v42 = vadd.f32 1.0, %v6282_v46  ;;  %6303 = vrcp.f32 %v1266_v58 }
 0x43f   :  { %3689 = vrot.lane.b32.xlu0 %v3655_v43, %s6389_s7  ;;  %11276 = vst [vmem:[#allocation183_spill] sm:$0xff] %v8806_v51  ;;  %v6286_v2 = vpop.eup %6285  ;;  %v3659_v47 = vmul.f32 %v8359_v6, %v8806_v51  ;;  %v8816_v50 = vmul.f32 %v6284_v31, %v11246_v9  ;;  %v8818_v32 = vpop.permute.xlu0 %3213 }
 0x440   :  { %11279 = vst [vmem:[#allocation186_spill] sm:$0xff] %v8818_v32  ;;  %v6288_v15 = vpop.eup %6287  ;;  %v8822_v43 = vmul.f32 %v6286_v2, %v8679_v1  ;;  %6305 = vrcp.f32 %v674_v42 }
 0x441   :  { %v8799_v40 = vpop.permute.xlu1 %3500  ;;  %11278 = vst [vmem:[#allocation185_spill] sm:$0xff] %v8816_v50  ;;  %v6290_v13 = vpop.eup %6289  ;;  %v2910_v6 = vmul.f32 %v8507_v24, %v8816_v50  ;;  %v8832_v54 = vmul.f32 %v6288_v15, %v11248_v53  ;;  %v3406_v2 = vmul.f32 %v8528_v27, %v8816_v50  ;;  %v11288_v15 = vld [vmem:[#allocation42_spill] sm:$0xff] }
 0x442   :  { %11274 = vst [vmem:[#allocation181_spill] sm:$0xff] %v8799_v40  ;;  %3451 = vrot.lane.b32.xlu1 %v3408_v48, %s6389_s7  ;;  %11280 = vst [vmem:[#allocation187_spill] sm:$0xff] %v8822_v43  ;;  %v3661_v34 = vmul.f32 %v8393_v4, %v8822_v43  ;;  %v6292_v52 = vpop.eup %6291  ;;  %v8836_v1 = vmul.f32 %v6290_v13, %v8690_v45  ;;  %v11285_v4 = vld [vmem:[#allocation45_spill] sm:$0xff]  ;;  %v910_v13 = vsub.f32 0.0, %v11288_v15 }
 0x443   :  { %3693 = vrot.lane.b32.xlu0 %v3657_v14, %s6389_s7  ;;  %11282 = vst [vmem:[#allocation189_spill] sm:$0xff] %v8832_v54  ;;  %v6294_v25 = vpop.eup %6293  ;;  %v3166_v24 = vmul.f32 %v8518_v20, %v8832_v54  ;;  %v8841_v48 = vpop.permute.xlu0 %3453  ;;  %v908_v19 = vsub.f32 0.0, %v11285_v4  ;;  %v376_v46 = vadd.f32 1.0, %v6292_v52 }
 0x444   :  { %11283 = vst [vmem:[#allocation190_spill] sm:$0xff] %v8836_v1  ;;  %11284 = vst [vmem:[#allocation191_spill] sm:$0xff] %v8841_v48  ;;  %v3663_v53 = vmul.f32 %v8380_v0, %v8836_v1  ;;  %v6296_v14 = vpop.eup %6295  ;;  %v8850_v31 = vmul.f32 %v6294_v25, %v8704_v61  ;;  %v11349_v48 = vld [vmem:[#allocation86_spill] sm:$0xff] }
 0x445   :  { %v8813_v30 = vpop.permute.xlu1 %3525  ;;  %v8858_v42 = vmul.f32 %v6296_v14, %v11254_v29  ;;  %6307 = vrcp.f32 %v376_v46 }
 0x446   :  { %11277 = vst [vmem:[#allocation184_spill] sm:$0xff] %v8813_v30  ;;  %2711 = vrot.lane.b32.xlu1 %v2670_v49, %s6389_s7  ;;  %11286 = vst [vmem:[#allocation45_spill] sm:$0xff] %v8850_v31  ;;  %v925_v49 = vmul.f32 1.442695, %v908_v19  ;;  %v3665_v0 = vmul.f32 %v8404_v23, %v8850_v31  ;;  %v11290_v19 = vld [vmem:[#allocation51_spill] sm:$0xff] }
 0x447   :  { %3697 = vrot.lane.b32.xlu0 %v3659_v47, %s6389_s7  ;;  %11287 = vst [vmem:[#allocation192_spill] sm:$0xff] %v8858_v42  ;;  %v3647_v61 = vpop.permute.xlu0 %3646  ;;  %v2676_v23 = vmul.f32 %v8623_v63, %v8858_v42 }
 0x448   :  { %v6298_v45 = vpop.eup %6297  ;;  %6309 = vpow2.f32 %v925_v49 }
 0x449   :  { %v8829_v9 = vpop.permute.xlu1 %3515  ;;  %v6300_v20 = vpop.eup %6299 }
 0x44a   :  { %11281 = vst [vmem:[#allocation188_spill] sm:$0xff] %v8829_v9  ;;  %2951 = vrot.lane.b32.xlu1 %v2910_v6, %s6389_s7  ;;  %v6302_v47 = vpop.eup %6301  ;;  %v1264_v6 = vadd.f32 1.0, %v6298_v45  ;;  %v8865_v27 = vmul.f32 %v6300_v20, %v8718_v37  ;;  %v11294_v20 = vld [vmem:[#allocation48_spill] sm:$0xff] }
 0x44b   :  { %3701 = vrot.lane.b32.xlu0 %v3661_v34, %s6389_s7  ;;  %v6304_v52 = vpop.eup %6303  ;;  %v672_v29 = vadd.f32 1.0, %v6302_v47  ;;  %v11343_v9 = vld [vmem:[#allocation84_spill] sm:$0xff] }
 0x44c   :  { %11289 = vst [vmem:[#allocation42_spill] sm:$0xff] %v8865_v27  ;;  %v3667_v25 = vmul.f32 %v3647_v61, %v8865_v27  ;;  %v8873_v14 = vmul.f32 %v6304_v52, %v11258_v55  ;;  %6311 = vrcp.f32 %v1264_v6 }
 0x44d   :  { %v6306_v37 = vpop.eup %6305  ;;  %6313 = vrcp.f32 %v672_v29 }
 0x44e   :  { %v8846_v58 = vpop.permute.xlu1 %3618  ;;  %3207 = vrot.lane.b32.xlu1 %v3166_v24, %s6389_s7  ;;  %v929_v24 = vmul.f32 1.442695, %v910_v13  ;;  %11291 = vst [vmem:[#allocation51_spill] sm:$0xff] %v8873_v14  ;;  %v2916_v63 = vmul.f32 %v8642_v10, %v8873_v14  ;;  %v8882_v45 = vmul.f32 %v6306_v37, %v11259_v60  ;;  %v11296_v10 = vld [vmem:[#allocation58_spill] sm:$0xff]  ;;  %v3412_v6 = vmul.f32 %v8673_v18, %v8873_v14 }
 0x44f   :  { %3705 = vrot.lane.b32.xlu0 %v3663_v53, %s6389_s7  ;;  %v912_v53 = vsub.f32 0.0, %v11290_v19  ;;  %v916_v13 = vsub.f32 0.0, %v11296_v10 }
 0x450   :  { %11293 = vst [vmem:[#allocation194_spill] sm:$0xff] %v8882_v45  ;;  %6315 = vpow2.f32 %v929_v24 }
 0x451   :  { %v933_v55 = vmul.f32 1.442695, %v912_v53  ;;  %v11299_v53 = vld [vmem:[#allocation122_spill] sm:$0xff] }
 0x452   :  { %v8861_v34 = vpop.permute.xlu1 %3610  ;;  %3447 = vrot.lane.b32.xlu1 %v3406_v2, %s6389_s7  ;;  %v914_v2 = vsub.f32 0.0, %v11294_v20  ;;  %v6308_v60 = vpop.eup %6307 }
 0x453   :  { %3709 = vrot.lane.b32.xlu0 %v3665_v0, %s6389_s7  ;;  %v3172_v0 = vmul.f32 %v8654_v26, %v8882_v45  ;;  %6317 = vpow2.f32 %v933_v55  ;;  %v11298_v26 = vld [vmem:[#allocation56_spill] sm:$0xff] }
 0x454   :  { %v937_v47 = vmul.f32 1.442695, %v914_v2  ;;  %v918_v29 = vsub.f32 0.0, %v11298_v26 }
 0x455   :  { %v6310_v52 = vpop.eup %6309 }
 0x456   :  { %2723 = vrot.lane.b32.xlu1 %v2676_v23, %s6389_s7  ;;  %v8899_v23 = vmul.f32 %v6308_v60, %v11264_v28  ;;  %6319 = vpow2.f32 %v937_v47  ;;  %v945_v28 = vmul.f32 1.442695, %v918_v29  ;;  %v11301_v47 = vld [vmem:[#allocation119_spill] sm:$0xff] }
 0x457   :  { %v8876_v46 = vpop.permute.xlu1 %3545  ;;  %3713 = vrot.lane.b32.xlu0 %v3667_v25, %s6389_s7  ;;  %v941_v25 = vmul.f32 1.442695, %v916_v13  ;;  %6321 = vrcp.f32 %v11299_v53  ;;  %v11306_v53 = vld [vmem:[#allocation133_spill] sm:$0xff] }
 0x458   :  { %11292 = vst [vmem:[#allocation193_spill] sm:$0xff] %v8876_v46  ;;  %11297 = vst [vmem:[#allocation58_spill] sm:$0xff] %v8899_v23  ;;  %v2674_v18 = vmul.f32 %v8693_v8, %v8899_v23 }
 0x459   :  { %v6312_v24 = vpop.eup %6311  ;;  %6323 = vpow2.f32 %v941_v25 }
 0x45a   :  { %2963 = vrot.lane.b32.xlu1 %v2916_v63, %s6389_s7  ;;  %v956_v63 = vadd.f32 1.0, %v6310_v52  ;;  %v6314_v2 = vpop.eup %6313  ;;  %v8910_v55 = vmul.f32 %v6312_v24, %v11268_v16  ;;  %6325 = vrcp.f32 %v11301_v47  ;;  %v11304_v52 = vld [vmem:[#allocation39_spill] sm:$0xff] }
 0x45b   :  { %v8886_v49 = vpop.permute.xlu1 %3535  ;;  %3834 = vperm.xlu0 %5804, %v11176_v21   ;;  %v8920_v60 = vmul.f32 %v6314_v2, %v11271_v17 }
 0x45c   :  { %11295 = vst [vmem:[#allocation48_spill] sm:$0xff] %v8886_v49  ;;  %11300 = vst [vmem:[#allocation56_spill] sm:$0xff] %v8910_v55  ;;  %v2914_v13 = vmul.f32 %v8708_v33, %v8910_v55  ;;  %6327 = vrcp.f32 %v956_v63  ;;  %v3410_v17 = vmul.f32 %v8739_v39, %v8910_v55  ;;  %v11337_v49 = vld [vmem:[#allocation10_spill] sm:$0xff] }
 0x45d   :  { %11303 = vst [vmem:[#allocation119_spill] sm:$0xff] %v8920_v60  ;;  %6329 = vpow2.f32 %v945_v28  ;;  %v3170_v29 = vmul.f32 %v8724_v38, %v8920_v60  ;;  %v11308_v28 = vld [vmem:[#allocation164_spill] sm:$0xff] }
 0x45e   :  { %3219 = vrot.lane.b32.xlu1 %v3172_v0, %s6389_s7  ;;  %v6316_v0 = vpop.eup %6315 }
 0x45f   :  { %3846 = vperm.xlu0 %5804, %v11182_v11  }
 0x460   :  { %v8896_v61 = vpop.permute.xlu1 %3634  ;;  %v6318_v16 = vpop.eup %6317 }
 0x461   :  { %v960_v33 = vadd.f32 1.0, %v6318_v16 }
 0x462   :  { %3459 = vrot.lane.b32.xlu1 %v3412_v6, %s6389_s7  ;;  %v958_v6 = vadd.f32 1.0, %v6316_v0  ;;  %v11309_v0 = vld [vmem:[#allocation92_spill] sm:$0xff] }
 0x463   :  { %3854 = vperm.xlu0 %5804, %v11179_v35   ;;  %v6320_v24 = vpop.eup %6319 }
 0x464   :  { %v8907_v37 = vpop.permute.xlu1 %3626  ;;  %6331 = vrcp.f32 %v958_v6  ;;  %v962_v2 = vadd.f32 1.0, %v6320_v24  ;;  %v11313_v24 = vld [vmem:[#allocation80_spill] sm:$0xff] }
 0x465   :  { %6333 = vrcp.f32 %v960_v33  ;;  %v11312_v33 = vld [vmem:[#allocation95_spill] sm:$0xff] }
 0x466   :  { %2719 = vrot.lane.b32.xlu1 %v2674_v18, %s6389_s7  ;;  %v6322_v18 = vpop.eup %6321  ;;  %6335 = vrcp.f32 %v962_v2 }
 0x467   :  { %3862 = vperm.xlu0 %5804, %v11197_v22   ;;  %v6324_v38 = vpop.eup %6323  ;;  %v8937_v47 = vmul.f32 %v6322_v18, %v11309_v0 }
 0x469   :  { %v8917_v8 = vpop.permute.xlu1 %3565 }
 0x46a   :  { %11302 = vst [vmem:[#allocation122_spill] sm:$0xff] %v8917_v8  ;;  %2959 = vrot.lane.b32.xlu1 %v2914_v13, %s6389_s7  ;;  %v6326_v13 = vpop.eup %6325  ;;  %v11317_v8 = vld [vmem:[#allocation149_spill] sm:$0xff] }
 0x46b   :  { %3870 = vperm.xlu0 %5804, %v11304_v52   ;;  %v6328_v16 = vpop.eup %6327 }
 0x46c   :  { %v6330_v39 = vpop.eup %6329  ;;  %v8950_v18 = vmul.f32 %v6328_v16, %v11285_v4  ;;  %v11320_v16 = vmov 2  }
 0x46d   :  { %v8926_v25 = vpop.permute.xlu1 %3555  ;;  %v966_v0 = vadd.f32 1.0, %v6330_v39  ;;  %v11321_v39 = vld [vmem:[#allocation142_spill] sm:$0xff] }
 0x46e   :  { %11305 = vst [vmem:[#allocation39_spill] sm:$0xff] %v8926_v25  ;;  %3215 = vrot.lane.b32.xlu1 %v3170_v29, %s6389_s7  ;;  %v964_v29 = vadd.f32 1.0, %v6324_v38  ;;  %11315 = vst [vmem:[#allocation95_spill] sm:$0xff] %v8950_v18  ;;  %v11316_v38 = vld [vmem:[#allocation160_spill] sm:$0xff] }
 0x46f   :  { %3878 = vperm.xlu0 %5804, %v11306_v53  }
 0x470   :  { %6337 = vrcp.f32 %v964_v29 }
 0x471   :  { %v8932_v63 = vpop.permute.xlu1 %2699  ;;  %v6332_v2 = vpop.eup %6331  ;;  %6339 = vrcp.f32 %v966_v0 }
 0x472   :  { %11307 = vst [vmem:[#allocation133_spill] sm:$0xff] %v8932_v63  ;;  %3455 = vrot.lane.b32.xlu1 %v3410_v17, %s6389_s7  ;;  %v8945_v17 = vmul.f32 %v6326_v13, %v11313_v24  ;;  %v8959_v13 = vmul.f32 %v6332_v2, %v11288_v15  ;;  %v6334_v4 = vpop.eup %6333 }
 0x473   :  { %3886 = vperm.xlu0 %5804, %v11308_v28   ;;  %v6336_v15 = vpop.eup %6335 }
 0x474   :  { %11319 = vst [vmem:[#allocation160_spill] sm:$0xff] %v8959_v13  ;;  %v3656_v29 = vmul.f32 %v8784_v36, %v8959_v13  ;;  %v8978_v46 = vmul.f32 %v6336_v15, %v11294_v20  ;;  %v11330_v15 = vld [vmem:[#allocation99_spill] sm:$0xff] }
 0x475   :  { %v8939_v6 = vpop.permute.xlu1 %2939 }
 0x476   :  { %11310 = vst [vmem:[#allocation164_spill] sm:$0xff] %v8939_v6  ;;  %3642 = vperm.xlu1 %5801, %v8937_v47   ;;  %v3654_v6 = vmul.f32 %v11316_v38, %v8950_v18  ;;  %v8969_v38 = vmul.f32 %v6334_v4, %v11290_v19  ;;  %11326 = vst [vmem:[#allocation195_spill] sm:$0xff] %v8978_v46  ;;  %v3660_v19 = vmul.f32 %v8846_v58, %v8978_v46  ;;  %v11327_v4 = vld [vmem:[#allocation81_spill] sm:$0xff] }
 0x477   :  { %5805 = vset.pattern.permute.xlu0 %v11311_v3 }
 0x478   :  { %2503 = vperm.xlu0 %5805, %v11312_v33   ;;  %11323 = vst [vmem:[#allocation142_spill] sm:$0xff] %v8969_v38  ;;  %v3658_v0 = vmul.f32 %v8861_v34, %v8969_v38 }
 0x479   :  { %v8947_v63 = vpop.permute.xlu1 %3195 }
 0x47a   :  { %11314 = vst [vmem:[#allocation92_spill] sm:$0xff] %v8947_v63  ;;  %3650 = vperm.xlu1 %5801, %v8945_v17  }
 0x47c   :  { %2548 = vperm.xlu0 %5805, %v11317_v8  }
 0x47d   :  { %v8956_v25 = vpop.permute.xlu1 %3435  ;;  %v6338_v36 = vpop.eup %6337 }
 0x47e   :  { %11318 = vst [vmem:[#allocation80_spill] sm:$0xff] %v8956_v25  ;;  %3687 = vrot.lane.b32.xlu1 %v3654_v6, %s6389_s7  ;;  %v11324_v6 = vld [vmem:[#allocation83_spill] sm:$0xff]  ;;  %v6340_v34 = vpop.eup %6339 }
 0x47f   :  { %5802 = vset.pattern.permute.xlu1 %v11320_v16 }
 0x480   :  { %2558 = vperm.xlu0 %5805, %v11321_v39  }
 0x481   :  { %v8966_v24 = vpop.permute.xlu1 %2695 }
 0x482   :  { %11322 = vst [vmem:[#allocation149_spill] sm:$0xff] %v8966_v24  ;;  %3691 = vrot.lane.b32.xlu1 %v3656_v29, %s6389_s7  ;;  %v8987_v24 = vmul.f32 %v6338_v36, %v11296_v10  ;;  %v11333_v10 = vld [vmem:[#allocation110_spill] sm:$0xff] }
 0x484   :  { %2568 = vperm.xlu0 %5805, %v11324_v6   ;;  %11329 = vst [vmem:[#allocation196_spill] sm:$0xff] %v8987_v24  ;;  %v3662_v20 = vmul.f32 %v8907_v37, %v8987_v24 }
 0x485   :  { %v8975_v2 = vpop.permute.xlu1 %2935 }
 0x486   :  { %11325 = vst [vmem:[#allocation83_spill] sm:$0xff] %v8975_v2  ;;  %3695 = vrot.lane.b32.xlu1 %v3658_v0, %s6389_s7  ;;  %v8996_v2 = vmul.f32 %v6340_v34, %v11298_v26  ;;  %v11339_v26 = vld [vmem:[#allocation154_spill] sm:$0xff] }
 0x488   :  { %2578 = vperm.xlu0 %5805, %v11327_v4   ;;  %11332 = vst [vmem:[#allocation197_spill] sm:$0xff] %v8996_v2  ;;  %v3664_v58 = vmul.f32 %v8896_v61, %v8996_v2  ;;  %v11361_v2 = vld [vmem:[#allocation62_spill] sm:$0xff] }
 0x489   :  { %v8984_v29 = vpop.permute.xlu1 %3191 }
 0x48a   :  { %11328 = vst [vmem:[#allocation81_spill] sm:$0xff] %v8984_v29  ;;  %3699 = vrot.lane.b32.xlu1 %v3660_v19, %s6389_s7  ;;  %v11335_v19 = vld [vmem:[#allocation135_spill] sm:$0xff] }
 0x48c   :  { %2999 = vperm.xlu0 %5805, %v11330_v15  }
 0x48d   :  { %v8993_v0 = vpop.permute.xlu1 %3431 }
 0x48e   :  { %11331 = vst [vmem:[#allocation99_spill] sm:$0xff] %v8993_v0  ;;  %3703 = vrot.lane.b32.xlu1 %v3662_v20, %s6389_s7  ;;  %v11341_v20 = vld [vmem:[#allocation146_spill] sm:$0xff] }
 0x490   :  { %3014 = vperm.xlu0 %5805, %v11333_v10  }
 0x491   :  { %v9002_v36 = vpop.permute.xlu1 %2707 }
 0x492   :  { %11334 = vst [vmem:[#allocation110_spill] sm:$0xff] %v9002_v36  ;;  %3707 = vrot.lane.b32.xlu1 %v3664_v58, %s6389_s7  ;;  %v11345_v58 = vld [vmem:[#allocation82_spill] sm:$0xff] }
 0x494   :  { %3024 = vperm.xlu0 %5805, %v11335_v19  }
 0x495   :  { %v9006_v37 = vpop.permute.xlu1 %2947 }
 0x496   :  { %11336 = vst [vmem:[#allocation135_spill] sm:$0xff] %v9006_v37  ;;  %v11347_v37 = vld [vmem:[#allocation89_spill] sm:$0xff] }
 0x498   :  { %3034 = vperm.xlu0 %5805, %v11337_v49  }
 0x499   :  { %v9009_v30 = vpop.permute.xlu1 %3203 }
 0x49a   :  { %11338 = vst [vmem:[#allocation10_spill] sm:$0xff] %v9009_v30 }
 0x49c   :  { %3044 = vperm.xlu0 %5805, %v11339_v26  }
 0x49d   :  { %v9012_v34 = vpop.permute.xlu1 %3443 }
 0x49e   :  { %11340 = vst [vmem:[#allocation154_spill] sm:$0xff] %v9012_v34  ;;  %v11351_v34 = vld [vmem:[#allocation130_spill] sm:$0xff] }
 0x4a0   :  { %3054 = vperm.xlu0 %5805, %v11341_v20  }
 0x4a1   :  { %v9015_v61 = vpop.permute.xlu1 %2703 }
 0x4a2   :  { %11342 = vst [vmem:[#allocation146_spill] sm:$0xff] %v9015_v61  ;;  %v11353_v61 = vld [vmem:[#allocation128_spill] sm:$0xff] }
 0x4a4   :  { %3064 = vperm.xlu0 %5805, %v11343_v9  }
 0x4a5   :  { %v9018_v36 = vpop.permute.xlu1 %2943 }
 0x4a6   :  { %11344 = vst [vmem:[#allocation84_spill] sm:$0xff] %v9018_v36  ;;  %v11355_v36 = vld [vmem:[#allocation116_spill] sm:$0xff] }
 0x4a8   :  { %3074 = vperm.xlu0 %5805, %v11345_v58  }
 0x4a9   :  { %v9021_v40 = vpop.permute.xlu1 %3199 }
 0x4aa   :  { %11346 = vst [vmem:[#allocation82_spill] sm:$0xff] %v9021_v40  ;;  %v11357_v40 = vld [vmem:[#allocation114_spill] sm:$0xff] }
 0x4ac   :  { %3495 = vperm.xlu0 %5805, %v11347_v37  }
 0x4ad   :  { %v9024_v32 = vpop.permute.xlu1 %3439 }
 0x4ae   :  { %11348 = vst [vmem:[#allocation89_spill] sm:$0xff] %v9024_v32  ;;  %v11359_v32 = vld [vmem:[#allocation64_spill] sm:$0xff] }
 0x4af   :  { %v920_v27 = vsub.f32 0.0, %v11359_v32 }
 0x4b0   :  { %3510 = vperm.xlu0 %5805, %v11349_v48  }
 0x4b1   :  { %v9027_v30 = vpop.permute.xlu1 %2715  ;;  %v949_v31 = vmul.f32 1.442695, %v920_v27 }
 0x4b2   :  { %11350 = vst [vmem:[#allocation86_spill] sm:$0xff] %v9027_v30 }
 0x4b3   :  { %6341 = vpow2.f32 %v949_v31 }
 0x4b4   :  { %3520 = vperm.xlu0 %5805, %v11351_v34  }
 0x4b5   :  { %v9030_v63 = vpop.permute.xlu1 %2955 }
 0x4b6   :  { %11352 = vst [vmem:[#allocation130_spill] sm:$0xff] %v9030_v63  ;;  %v922_v63 = vsub.f32 0.0, %v11361_v2 }
 0x4b8   :  { %3530 = vperm.xlu0 %5805, %v11353_v61   ;;  %v953_v24 = vmul.f32 1.442695, %v922_v63 }
 0x4b9   :  { %v9033_v25 = vpop.permute.xlu1 %3211 }
 0x4ba   :  { %11354 = vst [vmem:[#allocation128_spill] sm:$0xff] %v9033_v25  ;;  %6343 = vpow2.f32 %v953_v24 }
 0x4bc   :  { %3540 = vperm.xlu0 %5805, %v11355_v36  }
 0x4bd   :  { %v9036_v29 = vpop.permute.xlu1 %3451 }
 0x4be   :  { %11356 = vst [vmem:[#allocation116_spill] sm:$0xff] %v9036_v29 }
 0x4c0   :  { %3550 = vperm.xlu0 %5805, %v11357_v40   ;;  %v6342_v46 = vpop.eup %6341 }
 0x4c1   :  { %v9039_v0 = vpop.permute.xlu1 %2711 }
 0x4c2   :  { %11358 = vst [vmem:[#allocation114_spill] sm:$0xff] %v9039_v0 }
 0x4c4   :  { %3560 = vperm.xlu0 %5805, %v8937_v47  }
 0x4c5   :  { %v9043_v30 = vpop.permute.xlu1 %2951 }
 0x4c6   :  { %11360 = vst [vmem:[#allocation64_spill] sm:$0xff] %v9043_v30  ;;  %v968_v30 = vadd.f32 1.0, %v6342_v46 }
 0x4c7   :  { %v6344_v38 = vpop.eup %6343 }
 0x4c8   :  { %3570 = vperm.xlu0 %5805, %v8945_v17   ;;  %v970_v27 = vadd.f32 1.0, %v6344_v38  ;;  %6345 = vrcp.f32 %v968_v30 }
 0x4c9   :  { %v9047_v25 = vpop.permute.xlu1 %3207 }
 0x4ca   :  { %11362 = vst [vmem:[#allocation62_spill] sm:$0xff] %v9047_v25  ;;  %6347 = vrcp.f32 %v970_v27 }
 0x4cd   :  { %v9049_v29 = vpop.permute.xlu1 %3447 }
 0x4ce   :  { %11363 = vst [vmem:[#allocation198_spill] sm:$0xff] %v9049_v29 }
 0x4d1   :  { %v9051_v1 = vpop.permute.xlu1 %2723 }
 0x4d2   :  { %11364 = vst [vmem:[#allocation199_spill] sm:$0xff] %v9051_v1 }
 0x4d5   :  { %v9053_v0 = vpop.permute.xlu1 %2963  ;;  %v6346_v24 = vpop.eup %6345 }
 0x4d6   :  { %11365 = vst [vmem:[#allocation200_spill] sm:$0xff] %v9053_v0  ;;  %v9068_v0 = vmul.f32 %v6346_v24, %v11359_v32  ;;  %v9082_v32 = vpop.permute.xlu0 %3685 }
 0x4d9   :  { %v9055_v43 = vpop.permute.xlu1 %3219 }
 0x4da   :  { %11366 = vst [vmem:[#allocation201_spill] sm:$0xff] %v9055_v43  ;;  %v6348_v43 = vpop.eup %6347 }
 0x4db   :  { %v9072_v38 = vmul.f32 %v6348_v43, %v11361_v2  ;;  %v9085_v43 = vpop.permute.xlu0 %3689 }
 0x4dc   :  { %11374 = vst [vmem:[#allocation207_spill] sm:$0xff] %v9085_v43 }
 0x4dd   :  { %v9057_v51 = vpop.permute.xlu1 %3459 }
 0x4de   :  { %11367 = vst [vmem:[#allocation202_spill] sm:$0xff] %v9057_v51 }
 0x4e1   :  { %v9059_v13 = vpop.permute.xlu1 %2719 }
 0x4e2   :  { %11368 = vst [vmem:[#allocation203_spill] sm:$0xff] %v9059_v13  ;;  %v11372_v13 = vld [vmem:[#allocation85_spill] sm:$0xff] }
 0x4e3   :  { %11373 = vst [vmem:[#allocation85_spill] sm:$0xff] %v9082_v32 }
 0x4e5   :  { %v9061_v31 = vpop.permute.xlu1 %2959 }
 0x4e6   :  { %11369 = vst [vmem:[#allocation204_spill] sm:$0xff] %v9061_v31 }
 0x4e9   :  { %v9063_v63 = vpop.permute.xlu1 %3215 }
 0x4ea   :  { %11370 = vst [vmem:[#allocation205_spill] sm:$0xff] %v9063_v63 }
 0x4ed   :  { %v9065_v1 = vpop.permute.xlu1 %3455 }
 0x4ee   :  { %11371 = vst [vmem:[#allocation206_spill] sm:$0xff] %v9065_v1 }
 0x4f1   :  { %v3643_v46 = vpop.permute.xlu1 %3642 }
 0x4f2   :  { %v3666_v25 = vmul.f32 %v3643_v46, %v9068_v0 }
 0x4f4   :  { %3711 = vrot.lane.b32.xlu1 %v3666_v25, %s6389_s7  ;;  %v9089_v25 = vpop.permute.xlu0 %3693 }
 0x4f5   :  { %v3651_v30 = vpop.permute.xlu1 %3650  ;;  %11375 = vst [vmem:[#allocation208_spill] sm:$0xff] %v9089_v25 }
 0x4f6   :  { %v3668_v27 = vmul.f32 %v3651_v30, %v9072_v38 }
 0x4f8   :  { %3715 = vrot.lane.b32.xlu1 %v3668_v27, %s6389_s7 }
 0x4f9   :  { %v9114_v24 = vpop.permute.xlu1 %3687 }
 0x4fa   :  { %11383 = vst [vmem:[#allocation214_spill] sm:$0xff] %v9114_v24 }
 0x4fc   :  { %3754 = vperm.xlu1 %5802, %v11176_v21   ;;  %v11376_v21 = vmov 3  }
 0x4fd   :  { %v9116_v46 = vpop.permute.xlu1 %3691 }
 0x4fe   :  { %11384 = vst [vmem:[#allocation215_spill] sm:$0xff] %v9116_v46 }
 0x500   :  { %3758 = vperm.xlu1 %5802, %v11372_v13  }
 0x501   :  { %v9118_v30 = vpop.permute.xlu1 %3695 }
 0x502   :  { %11385 = vst [vmem:[#allocation216_spill] sm:$0xff] %v9118_v30 }
 0x504   :  { %3766 = vperm.xlu1 %5802, %v11182_v11   ;;  %v9093_v11 = vpop.permute.xlu0 %3697 }
 0x505   :  { %11377 = vst [vmem:[#allocation209_spill] sm:$0xff] %v9093_v11  ;;  %v9120_v27 = vpop.permute.xlu1 %3699 }
 0x506   :  { %11386 = vst [vmem:[#allocation217_spill] sm:$0xff] %v9120_v27 }
 0x508   :  { %3774 = vperm.xlu1 %5802, %v11179_v35  }
 0x509   :  { %v9122_v31 = vpop.permute.xlu1 %3703 }
 0x50a   :  { %11387 = vst [vmem:[#allocation218_spill] sm:$0xff] %v9122_v31 }
 0x50c   :  { %3782 = vperm.xlu1 %5802, %v11197_v22   ;;  %v9097_v22 = vpop.permute.xlu0 %3701 }
 0x50d   :  { %11378 = vst [vmem:[#allocation210_spill] sm:$0xff] %v9097_v22 }
 0x510   :  { %3790 = vperm.xlu1 %5802, %v11304_v52   ;;  %v9100_v35 = vpop.permute.xlu0 %3705 }
 0x511   :  { %11379 = vst [vmem:[#allocation211_spill] sm:$0xff] %v9100_v35 }
 0x514   :  { %3798 = vperm.xlu1 %5802, %v11306_v53   ;;  %v9104_v52 = vpop.permute.xlu0 %3709 }
 0x515   :  { %11380 = vst [vmem:[#allocation212_spill] sm:$0xff] %v9104_v52 }
 0x518   :  { %3806 = vperm.xlu1 %5802, %v11308_v28   ;;  %v9107_v53 = vpop.permute.xlu0 %3713 }
 0x519   :  { %11381 = vst [vmem:[#allocation213_spill] sm:$0xff] %v9107_v53  ;;  %v9124_v53 = vpop.permute.xlu1 %3707 }
 0x51a   :  { %11388 = vst [vmem:[#allocation219_spill] sm:$0xff] %v9124_v53 }
 0x51c   :  { %5803 = vset.pattern.permute.xlu1 %v11376_v21  ;;  %v3835_v28 = vpop.permute.xlu0 %3834 }
 0x51d   :  { %3830 = vperm.xlu1 %5803, %v11347_v37  }
 0x520   :  { %v3847_v52 = vpop.permute.xlu0 %3846 }
 0x521   :  { %3838 = vperm.xlu1 %5803, %v11372_v13   ;;  %v11382_v13 = vld [vmem:[#allocation22_spill] sm:$0xff] }
 0x522   :  { %v3894_v2 = vmul.f32 %v3835_v28, %v11382_v13 }
 0x524   :  { %v3855_v28 = vpop.permute.xlu0 %3854 }
 0x525   :  { %3842 = vperm.xlu1 %5803, %v11349_v48  }
 0x529   :  { %3850 = vperm.xlu1 %5803, %v11351_v34  }
 0x52d   :  { %3858 = vperm.xlu1 %5803, %v11353_v61  }
 0x531   :  { %3866 = vperm.xlu1 %5803, %v11355_v36  }
 0x535   :  { %3874 = vperm.xlu1 %5803, %v11357_v40  }
 0x539   :  { %3882 = vperm.xlu1 %5803, %v8937_v47  }
 0x53d   :  { %3890 = vperm.xlu1 %5803, %v8945_v17  }
 0x541   :  { %3927 = vrot.lane.b32.xlu1 %v3894_v2, %s6389_s7 }
 0x542   :  { %5806 = vset.pattern.permute.xlu1 %v11311_v3  ;;  %v3863_v3 = vpop.permute.xlu0 %3862 }
 0x546   :  { %v3871_v46 = vpop.permute.xlu0 %3870 }
 0x54a   :  { %v3879_v27 = vpop.permute.xlu0 %3878 }
 0x54e   :  { %v3887_v53 = vpop.permute.xlu0 %3886 }
 0x552   :  { %v9144_v43 = vpop.permute.xlu0 %2503 }
 0x553   :  { %11398 = vst [vmem:[#allocation229_spill] sm:$0xff] %v9144_v43  ;;  %v11405_v43 = vld [vmem:[#allocation49_spill] sm:$0xff] }
 0x556   :  { %v9148_v32 = vpop.permute.xlu0 %2548 }
 0x557   :  { %11400 = vst [vmem:[#allocation231_spill] sm:$0xff] %v9148_v32 }
 0x566   :  { %v9126_v35 = vpop.permute.xlu1 %3711 }
 0x567   :  { %11389 = vst [vmem:[#allocation220_spill] sm:$0xff] %v9126_v35 }
 0x56a   :  { %v9128_v22 = vpop.permute.xlu1 %3715 }
 0x56b   :  { %11390 = vst [vmem:[#allocation221_spill] sm:$0xff] %v9128_v22 }
 0x577   :  { %v9130_v2 = vpop.permute.xlu1 %3754 }
 0x578   :  { %11391 = vst [vmem:[#allocation222_spill] sm:$0xff] %v9130_v2  ;;  %v11401_v2 = vld [vmem:[#allocation18_spill] sm:$0xff] }
 0x57b   :  { %v9132_v11 = vpop.permute.xlu1 %3758 }
 0x57c   :  { %11392 = vst [vmem:[#allocation223_spill] sm:$0xff] %v9132_v11 }
 0x57f   :  { %v9134_v25 = vpop.permute.xlu1 %3766 }
 0x580   :  { %11393 = vst [vmem:[#allocation224_spill] sm:$0xff] %v9134_v25  ;;  %v9152_v25 = vpop.permute.xlu0 %2558 }
 0x581   :  { %11402 = vst [vmem:[#allocation232_spill] sm:$0xff] %v9152_v25 }
 0x583   :  { %v9136_v30 = vpop.permute.xlu1 %3774 }
 0x584   :  { %11394 = vst [vmem:[#allocation225_spill] sm:$0xff] %v9136_v30 }
 0x587   :  { %v9138_v31 = vpop.permute.xlu1 %3782 }
 0x588   :  { %11395 = vst [vmem:[#allocation226_spill] sm:$0xff] %v9138_v31  ;;  %v11403_v31 = vld [vmem:[#allocation134_spill] sm:$0xff] }
 0x58b   :  { %v9140_v24 = vpop.permute.xlu1 %3790 }
 0x58c   :  { %11396 = vst [vmem:[#allocation227_spill] sm:$0xff] %v9140_v24 }
 0x58f   :  { %v9142_v35 = vpop.permute.xlu1 %3798 }
 0x590   :  { %11397 = vst [vmem:[#allocation228_spill] sm:$0xff] %v9142_v35  ;;  %v11404_v35 = vld [vmem:[#allocation26_spill] sm:$0xff] }
 0x591   :  { %v3897_v1 = vmul.f32 %v3847_v52, %v11404_v35  ;;  %v11409_v52 = vld [vmem:[#allocation150_spill] sm:$0xff] }
 0x593   :  { %v9146_v22 = vpop.permute.xlu1 %3806 }
 0x594   :  { %11399 = vst [vmem:[#allocation230_spill] sm:$0xff] %v9146_v22  ;;  %v9158_v22 = vpop.permute.xlu0 %2568 }
 0x595   :  { %11406 = vst [vmem:[#allocation233_spill] sm:$0xff] %v9158_v22 }
 0x598   :  { %v3831_v11 = vpop.permute.xlu1 %3830 }
 0x599   :  { %v3893_v51 = vmul.f32 %v3831_v11, %v11401_v2 }
 0x59b   :  { %3925 = vrot.lane.b32.xlu0 %v3893_v51, %s6389_s7  ;;  %v11407_v51 = vld [vmem:[#allocation20_spill] sm:$0xff] }
 0x59c   :  { %v3839_v30 = vpop.permute.xlu1 %3838  ;;  %v3899_v32 = vmul.f32 %v3855_v28, %v11407_v51 }
 0x59d   :  { %v3895_v63 = vmul.f32 %v3839_v30, %v11403_v31  ;;  %v11408_v30 = vld [vmem:[#allocation105_spill] sm:$0xff] }
 0x59e   :  { %6349 = vrcp.f32 %v11408_v30 }
 0x59f   :  { %3929 = vrot.lane.b32.xlu0 %v3895_v63, %s6389_s7 }
 0x5a0   :  { %v3843_v24 = vpop.permute.xlu1 %3842 }
 0x5a1   :  { %v3896_v29 = vmul.f32 %v3843_v24, %v11405_v43  ;;  %v3901_v24 = vmul.f32 %v3863_v3, %v11409_v52  ;;  %v9168_v43 = vpop.permute.xlu0 %2578  ;;  %v11415_v3 = vld [vmem:[#allocation101_spill] sm:$0xff] }
 0x5a2   :  { %11410 = vst [vmem:[#allocation105_spill] sm:$0xff] %v9168_v43 }
 0x5a3   :  { %3931 = vrot.lane.b32.xlu1 %v3896_v29, %s6389_s7  ;;  %3933 = vrot.lane.b32.xlu0 %v3897_v1, %s6389_s7  ;;  %v11411_v1 = vld [vmem:[#allocation102_spill] sm:$0xff] }
 0x5a4   :  { %v3851_v11 = vpop.permute.xlu1 %3850  ;;  %6351 = vrcp.f32 %v11411_v1 }
 0x5a5   :  { %v3898_v25 = vmul.f32 %v3851_v11, %v8727_v57  ;;  %v11412_v11 = vld [vmem:[#allocation106_spill] sm:$0xff]  ;;  %v9177_v30 = vpop.permute.xlu0 %2999 }
 0x5a6   :  { %6353 = vrcp.f32 %v11412_v11  ;;  %11414 = vst [vmem:[#allocation102_spill] sm:$0xff] %v9177_v30  ;;  %v11419_v11 = vld [vmem:[#allocation113_spill] sm:$0xff] }
 0x5a7   :  { %3935 = vrot.lane.b32.xlu1 %v3898_v25, %s6389_s7  ;;  %3937 = vrot.lane.b32.xlu0 %v3899_v32, %s6389_s7  ;;  %v11413_v25 = vld [vmem:[#allocation28_spill] sm:$0xff]  ;;  %6355 = vrcp.f32 %v11415_v3 }
 0x5a8   :  { %v3859_v63 = vpop.permute.xlu1 %3858  ;;  %v3903_v32 = vmul.f32 %v3871_v46, %v11413_v25  ;;  %v11418_v46 = vld [vmem:[#allocation109_spill] sm:$0xff] }
 0x5a9   :  { %v3900_v29 = vmul.f32 %v3859_v63, %v8669_v44  ;;  %v9190_v30 = vpop.permute.xlu0 %3014  ;;  %v11440_v44 = vld [vmem:[#allocation69_spill] sm:$0xff] }
 0x5aa   :  { %11421 = vst [vmem:[#allocation106_spill] sm:$0xff] %v9190_v30 }
 0x5ab   :  { %3939 = vrot.lane.b32.xlu1 %v3900_v29, %s6389_s7  ;;  %3941 = vrot.lane.b32.xlu0 %v3901_v24, %s6389_s7  ;;  %v11416_v29 = vld [vmem:[#allocation112_spill] sm:$0xff]  ;;  %v11417_v24 = vld [vmem:[#allocation161_spill] sm:$0xff] }
 0x5ac   :  { %v3867_v28 = vpop.permute.xlu1 %3866  ;;  %6357 = vrcp.f32 %v11416_v29  ;;  %v3905_v1 = vmul.f32 %v3879_v27, %v11417_v24  ;;  %v6350_v29 = vpop.eup %6349  ;;  %v11422_v27 = vld [vmem:[#allocation108_spill] sm:$0xff] }
 0x5ad   :  { %v3902_v22 = vmul.f32 %v3867_v28, %v8816_v50  ;;  %6359 = vrcp.f32 %v11418_v46  ;;  %v9201_v30 = vpop.permute.xlu0 %3024 }
 0x5ae   :  { %6361 = vrcp.f32 %v11419_v11  ;;  %11425 = vst [vmem:[#allocation101_spill] sm:$0xff] %v9201_v30  ;;  %v11431_v30 = vld [vmem:[#allocation87_spill] sm:$0xff] }
 0x5af   :  { %3943 = vrot.lane.b32.xlu1 %v3902_v22, %s6389_s7  ;;  %3945 = vrot.lane.b32.xlu0 %v3903_v32, %s6389_s7  ;;  %v11420_v22 = vld [vmem:[#allocation157_spill] sm:$0xff]  ;;  %6363 = vrcp.f32 %v11422_v27 }
 0x5b0   :  { %v3875_v63 = vpop.permute.xlu1 %3874  ;;  %v3907_v32 = vmul.f32 %v3887_v53, %v11420_v22 }
 0x5b1   :  { %v3904_v43 = vmul.f32 %v3875_v63, %v8762_v7  ;;  %v6352_v63 = vpop.eup %6351  ;;  %v11424_v7 = vld [vmem:[#allocation118_spill] sm:$0xff] }
 0x5b2   :  { %6365 = vrcp.f32 %v11424_v7 }
 0x5b3   :  { %3947 = vrot.lane.b32.xlu1 %v3904_v43, %s6389_s7  ;;  %3949 = vrot.lane.b32.xlu0 %v3905_v1, %s6389_s7  ;;  %v11423_v1 = vld [vmem:[#allocation66_spill] sm:$0xff]  ;;  %v6354_v11 = vpop.eup %6353 }
 0x5b4   :  { %v3883_v28 = vpop.permute.xlu1 %3882  ;;  %v9197_v46 = vmul.f32 %v6350_v29, %v11423_v1  ;;  %v11429_v1 = vld [vmem:[#allocation121_spill] sm:$0xff] }
 0x5b5   :  { %v3906_v3 = vmul.f32 %v3883_v28, %v8910_v55  ;;  %v11426_v28 = vld [vmem:[#allocation115_spill] sm:$0xff] }
 0x5b6   :  { %6367 = vrcp.f32 %v11426_v28  ;;  %v11428_v55 = vld [vmem:[#allocation67_spill] sm:$0xff]  ;;  %v11432_v28 = vld [vmem:[#allocation73_spill] sm:$0xff] }
 0x5b7   :  { %3951 = vrot.lane.b32.xlu1 %v3906_v3, %s6389_s7  ;;  %3953 = vrot.lane.b32.xlu0 %v3907_v32, %s6389_s7  ;;  %v6356_v32 = vpop.eup %6355  ;;  %v11427_v3 = vld [vmem:[#allocation88_spill] sm:$0xff]  ;;  %v9210_v29 = vmul.f32 %v6354_v11, %v11428_v55  ;;  %6369 = vrcp.f32 %v11429_v1  ;;  %v9223_v55 = vpop.permute.xlu0 %3034 }
 0x5b8   :  { %v3891_v43 = vpop.permute.xlu1 %3890  ;;  %v9207_v27 = vmul.f32 %v6352_v63, %v11427_v3  ;;  %v11433_v63 = vld [vmem:[#allocation123_spill] sm:$0xff]  ;;  %11434 = vst [vmem:[#allocation112_spill] sm:$0xff] %v9223_v55  ;;  %v11435_v3 = vld [vmem:[#allocation120_spill] sm:$0xff] }
 0x5b9   :  { %v3908_v53 = vmul.f32 %v3891_v43, %v8873_v14  ;;  %v6358_v7 = vpop.eup %6357  ;;  %v11430_v43 = vld [vmem:[#allocation117_spill] sm:$0xff]  ;;  %v9217_v14 = vmul.f32 %v6356_v32, %v11431_v30  ;;  %v11437_v30 = vld [vmem:[#allocation72_spill] sm:$0xff] }
 0x5ba   :  { %6371 = vrcp.f32 %v11430_v43  ;;  %v9220_v50 = vmul.f32 %v6358_v7, %v11432_v28  ;;  %v11436_v43 = vld [vmem:[#allocation70_spill] sm:$0xff] }
 0x5bb   :  { %3955 = vrot.lane.b32.xlu1 %v3908_v53, %s6389_s7  ;;  %3991 = vperm.xlu0 %5805, %v9197_v46   ;;  %v6360_v53 = vpop.eup %6359  ;;  %6373 = vrcp.f32 %v11433_v63  ;;  %v11438_v7 = vld [vmem:[#allocation2_spill] sm:$0xff]  ;;  %v9235_v63 = vpop.permute.xlu0 %3044 }
 0x5bc   :  { %v6362_v11 = vpop.eup %6361  ;;  %6375 = vrcp.f32 %v11435_v3  ;;  %v9229_v25 = vmul.f32 %v6360_v53, %v11436_v43  ;;  %11439 = vst [vmem:[#allocation109_spill] sm:$0xff] %v9235_v63  ;;  %v11441_v3 = vld [vmem:[#allocation79_spill] sm:$0xff]  ;;  %v11442_v53 = vld [vmem:[#allocation124_spill] sm:$0xff]  ;;  %v11444_v63 = vld [vmem:[#allocation78_spill] sm:$0xff] }
 0x5bd   :  { %v6364_v1 = vpop.eup %6363  ;;  %v9232_v32 = vmul.f32 %v6362_v11, %v11437_v30  ;;  %6377 = vrcp.f32 %v11438_v7  ;;  %v11443_v30 = vld [vmem:[#allocation76_spill] sm:$0xff] }
 0x5be   :  { %v9240_v52 = vmul.f32 %v6364_v1, %v11440_v44  ;;  %6379 = vrcp.f32 %v11442_v53  ;;  %v11447_v53 = vld [vmem:[#allocation94_spill] sm:$0xff] }
 0x5bf   :  { %3996 = vperm.xlu1 %5806, %v9210_v29   ;;  %4006 = vperm.xlu0 %5805, %v9207_v27   ;;  %v6366_v28 = vpop.eup %6365  ;;  %v9254_v35 = vpop.permute.xlu0 %3054 }
 0x5c0   :  { %v9243_v57 = vmul.f32 %v6366_v28, %v11441_v3  ;;  %11445 = vst [vmem:[#allocation113_spill] sm:$0xff] %v9254_v35  ;;  %v11446_v28 = vld [vmem:[#allocation75_spill] sm:$0xff] }
 0x5c3   :  { %4001 = vperm.xlu1 %5806, %v9217_v14   ;;  %4016 = vperm.xlu0 %5805, %v9220_v50   ;;  %v6368_v55 = vpop.eup %6367 }
 0x5c4   :  { %v6370_v11 = vpop.eup %6369  ;;  %v9249_v7 = vmul.f32 %v6368_v55, %v11443_v30  ;;  %v9264_v55 = vpop.permute.xlu0 %3064  ;;  %v11450_v30 = vld [vmem:[#allocation93_spill] sm:$0xff] }
 0x5c5   :  { %v9252_v51 = vmul.f32 %v6370_v11, %v11444_v63  ;;  %11448 = vst [vmem:[#allocation108_spill] sm:$0xff] %v9264_v55  ;;  %v11449_v63 = vld [vmem:[#allocation91_spill] sm:$0xff] }
 0x5c7   :  { %4011 = vperm.xlu1 %5806, %v9232_v32   ;;  %4026 = vperm.xlu0 %5805, %v9229_v25   ;;  %v6372_v43 = vpop.eup %6371 }
 0x5c8   :  { %v6374_v44 = vpop.eup %6373  ;;  %v9259_v3 = vmul.f32 %v6372_v43, %v11446_v28  ;;  %v11451_v43 = vld [vmem:[#allocation90_spill] sm:$0xff]  ;;  %v9279_v28 = vpop.permute.xlu0 %3074 }
 0x5c9   :  { %v6376_v1 = vpop.eup %6375  ;;  %v9262_v31 = vmul.f32 %v6374_v44, %v11447_v53  ;;  %11452 = vst [vmem:[#allocation66_spill] sm:$0xff] %v9279_v28  ;;  %v11453_v53 = vmov 1  }
 0x5ca   :  { %v6378_v2 = vpop.eup %6377  ;;  %v9269_v11 = vmul.f32 %v6376_v1, %v11449_v63 }
 0x5cb   :  { %4021 = vperm.xlu1 %5806, %v9240_v52   ;;  %4036 = vperm.xlu0 %5805, %v9243_v57   ;;  %v9272_v35 = vmul.f32 %v6378_v2, %v11450_v30  ;;  %v6380_v13 = vpop.eup %6379 }
 0x5cc   :  { %v9277_v44 = vmul.f32 %v6380_v13, %v11451_v43  ;;  %v9284_v1 = vpop.permute.xlu0 %3495 }
 0x5cd   :  { %11454 = vst [vmem:[#allocation118_spill] sm:$0xff] %v9284_v1 }
 0x5cf   :  { %4031 = vperm.xlu1 %5806, %v9252_v51   ;;  %4046 = vperm.xlu0 %5805, %v9249_v7  }
 0x5d0   :  { %v9291_v13 = vpop.permute.xlu0 %3510 }
 0x5d1   :  { %11455 = vst [vmem:[#allocation115_spill] sm:$0xff] %v9291_v13 }
 0x5d3   :  { %4041 = vperm.xlu1 %5806, %v9259_v3   ;;  %4056 = vperm.xlu0 %5805, %v9262_v31  }
 0x5d4   :  { %v9295_v2 = vpop.permute.xlu0 %3520 }
 0x5d5   :  { %11456 = vst [vmem:[#allocation88_spill] sm:$0xff] %v9295_v2 }
 0x5d7   :  { %4051 = vperm.xlu1 %5806, %v9272_v35   ;;  %4066 = vperm.xlu0 %5805, %v9269_v11  }
 0x5d8   :  { %v9301_v63 = vpop.permute.xlu0 %3530 }
 0x5d9   :  { %11457 = vst [vmem:[#allocation67_spill] sm:$0xff] %v9301_v63  ;;  %v11461_v63 = vld [vmem:[#allocation132_spill] sm:$0xff] }
 0x5db   :  { %4061 = vperm.xlu1 %5806, %v9277_v44   ;;  %5808 = vset.pattern.permute.xlu0 %v11453_v53 }
 0x5dc   :  { %4090 = vperm.xlu0 %5808, %v9210_v29   ;;  %v9305_v30 = vpop.permute.xlu0 %3540 }
 0x5dd   :  { %11458 = vst [vmem:[#allocation121_spill] sm:$0xff] %v9305_v30  ;;  %v11463_v30 = vld [vmem:[#allocation127_spill] sm:$0xff] }
 0x5df   :  { %5807 = vset.pattern.permute.xlu1 %v11453_v53  ;;  %v11460_v53 = vld [vmem:[#allocation104_spill] sm:$0xff] }
 0x5e0   :  { %4086 = vperm.xlu1 %5807, %v9197_v46   ;;  %4102 = vperm.xlu0 %5808, %v9232_v32   ;;  %v9311_v43 = vpop.permute.xlu0 %3550 }
 0x5e1   :  { %11459 = vst [vmem:[#allocation117_spill] sm:$0xff] %v9311_v43  ;;  %v9326_v43 = vpop.permute.xlu1 %3927 }
 0x5e2   :  { %11466 = vst [vmem:[#allocation120_spill] sm:$0xff] %v9326_v43 }
 0x5e4   :  { %4094 = vperm.xlu1 %5807, %v9217_v14   ;;  %4110 = vperm.xlu0 %5808, %v9240_v52   ;;  %v9316_v2 = vpop.permute.xlu0 %3560 }
 0x5e5   :  { %11462 = vst [vmem:[#allocation87_spill] sm:$0xff] %v9316_v2 }
 0x5e8   :  { %4098 = vperm.xlu1 %5807, %v9207_v27   ;;  %4118 = vperm.xlu0 %5808, %v9252_v51   ;;  %v9320_v13 = vpop.permute.xlu0 %3570 }
 0x5e9   :  { %11464 = vst [vmem:[#allocation73_spill] sm:$0xff] %v9320_v13 }
 0x5ec   :  { %4106 = vperm.xlu1 %5807, %v9220_v50   ;;  %4126 = vperm.xlu0 %5808, %v9259_v3  }
 0x5f0   :  { %4114 = vperm.xlu1 %5807, %v9229_v25   ;;  %4134 = vperm.xlu0 %5808, %v9272_v35  }
 0x5f4   :  { %4122 = vperm.xlu1 %5807, %v9243_v57   ;;  %4142 = vperm.xlu0 %5808, %v9277_v44  }
 0x5f8   :  { %4130 = vperm.xlu1 %5807, %v9249_v7   ;;  %5809 = vset.pattern.permute.xlu0 %v11320_v16 }
 0x5f9   :  { %2758 = vperm.xlu0 %5809, %v11312_v33  }
 0x5fc   :  { %4138 = vperm.xlu1 %5807, %v9262_v31  }
 0x5fd   :  { %2770 = vperm.xlu0 %5809, %v11460_v53  }
 0x600   :  { %4146 = vperm.xlu1 %5807, %v9269_v11  }
 0x601   :  { %2778 = vperm.xlu0 %5809, %v11461_v63  }
 0x604   :  { %5810 = vset.pattern.permute.xlu1 %v11320_v16 }
 0x605   :  { %2786 = vperm.xlu0 %5809, %v11463_v30  }
 0x609   :  { %2794 = vperm.xlu0 %5809, %v11317_v8  }
 0x60d   :  { %2802 = vperm.xlu0 %5809, %v11321_v39   ;;  %v9324_v33 = vpop.permute.xlu0 %3925 }
 0x60e   :  { %11465 = vst [vmem:[#allocation123_spill] sm:$0xff] %v9324_v33  ;;  %v11559_v33 = vld [vmem:[#allocation176_spill] sm:$0xff] }
 0x611   :  { %2810 = vperm.xlu0 %5809, %v11324_v6   ;;  %v9329_v53 = vpop.permute.xlu0 %3929 }
 0x612   :  { %11467 = vst [vmem:[#allocation70_spill] sm:$0xff] %v9329_v53  ;;  %v11558_v53 = vld [vmem:[#allocation141_spill] sm:$0xff] }
 0x615   :  { %v9331_v63 = vpop.permute.xlu1 %3931  ;;  %2818 = vperm.xlu0 %5809, %v11327_v4   ;;  %v9334_v16 = vpop.permute.xlu0 %3933 }
 0x616   :  { %11468 = vst [vmem:[#allocation72_spill] sm:$0xff] %v9331_v63  ;;  %11469 = vst [vmem:[#allocation2_spill] sm:$0xff] %v9334_v16 }
 0x619   :  { %v9336_v30 = vpop.permute.xlu1 %3935  ;;  %3254 = vperm.xlu0 %5809, %v11330_v15   ;;  %v9339_v8 = vpop.permute.xlu0 %3937 }
 0x61a   :  { %11470 = vst [vmem:[#allocation69_spill] sm:$0xff] %v9336_v30  ;;  %11471 = vst [vmem:[#allocation79_spill] sm:$0xff] %v9339_v8 }
 0x61d   :  { %3266 = vperm.xlu0 %5809, %v11333_v10   ;;  %v9342_v39 = vpop.permute.xlu1 %3939  ;;  %v9344_v13 = vpop.permute.xlu0 %3941 }
 0x61e   :  { %11472 = vst [vmem:[#allocation124_spill] sm:$0xff] %v9342_v39  ;;  %11473 = vst [vmem:[#allocation76_spill] sm:$0xff] %v9344_v13 }
 0x621   :  { %3274 = vperm.xlu0 %5809, %v11335_v19   ;;  %v9347_v6 = vpop.permute.xlu1 %3943  ;;  %v9350_v4 = vpop.permute.xlu0 %3945 }
 0x622   :  { %11474 = vst [vmem:[#allocation78_spill] sm:$0xff] %v9347_v6  ;;  %11475 = vst [vmem:[#allocation75_spill] sm:$0xff] %v9350_v4 }
 0x625   :  { %3282 = vperm.xlu0 %5809, %v11337_v49   ;;  %v9353_v2 = vpop.permute.xlu1 %3947  ;;  %v9355_v15 = vpop.permute.xlu0 %3949 }
 0x626   :  { %11476 = vst [vmem:[#allocation94_spill] sm:$0xff] %v9353_v2  ;;  %11477 = vst [vmem:[#allocation91_spill] sm:$0xff] %v9355_v15  ;;  %v11499_v15 = vld [vmem:[#allocation74_spill] sm:$0xff] }
 0x629   :  { %3290 = vperm.xlu0 %5809, %v11339_v26   ;;  %v9358_v10 = vpop.permute.xlu1 %3951  ;;  %v9361_v39 = vpop.permute.xlu0 %3953 }
 0x62a   :  { %11478 = vst [vmem:[#allocation93_spill] sm:$0xff] %v9358_v10  ;;  %11479 = vst [vmem:[#allocation90_spill] sm:$0xff] %v9361_v39 }
 0x62d   :  { %3298 = vperm.xlu0 %5809, %v11341_v20   ;;  %v9364_v19 = vpop.permute.xlu1 %3955 }
 0x62e   :  { %11480 = vst [vmem:[#allocation104_spill] sm:$0xff] %v9364_v19  ;;  %v11498_v19 = vld [vmem:[#allocation139_spill] sm:$0xff] }
 0x631   :  { %3306 = vperm.xlu0 %5809, %v11343_v9  }
 0x635   :  { %3314 = vperm.xlu0 %5809, %v11345_v58  }
 0x636   :  { %v9366_v49 = vpop.permute.xlu0 %3991 }
 0x637   :  { %11481 = vst [vmem:[#allocation132_spill] sm:$0xff] %v9366_v49 }
 0x639   :  { %3750 = vperm.xlu0 %5809, %v11347_v37  }
 0x63a   :  { %v9369_v26 = vpop.permute.xlu1 %3996  ;;  %v9371_v2 = vpop.permute.xlu0 %4006 }
 0x63b   :  { %11482 = vst [vmem:[#allocation127_spill] sm:$0xff] %v9369_v26  ;;  %11483 = vst [vmem:[#allocation234_spill] sm:$0xff] %v9371_v2 }
 0x63d   :  { %3762 = vperm.xlu0 %5809, %v11349_v48  }
 0x63e   :  { %v9374_v20 = vpop.permute.xlu1 %4001  ;;  %v9376_v10 = vpop.permute.xlu0 %4016 }
 0x63f   :  { %11484 = vst [vmem:[#allocation235_spill] sm:$0xff] %v9374_v20  ;;  %11485 = vst [vmem:[#allocation236_spill] sm:$0xff] %v9376_v10  ;;  %v11497_v20 = vld [vmem:[#allocation12_spill] sm:$0xff] }
 0x641   :  { %3770 = vperm.xlu0 %5809, %v11351_v34  }
 0x642   :  { %v9379_v9 = vpop.permute.xlu1 %4011  ;;  %v9381_v58 = vpop.permute.xlu0 %4026 }
 0x643   :  { %11486 = vst [vmem:[#allocation237_spill] sm:$0xff] %v9379_v9  ;;  %11487 = vst [vmem:[#allocation238_spill] sm:$0xff] %v9381_v58 }
 0x645   :  { %3778 = vperm.xlu0 %5809, %v11353_v61  }
 0x646   :  { %v9384_v49 = vpop.permute.xlu1 %4021  ;;  %v9386_v37 = vpop.permute.xlu0 %4036 }
 0x647   :  { %11488 = vst [vmem:[#allocation239_spill] sm:$0xff] %v9384_v49  ;;  %11489 = vst [vmem:[#allocation240_spill] sm:$0xff] %v9386_v37 }
 0x649   :  { %3786 = vperm.xlu0 %5809, %v11355_v36  }
 0x64a   :  { %v9389_v2 = vpop.permute.xlu1 %4031  ;;  %v9391_v48 = vpop.permute.xlu0 %4046 }
 0x64b   :  { %11490 = vst [vmem:[#allocation241_spill] sm:$0xff] %v9389_v2  ;;  %11491 = vst [vmem:[#allocation242_spill] sm:$0xff] %v9391_v48  ;;  %v11495_v2 = vld [vmem:[#allocation177_spill] sm:$0xff] }
 0x64d   :  { %3794 = vperm.xlu0 %5809, %v11357_v40  }
 0x64e   :  { %v9394_v10 = vpop.permute.xlu1 %4041  ;;  %v9396_v34 = vpop.permute.xlu0 %4056 }
 0x64f   :  { %11492 = vst [vmem:[#allocation243_spill] sm:$0xff] %v9394_v10  ;;  %11493 = vst [vmem:[#allocation244_spill] sm:$0xff] %v9396_v34  ;;  %v11496_v10 = vld [vmem:[#allocation136_spill] sm:$0xff] }
 0x651   :  { %3802 = vperm.xlu0 %5809, %v8937_v47  }
 0x652   :  { %v9399_v58 = vpop.permute.xlu1 %4051  ;;  %v9401_v61 = vpop.permute.xlu0 %4066 }
 0x653   :  { %11494 = vst [vmem:[#allocation245_spill] sm:$0xff] %v9401_v61 }
 0x655   :  { %3810 = vperm.xlu0 %5809, %v8945_v17  }
 0x656   :  { %v9404_v37 = vpop.permute.xlu1 %4061 }
 0x657   :  { %v4091_v36 = vpop.permute.xlu0 %4090 }
 0x658   :  { %v4150_v49 = vmul.f32 %v4091_v36, %v11495_v2  ;;  %v11501_v2 = vld [vmem:[#allocation38_spill] sm:$0xff] }
 0x65a   :  { %4183 = vrot.lane.b32.xlu1 %v4150_v49, %s6389_s7 }
 0x65b   :  { %v4087_v40 = vpop.permute.xlu1 %4086  ;;  %v4103_v48 = vpop.permute.xlu0 %4102 }
 0x65c   :  { %v4149_v9 = vmul.f32 %v4087_v40, %v11496_v10  ;;  %v4153_v39 = vmul.f32 %v4103_v48, %v11498_v19  ;;  %v11500_v10 = vld [vmem:[#allocation54_spill] sm:$0xff]  ;;  %v11503_v19 = vld [vmem:[#allocation57_spill] sm:$0xff] }
 0x65e   :  { %4181 = vrot.lane.b32.xlu0 %v4149_v9, %s6389_s7 }
 0x65f   :  { %v4095_v47 = vpop.permute.xlu1 %4094  ;;  %v4111_v34 = vpop.permute.xlu0 %4110 }
 0x660   :  { %v4151_v26 = vmul.f32 %v4095_v47, %v11497_v20  ;;  %v4155_v9 = vmul.f32 %v4111_v34, %v11500_v10  ;;  %v11502_v20 = vld [vmem:[#allocation29_spill] sm:$0xff] }
 0x662   :  { %4185 = vrot.lane.b32.xlu0 %v4151_v26, %s6389_s7 }
 0x663   :  { %v4099_v17 = vpop.permute.xlu1 %4098  ;;  %v4119_v61 = vpop.permute.xlu0 %4118 }
 0x664   :  { %v4152_v36 = vmul.f32 %v4099_v17, %v11499_v15  ;;  %v4157_v48 = vmul.f32 %v4119_v61, %v11502_v20  ;;  %v11504_v15 = vld [vmem:[#allocation143_spill] sm:$0xff] }
 0x666   :  { %4187 = vrot.lane.b32.xlu1 %v4152_v36, %s6389_s7  ;;  %4189 = vrot.lane.b32.xlu0 %v4153_v39, %s6389_s7 }
 0x667   :  { %v4107_v49 = vpop.permute.xlu1 %4106  ;;  %v4127_v40 = vpop.permute.xlu0 %4126 }
 0x668   :  { %v4154_v6 = vmul.f32 %v4107_v49, %v11501_v2  ;;  %v4159_v34 = vmul.f32 %v4127_v40, %v11504_v15 }
 0x66a   :  { %4191 = vrot.lane.b32.xlu1 %v4154_v6, %s6389_s7  ;;  %4193 = vrot.lane.b32.xlu0 %v4155_v9, %s6389_s7  ;;  %v11505_v9 = vld [vmem:[#allocation159_spill] sm:$0xff] }
 0x66b   :  { %v4115_v26 = vpop.permute.xlu1 %4114  ;;  %v4135_v47 = vpop.permute.xlu0 %4134 }
 0x66c   :  { %v4156_v17 = vmul.f32 %v4115_v26, %v11503_v19  ;;  %v4161_v10 = vmul.f32 %v4135_v47, %v11505_v9 }
 0x66e   :  { %4195 = vrot.lane.b32.xlu1 %v4156_v17, %s6389_s7  ;;  %4197 = vrot.lane.b32.xlu0 %v4157_v48, %s6389_s7  ;;  %v11507_v17 = vld [vmem:[#allocation156_spill] sm:$0xff] }
 0x66f   :  { %v4123_v39 = vpop.permute.xlu1 %4122  ;;  %v4143_v36 = vpop.permute.xlu0 %4142 }
 0x670   :  { %v4158_v49 = vmul.f32 %v4123_v39, %v8802_v41  ;;  %v4163_v40 = vmul.f32 %v4143_v36, %v11507_v17 }
 0x672   :  { %4199 = vrot.lane.b32.xlu1 %v4158_v49, %s6389_s7  ;;  %4201 = vrot.lane.b32.xlu0 %v4159_v34, %s6389_s7 }
 0x673   :  { %v4131_v6 = vpop.permute.xlu1 %4130 }
 0x674   :  { %v4160_v61 = vmul.f32 %v4131_v6, %v8753_v12  ;;  %v9430_v26 = vpop.permute.xlu0 %2758 }
 0x675   :  { %11506 = vst [vmem:[#allocation246_spill] sm:$0xff] %v9430_v26  ;;  %v6390_v26 = vmov 4  }
 0x676   :  { %4203 = vrot.lane.b32.xlu1 %v4160_v61, %s6389_s7  ;;  %4205 = vrot.lane.b32.xlu0 %v4161_v10, %s6389_s7 }
 0x677   :  { %v4139_v48 = vpop.permute.xlu1 %4138 }
 0x678   :  { %v4162_v39 = vmul.f32 %v4139_v48, %v8899_v23  ;;  %v9436_v15 = vpop.permute.xlu0 %2770 }
 0x679   :  { %11508 = vst [vmem:[#allocation247_spill] sm:$0xff] %v9436_v15 }
 0x67a   :  { %4207 = vrot.lane.b32.xlu1 %v4162_v39, %s6389_s7  ;;  %4209 = vrot.lane.b32.xlu0 %v4163_v40, %s6389_s7 }
 0x67b   :  { %v4147_v47 = vpop.permute.xlu1 %4146 }
 0x67c   :  { %v4164_v34 = vmul.f32 %v4147_v47, %v8858_v42  ;;  %v9441_v49 = vpop.permute.xlu0 %2778 }
 0x67d   :  { %11509 = vst [vmem:[#allocation248_spill] sm:$0xff] %v9441_v49 }
 0x67e   :  { %4211 = vrot.lane.b32.xlu1 %v4164_v34, %s6389_s7  ;;  %4246 = vperm.xlu0 %5809, %v9197_v46  }
 0x680   :  { %v9445_v10 = vpop.permute.xlu0 %2786 }
 0x681   :  { %11510 = vst [vmem:[#allocation249_spill] sm:$0xff] %v9445_v10 }
 0x682   :  { %4250 = vperm.xlu1 %5810, %v9210_v29   ;;  %4258 = vperm.xlu0 %5809, %v9207_v27  }
 0x684   :  { %v9449_v36 = vpop.permute.xlu0 %2794 }
 0x685   :  { %11511 = vst [vmem:[#allocation250_spill] sm:$0xff] %v9449_v36 }
 0x686   :  { %4254 = vperm.xlu1 %5810, %v9217_v14   ;;  %4266 = vperm.xlu0 %5809, %v9220_v50  }
 0x688   :  { %v9453_v6 = vpop.permute.xlu0 %2802 }
 0x689   :  { %11512 = vst [vmem:[#allocation251_spill] sm:$0xff] %v9453_v6 }
 0x68a   :  { %4262 = vperm.xlu1 %5810, %v9232_v32   ;;  %4274 = vperm.xlu0 %5809, %v9229_v25  }
 0x68c   :  { %v9457_v61 = vpop.permute.xlu0 %2810 }
 0x68d   :  { %11513 = vst [vmem:[#allocation252_spill] sm:$0xff] %v9457_v61 }
 0x68e   :  { %4270 = vperm.xlu1 %5810, %v9240_v52   ;;  %4282 = vperm.xlu0 %5809, %v9243_v57  }
 0x690   :  { %v9461_v48 = vpop.permute.xlu0 %2818 }
 0x691   :  { %11514 = vst [vmem:[#allocation253_spill] sm:$0xff] %v9461_v48 }
 0x692   :  { %4278 = vperm.xlu1 %5810, %v9252_v51   ;;  %4290 = vperm.xlu0 %5809, %v9249_v7  }
 0x694   :  { %v9465_v40 = vpop.permute.xlu0 %3254 }
 0x696   :  { %4286 = vperm.xlu1 %5810, %v9259_v3   ;;  %4298 = vperm.xlu0 %5809, %v9262_v31  }
 0x698   :  { %v9469_v39 = vpop.permute.xlu0 %3266 }
 0x69a   :  { %4294 = vperm.xlu1 %5810, %v9272_v35   ;;  %4306 = vperm.xlu0 %5809, %v9269_v11  }
 0x69c   :  { %v9473_v47 = vpop.permute.xlu0 %3274 }
 0x69e   :  { %4302 = vperm.xlu1 %5810, %v9277_v44   ;;  %5812 = vset.pattern.permute.xlu0 %v11376_v21 }
 0x69f   :  { %4346 = vperm.xlu0 %5812, %v9210_v29  }
 0x6a0   :  { %v9478_v34 = vpop.permute.xlu0 %3282 }
 0x6a2   :  { %5811 = vset.pattern.permute.xlu1 %v11376_v21 }
 0x6a3   :  { %4342 = vperm.xlu1 %5811, %v9197_v46   ;;  %4358 = vperm.xlu0 %5812, %v9232_v32  }
 0x6a4   :  { %v9483_v48 = vpop.permute.xlu0 %3290 }
 0x6a5   :  { %11515 = vst [vmem:[#allocation254_spill] sm:$0xff] %v9483_v48 }
 0x6a7   :  { %4350 = vperm.xlu1 %5811, %v9217_v14   ;;  %4366 = vperm.xlu0 %5812, %v9240_v52  }
 0x6a8   :  { %v9487_v61 = vpop.permute.xlu0 %3298 }
 0x6a9   :  { %11516 = vst [vmem:[#allocation255_spill] sm:$0xff] %v9487_v61 }
 0x6ab   :  { %4354 = vperm.xlu1 %5811, %v9207_v27   ;;  %4374 = vperm.xlu0 %5812, %v9252_v51  }
 0x6ac   :  { %v9491_v6 = vpop.permute.xlu0 %3306 }
 0x6ad   :  { %11517 = vst [vmem:[#allocation256_spill] sm:$0xff] %v9491_v6 }
 0x6af   :  { %4362 = vperm.xlu1 %5811, %v9220_v50   ;;  %4382 = vperm.xlu0 %5812, %v9259_v3  }
 0x6b0   :  { %v9495_v21 = vpop.permute.xlu0 %3314 }
 0x6b1   :  { %11518 = vst [vmem:[#allocation257_spill] sm:$0xff] %v9495_v21 }
 0x6b3   :  { %4370 = vperm.xlu1 %5811, %v9229_v25   ;;  %4390 = vperm.xlu0 %5812, %v9272_v35  }
 0x6b4   :  { %v9499_v36 = vpop.permute.xlu0 %3750 }
 0x6b5   :  { %11519 = vst [vmem:[#allocation258_spill] sm:$0xff] %v9499_v36 }
 0x6b7   :  { %4378 = vperm.xlu1 %5811, %v9243_v57   ;;  %4398 = vperm.xlu0 %5812, %v9277_v44  }
 0x6b8   :  { %v9503_v10 = vpop.permute.xlu0 %3762 }
 0x6b9   :  { %11520 = vst [vmem:[#allocation259_spill] sm:$0xff] %v9503_v10 }
 0x6bb   :  { %4386 = vperm.xlu1 %5811, %v9249_v7   ;;  %5813 = vset.pattern.permute.xlu0 %v6390_v26 }
 0x6bc   :  { %v9506_v49 = vpop.permute.xlu0 %3770 }
 0x6bd   :  { %11521 = vst [vmem:[#allocation260_spill] sm:$0xff] %v9506_v49 }
 0x6bf   :  { %4394 = vperm.xlu1 %5811, %v9262_v31  }
 0x6c0   :  { %v9509_v15 = vpop.permute.xlu0 %3778 }
 0x6c1   :  { %11522 = vst [vmem:[#allocation261_spill] sm:$0xff] %v9509_v15 }
 0x6c3   :  { %4402 = vperm.xlu1 %5811, %v9269_v11  }
 0x6c4   :  { %v9512_v42 = vpop.permute.xlu0 %3786 }
 0x6c5   :  { %11523 = vst [vmem:[#allocation262_spill] sm:$0xff] %v9512_v42 }
 0x6c7   :  { %5814 = vset.pattern.permute.xlu1 %v6390_v26 }
 0x6c8   :  { %v9514_v23 = vpop.permute.xlu0 %3794 }
 0x6c9   :  { %11524 = vst [vmem:[#allocation263_spill] sm:$0xff] %v9514_v23 }
 0x6cc   :  { %v9516_v12 = vpop.permute.xlu0 %3802  ;;  %v9520_v41 = vpop.permute.xlu1 %4183 }
 0x6cd   :  { %11525 = vst [vmem:[#allocation264_spill] sm:$0xff] %v9516_v12  ;;  %11527 = vst [vmem:[#allocation266_spill] sm:$0xff] %v9520_v41 }
 0x6d0   :  { %v9518_v20 = vpop.permute.xlu0 %3810 }
 0x6d1   :  { %11526 = vst [vmem:[#allocation265_spill] sm:$0xff] %v9518_v20 }
 0x6d4   :  { %v9522_v19 = vpop.permute.xlu0 %4181 }
 0x6d5   :  { %11528 = vst [vmem:[#allocation267_spill] sm:$0xff] %v9522_v19 }
 0x6d8   :  { %v9524_v2 = vpop.permute.xlu1 %4187  ;;  %v9526_v4 = vpop.permute.xlu0 %4185 }
 0x6d9   :  { %11529 = vst [vmem:[#allocation268_spill] sm:$0xff] %v9524_v2  ;;  %11530 = vst [vmem:[#allocation269_spill] sm:$0xff] %v9526_v4 }
 0x6dc   :  { %v9528_v13 = vpop.permute.xlu1 %4191  ;;  %v9530_v15 = vpop.permute.xlu0 %4189 }
 0x6dd   :  { %11531 = vst [vmem:[#allocation270_spill] sm:$0xff] %v9528_v13  ;;  %11532 = vst [vmem:[#allocation271_spill] sm:$0xff] %v9530_v15 }
 0x6e0   :  { %v9532_v42 = vpop.permute.xlu0 %4193  ;;  %v9534_v26 = vpop.permute.xlu1 %4195 }
 0x6e1   :  { %11533 = vst [vmem:[#allocation272_spill] sm:$0xff] %v9532_v42  ;;  %11534 = vst [vmem:[#allocation273_spill] sm:$0xff] %v9534_v26 }
 0x6e4   :  { %v9536_v23 = vpop.permute.xlu0 %4197  ;;  %v9538_v12 = vpop.permute.xlu1 %4199 }
 0x6e5   :  { %11535 = vst [vmem:[#allocation274_spill] sm:$0xff] %v9536_v23  ;;  %11536 = vst [vmem:[#allocation275_spill] sm:$0xff] %v9538_v12 }
 0x6e8   :  { %v9540_v20 = vpop.permute.xlu0 %4201  ;;  %v9542_v41 = vpop.permute.xlu1 %4203 }
 0x6e9   :  { %11537 = vst [vmem:[#allocation276_spill] sm:$0xff] %v9540_v20  ;;  %11538 = vst [vmem:[#allocation277_spill] sm:$0xff] %v9542_v41 }
 0x6ec   :  { %v9544_v19 = vpop.permute.xlu0 %4205  ;;  %v9546_v2 = vpop.permute.xlu1 %4207 }
 0x6ed   :  { %11539 = vst [vmem:[#allocation278_spill] sm:$0xff] %v9546_v2 }
 0x6f0   :  { %v9548_v4 = vpop.permute.xlu0 %4209  ;;  %v9550_v13 = vpop.permute.xlu1 %4211 }
 0x6f1   :  { %11540 = vst [vmem:[#allocation279_spill] sm:$0xff] %v9550_v13 }
 0x6f9   :  { %v9552_v15 = vpop.permute.xlu0 %4246 }
 0x6fa   :  { %11541 = vst [vmem:[#allocation280_spill] sm:$0xff] %v9552_v15 }
 0x6fd   :  { %v9554_v42 = vpop.permute.xlu1 %4250  ;;  %v9556_v26 = vpop.permute.xlu0 %4258 }
 0x6fe   :  { %11542 = vst [vmem:[#allocation281_spill] sm:$0xff] %v9554_v42  ;;  %11543 = vst [vmem:[#allocation282_spill] sm:$0xff] %v9556_v26 }
 0x701   :  { %v9558_v23 = vpop.permute.xlu1 %4254  ;;  %v9560_v12 = vpop.permute.xlu0 %4266 }
 0x702   :  { %11544 = vst [vmem:[#allocation283_spill] sm:$0xff] %v9558_v23  ;;  %11545 = vst [vmem:[#allocation284_spill] sm:$0xff] %v9560_v12 }
 0x705   :  { %v9562_v20 = vpop.permute.xlu1 %4262  ;;  %v9564_v41 = vpop.permute.xlu0 %4274 }
 0x706   :  { %11546 = vst [vmem:[#allocation285_spill] sm:$0xff] %v9562_v20  ;;  %11547 = vst [vmem:[#allocation286_spill] sm:$0xff] %v9564_v41  ;;  %v11555_v41 = vld [vmem:[#allocation32_spill] sm:$0xff] }
 0x709   :  { %v9566_v30 = vpop.permute.xlu1 %4270  ;;  %v9568_v2 = vpop.permute.xlu0 %4282 }
 0x70a   :  { %11548 = vst [vmem:[#allocation287_spill] sm:$0xff] %v9566_v30  ;;  %11549 = vst [vmem:[#allocation288_spill] sm:$0xff] %v9568_v2 }
 0x70d   :  { %v9570_v8 = vpop.permute.xlu1 %4278  ;;  %v9572_v13 = vpop.permute.xlu0 %4290 }
 0x70e   :  { %11550 = vst [vmem:[#allocation289_spill] sm:$0xff] %v9570_v8  ;;  %11551 = vst [vmem:[#allocation290_spill] sm:$0xff] %v9572_v13  ;;  %v11556_v8 = vld [vmem:[#allocation137_spill] sm:$0xff] }
 0x711   :  { %v9574_v15 = vpop.permute.xlu1 %4286  ;;  %v9576_v42 = vpop.permute.xlu0 %4298 }
 0x712   :  { %11552 = vst [vmem:[#allocation291_spill] sm:$0xff] %v9574_v15  ;;  %11553 = vst [vmem:[#allocation292_spill] sm:$0xff] %v9576_v42  ;;  %v11557_v42 = vld [vmem:[#allocation41_spill] sm:$0xff] }
 0x715   :  { %v9578_v26 = vpop.permute.xlu1 %4294  ;;  %v9580_v23 = vpop.permute.xlu0 %4306 }
 0x716   :  { %11554 = vst [vmem:[#allocation293_spill] sm:$0xff] %v9580_v23 }
 0x719   :  { %v9582_v12 = vpop.permute.xlu1 %4302 }
 0x71a   :  { %v4347_v20 = vpop.permute.xlu0 %4346 }
 0x71b   :  { %v4406_v49 = vmul.f32 %v4347_v20, %v11555_v41 }
 0x71d   :  { %4439 = vrot.lane.b32.xlu1 %v4406_v49, %s6389_s7 }
 0x71e   :  { %v4343_v2 = vpop.permute.xlu1 %4342  ;;  %v4359_v30 = vpop.permute.xlu0 %4358 }
 0x71f   :  { %v4405_v63 = vmul.f32 %v4343_v2, %v11556_v8  ;;  %v4409_v43 = vmul.f32 %v4359_v30, %v11558_v53  ;;  %v11560_v2 = vld [vmem:[#allocation138_spill] sm:$0xff]  ;;  %v11563_v30 = vld [vmem:[#allocation40_spill] sm:$0xff] }
 0x721   :  { %4437 = vrot.lane.b32.xlu0 %v4405_v63, %s6389_s7  ;;  %v11561_v63 = vld [vmem:[#allocation44_spill] sm:$0xff] }
 0x722   :  { %v4351_v13 = vpop.permute.xlu1 %4350  ;;  %v4367_v15 = vpop.permute.xlu0 %4366 }
 0x723   :  { %v4407_v16 = vmul.f32 %v4351_v13, %v11557_v42  ;;  %v4411_v1 = vmul.f32 %v4367_v15, %v11560_v2 }
 0x725   :  { %4441 = vrot.lane.b32.xlu0 %v4407_v16, %s6389_s7  ;;  %v11562_v16 = vld [vmem:[#allocation152_spill] sm:$0xff] }
 0x726   :  { %v4355_v23 = vpop.permute.xlu1 %4354  ;;  %v4375_v10 = vpop.permute.xlu0 %4374 }
 0x727   :  { %v4408_v20 = vmul.f32 %v4355_v23, %v11559_v33  ;;  %v4413_v21 = vmul.f32 %v4375_v10, %v11562_v16 }
 0x729   :  { %4443 = vrot.lane.b32.xlu1 %v4408_v20, %s6389_s7  ;;  %4445 = vrot.lane.b32.xlu0 %v4409_v43, %s6389_s7  ;;  %v11564_v20 = vld [vmem:[#allocation147_spill] sm:$0xff] }
 0x72a   :  { %v4363_v49 = vpop.permute.xlu1 %4362  ;;  %v4383_v36 = vpop.permute.xlu0 %4382 }
 0x72b   :  { %v4410_v28 = vmul.f32 %v4363_v49, %v11561_v63  ;;  %v4415_v15 = vmul.f32 %v4383_v36, %v11564_v20 }
 0x72d   :  { %4447 = vrot.lane.b32.xlu1 %v4410_v28, %s6389_s7  ;;  %4449 = vrot.lane.b32.xlu0 %v4411_v1, %s6389_s7  ;;  %v11565_v1 = vld [vmem:[#allocation162_spill] sm:$0xff] }
 0x72e   :  { %v4371_v13 = vpop.permute.xlu1 %4370  ;;  %v4391_v23 = vpop.permute.xlu0 %4390 }
 0x72f   :  { %v4412_v55 = vmul.f32 %v4371_v13, %v11563_v30  ;;  %v4417_v6 = vmul.f32 %v4391_v23, %v11565_v1 }
 0x731   :  { %4451 = vrot.lane.b32.xlu1 %v4412_v55, %s6389_s7  ;;  %4453 = vrot.lane.b32.xlu0 %v4413_v21, %s6389_s7  ;;  %v11566_v21 = vld [vmem:[#allocation158_spill] sm:$0xff] }
 0x732   :  { %v4379_v43 = vpop.permute.xlu1 %4378  ;;  %v4399_v13 = vpop.permute.xlu0 %4398 }
 0x733   :  { %v4414_v49 = vmul.f32 %v4379_v43, %v8832_v54  ;;  %v4419_v61 = vmul.f32 %v4399_v13, %v11566_v21  ;;  %v11595_v54 = vld [vmem:[#allocation160_spill] sm:$0xff] }
 0x735   :  { %4455 = vrot.lane.b32.xlu1 %v4414_v49, %s6389_s7  ;;  %4457 = vrot.lane.b32.xlu0 %v4415_v15, %s6389_s7 }
 0x736   :  { %v4387_v28 = vpop.permute.xlu1 %4386 }
 0x737   :  { %v4416_v10 = vmul.f32 %v4387_v28, %v8772_v5 }
 0x739   :  { %4459 = vrot.lane.b32.xlu1 %v4416_v10, %s6389_s7  ;;  %4461 = vrot.lane.b32.xlu0 %v4417_v6, %s6389_s7  ;;  %v6391_v6 = vmov 5  }
 0x73a   :  { %v4395_v55 = vpop.permute.xlu1 %4394 }
 0x73b   :  { %v4418_v36 = vmul.f32 %v4395_v55, %v8920_v60 }
 0x73d   :  { %4463 = vrot.lane.b32.xlu1 %v4418_v36, %s6389_s7  ;;  %4465 = vrot.lane.b32.xlu0 %v4419_v61, %s6389_s7  ;;  %v6392_v61 = vmov 6  }
 0x73e   :  { %v4403_v43 = vpop.permute.xlu1 %4402 }
 0x73f   :  { %v4420_v15 = vmul.f32 %v4403_v43, %v8882_v45 }
 0x741   :  { %4467 = vrot.lane.b32.xlu1 %v4420_v15, %s6389_s7  ;;  %4502 = vperm.xlu0 %5813, %v9197_v46  }
 0x745   :  { %4506 = vperm.xlu1 %5814, %v9210_v29   ;;  %4514 = vperm.xlu0 %5813, %v9207_v27  }
 0x749   :  { %4510 = vperm.xlu1 %5814, %v9217_v14   ;;  %4522 = vperm.xlu0 %5813, %v9220_v50  }
 0x74d   :  { %4518 = vperm.xlu1 %5814, %v9232_v32   ;;  %4530 = vperm.xlu0 %5813, %v9229_v25  }
 0x751   :  { %4526 = vperm.xlu1 %5814, %v9240_v52   ;;  %4538 = vperm.xlu0 %5813, %v9243_v57  }
 0x755   :  { %4534 = vperm.xlu1 %5814, %v9252_v51   ;;  %4546 = vperm.xlu0 %5813, %v9249_v7  }
 0x759   :  { %4542 = vperm.xlu1 %5814, %v9259_v3   ;;  %4554 = vperm.xlu0 %5813, %v9262_v31  }
 0x75d   :  { %4550 = vperm.xlu1 %5814, %v9272_v35   ;;  %4562 = vperm.xlu0 %5813, %v9269_v11  }
 0x761   :  { %4558 = vperm.xlu1 %5814, %v9277_v44   ;;  %5816 = vset.pattern.permute.xlu0 %v6391_v6 }
 0x762   :  { %4602 = vperm.xlu0 %5816, %v9210_v29  }
 0x765   :  { %5815 = vset.pattern.permute.xlu1 %v6391_v6 }
 0x766   :  { %4598 = vperm.xlu1 %5815, %v9197_v46   ;;  %4614 = vperm.xlu0 %5816, %v9232_v32  }
 0x76a   :  { %4606 = vperm.xlu1 %5815, %v9217_v14   ;;  %4622 = vperm.xlu0 %5816, %v9240_v52  }
 0x76e   :  { %4610 = vperm.xlu1 %5815, %v9207_v27   ;;  %4630 = vperm.xlu0 %5816, %v9252_v51  }
 0x772   :  { %4618 = vperm.xlu1 %5815, %v9220_v50   ;;  %4638 = vperm.xlu0 %5816, %v9259_v3  }
 0x776   :  { %4626 = vperm.xlu1 %5815, %v9229_v25   ;;  %4646 = vperm.xlu0 %5816, %v9272_v35  }
 0x77a   :  { %4634 = vperm.xlu1 %5815, %v9243_v57   ;;  %4654 = vperm.xlu0 %5816, %v9277_v44  }
 0x77e   :  { %4642 = vperm.xlu1 %5815, %v9249_v7   ;;  %5817 = vset.pattern.permute.xlu0 %v6392_v61 }
 0x782   :  { %4650 = vperm.xlu1 %5815, %v9262_v31  }
 0x786   :  { %4658 = vperm.xlu1 %5815, %v9269_v11  }
 0x78a   :  { %5818 = vset.pattern.permute.xlu1 %v6392_v61 }
 0x78f   :  { %v9650_v49 = vpop.permute.xlu1 %4439 }
 0x790   :  { %11568 = vst [vmem:[#allocation137_spill] sm:$0xff] %v9650_v49 }
 0x793   :  { %v9648_v23 = vpop.permute.xlu0 %4437 }
 0x794   :  { %11567 = vst [vmem:[#allocation32_spill] sm:$0xff] %v9648_v23 }
 0x797   :  { %v9652_v28 = vpop.permute.xlu0 %4441 }
 0x798   :  { %11569 = vst [vmem:[#allocation41_spill] sm:$0xff] %v9652_v28 }
 0x79b   :  { %v9654_v10 = vpop.permute.xlu1 %4443  ;;  %v9656_v13 = vpop.permute.xlu0 %4445 }
 0x79c   :  { %11570 = vst [vmem:[#allocation141_spill] sm:$0xff] %v9654_v10  ;;  %11571 = vst [vmem:[#allocation176_spill] sm:$0xff] %v9656_v13 }
 0x79f   :  { %v9658_v55 = vpop.permute.xlu1 %4447  ;;  %v9660_v36 = vpop.permute.xlu0 %4449 }
 0x7a0   :  { %11572 = vst [vmem:[#allocation138_spill] sm:$0xff] %v9658_v55  ;;  %11573 = vst [vmem:[#allocation44_spill] sm:$0xff] %v9660_v36 }
 0x7a3   :  { %v9662_v43 = vpop.permute.xlu1 %4451  ;;  %v9664_v15 = vpop.permute.xlu0 %4453 }
 0x7a4   :  { %11574 = vst [vmem:[#allocation40_spill] sm:$0xff] %v9662_v43  ;;  %11575 = vst [vmem:[#allocation162_spill] sm:$0xff] %v9664_v15 }
 0x7a7   :  { %v9666_v6 = vpop.permute.xlu1 %4455  ;;  %v9668_v61 = vpop.permute.xlu0 %4457 }
 0x7a8   :  { %11576 = vst [vmem:[#allocation158_spill] sm:$0xff] %v9666_v6  ;;  %11577 = vst [vmem:[#allocation294_spill] sm:$0xff] %v9668_v61 }
 0x7ab   :  { %v9670_v23 = vpop.permute.xlu1 %4459  ;;  %v9672_v49 = vpop.permute.xlu0 %4461 }
 0x7ac   :  { %11578 = vst [vmem:[#allocation295_spill] sm:$0xff] %v9670_v23 }
 0x7af   :  { %v9674_v28 = vpop.permute.xlu1 %4463  ;;  %v9676_v10 = vpop.permute.xlu0 %4465 }
 0x7b0   :  { %11579 = vst [vmem:[#allocation296_spill] sm:$0xff] %v9674_v28 }
 0x7b3   :  { %v9678_v13 = vpop.permute.xlu1 %4467 }
 0x7b4   :  { %11580 = vst [vmem:[#allocation297_spill] sm:$0xff] %v9678_v13 }
 0x7bc   :  { %v9680_v55 = vpop.permute.xlu0 %4502 }
 0x7bd   :  { %11581 = vst [vmem:[#allocation298_spill] sm:$0xff] %v9680_v55 }
 0x7c0   :  { %v9682_v36 = vpop.permute.xlu1 %4506  ;;  %v9684_v43 = vpop.permute.xlu0 %4514 }
 0x7c1   :  { %11582 = vst [vmem:[#allocation299_spill] sm:$0xff] %v9682_v36  ;;  %11583 = vst [vmem:[#allocation300_spill] sm:$0xff] %v9684_v43 }
 0x7c4   :  { %v9686_v15 = vpop.permute.xlu1 %4510  ;;  %v9688_v6 = vpop.permute.xlu0 %4522 }
 0x7c5   :  { %11584 = vst [vmem:[#allocation301_spill] sm:$0xff] %v9686_v15  ;;  %11585 = vst [vmem:[#allocation302_spill] sm:$0xff] %v9688_v6 }
 0x7c8   :  { %v9690_v61 = vpop.permute.xlu1 %4518  ;;  %v9692_v23 = vpop.permute.xlu0 %4530 }
 0x7c9   :  { %11586 = vst [vmem:[#allocation303_spill] sm:$0xff] %v9690_v61  ;;  %11587 = vst [vmem:[#allocation304_spill] sm:$0xff] %v9692_v23 }
 0x7cc   :  { %v9694_v45 = vpop.permute.xlu1 %4526  ;;  %v9696_v28 = vpop.permute.xlu0 %4538 }
 0x7cd   :  { %11588 = vst [vmem:[#allocation305_spill] sm:$0xff] %v9694_v45  ;;  %11589 = vst [vmem:[#allocation306_spill] sm:$0xff] %v9696_v28 }
 0x7d0   :  { %v9698_v60 = vpop.permute.xlu1 %4534  ;;  %v9700_v13 = vpop.permute.xlu0 %4546 }
 0x7d1   :  { %11590 = vst [vmem:[#allocation307_spill] sm:$0xff] %v9698_v60  ;;  %11591 = vst [vmem:[#allocation308_spill] sm:$0xff] %v9700_v13 }
 0x7d4   :  { %v9702_v55 = vpop.permute.xlu1 %4542  ;;  %v9704_v36 = vpop.permute.xlu0 %4554 }
 0x7d5   :  { %11592 = vst [vmem:[#allocation309_spill] sm:$0xff] %v9702_v55  ;;  %11593 = vst [vmem:[#allocation310_spill] sm:$0xff] %v9704_v36 }
 0x7d8   :  { %v9706_v43 = vpop.permute.xlu1 %4550  ;;  %v9708_v15 = vpop.permute.xlu0 %4562 }
 0x7d9   :  { %11594 = vst [vmem:[#allocation311_spill] sm:$0xff] %v9708_v15 }
 0x7dc   :  { %v9710_v6 = vpop.permute.xlu1 %4558 }
 0x7dd   :  { %v4603_v61 = vpop.permute.xlu0 %4602 }
 0x7de   :  { %v4662_v23 = vmul.f32 %v4603_v61, %v8950_v18 }
 0x7e0   :  { %4695 = vrot.lane.b32.xlu1 %v4662_v23, %s6389_s7 }
 0x7e1   :  { %v4599_v28 = vpop.permute.xlu1 %4598  ;;  %v4615_v45 = vpop.permute.xlu0 %4614 }
 0x7e2   :  { %v4661_v60 = vmul.f32 %v4599_v28, %v8766_v59  ;;  %v4665_v20 = vmul.f32 %v4615_v45, %v8790_v56  ;;  %v11596_v28 = vld [vmem:[#allocation183_spill] sm:$0xff] }
 0x7e3   :  { %v11599_v45 = vld [vmem:[#allocation195_spill] sm:$0xff] }
 0x7e4   :  { %4693 = vrot.lane.b32.xlu0 %v4661_v60, %s6389_s7  ;;  %v11597_v60 = vld [vmem:[#allocation142_spill] sm:$0xff] }
 0x7e5   :  { %v4607_v13 = vpop.permute.xlu1 %4606  ;;  %v4623_v55 = vpop.permute.xlu0 %4622 }
 0x7e6   :  { %v4663_v36 = vmul.f32 %v4607_v13, %v8779_v62  ;;  %v4667_v18 = vmul.f32 %v4623_v55, %v11596_v28  ;;  %v11601_v28 = vld [vmem:[#allocation196_spill] sm:$0xff] }
 0x7e8   :  { %4697 = vrot.lane.b32.xlu0 %v4663_v36, %s6389_s7  ;;  %v11598_v36 = vld [vmem:[#allocation187_spill] sm:$0xff] }
 0x7e9   :  { %v4611_v15 = vpop.permute.xlu1 %4610  ;;  %v4631_v5 = vpop.permute.xlu0 %4630 }
 0x7ea   :  { %v4664_v61 = vmul.f32 %v4611_v15, %v11595_v54  ;;  %v4669_v62 = vmul.f32 %v4631_v5, %v11598_v36  ;;  %v11603_v5 = vld [vmem:[#allocation197_spill] sm:$0xff] }
 0x7ec   :  { %4699 = vrot.lane.b32.xlu1 %v4664_v61, %s6389_s7  ;;  %4701 = vrot.lane.b32.xlu0 %v4665_v20, %s6389_s7  ;;  %v11600_v61 = vld [vmem:[#allocation190_spill] sm:$0xff] }
 0x7ed   :  { %v4619_v23 = vpop.permute.xlu1 %4618  ;;  %v4639_v48 = vpop.permute.xlu0 %4638 }
 0x7ee   :  { %v4666_v59 = vmul.f32 %v4619_v23, %v11597_v60  ;;  %v4671_v55 = vmul.f32 %v4639_v48, %v11600_v61 }
 0x7f0   :  { %4703 = vrot.lane.b32.xlu1 %v4666_v59, %s6389_s7  ;;  %4705 = vrot.lane.b32.xlu0 %v4667_v18, %s6389_s7  ;;  %v11602_v18 = vld [vmem:[#allocation45_spill] sm:$0xff] }
 0x7f1   :  { %v4627_v13 = vpop.permute.xlu1 %4626  ;;  %v4647_v20 = vpop.permute.xlu0 %4646 }
 0x7f2   :  { %v4668_v56 = vmul.f32 %v4627_v13, %v11599_v45  ;;  %v4673_v60 = vmul.f32 %v4647_v20, %v11602_v18 }
 0x7f4   :  { %4707 = vrot.lane.b32.xlu1 %v4668_v56, %s6389_s7  ;;  %4709 = vrot.lane.b32.xlu0 %v4669_v62, %s6389_s7  ;;  %v11604_v56 = vld [vmem:[#allocation42_spill] sm:$0xff] }
 0x7f5   :  { %v4635_v15 = vpop.permute.xlu1 %4634  ;;  %v4655_v13 = vpop.permute.xlu0 %4654 }
 0x7f6   :  { %v4670_v23 = vmul.f32 %v4635_v15, %v11601_v28  ;;  %v4675_v45 = vmul.f32 %v4655_v13, %v11604_v56 }
 0x7f8   :  { %4711 = vrot.lane.b32.xlu1 %v4670_v23, %s6389_s7  ;;  %4713 = vrot.lane.b32.xlu0 %v4671_v55, %s6389_s7 }
 0x7f9   :  { %v4643_v59 = vpop.permute.xlu1 %4642 }
 0x7fa   :  { %v4672_v36 = vmul.f32 %v4643_v59, %v11603_v5 }
 0x7fc   :  { %4715 = vrot.lane.b32.xlu1 %v4672_v36, %s6389_s7  ;;  %4717 = vrot.lane.b32.xlu0 %v4673_v60, %s6389_s7  ;;  %v6393_v60 = vmov 7  }
 0x7fd   :  { %v4651_v62 = vpop.permute.xlu1 %4650 }
 0x7fe   :  { %v4674_v48 = vmul.f32 %v4651_v62, %v9068_v0 }
 0x800   :  { %4719 = vrot.lane.b32.xlu1 %v4674_v48, %s6389_s7  ;;  %4721 = vrot.lane.b32.xlu0 %v4675_v45, %s6389_s7 }
 0x801   :  { %v4659_v15 = vpop.permute.xlu1 %4658 }
 0x802   :  { %v4676_v55 = vmul.f32 %v4659_v15, %v9072_v38 }
 0x804   :  { %4723 = vrot.lane.b32.xlu1 %v4676_v55, %s6389_s7  ;;  %4758 = vperm.xlu0 %5817, %v9197_v46   ;;  %v4081_v55 = vmul.f32 %v9399_v58, %v11505_v9 }
 0x808   :  { %4762 = vperm.xlu1 %5818, %v9210_v29   ;;  %4770 = vperm.xlu0 %5817, %v9207_v27  }
 0x80c   :  { %4766 = vperm.xlu1 %5818, %v9217_v14   ;;  %4778 = vperm.xlu0 %5817, %v9220_v50  }
 0x810   :  { %4774 = vperm.xlu1 %5818, %v9232_v32   ;;  %4786 = vperm.xlu0 %5817, %v9229_v25  }
 0x814   :  { %4782 = vperm.xlu1 %5818, %v9240_v52   ;;  %4794 = vperm.xlu0 %5817, %v9243_v57  }
 0x818   :  { %4790 = vperm.xlu1 %5818, %v9252_v51   ;;  %4802 = vperm.xlu0 %5817, %v9249_v7  }
 0x81c   :  { %4798 = vperm.xlu1 %5818, %v9259_v3   ;;  %4810 = vperm.xlu0 %5817, %v9262_v31  }
 0x820   :  { %4806 = vperm.xlu1 %5818, %v9272_v35   ;;  %4818 = vperm.xlu0 %5817, %v9269_v11  }
 0x824   :  { %4814 = vperm.xlu1 %5818, %v9277_v44   ;;  %5820 = vset.pattern.permute.xlu0 %v6393_v60 }
 0x825   :  { %4858 = vperm.xlu0 %5820, %v9210_v29  }
 0x828   :  { %5819 = vset.pattern.permute.xlu1 %v6393_v60  ;;  %v4321_v60 = vmul.f32 %v9578_v26, %v11565_v1 }
 0x829   :  { %4854 = vperm.xlu1 %5819, %v9197_v46   ;;  %4870 = vperm.xlu0 %5820, %v9232_v32  }
 0x82d   :  { %4862 = vperm.xlu1 %5819, %v9217_v14   ;;  %4878 = vperm.xlu0 %5820, %v9240_v52  }
 0x831   :  { %4866 = vperm.xlu1 %5819, %v9207_v27   ;;  %4886 = vperm.xlu0 %5820, %v9252_v51  }
 0x835   :  { %4874 = vperm.xlu1 %5819, %v9220_v50   ;;  %4894 = vperm.xlu0 %5820, %v9259_v3  }
 0x839   :  { %4882 = vperm.xlu1 %5819, %v9229_v25   ;;  %4902 = vperm.xlu0 %5820, %v9272_v35  }
 0x83d   :  { %4890 = vperm.xlu1 %5819, %v9243_v57   ;;  %4910 = vperm.xlu0 %5820, %v9277_v44  }
 0x841   :  { %4898 = vperm.xlu1 %5819, %v9249_v7  }
 0x845   :  { %4906 = vperm.xlu1 %5819, %v9262_v31  }
 0x849   :  { %4914 = vperm.xlu1 %5819, %v9269_v11  }
 0x852   :  { %v9778_v51 = vpop.permute.xlu1 %4695 }
 0x856   :  { %v9776_v14 = vpop.permute.xlu0 %4693 }
 0x857   :  { %11605 = vst [vmem:[#allocation160_spill] sm:$0xff] %v9776_v14 }
 0x85a   :  { %v9780_v50 = vpop.permute.xlu0 %4697 }
 0x85b   :  { %11606 = vst [vmem:[#allocation190_spill] sm:$0xff] %v9780_v50 }
 0x85e   :  { %v9782_v52 = vpop.permute.xlu1 %4699  ;;  %v9784_v25 = vpop.permute.xlu0 %4701 }
 0x85f   :  { %11607 = vst [vmem:[#allocation196_spill] sm:$0xff] %v9782_v52  ;;  %11608 = vst [vmem:[#allocation45_spill] sm:$0xff] %v9784_v25  ;;  %v11653_v25 = vld [vmem:[#allocation99_spill] sm:$0xff] }
 0x862   :  { %v9786_v35 = vpop.permute.xlu1 %4703  ;;  %v9788_v57 = vpop.permute.xlu0 %4705 }
 0x863   :  { %11609 = vst [vmem:[#allocation197_spill] sm:$0xff] %v9786_v35  ;;  %11610 = vst [vmem:[#allocation42_spill] sm:$0xff] %v9788_v57 }
 0x866   :  { %v9790_v46 = vpop.permute.xlu1 %4707  ;;  %v9792_v27 = vpop.permute.xlu0 %4709 }
 0x867   :  { %11611 = vst [vmem:[#allocation312_spill] sm:$0xff] %v9790_v46  ;;  %11612 = vst [vmem:[#allocation313_spill] sm:$0xff] %v9792_v27 }
 0x86a   :  { %v9794_v31 = vpop.permute.xlu1 %4711  ;;  %v9796_v29 = vpop.permute.xlu0 %4713 }
 0x86b   :  { %11613 = vst [vmem:[#allocation314_spill] sm:$0xff] %v9794_v31  ;;  %11614 = vst [vmem:[#allocation315_spill] sm:$0xff] %v9796_v29  ;;  %v4083_v29 = vmul.f32 %v9404_v37, %v11507_v17  ;;  %v4323_v31 = vmul.f32 %v9582_v12, %v11566_v21 }
 0x86d   :  { %v4243_v26 = vadd.f32 %v9548_v4, %v4083_v29 }
 0x86e   :  { %v9798_v32 = vpop.permute.xlu1 %4715  ;;  %v4718_v7 = vpop.permute.xlu0 %4717 }
 0x86f   :  { %11615 = vst [vmem:[#allocation316_spill] sm:$0xff] %v9798_v32  ;;  %v4241_v32 = vadd.f32 %v9544_v19, %v4081_v55  ;;  %v4339_v46 = vadd.f32 %v4323_v31, %v4243_v26  ;;  %v4579_v19 = vmul.f32 %v9710_v6, %v11604_v56  ;;  %v11631_v31 = vld [vmem:[#allocation22_spill] sm:$0xff] }
 0x871   :  { %v4337_v27 = vadd.f32 %v4321_v60, %v4241_v32  ;;  %v4499_v12 = vadd.f32 %v9676_v10, %v4339_v46  ;;  %v11633_v10 = vld [vmem:[#allocation18_spill] sm:$0xff] }
 0x872   :  { %v9800_v3 = vpop.permute.xlu1 %4719  ;;  %v4722_v11 = vpop.permute.xlu0 %4721 }
 0x873   :  { %11616 = vst [vmem:[#allocation317_spill] sm:$0xff] %v9800_v3  ;;  %v4595_v60 = vadd.f32 %v4579_v19, %v4499_v12  ;;  %v11634_v19 = vld [vmem:[#allocation134_spill] sm:$0xff] }
 0x875   :  { %v4755_v4 = vadd.f32 %v4722_v11, %v4595_v60 }
 0x876   :  { %v9802_v44 = vpop.permute.xlu1 %4723 }
 0x877   :  { %11617 = vst [vmem:[#allocation318_spill] sm:$0xff] %v9802_v44 }
 0x87f   :  { %v9804_v36 = vpop.permute.xlu0 %4758 }
 0x883   :  { %v9806_v45 = vpop.permute.xlu1 %4762  ;;  %v9808_v20 = vpop.permute.xlu0 %4770 }
 0x884   :  { %11618 = vst [vmem:[#allocation319_spill] sm:$0xff] %v9808_v20 }
 0x887   :  { %v9810_v23 = vpop.permute.xlu1 %4766  ;;  %v9812_v59 = vpop.permute.xlu0 %4778 }
 0x888   :  { %11619 = vst [vmem:[#allocation320_spill] sm:$0xff] %v9810_v23  ;;  %11620 = vst [vmem:[#allocation321_spill] sm:$0xff] %v9812_v59 }
 0x88b   :  { %v9814_v13 = vpop.permute.xlu1 %4774  ;;  %v9816_v62 = vpop.permute.xlu0 %4786 }
 0x88c   :  { %11621 = vst [vmem:[#allocation322_spill] sm:$0xff] %v9814_v13  ;;  %11622 = vst [vmem:[#allocation323_spill] sm:$0xff] %v9816_v62  ;;  %v11646_v62 = vld [vmem:[#allocation56_spill] sm:$0xff] }
 0x88f   :  { %v9818_v48 = vpop.permute.xlu1 %4782  ;;  %v9820_v15 = vpop.permute.xlu0 %4794 }
 0x890   :  { %11623 = vst [vmem:[#allocation324_spill] sm:$0xff] %v9818_v48  ;;  %11624 = vst [vmem:[#allocation325_spill] sm:$0xff] %v9820_v15  ;;  %v4577_v15 = vmul.f32 %v9706_v43, %v11602_v18  ;;  %v11649_v48 = vld [vmem:[#allocation174_spill] sm:$0xff] }
 0x893   :  { %v9826_v44 = vpop.permute.xlu1 %4790  ;;  %v9828_v3 = vpop.permute.xlu0 %4802 }
 0x894   :  { %11625 = vst [vmem:[#allocation326_spill] sm:$0xff] %v9826_v44  ;;  %11626 = vst [vmem:[#allocation327_spill] sm:$0xff] %v9828_v3  ;;  %v4497_v3 = vadd.f32 %v9672_v49, %v4337_v27 }
 0x896   :  { %v4593_v37 = vadd.f32 %v4577_v15, %v4497_v3 }
 0x897   :  { %v9837_v58 = vpop.permute.xlu1 %4798  ;;  %v9839_v9 = vpop.permute.xlu0 %4810 }
 0x898   :  { %11627 = vst [vmem:[#allocation328_spill] sm:$0xff] %v9837_v58  ;;  %11628 = vst [vmem:[#allocation329_spill] sm:$0xff] %v9839_v9  ;;  %v4753_v32 = vadd.f32 %v4718_v7, %v4593_v37 }
 0x89b   :  { %v4807_v55 = vpop.permute.xlu1 %4806  ;;  %v9845_v17 = vpop.permute.xlu0 %4818 }
 0x89c   :  { %11629 = vst [vmem:[#allocation330_spill] sm:$0xff] %v9845_v17  ;;  %v4833_v43 = vmul.f32 %v4807_v55, %v11417_v24  ;;  %v11635_v55 = vld [vmem:[#allocation26_spill] sm:$0xff]  ;;  %v11642_v17 = vld [vmem:[#allocation185_spill] sm:$0xff] }
 0x89e   :  { %v9849_v58 = vadd.f32 %v4833_v43, %v4753_v32  ;;  %v11636_v32 = vld [vmem:[#allocation49_spill] sm:$0xff] }
 0x89f   :  { %v4815_v9 = vpop.permute.xlu1 %4814 }
 0x8a0   :  { %11630 = vst [vmem:[#allocation331_spill] sm:$0xff] %v9849_v58  ;;  %v4835_v49 = vmul.f32 %v4815_v9, %v11420_v22  ;;  %v4859_v27 = vpop.permute.xlu0 %4858 }
 0x8a1   :  { %v4918_v29 = vmul.f32 %v4859_v27, %v11631_v31  ;;  %v11638_v27 = vld [vmem:[#allocation47_spill] sm:$0xff] }
 0x8a2   :  { %v9853_v6 = vadd.f32 %v4835_v49, %v4755_v4  ;;  %v11637_v4 = vld [vmem:[#allocation20_spill] sm:$0xff] }
 0x8a3   :  { %4951 = vrot.lane.b32.xlu1 %v4918_v29, %s6389_s7 }
 0x8a4   :  { %11632 = vst [vmem:[#allocation22_spill] sm:$0xff] %v9853_v6  ;;  %v4855_v3 = vpop.permute.xlu1 %4854  ;;  %v4871_v15 = vpop.permute.xlu0 %4870 }
 0x8a5   :  { %v4917_v46 = vmul.f32 %v4855_v3, %v11633_v10  ;;  %v4921_v12 = vmul.f32 %v4871_v15, %v11635_v55  ;;  %v11640_v15 = vld [vmem:[#allocation23_spill] sm:$0xff] }
 0x8a7   :  { %4949 = vrot.lane.b32.xlu0 %v4917_v46, %s6389_s7 }
 0x8a8   :  { %v4863_v7 = vpop.permute.xlu1 %4862  ;;  %v4879_v26 = vpop.permute.xlu0 %4878 }
 0x8a9   :  { %v4919_v37 = vmul.f32 %v4863_v7, %v11634_v19  ;;  %v4923_v49 = vmul.f32 %v4879_v26, %v11637_v4  ;;  %v11639_v7 = vld [vmem:[#allocation150_spill] sm:$0xff] }
 0x8ab   :  { %4953 = vrot.lane.b32.xlu0 %v4919_v37, %s6389_s7 }
 0x8ac   :  { %v4867_v9 = vpop.permute.xlu1 %4866  ;;  %v4887_v11 = vpop.permute.xlu0 %4886 }
 0x8ad   :  { %v4920_v43 = vmul.f32 %v4867_v9, %v11636_v32  ;;  %v4925_v37 = vmul.f32 %v4887_v11, %v11639_v7  ;;  %v3317_v11 = vmul.f32 %v9465_v40, %v11633_v10  ;;  %v11647_v40 = vld [vmem:[#allocation129_spill] sm:$0xff] }
 0x8af   :  { %4955 = vrot.lane.b32.xlu1 %v4920_v43, %s6389_s7  ;;  %4957 = vrot.lane.b32.xlu0 %v4921_v12, %s6389_s7  ;;  %v11641_v43 = vld [vmem:[#allocation28_spill] sm:$0xff] }
 0x8b0   :  { %v4875_v60 = vpop.permute.xlu1 %4874  ;;  %v4895_v3 = vpop.permute.xlu0 %4894 }
 0x8b1   :  { %v4922_v29 = vmul.f32 %v4875_v60, %v11638_v27  ;;  %v4927_v26 = vmul.f32 %v4895_v3, %v11641_v43 }
 0x8b3   :  { %4959 = vrot.lane.b32.xlu1 %v4922_v29, %s6389_s7  ;;  %4961 = vrot.lane.b32.xlu0 %v4923_v49, %s6389_s7 }
 0x8b4   :  { %v4883_v46 = vpop.permute.xlu1 %4882  ;;  %v4903_v9 = vpop.permute.xlu0 %4902 }
 0x8b5   :  { %v4924_v6 = vmul.f32 %v4883_v46, %v11640_v15  ;;  %v4929_v29 = vmul.f32 %v4903_v9, %v11417_v24  ;;  %v11643_v46 = vld [vmem:[#allocation63_spill] sm:$0xff]  ;;  %v3319_v9 = vmul.f32 %v11647_v40, %v11634_v19 }
 0x8b7   :  { %4963 = vrot.lane.b32.xlu1 %v4924_v6, %s6389_s7  ;;  %4965 = vrot.lane.b32.xlu0 %v4925_v37, %s6389_s7  ;;  %v11644_v37 = vld [vmem:[#allocation102_spill] sm:$0xff] }
 0x8b8   :  { %v4891_v12 = vpop.permute.xlu1 %4890  ;;  %v4911_v58 = vpop.permute.xlu0 %4910  ;;  %v3077_v44 = vmul.f32 %v11644_v37, %v11556_v8  ;;  %v11652_v37 = vld [vmem:[#allocation170_spill] sm:$0xff] }
 0x8b9   :  { %v4926_v60 = vmul.f32 %v4891_v12, %v11642_v17  ;;  %v11645_v12 = vld [vmem:[#allocation175_spill] sm:$0xff] }
 0x8ba   :  { %v3237_v59 = vadd.f32 %v11649_v48, %v3077_v44  ;;  %v11654_v44 = vld [vmem:[#allocation51_spill] sm:$0xff] }
 0x8bb   :  { %4967 = vrot.lane.b32.xlu1 %v4926_v60, %s6389_s7  ;;  %4969 = vrot.lane.b32.xlu0 %v4927_v26, %s6389_s7  ;;  %v3477_v60 = vadd.f32 %v11645_v12, %v3317_v11  ;;  %v4931_v26 = vmul.f32 %v4911_v58, %v11420_v22  ;;  %v11651_v11 = vld [vmem:[#allocation21_spill] sm:$0xff] }
 0x8bc   :  { %v4899_v49 = vpop.permute.xlu1 %4898  ;;  %v3078_v58 = vmul.f32 %v11651_v11, %v11555_v41  ;;  %v11658_v11 = vld [vmem:[#allocation106_spill] sm:$0xff] }
 0x8bd   :  { %v4928_v6 = vmul.f32 %v4899_v49, %v11643_v46  ;;  %v11648_v49 = vld [vmem:[#allocation140_spill] sm:$0xff]  ;;  %v5029_v52 = vadd.f32 %v3477_v60, %v3237_v59  ;;  %v3080_v23 = vmul.f32 %v11658_v11, %v11559_v33  ;;  %v11660_v59 = vld [vmem:[#allocation9_spill] sm:$0xff] }
 0x8be   :  { %v3318_v35 = vmul.f32 %v11648_v49, %v11631_v31  ;;  %v3320_v49 = vmul.f32 %v9469_v39, %v11636_v32 }
 0x8bf   :  { %4971 = vrot.lane.b32.xlu1 %v4928_v6, %s6389_s7  ;;  %4973 = vrot.lane.b32.xlu0 %v4929_v29, %s6389_s7  ;;  %v11650_v29 = vld [vmem:[#allocation126_spill] sm:$0xff] }
 0x8c0   :  { %v4907_v3 = vpop.permute.xlu1 %4906  ;;  %v3079_v6 = vmul.f32 %v11650_v29, %v11557_v42  ;;  %v3478_v40 = vadd.f32 %v11653_v25, %v3318_v35  ;;  %v11657_v29 = vld [vmem:[#allocation81_spill] sm:$0xff]  ;;  %v11659_v25 = vld [vmem:[#allocation151_spill] sm:$0xff] }
 0x8c1   :  { %v4930_v57 = vmul.f32 %v4907_v3, %v11646_v62  ;;  %v3479_v3 = vadd.f32 %v11652_v37, %v3319_v9  ;;  %v3238_v50 = vadd.f32 %v11657_v29, %v3078_v58  ;;  %v3081_v39 = vmul.f32 %v11659_v25, %v11558_v53  ;;  %v11664_v29 = vld [vmem:[#allocation92_spill] sm:$0xff] }
 0x8c2   :  { %v3322_v58 = vmul.f32 %v9473_v47, %v11638_v27  ;;  %v3240_v11 = vadd.f32 %v11664_v29, %v3080_v23  ;;  %v11669_v23 = vld [vmem:[#allocation111_spill] sm:$0xff] }
 0x8c3   :  { %4975 = vrot.lane.b32.xlu1 %v4930_v57, %s6389_s7  ;;  %4977 = vrot.lane.b32.xlu0 %v4931_v26, %s6389_s7  ;;  %v11655_v57 = vld [vmem:[#allocation168_spill] sm:$0xff]  ;;  %v11656_v26 = vld [vmem:[#allocation153_spill] sm:$0xff]  ;;  %v5030_v9 = vadd.f32 %v3478_v40, %v3238_v50 }
 0x8c4   :  { %v4915_v12 = vpop.permute.xlu1 %4914  ;;  %v3239_v13 = vadd.f32 %v11655_v57, %v3079_v6  ;;  %v3321_v20 = vmul.f32 %v11656_v26, %v11635_v55  ;;  %v11661_v6 = vld [vmem:[#allocation80_spill] sm:$0xff]  ;;  %v11663_v26 = vld [vmem:[#allocation71_spill] sm:$0xff] }
 0x8c5   :  { %v4932_v48 = vmul.f32 %v4915_v12, %v11654_v44  ;;  %v3480_v37 = vadd.f32 %v11661_v6, %v3320_v49  ;;  %v11662_v12 = vld [vmem:[#allocation145_spill] sm:$0xff]  ;;  %v11666_v50 = vld [vmem:[#allocation144_spill] sm:$0xff] }
 0x8c6   :  { %v5031_v35 = vadd.f32 %v3479_v3, %v3239_v13  ;;  %v3481_v60 = vadd.f32 %v11660_v59, %v3321_v20  ;;  %v3323_v57 = vmul.f32 %v11662_v12, %v11637_v4  ;;  %v3083_v20 = vmul.f32 %v11666_v50, %v11560_v2  ;;  %v11667_v13 = vld [vmem:[#allocation43_spill] sm:$0xff]  ;;  %v11668_v49 = vld [vmem:[#allocation89_spill] sm:$0xff]  ;;  %v11676_v50 = vld [vmem:[#allocation254_spill] sm:$0xff] }
 0x8c7   :  { %4979 = vrot.lane.b32.xlu1 %v4932_v48, %s6389_s7  ;;  %5077 = vrot.lane.b32.xlu0 %v5029_v52, %s6394_s9  ;;  %v3241_v48 = vadd.f32 %v11663_v26, %v3081_v39  ;;  %v11665_v52 = vld [vmem:[#allocation101_spill] sm:$0xff]  ;;  %v5032_v40 = vadd.f32 %v3480_v37, %v3240_v11  ;;  %v3482_v25 = vadd.f32 %v11668_v49, %v3322_v58  ;;  %v11673_v37 = vld [vmem:[#allocation103_spill] sm:$0xff]  ;;  %v11675_v11 = vld [vmem:[#allocation154_spill] sm:$0xff] }
 0x8c8   :  { %v3082_v14 = vmul.f32 %v11665_v52, %v11561_v63  ;;  %v3483_v3 = vadd.f32 %v11667_v13, %v3323_v57  ;;  %v3324_v39 = vmul.f32 %v9478_v34, %v11640_v15  ;;  %v3243_v59 = vadd.f32 %v11669_v23, %v3083_v20  ;;  %v11670_v6 = vld [vmem:[#allocation173_spill] sm:$0xff]  ;;  %v11678_v49 = vld [vmem:[#allocation34_spill] sm:$0xff] }
 0x8c9   :  { %v5033_v47 = vadd.f32 %v3481_v60, %v3241_v48  ;;  %v3325_v12 = vmul.f32 %v11670_v6, %v11639_v7  ;;  %v3085_v58 = vmul.f32 %v11673_v37, %v11562_v16  ;;  %v11674_v57 = vld [vmem:[#allocation5_spill] sm:$0xff]  ;;  %v3326_v20 = vmul.f32 %v11676_v50, %v11642_v17 }
 0x8ca   :  { %v5035_v60 = vadd.f32 %v3483_v3, %v3243_v59  ;;  %v3484_v52 = vadd.f32 %v11675_v11, %v3324_v39  ;;  %v11681_v3 = vld [vmem:[#allocation109_spill] sm:$0xff] }
 0x8cb   :  { %5079 = vrot.lane.b32.xlu1 %v5030_v9, %s6394_s9  ;;  %5081 = vrot.lane.b32.xlu0 %v5031_v35, %s6394_s9  ;;  %v11671_v9 = vld [vmem:[#allocation82_spill] sm:$0xff]  ;;  %v11672_v35 = vld [vmem:[#allocation112_spill] sm:$0xff]  ;;  %v3485_v34 = vadd.f32 %v11674_v57, %v3325_v12  ;;  %v3245_v23 = vadd.f32 %v11678_v49, %v3085_v58  ;;  %v11683_v12 = vld [vmem:[#allocation167_spill] sm:$0xff] }
 0x8cc   :  { %v3242_v26 = vadd.f32 %v11671_v9, %v3082_v14  ;;  %v3084_v29 = vmul.f32 %v11672_v35, %v11563_v30  ;;  %v11677_v14 = vld [vmem:[#allocation169_spill] sm:$0xff]  ;;  %v11684_v9 = vld [vmem:[#allocation3_spill] sm:$0xff]  ;;  %v11685_v35 = vld [vmem:[#allocation178_spill] sm:$0xff] }
 0x8cd   :  { %v3327_v13 = vmul.f32 %v11677_v14, %v11641_v43  ;;  %v3329_v37 = vmul.f32 %v11685_v35, %v11417_v24  ;;  %v5037_v57 = vadd.f32 %v3485_v34, %v3245_v23  ;;  %v11686_v58 = vld [vmem:[#allocation198_spill] sm:$0xff]  ;;  %v11688_v49 = vld [vmem:[#allocation52_spill] sm:$0xff]  ;;  %v11693_v34 = vld [vmem:[#allocation11_spill] sm:$0xff] }
 0x8ce   :  { %v5034_v48 = vadd.f32 %v3482_v25, %v3242_v26  ;;  %v11682_v25 = vld [vmem:[#allocation147_spill] sm:$0xff]  ;;  %v3486_v50 = vadd.f32 %v11686_v58, %v3326_v20  ;;  %v11695_v35 = vld [vmem:[#allocation116_spill] sm:$0xff] }
 0x8cf   :  { %5083 = vrot.lane.b32.xlu1 %v5032_v40, %s6394_s9  ;;  %5085 = vrot.lane.b32.xlu0 %v5033_v47, %s6394_s9  ;;  %v11679_v40 = vld [vmem:[#allocation10_spill] sm:$0xff]  ;;  %v11680_v47 = vld [vmem:[#allocation189_spill] sm:$0xff]  ;;  %v3087_v39 = vmul.f32 %v11683_v12, %v11682_v25  ;;  %v3487_v26 = vadd.f32 %v11684_v9, %v3327_v13  ;;  %v11691_v12 = vld [vmem:[#allocation36_spill] sm:$0xff] }
 0x8d0   :  { %v3244_v6 = vadd.f32 %v11679_v40, %v3084_v29  ;;  %v3086_v59 = vmul.f32 %v11681_v3, %v11680_v47  ;;  %v11687_v29 = vld [vmem:[#allocation255_spill] sm:$0xff]  ;;  %v11689_v40 = vld [vmem:[#allocation17_spill] sm:$0xff]  ;;  %v11690_v3 = vld [vmem:[#allocation62_spill] sm:$0xff] }
 0x8d1   :  { %v3328_v14 = vmul.f32 %v11687_v29, %v11643_v46  ;;  %v11692_v25 = vld [vmem:[#allocation113_spill] sm:$0xff]  ;;  %v11694_v20 = vld [vmem:[#allocation191_spill] sm:$0xff] }
 0x8d2   :  { %v5036_v11 = vadd.f32 %v3484_v52, %v3244_v6  ;;  %v3246_v16 = vadd.f32 %v11690_v3, %v3086_v59  ;;  %v3088_v13 = vmul.f32 %v11692_v25, %v11691_v12  ;;  %v3331_v52 = vmul.f32 %v11693_v34, %v11420_v22  ;;  %v11697_v59 = vld [vmem:[#allocation46_spill] sm:$0xff]  ;;  %v11701_v3 = vld [vmem:[#allocation108_spill] sm:$0xff]  ;;  %v11704_v34 = vld [vmem:[#allocation257_spill] sm:$0xff] }
 0x8d3   :  { %5087 = vrot.lane.b32.xlu1 %v5034_v48, %s6394_s9  ;;  %5089 = vrot.lane.b32.xlu0 %v5035_v60, %s6394_s9  ;;  %v3089_v48 = vmul.f32 %v11688_v49, %v11565_v1  ;;  %v3247_v60 = vadd.f32 %v11689_v40, %v3087_v39  ;;  %v3489_v23 = vadd.f32 %v11694_v20, %v3329_v37  ;;  %v11696_v39 = vld [vmem:[#allocation256_spill] sm:$0xff]  ;;  %v11698_v25 = vld [vmem:[#allocation186_spill] sm:$0xff] }
 0x8d4   :  { %v5038_v9 = vadd.f32 %v3486_v50, %v3246_v16  ;;  %v3488_v1 = vadd.f32 %v11695_v35, %v3328_v14  ;;  %v3330_v58 = vmul.f32 %v11696_v39, %v11646_v62  ;;  %v3091_v29 = vmul.f32 %v11697_v59, %v11566_v21  ;;  %v11702_v16 = vld [vmem:[#allocation33_spill] sm:$0xff]  ;;  %v11703_v14 = vld [vmem:[#allocation206_spill] sm:$0xff] }
 0x8d5   :  { %v5039_v6 = vadd.f32 %v3487_v26, %v3247_v60  ;;  %v3249_v49 = vadd.f32 %v11698_v25, %v3089_v48  ;;  %v3491_v26 = vadd.f32 %v11702_v16, %v3331_v52  ;;  %v3332_v21 = vmul.f32 %v11704_v34, %v11654_v44  ;;  %v11705_v48 = vld [vmem:[#allocation258_spill] sm:$0xff]  ;;  %v11707_v39 = vld [vmem:[#allocation205_spill] sm:$0xff] }
 0x8d6   :  { %v3490_v60 = vadd.f32 %v11703_v14, %v3330_v58  ;;  %v3813_v20 = vmul.f32 %v11705_v48, %v11633_v10  ;;  %v11708_v25 = vld [vmem:[#allocation194_spill] sm:$0xff]  ;;  %v11716_v48 = vld [vmem:[#allocation85_spill] sm:$0xff] }
 0x8d7   :  { %5091 = vrot.lane.b32.xlu1 %v5036_v11, %s6394_s9  ;;  %5093 = vrot.lane.b32.xlu0 %v5037_v57, %s6394_s9  ;;  %v11699_v11 = vld [vmem:[#allocation128_spill] sm:$0xff]  ;;  %v11700_v57 = vld [vmem:[#allocation119_spill] sm:$0xff]  ;;  %v5041_v37 = vadd.f32 %v3489_v23, %v3249_v49  ;;  %v11712_v58 = vld [vmem:[#allocation202_spill] sm:$0xff] }
 0x8d8   :  { %v3248_v40 = vadd.f32 %v11699_v11, %v3088_v13  ;;  %v3090_v12 = vmul.f32 %v11701_v3, %v11700_v57  ;;  %v11706_v13 = vld [vmem:[#allocation25_spill] sm:$0xff]  ;;  %v11711_v3 = vld [vmem:[#allocation118_spill] sm:$0xff]  ;;  %v3492_v49 = vadd.f32 %v11712_v58, %v3332_v21 }
 0x8d9   :  { %v3251_v35 = vadd.f32 %v11706_v13, %v3091_v29  ;;  %v11714_v29 = vld [vmem:[#allocation222_spill] sm:$0xff]  ;;  %v11721_v21 = vld [vmem:[#allocation181_spill] sm:$0xff] }
 0x8da   :  { %v5040_v50 = vadd.f32 %v3488_v1, %v3248_v40  ;;  %v3250_v59 = vadd.f32 %v11707_v39, %v3090_v12  ;;  %v11713_v40 = vld [vmem:[#allocation123_spill] sm:$0xff]  ;;  %v3814_v14 = vmul.f32 %v11714_v29, %v11631_v31  ;;  %v11715_v12 = vld [vmem:[#allocation201_spill] sm:$0xff] }
 0x8db   :  { %5095 = vrot.lane.b32.xlu1 %v5038_v9, %s6394_s9  ;;  %5097 = vrot.lane.b32.xlu0 %v5039_v6, %s6394_s9  ;;  %v11709_v9 = vld [vmem:[#allocation66_spill] sm:$0xff]  ;;  %v11710_v6 = vld [vmem:[#allocation35_spill] sm:$0xff]  ;;  %v5043_v23 = vadd.f32 %v3491_v26, %v3251_v35  ;;  %v3973_v16 = vadd.f32 %v11713_v40, %v3813_v20  ;;  %v11722_v35 = vld [vmem:[#allocation120_spill] sm:$0xff] }
 0x8dc   :  { %v3092_v11 = vmul.f32 %v11709_v9, %v11708_v25  ;;  %v3573_v52 = vmul.f32 %v11711_v3, %v11710_v6  ;;  %v5042_v1 = vadd.f32 %v3490_v60, %v3250_v59  ;;  %v11717_v39 = vld [vmem:[#allocation223_spill] sm:$0xff]  ;;  %v3974_v59 = vadd.f32 %v11722_v35, %v3814_v14  ;;  %v11723_v3 = vld [vmem:[#allocation70_spill] sm:$0xff]  ;;  %v11732_v35 = vld [vmem:[#allocation72_spill] sm:$0xff] }
 0x8dd   :  { %v3815_v9 = vmul.f32 %v11717_v39, %v11634_v19  ;;  %v11718_v26 = vld [vmem:[#allocation179_spill] sm:$0xff]  ;;  %v11727_v39 = vld [vmem:[#allocation214_spill] sm:$0xff] }
 0x8de   :  { %v3252_v34 = vadd.f32 %v11715_v12, %v3092_v11  ;;  %v3733_v13 = vadd.f32 %v11716_v48, %v3573_v52  ;;  %v11720_v60 = vld [vmem:[#allocation95_spill] sm:$0xff]  ;;  %v11725_v12 = vld [vmem:[#allocation224_spill] sm:$0xff] }
 0x8df   :  { %5099 = vrot.lane.b32.xlu1 %v5040_v50, %s6394_s9  ;;  %5101 = vrot.lane.b32.xlu0 %v5041_v37, %s6394_s9  ;;  %v11719_v37 = vld [vmem:[#allocation53_spill] sm:$0xff]  ;;  %v3574_v20 = vmul.f32 %v11721_v21, %v11720_v60  ;;  %v3975_v58 = vadd.f32 %v11723_v3, %v3815_v9  ;;  %v11724_v52 = vld [vmem:[#allocation259_spill] sm:$0xff] }
 0x8e0   :  { %v3575_v50 = vmul.f32 %v11719_v37, %v11718_v26  ;;  %v5044_v11 = vadd.f32 %v3492_v49, %v3252_v34  ;;  %v5045_v40 = vadd.f32 %v3973_v16, %v3733_v13  ;;  %v3816_v29 = vmul.f32 %v11724_v52, %v11636_v32  ;;  %v11726_v48 = vld [vmem:[#allocation207_spill] sm:$0xff]  ;;  %v11729_v49 = vld [vmem:[#allocation37_spill] sm:$0xff]  ;;  %v11730_v16 = vld [vmem:[#allocation188_spill] sm:$0xff] }
 0x8e1   :  { %v3734_v25 = vadd.f32 %v11727_v39, %v3574_v20  ;;  %v11728_v37 = vld [vmem:[#allocation115_spill] sm:$0xff]  ;;  %v3577_v14 = vmul.f32 %v11730_v16, %v11729_v49  ;;  %v11731_v34 = vld [vmem:[#allocation2_spill] sm:$0xff]  ;;  %v11734_v52 = vld [vmem:[#allocation208_spill] sm:$0xff] }
 0x8e2   :  { %v3576_v57 = vmul.f32 %v11728_v37, %v11595_v54  ;;  %v3976_v3 = vadd.f32 %v11732_v35, %v3816_v29  ;;  %v11737_v37 = vld [vmem:[#allocation88_spill] sm:$0xff] }
 0x8e3   :  { %5103 = vrot.lane.b32.xlu1 %v5042_v1, %s6394_s9  ;;  %5105 = vrot.lane.b32.xlu0 %v5043_v23, %s6394_s9  ;;  %v3817_v1 = vmul.f32 %v11725_v12, %v11635_v55  ;;  %v3735_v23 = vadd.f32 %v11726_v48, %v3575_v50  ;;  %v5046_v9 = vadd.f32 %v3974_v59, %v3734_v25  ;;  %v11733_v50 = vld [vmem:[#allocation260_spill] sm:$0xff]  ;;  %v11735_v48 = vld [vmem:[#allocation215_spill] sm:$0xff] }
 0x8e4   :  { %v3818_v20 = vmul.f32 %v11733_v50, %v11638_v27  ;;  %v3737_v12 = vadd.f32 %v11734_v52, %v3577_v14  ;;  %v3736_v39 = vadd.f32 %v11735_v48, %v3576_v57  ;;  %v11739_v25 = vld [vmem:[#allocation183_spill] sm:$0xff]  ;;  %v11740_v59 = vld [vmem:[#allocation184_spill] sm:$0xff]  ;;  %v11742_v14 = vld [vmem:[#allocation69_spill] sm:$0xff] }
 0x8e5   :  { %v3977_v13 = vadd.f32 %v11731_v34, %v3817_v1  ;;  %v5047_v21 = vadd.f32 %v3975_v58, %v3735_v23  ;;  %v3579_v58 = vmul.f32 %v11740_v59, %v11739_v25  ;;  %v11741_v1 = vld [vmem:[#allocation79_spill] sm:$0xff]  ;;  %v11743_v57 = vld [vmem:[#allocation261_spill] sm:$0xff]  ;;  %v11744_v50 = vld [vmem:[#allocation226_spill] sm:$0xff] }
 0x8e6   :  { %v5048_v16 = vadd.f32 %v3976_v3, %v3736_v39  ;;  %v3978_v34 = vadd.f32 %v11742_v14, %v3818_v20  ;;  %v3820_v35 = vmul.f32 %v11743_v57, %v11640_v15  ;;  %v3821_v52 = vmul.f32 %v11744_v50, %v11639_v7  ;;  %v11745_v48 = vld [vmem:[#allocation209_spill] sm:$0xff]  ;;  %v11751_v20 = vld [vmem:[#allocation76_spill] sm:$0xff] }
 0x8e7   :  { %5107 = vrot.lane.b32.xlu1 %v5044_v11, %s6394_s9  ;;  %5141 = vrot.lane.b32.xlu0 %v5045_v40, %s6395_s14  ;;  %v11736_v11 = vld [vmem:[#allocation142_spill] sm:$0xff]  ;;  %v11738_v40 = vld [vmem:[#allocation225_spill] sm:$0xff]  ;;  %v5049_v29 = vadd.f32 %v3977_v13, %v3737_v12  ;;  %v11750_v13 = vld [vmem:[#allocation48_spill] sm:$0xff] }
 0x8e8   :  { %v3578_v55 = vmul.f32 %v11737_v37, %v11736_v11  ;;  %v3819_v32 = vmul.f32 %v11738_v40, %v11637_v4  ;;  %v3739_v37 = vadd.f32 %v11745_v48, %v3579_v58  ;;  %v11748_v4 = vld [vmem:[#allocation67_spill] sm:$0xff]  ;;  %v3981_v12 = vadd.f32 %v11751_v20, %v3821_v52  ;;  %v11753_v58 = vld [vmem:[#allocation262_spill] sm:$0xff]  ;;  %v11755_v48 = vld [vmem:[#allocation217_spill] sm:$0xff] }
 0x8e9   :  { %v3822_v57 = vmul.f32 %v11753_v58, %v11642_v17  ;;  %v11759_v52 = vld [vmem:[#allocation75_spill] sm:$0xff] }
 0x8ea   :  { %v3979_v23 = vadd.f32 %v11741_v1, %v3819_v32  ;;  %v11749_v32 = vld [vmem:[#allocation187_spill] sm:$0xff]  ;;  %v11752_v1 = vld [vmem:[#allocation124_spill] sm:$0xff] }
 0x8eb   :  { %5143 = vrot.lane.b32.xlu1 %v5046_v9, %s6395_s14  ;;  %5145 = vrot.lane.b32.xlu0 %v5047_v21, %s6395_s14  ;;  %v11746_v9 = vld [vmem:[#allocation216_spill] sm:$0xff]  ;;  %v11747_v21 = vld [vmem:[#allocation195_spill] sm:$0xff]  ;;  %v3581_v3 = vmul.f32 %v11750_v13, %v11749_v32  ;;  %v3980_v14 = vadd.f32 %v11752_v1, %v3820_v35  ;;  %v11760_v13 = vld [vmem:[#allocation78_spill] sm:$0xff] }
 0x8ec   :  { %v3738_v40 = vadd.f32 %v11746_v9, %v3578_v55  ;;  %v3580_v27 = vmul.f32 %v11748_v4, %v11747_v21  ;;  %v5051_v39 = vadd.f32 %v3979_v23, %v3739_v37  ;;  %v11754_v55 = vld [vmem:[#allocation210_spill] sm:$0xff]  ;;  %v11758_v23 = vld [vmem:[#allocation193_spill] sm:$0xff]  ;;  %v11762_v1 = vld [vmem:[#allocation228_spill] sm:$0xff] }
 0x8ed   :  { %v3741_v50 = vadd.f32 %v11754_v55, %v3581_v3  ;;  %v3982_v3 = vadd.f32 %v11760_v13, %v3822_v57  ;;  %v3825_v58 = vmul.f32 %v11762_v1, %v11417_v24  ;;  %v11763_v55 = vld [vmem:[#allocation211_spill] sm:$0xff]  ;;  %v11806_v24 = vld [vmem:[#allocation241_spill] sm:$0xff] }
 0x8ee   :  { %v5050_v59 = vadd.f32 %v3978_v34, %v3738_v40  ;;  %v3740_v4 = vadd.f32 %v11755_v48, %v3580_v27  ;;  %v3583_v34 = vmul.f32 %v11758_v23, %v11600_v61  ;;  %v11761_v27 = vld [vmem:[#allocation263_spill] sm:$0xff]  ;;  %v11768_v23 = vld [vmem:[#allocation94_spill] sm:$0xff] }
 0x8ef   :  { %5147 = vrot.lane.b32.xlu1 %v5048_v16, %s6395_s14  ;;  %5149 = vrot.lane.b32.xlu0 %v5049_v29, %s6395_s14  ;;  %v11756_v16 = vld [vmem:[#allocation121_spill] sm:$0xff]  ;;  %v11757_v29 = vld [vmem:[#allocation227_spill] sm:$0xff]  ;;  %v5053_v35 = vadd.f32 %v3981_v12, %v3741_v50  ;;  %v3824_v20 = vmul.f32 %v11761_v27, %v11643_v46 }
 0x8f0   :  { %v3582_v9 = vmul.f32 %v11756_v16, %v11601_v28  ;;  %v3823_v7 = vmul.f32 %v11757_v29, %v11641_v43  ;;  %v5052_v40 = vadd.f32 %v3980_v14, %v3740_v4  ;;  %v3743_v48 = vadd.f32 %v11763_v55, %v3583_v34  ;;  %v11767_v14 = vld [vmem:[#allocation91_spill] sm:$0xff]  ;;  %v11769_v34 = vld [vmem:[#allocation264_spill] sm:$0xff] }
 0x8f1   :  { %v3985_v57 = vadd.f32 %v11767_v14, %v3825_v58  ;;  %v3826_v13 = vmul.f32 %v11769_v34, %v11646_v62  ;;  %v11771_v1 = vld [vmem:[#allocation219_spill] sm:$0xff]  ;;  %v11775_v58 = vld [vmem:[#allocation90_spill] sm:$0xff]  ;;  %v11778_v14 = vld [vmem:[#allocation213_spill] sm:$0xff] }
 0x8f2   :  { %v3983_v37 = vadd.f32 %v11759_v52, %v3823_v7  ;;  %v11766_v7 = vld [vmem:[#allocation39_spill] sm:$0xff]  ;;  %v3984_v52 = vadd.f32 %v11768_v23, %v3824_v20 }
 0x8f3   :  { %5151 = vrot.lane.b32.xlu1 %v5050_v59, %s6395_s14  ;;  %5153 = vrot.lane.b32.xlu0 %v5051_v39, %s6395_s14  ;;  %v11764_v59 = vld [vmem:[#allocation218_spill] sm:$0xff]  ;;  %v11765_v39 = vld [vmem:[#allocation117_spill] sm:$0xff]  ;;  %v3585_v12 = vmul.f32 %v11766_v7, %v11602_v18 }
 0x8f4   :  { %v3742_v16 = vadd.f32 %v11764_v59, %v3582_v9  ;;  %v3584_v29 = vmul.f32 %v11765_v39, %v11603_v5  ;;  %v5055_v50 = vadd.f32 %v3983_v37, %v3743_v48  ;;  %v11770_v9 = vld [vmem:[#allocation212_spill] sm:$0xff]  ;;  %v11773_v18 = vld [vmem:[#allocation122_spill] sm:$0xff]  ;;  %v11774_v37 = vld [vmem:[#allocation87_spill] sm:$0xff] }
 0x8f5   :  { %v3745_v27 = vadd.f32 %v11770_v9, %v3585_v12  ;;  %v11776_v39 = vld [vmem:[#allocation93_spill] sm:$0xff] }
 0x8f6   :  { %v5054_v4 = vadd.f32 %v3982_v3, %v3742_v16  ;;  %v3744_v55 = vadd.f32 %v11771_v1, %v3584_v29  ;;  %v3586_v3 = vmul.f32 %v11774_v37, %v9068_v0  ;;  %v3986_v7 = vadd.f32 %v11776_v39, %v3826_v13  ;;  %v11777_v29 = vld [vmem:[#allocation265_spill] sm:$0xff]  ;;  %v11789_v39 = vld [vmem:[#allocation74_spill] sm:$0xff] }
 0x8f7   :  { %5155 = vrot.lane.b32.xlu1 %v5052_v40, %s6395_s14  ;;  %5157 = vrot.lane.b32.xlu0 %v5053_v35, %s6395_s14  ;;  %v11772_v40 = vld [vmem:[#allocation230_spill] sm:$0xff]  ;;  %v3587_v35 = vmul.f32 %v11773_v18, %v11604_v56  ;;  %v5057_v20 = vadd.f32 %v3985_v57, %v3745_v27  ;;  %v3828_v12 = vmul.f32 %v11777_v29, %v11654_v44  ;;  %v11780_v56 = vld [vmem:[#allocation73_spill] sm:$0xff]  ;;  %v11781_v27 = vld [vmem:[#allocation104_spill] sm:$0xff] }
 0x8f8   :  { %v3827_v59 = vmul.f32 %v11772_v40, %v11420_v22  ;;  %v5056_v16 = vadd.f32 %v3984_v52, %v3744_v55  ;;  %v11782_v1 = vld [vmem:[#allocation221_spill] sm:$0xff]  ;;  %v11823_v44 = vld [vmem:[#allocation275_spill] sm:$0xff] }
 0x8f9   :  { %v3747_v23 = vadd.f32 %v11778_v14, %v3587_v35  ;;  %v3988_v52 = vadd.f32 %v11781_v27, %v3828_v12  ;;  %v11783_v40 = vld [vmem:[#allocation177_spill] sm:$0xff]  ;;  %v11791_v12 = vld [vmem:[#allocation12_spill] sm:$0xff]  ;;  %v11792_v14 = vld [vmem:[#allocation235_spill] sm:$0xff] }
 0x8fa   :  { %v3987_v48 = vadd.f32 %v11775_v58, %v3827_v59  ;;  %v11784_v59 = vld [vmem:[#allocation127_spill] sm:$0xff]  ;;  %v11785_v35 = vld [vmem:[#allocation281_spill] sm:$0xff]  ;;  %v11787_v58 = vld [vmem:[#allocation136_spill] sm:$0xff] }
 0x8fb   :  { %5159 = vrot.lane.b32.xlu1 %v5054_v4, %s6395_s14  ;;  %5161 = vrot.lane.b32.xlu0 %v5055_v50, %s6395_s14  ;;  %v11779_v4 = vld [vmem:[#allocation220_spill] sm:$0xff]  ;;  %v3588_v50 = vmul.f32 %v11780_v56, %v9072_v38  ;;  %v4070_v18 = vmul.f32 %v11784_v59, %v11783_v40  ;;  %v4310_v37 = vmul.f32 %v11785_v35, %v11555_v41  ;;  %v11796_v41 = vld [vmem:[#allocation299_spill] sm:$0xff]  ;;  %v11800_v59 = vld [vmem:[#allocation238_spill] sm:$0xff] }
 0x8fc   :  { %v3746_v34 = vadd.f32 %v11779_v4, %v3586_v3  ;;  %v5059_v57 = vadd.f32 %v3987_v48, %v3747_v23  ;;  %v11786_v3 = vld [vmem:[#allocation266_spill] sm:$0xff]  ;;  %v11788_v48 = vld [vmem:[#allocation132_spill] sm:$0xff]  ;;  %v4071_v23 = vmul.f32 %v11792_v14, %v11791_v12  ;;  %v4566_v27 = vmul.f32 %v11796_v41, %v11720_v60  ;;  %v11810_v41 = vld [vmem:[#allocation137_spill] sm:$0xff] }
 0x8fd   :  { %v3748_v13 = vadd.f32 %v11782_v1, %v3588_v50  ;;  %v11793_v4 = vld [vmem:[#allocation38_spill] sm:$0xff]  ;;  %v11795_v50 = vld [vmem:[#allocation280_spill] sm:$0xff]  ;;  %v11798_v1 = vld [vmem:[#allocation237_spill] sm:$0xff] }
 0x8fe   :  { %v5058_v9 = vadd.f32 %v3986_v7, %v3746_v34  ;;  %v11790_v7 = vld [vmem:[#allocation234_spill] sm:$0xff]  ;;  %v11794_v34 = vld [vmem:[#allocation236_spill] sm:$0xff] }
 0x8ff   :  { %5163 = vrot.lane.b32.xlu1 %v5056_v16, %s6395_s14  ;;  %5165 = vrot.lane.b32.xlu0 %v5057_v20, %s6395_s14  ;;  %v5060_v55 = vadd.f32 %v3988_v52, %v3748_v13  ;;  %v4230_v20 = vadd.f32 %v11786_v3, %v4070_v18  ;;  %v4069_v16 = vmul.f32 %v11788_v48, %v11787_v58  ;;  %v11797_v52 = vld [vmem:[#allocation139_spill] sm:$0xff]  ;;  %v11801_v35 = vld [vmem:[#allocation54_spill] sm:$0xff]  ;;  %v11804_v14 = vld [vmem:[#allocation240_spill] sm:$0xff] }
 0x900   :  { %v4072_v29 = vmul.f32 %v11790_v7, %v11789_v39  ;;  %v4074_v56 = vmul.f32 %v11794_v34, %v11793_v4  ;;  %v4073_v13 = vmul.f32 %v11798_v1, %v11797_v52  ;;  %v11802_v3 = vld [vmem:[#allocation239_spill] sm:$0xff]  ;;  %v11803_v7 = vld [vmem:[#allocation182_spill] sm:$0xff]  ;;  %v11805_v34 = vld [vmem:[#allocation29_spill] sm:$0xff] }
 0x901   :  { %v4075_v48 = vmul.f32 %v11802_v3, %v11801_v35  ;;  %v4078_v22 = vmul.f32 %v11804_v14, %v11803_v7  ;;  %v4077_v4 = vmul.f32 %v11806_v24, %v11805_v34  ;;  %v11811_v1 = vld [vmem:[#allocation143_spill] sm:$0xff]  ;;  %v11815_v3 = vld [vmem:[#allocation268_spill] sm:$0xff]  ;;  %v11817_v34 = vld [vmem:[#allocation298_spill] sm:$0xff] }
 0x902   :  { %v11812_v52 = vld [vmem:[#allocation243_spill] sm:$0xff]  ;;  %v4232_v35 = vadd.f32 %v11815_v3, %v4072_v29  ;;  %v11822_v29 = vld [vmem:[#allocation272_spill] sm:$0xff] }
 0x903   :  { %5167 = vrot.lane.b32.xlu1 %v5058_v9, %s6395_s14  ;;  %5169 = vrot.lane.b32.xlu0 %v5059_v57, %s6395_s14  ;;  %v4309_v57 = vmul.f32 %v11795_v50, %v11556_v8  ;;  %v4326_v9 = vadd.f32 %v4310_v37, %v4230_v20  ;;  %v11807_v8 = vld [vmem:[#allocation50_spill] sm:$0xff]  ;;  %v11809_v50 = vld [vmem:[#allocation267_spill] sm:$0xff]  ;;  %v4079_v12 = vmul.f32 %v11812_v52, %v11811_v1 }
 0x904   :  { %v11808_v37 = vld [vmem:[#allocation242_spill] sm:$0xff]  ;;  %v4229_v60 = vadd.f32 %v11809_v50, %v4069_v16  ;;  %v11816_v14 = vld [vmem:[#allocation283_spill] sm:$0xff]  ;;  %v4822_v16 = vmul.f32 %v9806_v45, %v11631_v31  ;;  %v4235_v3 = vadd.f32 %v11822_v29, %v4075_v48  ;;  %v11829_v48 = vld [vmem:[#allocation277_spill] sm:$0xff] }
 0x905   :  { %v4080_v20 = vmul.f32 %v11808_v37, %v11807_v8  ;;  %v4486_v39 = vadd.f32 %v11810_v41, %v4326_v9  ;;  %v4311_v7 = vmul.f32 %v11816_v14, %v11557_v42  ;;  %v4565_v37 = vmul.f32 %v11817_v34, %v11710_v6  ;;  %v11818_v9 = vld [vmem:[#allocation269_spill] sm:$0xff]  ;;  %v11819_v52 = vld [vmem:[#allocation270_spill] sm:$0xff]  ;;  %v11820_v1 = vld [vmem:[#allocation271_spill] sm:$0xff] }
 0x906   :  { %v4325_v24 = vadd.f32 %v4309_v57, %v4229_v60  ;;  %v4231_v50 = vadd.f32 %v11818_v9, %v4071_v23  ;;  %v4234_v41 = vadd.f32 %v11819_v52, %v4074_v56  ;;  %v4238_v42 = vadd.f32 %v11823_v44, %v4078_v22  ;;  %v11824_v57 = vld [vmem:[#allocation32_spill] sm:$0xff]  ;;  %v11826_v45 = vld [vmem:[#allocation282_spill] sm:$0xff]  ;;  %v11827_v23 = vld [vmem:[#allocation285_spill] sm:$0xff] }
 0x907   :  { %5171 = vrot.lane.b32.xlu1 %v5060_v55, %s6395_s14  ;;  %v11799_v55 = vld [vmem:[#allocation57_spill] sm:$0xff]  ;;  %v4582_v8 = vadd.f32 %v4566_v27, %v4486_v39  ;;  %v11825_v39 = vld [vmem:[#allocation274_spill] sm:$0xff]  ;;  %v4312_v34 = vmul.f32 %v11826_v45, %v11559_v33  ;;  %v4313_v56 = vmul.f32 %v11827_v23, %v11558_v53  ;;  %v4821_v22 = vmul.f32 %v9804_v36, %v11633_v10  ;;  %v11832_v53 = vld [vmem:[#allocation287_spill] sm:$0xff] }
 0x908   :  { %v4076_v18 = vmul.f32 %v11800_v59, %v11799_v55  ;;  %v11813_v59 = vld [vmem:[#allocation58_spill] sm:$0xff]  ;;  %v11814_v55 = vld [vmem:[#allocation244_spill] sm:$0xff]  ;;  %v4485_v60 = vadd.f32 %v11824_v57, %v4325_v24  ;;  %v4237_v27 = vadd.f32 %v11825_v39, %v4077_v4  ;;  %v4327_v14 = vadd.f32 %v4311_v7, %v4231_v50 }
 0x909   :  { %v10145_v58 = vmul.f32 %v11814_v55, %v11813_v59  ;;  %v4233_v55 = vadd.f32 %v11820_v1, %v4073_v13  ;;  %v11821_v59 = vld [vmem:[#allocation273_spill] sm:$0xff]  ;;  %v4742_v6 = vadd.f32 %v9778_v51, %v4582_v8  ;;  %v11830_v51 = vld [vmem:[#allocation284_spill] sm:$0xff]  ;;  %v11831_v33 = vld [vmem:[#allocation286_spill] sm:$0xff]  ;;  %v4315_v7 = vmul.f32 %v11832_v53, %v11560_v2 }
 0x90a   :  { %v4236_v40 = vadd.f32 %v11821_v59, %v4076_v18  ;;  %v11828_v13 = vld [vmem:[#allocation301_spill] sm:$0xff]  ;;  %v4581_v1 = vadd.f32 %v4565_v37, %v4485_v60  ;;  %v10172_v59 = vadd.f32 %v11829_v48, %v4080_v20  ;;  %v4314_v4 = vmul.f32 %v11830_v51, %v11561_v63  ;;  %v11833_v9 = vld [vmem:[#allocation276_spill] sm:$0xff]  ;;  %v11844_v51 = vld [vmem:[#allocation190_spill] sm:$0xff] }
 0x90b   :  { %v4567_v18 = vmul.f32 %v11828_v13, %v11718_v26  ;;  %v4838_v44 = vadd.f32 %v4822_v16, %v4742_v6  ;;  %v4316_v8 = vmul.f32 %v11831_v33, %v11563_v30  ;;  %v4239_v26 = vadd.f32 %v11833_v9, %v4079_v12  ;;  %v11834_v37 = vld [vmem:[#allocation41_spill] sm:$0xff]  ;;  %v11835_v52 = vld [vmem:[#allocation160_spill] sm:$0xff]  ;;  %v11838_v30 = vld [vmem:[#allocation303_spill] sm:$0xff] }
 0x90c   :  { %v4487_v50 = vadd.f32 %v11834_v37, %v4327_v14  ;;  %v4741_v36 = vadd.f32 %v11835_v52, %v4581_v1  ;;  %v11836_v20 = vld [vmem:[#allocation288_spill] sm:$0xff]  ;;  %v4328_v57 = vadd.f32 %v4312_v34, %v4232_v35  ;;  %v4329_v60 = vadd.f32 %v4313_v56, %v4233_v55  ;;  %v11840_v14 = vld [vmem:[#allocation141_spill] sm:$0xff]  ;;  %v11845_v53 = vld [vmem:[#allocation302_spill] sm:$0xff] }
 0x90d   :  { %v4318_v29 = vmul.f32 %v11836_v20, %v11680_v47  ;;  %v11837_v63 = vld [vmem:[#allocation300_spill] sm:$0xff]  ;;  %v4569_v39 = vmul.f32 %v11838_v30, %v11729_v49  ;;  %v4330_v1 = vadd.f32 %v4314_v4, %v4234_v41  ;;  %v4332_v47 = vadd.f32 %v4316_v8, %v4236_v40  ;;  %v11842_v34 = vld [vmem:[#allocation289_spill] sm:$0xff]  ;;  %v11848_v40 = vld [vmem:[#allocation319_spill] sm:$0xff] }
 0x90e   :  { %v4568_v6 = vmul.f32 %v11837_v63, %v11595_v54  ;;  %v4583_v2 = vadd.f32 %v4567_v18, %v4487_v50  ;;  %v11839_v45 = vld [vmem:[#allocation320_spill] sm:$0xff]  ;;  %v4837_v23 = vadd.f32 %v4821_v22, %v4741_v36  ;;  %v4488_v13 = vadd.f32 %v11840_v14, %v4328_v57  ;;  %v11846_v22 = vld [vmem:[#allocation305_spill] sm:$0xff]  ;;  %v11849_v8 = vld [vmem:[#allocation26_spill] sm:$0xff] }
 0x90f   :  { %v4823_v12 = vmul.f32 %v11839_v45, %v11634_v19  ;;  %v11841_v55 = vld [vmem:[#allocation152_spill] sm:$0xff]  ;;  %v4334_v33 = vadd.f32 %v4318_v29, %v4238_v42  ;;  %v4571_v9 = vmul.f32 %v11846_v22, %v11739_v25  ;;  %v11851_v36 = vld [vmem:[#allocation147_spill] sm:$0xff]  ;;  %v11853_v20 = vld [vmem:[#allocation138_spill] sm:$0xff] }
 0x910   :  { %v4317_v56 = vmul.f32 %v11842_v34, %v11841_v55  ;;  %v11843_v54 = vld [vmem:[#allocation176_spill] sm:$0xff]  ;;  %v4743_v49 = vadd.f32 %v11844_v51, %v4583_v2  ;;  %v4584_v37 = vadd.f32 %v4568_v6, %v4488_v13  ;;  %v4490_v29 = vadd.f32 %v11853_v20, %v4330_v1  ;;  %v11857_v2 = vld [vmem:[#allocation45_spill] sm:$0xff]  ;;  %v11860_v1 = vld [vmem:[#allocation47_spill] sm:$0xff] }
 0x911   :  { %v4489_v48 = vadd.f32 %v11843_v54, %v4329_v60  ;;  %v11855_v25 = vld [vmem:[#allocation304_spill] sm:$0xff]  ;;  %v11861_v54 = vld [vmem:[#allocation321_spill] sm:$0xff]  ;;  %v11866_v22 = vld [vmem:[#allocation162_spill] sm:$0xff] }
 0x912   :  { %v4839_v52 = vadd.f32 %v4823_v12, %v4743_v49  ;;  %v4572_v60 = vmul.f32 %v11855_v25, %v11747_v21  ;;  %v4333_v6 = vadd.f32 %v4317_v56, %v4237_v27  ;;  %v11856_v30 = vld [vmem:[#allocation196_spill] sm:$0xff]  ;;  %v11859_v12 = vld [vmem:[#allocation307_spill] sm:$0xff]  ;;  %v11869_v20 = vld [vmem:[#allocation306_spill] sm:$0xff] }
 0x913   :  { %v4585_v41 = vadd.f32 %v4569_v39, %v4489_v48  ;;  %v4744_v39 = vadd.f32 %v11856_v30, %v4584_v37  ;;  %v11858_v14 = vld [vmem:[#allocation40_spill] sm:$0xff]  ;;  %v11874_v30 = vld [vmem:[#allocation158_spill] sm:$0xff] }
 0x914   :  { %v4492_v13 = vadd.f32 %v11858_v14, %v4332_v47  ;;  %v11862_v48 = vld [vmem:[#allocation20_spill] sm:$0xff]  ;;  %v4493_v47 = vadd.f32 %v11866_v22, %v4333_v6 }
 0x915   :  { %v4952_v24 = vpop.permute.xlu1 %4951  ;;  %v4745_v45 = vadd.f32 %v11857_v2, %v4585_v41  ;;  %v11863_v51 = vld [vmem:[#allocation324_spill] sm:$0xff]  ;;  %v11875_v2 = vld [vmem:[#allocation294_spill] sm:$0xff] }
 0x916   :  { %v4998_v16 = vadd.f32 %v4952_v24, %v4838_v44  ;;  %v4331_v44 = vadd.f32 %v4315_v7, %v4235_v3  ;;  %v4570_v24 = vmul.f32 %v11845_v53, %v11736_v11  ;;  %v11847_v3 = vld [vmem:[#allocation49_spill] sm:$0xff]  ;;  %v11850_v7 = vld [vmem:[#allocation322_spill] sm:$0xff]  ;;  %v11854_v11 = vld [vmem:[#allocation44_spill] sm:$0xff]  ;;  %v4827_v21 = vmul.f32 %v11863_v51, %v11862_v48 }
 0x917   :  { %v4824_v4 = vmul.f32 %v11848_v40, %v11847_v3  ;;  %v4825_v50 = vmul.f32 %v11850_v7, %v11849_v8  ;;  %v11864_v49 = vld [vmem:[#allocation36_spill] sm:$0xff]  ;;  %v4588_v41 = vadd.f32 %v4572_v60, %v4492_v13  ;;  %v11868_v7 = vld [vmem:[#allocation42_spill] sm:$0xff] }
 0x918   :  { %5207 = vrot.lane.b32.xlu1 %v4998_v16, %s6389_s7  ;;  %v11852_v16 = vld [vmem:[#allocation291_spill] sm:$0xff]  ;;  %v4491_v57 = vadd.f32 %v11854_v11, %v4331_v44  ;;  %v4586_v55 = vadd.f32 %v4570_v24, %v4490_v29  ;;  %v4826_v44 = vmul.f32 %v11861_v54, %v11860_v1  ;;  %v4574_v29 = vmul.f32 %v11869_v20, %v11601_v28 }
 0x919   :  { %v4950_v35 = vpop.permute.xlu0 %4949  ;;  %v4319_v42 = vmul.f32 %v11852_v16, %v11851_v36  ;;  %v4840_v27 = vadd.f32 %v4824_v4, %v4744_v39  ;;  %v4841_v56 = vadd.f32 %v4825_v50, %v4745_v45  ;;  %v11870_v4 = vld [vmem:[#allocation309_spill] sm:$0xff]  ;;  %v4494_v39 = vadd.f32 %v11874_v30, %v4334_v33  ;;  %v11888_v20 = vld [vmem:[#allocation315_spill] sm:$0xff] }
 0x91a   :  { %v4997_v18 = vadd.f32 %v4950_v35, %v4837_v23  ;;  %v4573_v35 = vmul.f32 %v11859_v12, %v11749_v32  ;;  %v4587_v34 = vadd.f32 %v4571_v9, %v4491_v57  ;;  %v11867_v9 = vld [vmem:[#allocation197_spill] sm:$0xff]  ;;  %v4575_v50 = vmul.f32 %v11870_v4, %v11600_v61  ;;  %v11871_v57 = vld [vmem:[#allocation323_spill] sm:$0xff]  ;;  %v11876_v61 = vld [vmem:[#allocation312_spill] sm:$0xff] }
 0x91b   :  { %v4335_v37 = vadd.f32 %v4319_v42, %v4239_v26  ;;  %v4746_v40 = vadd.f32 %v11867_v9, %v4586_v55  ;;  %v4828_v25 = vmul.f32 %v11871_v57, %v11640_v15  ;;  %v11872_v26 = vld [vmem:[#allocation150_spill] sm:$0xff]  ;;  %v11877_v12 = vld [vmem:[#allocation119_spill] sm:$0xff]  ;;  %v11890_v57 = vld [vmem:[#allocation293_spill] sm:$0xff] }
 0x91c   :  { %5205 = vrot.lane.b32.xlu0 %v4997_v18, %s6389_s7  ;;  %v11865_v18 = vld [vmem:[#allocation290_spill] sm:$0xff]  ;;  %v4589_v11 = vadd.f32 %v4573_v35, %v4493_v47  ;;  %v11878_v35 = vld [vmem:[#allocation292_spill] sm:$0xff]  ;;  %v11886_v9 = vld [vmem:[#allocation295_spill] sm:$0xff] }
 0x91d   :  { %v4954_v63 = vpop.permute.xlu0 %4953  ;;  %v4320_v53 = vmul.f32 %v11865_v18, %v11864_v49  ;;  %v11873_v42 = vld [vmem:[#allocation326_spill] sm:$0xff]  ;;  %v4495_v28 = vadd.f32 %v11875_v2, %v4335_v37  ;;  %v4322_v55 = vmul.f32 %v11878_v35, %v11877_v12  ;;  %v11881_v18 = vld [vmem:[#allocation325_spill] sm:$0xff]  ;;  %v11883_v37 = vld [vmem:[#allocation192_spill] sm:$0xff] }
 0x91e   :  { %v4999_v23 = vadd.f32 %v4954_v63, %v4839_v52  ;;  %v4747_v52 = vadd.f32 %v11868_v7, %v4587_v34  ;;  %v4829_v60 = vmul.f32 %v11873_v42, %v11872_v26  ;;  %v4842_v63 = vadd.f32 %v4826_v44, %v4746_v40  ;;  %v11879_v34 = vld [vmem:[#allocation313_spill] sm:$0xff]  ;;  %v11880_v44 = vld [vmem:[#allocation308_spill] sm:$0xff] }
 0x91f   :  { %v4336_v45 = vadd.f32 %v4320_v53, %v10172_v59  ;;  %v4749_v54 = vadd.f32 %v11879_v34, %v4589_v11  ;;  %v4591_v33 = vadd.f32 %v4575_v50, %v4495_v28  ;;  %v4830_v59 = vmul.f32 %v11881_v18, %v11642_v17  ;;  %v11882_v53 = vld [vmem:[#allocation328_spill] sm:$0xff]  ;;  %v11889_v11 = vld [vmem:[#allocation194_spill] sm:$0xff]  ;;  %v11893_v28 = vld [vmem:[#allocation279_spill] sm:$0xff] }
 0x920   :  { %5209 = vrot.lane.b32.xlu0 %v4999_v23, %s6389_s7  ;;  %v4843_v6 = vadd.f32 %v4827_v21, %v4747_v52  ;;  %v4748_v23 = vadd.f32 %v11876_v61, %v4588_v41  ;;  %v4576_v21 = vmul.f32 %v11880_v44, %v11603_v5  ;;  %v4831_v22 = vmul.f32 %v11882_v53, %v11641_v43  ;;  %v11884_v41 = vld [vmem:[#allocation245_spill] sm:$0xff]  ;;  %v11894_v61 = vld [vmem:[#allocation296_spill] sm:$0xff] }
 0x921   :  { %v4956_v32 = vpop.permute.xlu1 %4955  ;;  %v4958_v24 = vpop.permute.xlu0 %4957  ;;  %v4845_v47 = vadd.f32 %v4829_v60, %v4749_v54  ;;  %v4496_v40 = vadd.f32 %v11886_v9, %v4336_v45  ;;  %v11891_v60 = vld [vmem:[#allocation310_spill] sm:$0xff]  ;;  %v11895_v12 = vld [vmem:[#allocation316_spill] sm:$0xff]  ;;  %v11897_v44 = vld [vmem:[#allocation329_spill] sm:$0xff] }
 0x922   :  { %v5000_v36 = vadd.f32 %v4956_v32, %v4840_v27  ;;  %v5001_v16 = vadd.f32 %v4958_v24, %v4841_v56  ;;  %v4590_v56 = vadd.f32 %v4574_v29, %v4494_v39  ;;  %v4844_v49 = vadd.f32 %v4828_v25, %v4748_v23  ;;  %v11885_v24 = vld [vmem:[#allocation278_spill] sm:$0xff]  ;;  %v11898_v18 = vld [vmem:[#allocation297_spill] sm:$0xff] }
 0x923   :  { %v4084_v32 = vmul.f32 %v11884_v41, %v11883_v37  ;;  %v4242_v5 = vadd.f32 %v11885_v24, %v10145_v58  ;;  %v4751_v29 = vadd.f32 %v11888_v20, %v4591_v33  ;;  %v4324_v25 = vmul.f32 %v11890_v57, %v11889_v11  ;;  %v11892_v58 = vld [vmem:[#allocation327_spill] sm:$0xff]  ;;  %v11899_v53 = vld [vmem:[#allocation317_spill] sm:$0xff] }
 0x924   :  { %5211 = vrot.lane.b32.xlu1 %v5000_v36, %s6389_s7  ;;  %5213 = vrot.lane.b32.xlu0 %v5001_v16, %s6389_s7  ;;  %v11887_v36 = vld [vmem:[#allocation314_spill] sm:$0xff]  ;;  %v4832_v30 = vmul.f32 %v11892_v58, %v11643_v46  ;;  %v11900_v41 = vld [vmem:[#allocation331_spill] sm:$0xff] }
 0x925   :  { %v4960_v14 = vpop.permute.xlu1 %4959  ;;  %v4962_v13 = vpop.permute.xlu0 %4961  ;;  %v4750_v16 = vadd.f32 %v11887_v36, %v4590_v56  ;;  %v4338_v42 = vadd.f32 %v4322_v55, %v4242_v5  ;;  %v4847_v2 = vadd.f32 %v4831_v22, %v4751_v29  ;;  %v4244_v45 = vadd.f32 %v11893_v28, %v4084_v32  ;;  %v11901_v5 = vld [vmem:[#allocation51_spill] sm:$0xff]  ;;  %v11903_v36 = vld [vmem:[#allocation318_spill] sm:$0xff] }
 0x926   :  { %v5002_v51 = vadd.f32 %v4960_v14, %v4842_v63  ;;  %v5003_v27 = vadd.f32 %v4962_v13, %v4843_v6  ;;  %v4578_v63 = vmul.f32 %v11891_v60, %v9068_v0  ;;  %v4592_v6 = vadd.f32 %v4576_v21, %v4496_v40  ;;  %v11904_v29 = vld [vmem:[#allocation22_spill] sm:$0xff] }
 0x927   :  { %v4846_v39 = vadd.f32 %v4830_v59, %v4750_v16  ;;  %v4498_v23 = vadd.f32 %v11894_v61, %v4338_v42  ;;  %v4340_v34 = vadd.f32 %v4324_v25, %v4244_v45  ;;  %v4834_v21 = vmul.f32 %v11897_v44, %v11646_v62 }
 0x928   :  { %5215 = vrot.lane.b32.xlu1 %v5002_v51, %s6389_s7  ;;  %5217 = vrot.lane.b32.xlu0 %v5003_v27, %s6389_s7  ;;  %v4752_v35 = vadd.f32 %v11895_v12, %v4592_v6  ;;  %v11896_v51 = vld [vmem:[#allocation311_spill] sm:$0xff] }
 0x929   :  { %v4964_v7 = vpop.permute.xlu1 %4963  ;;  %v4966_v52 = vpop.permute.xlu0 %4965  ;;  %v4594_v54 = vadd.f32 %v4578_v63, %v4498_v23  ;;  %v4580_v27 = vmul.f32 %v11896_v51, %v9072_v38  ;;  %v4500_v59 = vadd.f32 %v11898_v18, %v4340_v34  ;;  %v11902_v38 = vld [vmem:[#allocation330_spill] sm:$0xff] }
 0x92a   :  { %v5004_v4 = vadd.f32 %v4964_v7, %v4844_v49  ;;  %v5005_v50 = vadd.f32 %v4966_v52, %v4845_v47  ;;  %v4848_v56 = vadd.f32 %v4832_v30, %v4752_v35  ;;  %v4836_v9 = vmul.f32 %v11902_v38, %v11901_v5  ;;  %v11909_v38 = vld [vmem:[#allocation246_spill] sm:$0xff] }
 0x92b   :  { %v4754_v22 = vadd.f32 %v11899_v53, %v4594_v54  ;;  %v4596_v24 = vadd.f32 %v4580_v27, %v4500_v59  ;;  %v11905_v59 = vld [vmem:[#allocation55_spill] sm:$0xff] }
 0x92c   :  { %5219 = vrot.lane.b32.xlu1 %v5004_v4, %s6389_s7  ;;  %5221 = vrot.lane.b32.xlu0 %v5005_v50, %s6389_s7  ;;  %v2822_v53 = vmul.f32 %v11905_v59, %v11631_v31  ;;  %v11916_v59 = vld [vmem:[#allocation172_spill] sm:$0xff] }
 0x92d   :  { %v4968_v14 = vpop.permute.xlu1 %4967  ;;  %v4970_v13 = vpop.permute.xlu0 %4969  ;;  %v4850_v40 = vadd.f32 %v4834_v21, %v4754_v22  ;;  %v4756_v16 = vadd.f32 %v11903_v36, %v4596_v24  ;;  %v11906_v22 = vld [vmem:[#allocation177_spill] sm:$0xff]  ;;  %v11911_v36 = vld [vmem:[#allocation136_spill] sm:$0xff] }
 0x92e   :  { %v5006_v55 = vadd.f32 %v4968_v14, %v4846_v39  ;;  %v5007_v0 = vadd.f32 %v4970_v13, %v4847_v2 }
 0x92f   :  { %v4852_v50 = vadd.f32 %v4836_v9, %v4756_v16  ;;  %v2821_v9 = vmul.f32 %v11909_v38, %v11633_v10  ;;  %v11912_v16 = vld [vmem:[#allocation229_spill] sm:$0xff] }
 0x930   :  { %5223 = vrot.lane.b32.xlu1 %v5006_v55, %s6389_s7  ;;  %5225 = vrot.lane.b32.xlu0 %v5007_v0, %s6389_s7 }
 0x931   :  { %v4972_v33 = vpop.permute.xlu1 %4971  ;;  %v4974_v49 = vpop.permute.xlu0 %4973 }
 0x932   :  { %v5008_v47 = vadd.f32 %v4972_v33, %v4848_v56  ;;  %v5009_v32 = vadd.f32 %v4974_v49, %v11900_v41 }
 0x934   :  { %5227 = vrot.lane.b32.xlu1 %v5008_v47, %s6389_s7  ;;  %5229 = vrot.lane.b32.xlu0 %v5009_v32, %s6389_s7  ;;  %v11907_v47 = vld [vmem:[#allocation19_spill] sm:$0xff] }
 0x935   :  { %v4976_v7 = vpop.permute.xlu1 %4975  ;;  %v4978_v52 = vpop.permute.xlu0 %4977  ;;  %v2582_v41 = vmul.f32 %v11907_v47, %v11906_v22  ;;  %v11908_v32 = vld [vmem:[#allocation83_spill] sm:$0xff]  ;;  %v11917_v22 = vld [vmem:[#allocation12_spill] sm:$0xff]  ;;  %v11918_v47 = vld [vmem:[#allocation125_spill] sm:$0xff] }
 0x936   :  { %v5010_v20 = vadd.f32 %v4976_v7, %v4850_v40  ;;  %v5011_v4 = vadd.f32 %v4978_v52, %v11904_v29  ;;  %v2982_v24 = vadd.f32 %v11908_v32, %v2822_v53  ;;  %v11910_v7 = vld [vmem:[#allocation149_spill] sm:$0xff] }
 0x937   :  { %v2742_v52 = vadd.f32 %v11910_v7, %v2582_v41  ;;  %v2583_v41 = vmul.f32 %v11918_v47, %v11917_v22  ;;  %v11928_v47 = vld [vmem:[#allocation248_spill] sm:$0xff] }
 0x938   :  { %5231 = vrot.lane.b32.xlu1 %v5010_v20, %s6389_s7  ;;  %5233 = vrot.lane.b32.xlu0 %v5011_v4, %s6389_s7  ;;  %v2581_v20 = vmul.f32 %v11912_v16, %v11911_v36  ;;  %v11920_v36 = vld [vmem:[#allocation247_spill] sm:$0xff] }
 0x939   :  { %v4980_v11 = vpop.permute.xlu1 %4979  ;;  %v5078_v57 = vpop.permute.xlu0 %5077  ;;  %v5014_v4 = vadd.f32 %v2982_v24, %v2742_v52  ;;  %v11919_v24 = vld [vmem:[#allocation97_spill] sm:$0xff]  ;;  %v2824_v16 = vmul.f32 %v11920_v36, %v11847_v3  ;;  %v11926_v3 = vld [vmem:[#allocation139_spill] sm:$0xff] }
 0x93a   :  { %v5012_v25 = vadd.f32 %v4980_v11, %v4852_v50  ;;  %v11914_v50 = vld [vmem:[#allocation100_spill] sm:$0xff]  ;;  %v11915_v11 = vld [vmem:[#allocation31_spill] sm:$0xff]  ;;  %v2741_v53 = vadd.f32 %v11916_v59, %v2581_v20  ;;  %v11922_v20 = vld [vmem:[#allocation13_spill] sm:$0xff] }
 0x93b   :  { %v2981_v31 = vadd.f32 %v11914_v50, %v2821_v9 }
 0x93c   :  { %5235 = vrot.lane.b32.xlu1 %v5012_v25, %s6389_s7  ;;  %v2823_v25 = vmul.f32 %v11915_v11, %v11634_v19  ;;  %v11924_v11 = vld [vmem:[#allocation165_spill] sm:$0xff] }
 0x93d   :  { %v5080_v42 = vpop.permute.xlu1 %5079  ;;  %v10288_v60 = vpop.permute.xlu0 %5081  ;;  %v5013_v9 = vadd.f32 %v2981_v31, %v2741_v53  ;;  %v2743_v59 = vadd.f32 %v11924_v11, %v2583_v41  ;;  %v11925_v31 = vld [vmem:[#allocation27_spill] sm:$0xff] }
 0x93e   :  { %v5254_v10 = vsel %vm193_vm0, %v5014_v4, %v5080_v42  ;;  %v2983_v52 = vadd.f32 %v11919_v24, %v2823_v25  ;;  %v11921_v42 = vld [vmem:[#allocation74_spill] sm:$0xff]  ;;  %v2827_v53 = vmul.f32 %v11925_v31, %v11862_v48  ;;  %v11933_v48 = vld [vmem:[#allocation57_spill] sm:$0xff]  ;;  %v11934_v11 = vld [vmem:[#allocation155_spill] sm:$0xff] }
 0x93f   :  { %v2584_v4 = vmul.f32 %v11922_v20, %v11921_v42  ;;  %v5253_v25 = vsel %vm193_vm0, %v5013_v9, %v5078_v57  ;;  %v11931_v57 = vld [vmem:[#allocation54_spill] sm:$0xff]  ;;  %v11932_v9 = vld [vmem:[#allocation60_spill] sm:$0xff]  ;;  %v2588_v31 = vmul.f32 %v11934_v11, %v11933_v48 }
 0x940   :  { %v5015_v36 = vadd.f32 %v2983_v52, %v2743_v59  ;;  %v11938_v52 = vld [vmem:[#allocation7_spill] sm:$0xff] }
 0x941   :  { %v10290_v63 = vpop.permute.xlu1 %5083  ;;  %v10292_v6 = vpop.permute.xlu0 %5085 }
 0x945   :  { %v10294_v58 = vpop.permute.xlu1 %5087  ;;  %v10296_v30 = vpop.permute.xlu0 %5089 }
 0x949   :  { %v10298_v39 = vpop.permute.xlu1 %5091  ;;  %v10300_v2 = vpop.permute.xlu0 %5093 }
 0x94d   :  { %v10302_v28 = vpop.permute.xlu1 %5095  ;;  %v10304_v45 = vpop.permute.xlu0 %5097 }
 0x951   :  { %v10306_v61 = vpop.permute.xlu1 %5099  ;;  %v10308_v23 = vpop.permute.xlu0 %5101 }
 0x955   :  { %v10310_v14 = vpop.permute.xlu1 %5103  ;;  %v10314_v12 = vpop.permute.xlu0 %5105 }
 0x959   :  { %v10312_v13 = vpop.permute.xlu1 %5107  ;;  %v5142_v55 = vpop.permute.xlu0 %5141 }
 0x95d   :  { %v5144_v35 = vpop.permute.xlu1 %5143  ;;  %v5146_v34 = vpop.permute.xlu0 %5145 }
 0x95e   :  { %v5271_v32 = vsel %vm5269_vm4, %v5254_v10, %v5144_v35  ;;  %v11923_v35 = vld [vmem:[#allocation148_spill] sm:$0xff]  ;;  %v11927_v10 = vld [vmem:[#allocation61_spill] sm:$0xff] }
 0x95f   :  { %v2825_v50 = vmul.f32 %v11923_v35, %v11849_v8  ;;  %v2585_v22 = vmul.f32 %v11927_v10, %v11926_v3  ;;  %v11930_v8 = vld [vmem:[#allocation164_spill] sm:$0xff]  ;;  %v2587_v35 = vmul.f32 %v11932_v9, %v11931_v57  ;;  %v11935_v3 = vld [vmem:[#allocation38_spill] sm:$0xff]  ;;  %v11936_v10 = vld [vmem:[#allocation163_spill] sm:$0xff] }
 0x960   :  { %v2984_v20 = vadd.f32 %v11930_v8, %v2824_v16  ;;  %v11939_v16 = vld [vmem:[#allocation133_spill] sm:$0xff]  ;;  %v11942_v8 = vld [vmem:[#allocation84_spill] sm:$0xff] }
 0x961   :  { %v10316_v0 = vpop.permute.xlu1 %5147  ;;  %v10320_v51 = vpop.permute.xlu0 %5149  ;;  %v2744_v59 = vadd.f32 %v11939_v16, %v2584_v4  ;;  %v11949_v16 = vld [vmem:[#allocation146_spill] sm:$0xff] }
 0x963   :  { %v5016_v11 = vadd.f32 %v2984_v20, %v2744_v59  ;;  %v11951_v59 = vld [vmem:[#allocation4_spill] sm:$0xff] }
 0x965   :  { %v10318_v54 = vpop.permute.xlu1 %5151  ;;  %v10324_v44 = vpop.permute.xlu0 %5153  ;;  %v5256_v20 = vsel %vm193_vm0, %v5016_v11, %v10290_v63 }
 0x969   :  { %v10322_v27 = vpop.permute.xlu1 %5155  ;;  %v10328_v56 = vpop.permute.xlu0 %5157 }
 0x96d   :  { %v10326_v21 = vpop.permute.xlu1 %5159  ;;  %v10332_v49 = vpop.permute.xlu0 %5161 }
 0x971   :  { %v10330_v33 = vpop.permute.xlu1 %5163  ;;  %v10343_v40 = vpop.permute.xlu0 %5165 }
 0x975   :  { %v10334_v18 = vpop.permute.xlu1 %5167  ;;  %v10358_v38 = vpop.permute.xlu0 %5169 }
 0x979   :  { %v10348_v29 = vpop.permute.xlu1 %5171 }
 0x97a   :  { %11913 = vst [vmem:[#allocation18_spill] sm:$0xff] %v10348_v29  ;;  %v2586_v29 = vmul.f32 %v11936_v10, %v11935_v3  ;;  %v11944_v3 = vld [vmem:[#allocation143_spill] sm:$0xff]  ;;  %v11945_v10 = vld [vmem:[#allocation96_spill] sm:$0xff] }
 0x98a   :  { %v5208_v7 = vpop.permute.xlu1 %5207 }
 0x98b   :  { %v5288_v19 = vsel %vm5286_vm3, %v5271_v32, %v5208_v7  ;;  %v2826_v32 = vmul.f32 %v11928_v47, %v11860_v1  ;;  %v5270_v7 = vsel %vm5269_vm4, %v5253_v25, %v5142_v55  ;;  %v11937_v1 = vld [vmem:[#allocation6_spill] sm:$0xff]  ;;  %v5255_v25 = vsel %vm193_vm0, %v5015_v36, %v10288_v60  ;;  %v11940_v47 = vld [vmem:[#allocation107_spill] sm:$0xff]  ;;  %v11946_v36 = vld [vmem:[#allocation29_spill] sm:$0xff] }
 0x98c   :  { %5304 = vst [vmem:[%s10581_s20 + $0x8] sm:$0xff] %v5288_v19  ;;  %v11929_v19 = vld [vmem:[#allocation68_spill] sm:$0xff]  ;;  %v2987_v55 = vadd.f32 %v11937_v1, %v2827_v53  ;;  %v5272_v9 = vsel %vm5269_vm4, %v5255_v25, %v5146_v34  ;;  %v11943_v53 = vld [vmem:[#allocation249_spill] sm:$0xff]  ;;  %v2591_v60 = vmul.f32 %v11945_v10, %v11944_v3  ;;  %v11950_v34 = vld [vmem:[#allocation166_spill] sm:$0xff] }
 0x98d   :  { %v2985_v42 = vadd.f32 %v11929_v19, %v2825_v50  ;;  %v2745_v50 = vadd.f32 %v11938_v52, %v2585_v22  ;;  %v2986_v57 = vadd.f32 %v11942_v8, %v2826_v32  ;;  %v2828_v22 = vmul.f32 %v11943_v53, %v11640_v15  ;;  %v11948_v52 = vld [vmem:[#allocation30_spill] sm:$0xff] }
 0x98e   :  { %v5206_v24 = vpop.permute.xlu0 %5205  ;;  %v2746_v32 = vadd.f32 %v11949_v16, %v2586_v29  ;;  %v5273_v29 = vsel %vm5269_vm4, %v5256_v20, %v10316_v0  ;;  %v11956_v0 = vld [vmem:[#allocation110_spill] sm:$0xff] }
 0x98f   :  { %v5287_v41 = vsel %vm5286_vm3, %v5270_v7, %v5206_v24  ;;  %v2747_v7 = vadd.f32 %v11940_v47, %v2587_v35  ;;  %v11941_v24 = vld [vmem:[#allocation171_spill] sm:$0xff]  ;;  %v11947_v35 = vld [vmem:[#allocation98_spill] sm:$0xff] }
 0x990   :  { %5303 = vst [vmem:[%s10581_s20] sm:$0xff] %v5287_v41  ;;  %v2829_v19 = vmul.f32 %v11941_v24, %v11872_v26  ;;  %v5017_v41 = vadd.f32 %v2985_v42, %v2745_v50  ;;  %v2589_v1 = vmul.f32 %v11947_v35, %v11946_v36  ;;  %v2831_v42 = vmul.f32 %v11950_v34, %v11641_v43  ;;  %v11960_v36 = vld [vmem:[#allocation16_spill] sm:$0xff] }
 0x991   :  { %v5019_v15 = vadd.f32 %v2987_v55, %v2747_v7  ;;  %v5018_v47 = vadd.f32 %v2986_v57, %v2746_v32  ;;  %v11953_v55 = vld [vmem:[#allocation250_spill] sm:$0xff]  ;;  %v11955_v57 = vld [vmem:[#allocation15_spill] sm:$0xff] }
 0x992   :  { %v5210_v48 = vpop.permute.xlu0 %5209  ;;  %v2989_v26 = vadd.f32 %v11948_v52, %v2829_v19  ;;  %v5257_v50 = vsel %vm193_vm0, %v5017_v41, %v10292_v6  ;;  %v2749_v25 = vadd.f32 %v11951_v59, %v2589_v1  ;;  %v2830_v7 = vmul.f32 %v11953_v55, %v11642_v17  ;;  %v11957_v17 = vld [vmem:[#allocation182_spill] sm:$0xff]  ;;  %v11961_v1 = vld [vmem:[#allocation251_spill] sm:$0xff]  ;;  %v11964_v59 = vld [vmem:[#allocation77_spill] sm:$0xff] }
 0x993   :  { %v5289_v4 = vsel %vm5286_vm3, %v5272_v9, %v5210_v48  ;;  %v5274_v24 = vsel %vm5269_vm4, %v5257_v50, %v10320_v51  ;;  %v11952_v9 = vld [vmem:[#allocation135_spill] sm:$0xff]  ;;  %v11954_v48 = vld [vmem:[#allocation14_spill] sm:$0xff]  ;;  %v2991_v11 = vadd.f32 %v11955_v57, %v2831_v42  ;;  %v2748_v51 = vadd.f32 %v11956_v0, %v2588_v31  ;;  %v11962_v42 = vld [vmem:[#allocation64_spill] sm:$0xff] }
 0x994   :  { %5305 = vst [vmem:[%s10581_s20 + $0x10] sm:$0xff] %v5289_v4  ;;  %v2988_v43 = vadd.f32 %v11952_v9, %v2828_v22  ;;  %v2751_v41 = vadd.f32 %v11954_v48, %v2591_v60  ;;  %v5021_v53 = vadd.f32 %v2989_v26, %v2749_v25  ;;  %v11958_v22 = vld [vmem:[#allocation231_spill] sm:$0xff]  ;;  %v5258_v3 = vsel %vm193_vm0, %v5018_v47, %v10294_v58  ;;  %v11959_v60 = vld [vmem:[#allocation161_spill] sm:$0xff]  ;;  %v11966_v47 = vld [vmem:[#allocation232_spill] sm:$0xff] }
 0x995   :  { %v2590_v4 = vmul.f32 %v11958_v22, %v11957_v17  ;;  %v5259_v10 = vsel %vm193_vm0, %v5019_v15, %v10296_v30  ;;  %v2833_v35 = vmul.f32 %v11960_v36, %v11959_v60  ;;  %v2832_v52 = vmul.f32 %v11961_v1, %v11643_v46  ;;  %v11963_v50 = vld [vmem:[#allocation159_spill] sm:$0xff]  ;;  %v11965_v46 = vld [vmem:[#allocation50_spill] sm:$0xff]  ;;  %v11970_v55 = vld [vmem:[#allocation180_spill] sm:$0xff] }
 0x996   :  { %v5212_v19 = vpop.permute.xlu1 %5211  ;;  %v5214_v8 = vpop.permute.xlu0 %5213  ;;  %v5275_v26 = vsel %vm5269_vm4, %v5258_v3, %v10318_v54  ;;  %v5276_v31 = vsel %vm5269_vm4, %v5259_v10, %v10324_v44  ;;  %v5020_v34 = vadd.f32 %v2988_v43, %v2748_v51  ;;  %v2990_v58 = vadd.f32 %v11962_v42, %v2830_v7  ;;  %v11967_v54 = vld [vmem:[#allocation157_spill] sm:$0xff]  ;;  %v11968_v44 = vld [vmem:[#allocation8_spill] sm:$0xff]  ;;  %v11974_v22 = vld [vmem:[#allocation131_spill] sm:$0xff] }
 0x997   :  { %v5290_v63 = vsel %vm5286_vm3, %v5273_v29, %v5212_v19  ;;  %v5291_v6 = vsel %vm5286_vm3, %v5274_v24, %v5214_v8  ;;  %v5023_v15 = vadd.f32 %v2991_v11, %v2751_v41  ;;  %v2593_v25 = vmul.f32 %v11964_v59, %v11963_v50  ;;  %v11969_v19 = vld [vmem:[#allocation114_spill] sm:$0xff]  ;;  %v11972_v51 = vld [vmem:[#allocation252_spill] sm:$0xff]  ;;  %v11975_v3 = vld [vmem:[#allocation65_spill] sm:$0xff] }
 0x998   :  { %5306 = vst [vmem:[%s10581_s20 + $0x18] sm:$0xff] %v5290_v63  ;;  %5307 = vst [vmem:[%s10581_s20 + $0x20] sm:$0xff] %v5291_v6  ;;  %v2592_v29 = vmul.f32 %v11966_v47, %v11965_v46  ;;  %v2835_v24 = vmul.f32 %v11968_v44, %v11967_v54  ;;  %v2750_v8 = vadd.f32 %v11969_v19, %v2590_v4  ;;  %v11971_v63 = vld [vmem:[#allocation130_spill] sm:$0xff]  ;;  %v11981_v50 = vld [vmem:[#allocation253_spill] sm:$0xff] }
 0x999   :  { %v5260_v9 = vsel %vm193_vm0, %v5020_v34, %v10298_v39  ;;  %v5261_v43 = vsel %vm193_vm0, %v5021_v53, %v10300_v2  ;;  %v2993_v7 = vadd.f32 %v11970_v55, %v2833_v35  ;;  %v2992_v6 = vadd.f32 %v11971_v63, %v2832_v52  ;;  %v11973_v53 = vld [vmem:[#allocation156_spill] sm:$0xff]  ;;  %v11976_v60 = vld [vmem:[#allocation86_spill] sm:$0xff]  ;;  %v11979_v35 = vld [vmem:[#allocation233_spill] sm:$0xff] }
 0x99a   :  { %v5216_v16 = vpop.permute.xlu1 %5215  ;;  %v5218_v32 = vpop.permute.xlu0 %5217  ;;  %v5277_v48 = vsel %vm5269_vm4, %v5260_v9, %v10322_v27  ;;  %v5278_v41 = vsel %vm5269_vm4, %v5261_v43, %v10328_v56  ;;  %v5022_v0 = vadd.f32 %v2990_v58, %v2750_v8  ;;  %v2834_v17 = vmul.f32 %v11972_v51, %v11646_v62  ;;  %v11977_v62 = vld [vmem:[#allocation59_spill] sm:$0xff]  ;;  %v11978_v36 = vld [vmem:[#allocation58_spill] sm:$0xff]  ;;  %v11984_v46 = vld [vmem:[#allocation105_spill] sm:$0xff] }
 0x99b   :  { %v5292_v20 = vsel %vm5286_vm3, %v5275_v26, %v5216_v16  ;;  %v5293_v30 = vsel %vm5286_vm3, %v5276_v31, %v5218_v32  ;;  %v2595_v4 = vmul.f32 %v11974_v22, %v11973_v53  ;;  %v2753_v10 = vadd.f32 %v11975_v3, %v2593_v25  ;;  %v11985_v43 = vld [vmem:[#allocation200_spill] sm:$0xff] }
 0x99c   :  { %5308 = vst [vmem:[%s10581_s20 + $0x28] sm:$0xff] %v5292_v20  ;;  %5309 = vst [vmem:[%s10581_s20 + $0x30] sm:$0xff] %v5293_v30  ;;  %v2752_v27 = vadd.f32 %v11976_v60, %v2592_v29  ;;  %v2995_v56 = vadd.f32 %v11977_v62, %v2835_v24  ;;  %v2594_v1 = vmul.f32 %v11979_v35, %v11978_v36  ;;  %v11980_v20 = vld [vmem:[#allocation204_spill] sm:$0xff] }
 0x99d   :  { %v5262_v52 = vsel %vm193_vm0, %v5022_v0, %v10302_v28  ;;  %v5263_v26 = vsel %vm193_vm0, %v5023_v15, %v10304_v45  ;;  %v5025_v31 = vadd.f32 %v2993_v7, %v2753_v10  ;;  %v2994_v30 = vadd.f32 %v11980_v20, %v2834_v17  ;;  %v11982_v45 = vld [vmem:[#allocation24_spill] sm:$0xff] }
 0x99e   :  { %v5220_v57 = vpop.permute.xlu1 %5219  ;;  %v5222_v11 = vpop.permute.xlu0 %5221  ;;  %v5024_v16 = vadd.f32 %v2992_v6, %v2752_v27  ;;  %v5279_v32 = vsel %vm5269_vm4, %v5262_v52, %v10326_v21  ;;  %v5280_v34 = vsel %vm5269_vm4, %v5263_v26, %v10332_v49  ;;  %v2836_v59 = vmul.f32 %v11981_v50, %v11901_v5  ;;  %v11983_v21 = vld [vmem:[#allocation203_spill] sm:$0xff] }
 0x99f   :  { %v5294_v39 = vsel %vm5286_vm3, %v5277_v48, %v5220_v57  ;;  %v5295_v2 = vsel %vm5286_vm3, %v5278_v41, %v5222_v11  ;;  %v2755_v15 = vadd.f32 %v11982_v45, %v2595_v4  ;;  %v2754_v49 = vadd.f32 %v11983_v21, %v2594_v1 }
 0x9a0   :  { %5310 = vst [vmem:[%s10581_s20 + $0x38] sm:$0xff] %v5294_v39  ;;  %5311 = vst [vmem:[%s10581_s20 + $0x40] sm:$0xff] %v5295_v2  ;;  %v2596_v47 = vmul.f32 %v11984_v46, %v11883_v37  ;;  %v5264_v5 = vsel %vm193_vm0, %v5024_v16, %v10306_v61  ;;  %v5265_v29 = vsel %vm193_vm0, %v5025_v31, %v10308_v23  ;;  %v11986_v61 = vld [vmem:[#allocation199_spill] sm:$0xff] }
 0x9a1   :  { %v5027_v54 = vadd.f32 %v2995_v56, %v2755_v15  ;;  %v5281_v44 = vsel %vm5269_vm4, %v5264_v5, %v10330_v33  ;;  %v5282_v24 = vsel %vm5269_vm4, %v5265_v29, %v10343_v40  ;;  %v5026_v9 = vadd.f32 %v2994_v30, %v2754_v49 }
 0x9a2   :  { %v5224_v42 = vpop.permute.xlu1 %5223  ;;  %v5226_v58 = vpop.permute.xlu0 %5225  ;;  %v2996_v55 = vadd.f32 %v11985_v43, %v2836_v59  ;;  %v2756_v23 = vadd.f32 %v11986_v61, %v2596_v47 }
 0x9a3   :  { %v5296_v28 = vsel %vm5286_vm3, %v5279_v32, %v5224_v42  ;;  %v5297_v25 = vsel %vm5286_vm3, %v5280_v34, %v5226_v58  ;;  %v5266_v33 = vsel %vm193_vm0, %v5026_v9, %v10310_v14  ;;  %v5267_v40 = vsel %vm193_vm0, %v5027_v54, %v10314_v12  ;;  %v11987_v12 = vld [vmem:[#allocation18_spill] sm:$0xff] }
 0x9a4   :  { %5312 = vst [vmem:[%s10581_s20 + $0x48] sm:$0xff] %v5296_v28  ;;  %5313 = vst [vmem:[%s10581_s20 + $0x50] sm:$0xff] %v5297_v25  ;;  %v5283_v63 = vsel %vm5269_vm4, %v5266_v33, %v10334_v18  ;;  %v5284_v6 = vsel %vm5269_vm4, %v5267_v40, %v10358_v38  ;;  %v5028_v57 = vadd.f32 %v2996_v55, %v2756_v23 }
 0x9a6   :  { %v5228_v19 = vpop.permute.xlu1 %5227  ;;  %v5230_v8 = vpop.permute.xlu0 %5229  ;;  %v5268_v14 = vsel %vm193_vm0, %v5028_v57, %v10312_v13 }
 0x9a7   :  { %v5298_v37 = vsel %vm5286_vm3, %v5281_v44, %v5228_v19  ;;  %v5299_v7 = vsel %vm5286_vm3, %v5282_v24, %v5230_v8  ;;  %v5285_v18 = vsel %vm5269_vm4, %v5268_v14, %v11987_v12 }
 0x9a8   :  { %5314 = vst [vmem:[%s10581_s20 + $0x58] sm:$0xff] %v5298_v37  ;;  %5315 = vst [vmem:[%s10581_s20 + $0x60] sm:$0xff] %v5299_v7 }
 0x9aa   :  { %v5232_v48 = vpop.permute.xlu1 %5231  ;;  %v5234_v41 = vpop.permute.xlu0 %5233 }
 0x9ab   :  { %v5300_v11 = vsel %vm5286_vm3, %v5283_v63, %v5232_v48  ;;  %v5301_v0 = vsel %vm5286_vm3, %v5284_v6, %v5234_v41 }
 0x9ac   :  { %5316 = vst [vmem:[%s10581_s20 + $0x68] sm:$0xff] %v5300_v11  ;;  %5317 = vst [vmem:[%s10581_s20 + $0x70] sm:$0xff] %v5301_v0 }
 0x9ae   :  { %v5236_v38 = vpop.permute.xlu1 %5235 }
 0x9af   :  { %v5302_v51 = vsel %vm5286_vm3, %v5285_v18, %v5236_v38 }
 0x9b0   :  { %5318 = vst [vmem:[%s10581_s20 + $0x78] sm:$0xff] %v5302_v51 }

</bundles_post_ra>
